<compile_context>
chip_gen: v6e
topology: v6e:2x2x1
jax: 0.10.0
libtpu: 0.0.40
codegen_flags: <defaults>
</compile_context>

<pallas_src>
import functools

import jax
import jax.numpy as jnp
from jax.experimental import pallas as pl
from jax.experimental.pallas import tpu as pltpu


# ----------------------------------------------------------------------------
# Pallas kernels
# ----------------------------------------------------------------------------
def _gemm_bias_act_kernel(p_ref, w_ref, b_ref, o_ref, *, relu):
    # p_ref: (M, Kc)  bf16 im2col patches for one batch element
    # w_ref: (Kc, Cout) bf16 conv weights with the BN scale folded in
    # b_ref: (1, Cout)  f32 folded BN bias (zeros if no BN)
    # o_ref: (M, Cout)  f32 flat output (reshaped to H,W,Cout in the wrapper)
    y = jnp.dot(p_ref[...], w_ref[...], preferred_element_type=jnp.float32)
    y = y + b_ref[...]
    if relu:
        y = jnp.maximum(y, 0.0)
    o_ref[...] = y.astype(o_ref.dtype)


def _residual_pw_kernel(x_ref, r_ref, w_ref, b_ref, o_ref):
    # Fused: (avg-pooled x4 + residual x1) -> 1x1 conv (BN5-scaled) + bias + ReLU
    # x_ref, r_ref: (M, C) f32;  w_ref: (C, Cout) bf16;  b_ref: (1, Cout) f32
    s = x_ref[...] + r_ref[...]                       # residual add in f32
    y = jnp.dot(s.astype(w_ref.dtype), w_ref[...],
                preferred_element_type=jnp.float32)
    y = jnp.maximum(y + b_ref[...], 0.0)
    o_ref[...] = y.astype(o_ref.dtype)


# ----------------------------------------------------------------------------
# Conv wrappers (im2col + pallas_call)
# ----------------------------------------------------------------------------
def _im2col(x, K):
    """x: (N,H,W,C) -> replicate-padded im2col patches (N, H*W, K*K*C)."""
    N, H, W, C = x.shape
    pad = (K - 1) // 2
    if pad:
        # replicate ('edge') padding == PyTorch padding_mode='replicate'
        x = jnp.pad(x, ((0, 0), (pad, pad), (pad, pad), (0, 0)), mode="edge")
    cols = []
    for ky in range(K):
        for kx in range(K):
            cols.append(x[:, ky:ky + H, kx:kx + W, :])
    patches = jnp.concatenate(cols, axis=-1)          # (N, H, W, K*K*C)
    return patches.reshape(N, H * W, K * K * C)


def conv2d_bn_relu(x, w, scale, bias, *, relu):
    """x: (N,H,W,Cin) f32.  w: (K,K,Cin,Cout).  Stride 1, replicate pad, no conv bias."""
    N, H, W, Cin = x.shape
    K = w.shape[0]
    Cout = w.shape[-1]
    M, Kc = H * W, K * K * Cin

    patches = _im2col(x, K).astype(jnp.bfloat16)                     # (N, M, Kc)
    w2d = (w.reshape(Kc, Cout) * scale[None, :]).astype(jnp.bfloat16)  # BN scale folded
    b2d = bias.reshape(1, Cout).astype(jnp.float32)

    kernel = functools.partial(_gemm_bias_act_kernel, relu=relu)
    out = pl.pallas_call(
        kernel,
        out_shape=jax.ShapeDtypeStruct((N, M, Cout), jnp.float32),
        grid=(N,),
        in_specs=[
            pl.BlockSpec((None, M, Kc), lambda n: (n, 0, 0)),
            pl.BlockSpec((Kc, Cout), lambda n: (0, 0)),
            pl.BlockSpec((1, Cout), lambda n: (0, 0)),
        ],
        out_specs=pl.BlockSpec((None, M, Cout), lambda n: (n, 0, 0)),
        compiler_params=pltpu.CompilerParams(dimension_semantics=("parallel",)),
    )(patches, w2d, b2d)
    return out.reshape(N, H, W, Cout)


def residual_pointwise_bn_relu(xp, x1, w, scale, bias):
    """Fused: relu5(bn5(conv5(xp + x1))) with conv5 a 1x1 conv (no bias)."""
    N, H, W, C = xp.shape
    Cout = w.shape[-1]
    M = H * W
    w2d = (w.reshape(C, Cout) * scale[None, :]).astype(jnp.bfloat16)
    b2d = bias.reshape(1, Cout).astype(jnp.float32)

    out = pl.pallas_call(
        _residual_pw_kernel,
        out_shape=jax.ShapeDtypeStruct((N, M, Cout), jnp.float32),
        grid=(N,),
        in_specs=[
            pl.BlockSpec((None, M, C), lambda n: (n, 0, 0)),
            pl.BlockSpec((None, M, C), lambda n: (n, 0, 0)),
            pl.BlockSpec((C, Cout), lambda n: (0, 0)),
            pl.BlockSpec((1, Cout), lambda n: (0, 0)),
        ],
        out_specs=pl.BlockSpec((None, M, Cout), lambda n: (n, 0, 0)),
        compiler_params=pltpu.CompilerParams(dimension_semantics=("parallel",)),
    )(xp.reshape(N, M, C), x1.reshape(N, M, C), w2d, b2d)
    return out.reshape(N, H, W, Cout)


# ----------------------------------------------------------------------------
# JAX glue ops (not the matmul hot path)
# ----------------------------------------------------------------------------
def upsample_bilinear_x2_align_corners(x):
    """PyTorch nn.Upsample(scale_factor=2, mode='bilinear', align_corners=True)."""
    # TODO(synk): gather-based bilinear resample kept in plain JAX (no clean
    # rectangular-BlockSpec expression); it fuses under jit and is tiny here.
    N, H, W, C = x.shape
    H2, W2 = 2 * H, 2 * W
    ys = jnp.arange(H2, dtype=jnp.float32) * (H - 1) / (H2 - 1)
    xs = jnp.arange(W2, dtype=jnp.float32) * (W - 1) / (W2 - 1)
    y0 = jnp.floor(ys).astype(jnp.int32)
    y1 = jnp.minimum(y0 + 1, H - 1)
    wy = (ys - y0.astype(jnp.float32))[None, :, None, None]
    x0 = jnp.floor(xs).astype(jnp.int32)
    x1 = jnp.minimum(x0 + 1, W - 1)
    wx = (xs - x0.astype(jnp.float32))[None, None, :, None]
    top = x[:, y0, :, :] * (1.0 - wy) + x[:, y1, :, :] * wy        # (N,H2,W,C)
    out = top[:, :, x0, :] * (1.0 - wx) + top[:, :, x1, :] * wx    # (N,H2,W2,C)
    return out


def avg_pool_2x2(x):
    # TODO(synk): 2x2 avg-pool kept as XLA reshape+mean (fuses under jit);
    # H and W are assumed even (true for this module's shapes).
    N, H, W, C = x.shape
    return x.reshape(N, H // 2, 2, W // 2, 2, C).mean(axis=(2, 4))


# ----------------------------------------------------------------------------
# Parameters (deterministic, in-script)
# ----------------------------------------------------------------------------
def _fold_bn(gamma, beta, mean, var, eps=1e-5):
    scale = gamma / jnp.sqrt(var + eps)
    bias = beta - mean * scale
    return scale, bias


def init_params(key, in_channels):
    keys = jax.random.split(key, 9)

    def conv_w(k, K, cin, cout):
        w = jax.random.normal(k, (K, K, cin, cout), jnp.float32)
        return w * (2.0 / (K * K * cin)) ** 0.5

    def bn_p(k, c):
        k1, k2, k3, k4 = jax.random.split(k, 4)
        gamma = 1.0 + 0.1 * jax.random.normal(k1, (c,), jnp.float32)
        beta = 0.1 * jax.random.normal(k2, (c,), jnp.float32)
        mean = 0.1 * jax.random.normal(k3, (c,), jnp.float32)
        var = 1.0 + 0.1 * jax.random.uniform(k4, (c,), jnp.float32)
        return _fold_bn(gamma, beta, mean, var)

    return {
        "w1": conv_w(keys[0], 3, in_channels, 64), "bn1": bn_p(keys[1], 64),
        "w2": conv_w(keys[2], 3, 64, 32),
        "w3": conv_w(keys[3], 3, 32, 32), "bn3": bn_p(keys[4], 32),
        "w4": conv_w(keys[5], 5, 32, 32), "bn4": bn_p(keys[6], 32),
        "w5": conv_w(keys[7], 1, 32, 32), "bn5": bn_p(keys[8], 32),
    }


# ----------------------------------------------------------------------------
# Encoder forward (mirrors the PyTorch module)
# ----------------------------------------------------------------------------
@jax.jit
def encoder_forward(params, x_nchw):
    x = jnp.transpose(x_nchw, (0, 2, 3, 1)).astype(jnp.float32)        # -> NHWC
    s1, b1 = params["bn1"]
    x = conv2d_bn_relu(x, params["w1"], s1, b1, relu=True)             # relu1(bn1(conv1))
    ones32 = jnp.ones((32,), jnp.float32)
    zeros32 = jnp.zeros((32,), jnp.float32)
    x1 = conv2d_bn_relu(x, params["w2"], ones32, zeros32, relu=False)  # conv2
    x = upsample_bilinear_x2_align_corners(x1)                         # upsample(x1)
    s3, b3 = params["bn3"]
    x = conv2d_bn_relu(x, params["w3"], s3, b3, relu=True)             # relu3(bn3(conv3))
    s4, b4 = params["bn4"]
    x = conv2d_bn_relu(x, params["w4"], s4, b4, relu=True)             # relu4(bn4(conv4))
    xp = avg_pool_2x2(x)                                               # avgpool
    s5, b5 = params["bn5"]
    x = residual_pointwise_bn_relu(xp, x1, params["w5"], s5, b5)       # relu5(bn5(conv5(xp+x1)))
    return jnp.transpose(x, (0, 3, 1, 2))                              # -> NCHW


if __name__ == "__main__":
    key = jax.random.PRNGKey(0)
    k_in, k_par = jax.random.split(key)
    N, Cin, H, W = 2, 4, 16, 16
    x = jax.random.normal(k_in, (N, Cin, H, W), jnp.float32)
    params = init_params(k_par, Cin)

    out = encoder_forward(params, x)
    out = jax.block_until_ready(out)

    assert out.shape == (N, 32, H, W), out.shape
    assert bool(jnp.all(jnp.isfinite(out)))
    print("KERNEL_OK")
</pallas_src>

<mosaic_0001>
module attributes {stable_mosaic.version = 11 : i64} {
  func.func @_gemm_bias_act_kernel(%arg0: i32, %arg1: memref<1x256x36xbf16, #tpu.memory_space<vmem>>, %arg2: memref<36x64xbf16, #tpu.memory_space<vmem>>, %arg3: memref<1x64xf32, #tpu.memory_space<vmem>>, %arg4: memref<1x256x64xf32, #tpu.memory_space<vmem>>) attributes {dimension_semantics = [#tpu.dimension_semantics<parallel>], iteration_bounds = array<i64: 2>, scalar_prefetch = 0 : i64, scratch_operands = 0 : i64, tpu.core_type = #tpu.core_type<tc>, window_params = [{transform_indices = @transform_0, window_bounds = array<i64: 1, 256, 36>}, {pipeline_mode = #tpu.pipeline_mode<synchronous>, transform_indices = @transform_1, window_bounds = array<i64: 36, 64>}, {pipeline_mode = #tpu.pipeline_mode<synchronous>, transform_indices = @transform_2, window_bounds = array<i64: 1, 64>}, {transform_indices = @transform_3, window_bounds = array<i64: 1, 256, 64>}]} {
    %c0 = arith.constant 0 : index
    %c0_0 = arith.constant 0 : index
    %c0_1 = arith.constant 0 : index
    %0 = vector.load %arg1[%c0, %c0_0, %c0_1] : memref<1x256x36xbf16, #tpu.memory_space<vmem>>, vector<1x256x36xbf16>
    %1 = vector.shape_cast %0 : vector<1x256x36xbf16> to vector<256x36xbf16>
    %c0_2 = arith.constant 0 : index
    %c0_3 = arith.constant 0 : index
    %2 = vector.load %arg2[%c0_2, %c0_3] : memref<36x64xbf16, #tpu.memory_space<vmem>>, vector<36x64xbf16>
    %cst = arith.constant dense<0.000000e+00> : vector<256x64xf32>
    %3 = tpu.matmul %1, %2, %cst {dimension_numbers = #tpu.dot_dimension_numbers<[1], [0], [0], [1], [0, 0, 1, 1], [], []>} : vector<256x36xbf16>, vector<36x64xbf16>, vector<256x64xf32> -> vector<256x64xf32>
    %c0_4 = arith.constant 0 : index
    %c0_5 = arith.constant 0 : index
    %4 = vector.load %arg3[%c0_4, %c0_5] : memref<1x64xf32, #tpu.memory_space<vmem>>, vector<1x64xf32>
    %5 = vector.broadcast %4 : vector<1x64xf32> to vector<256x64xf32>
    %6 = arith.addf %3, %5 : vector<256x64xf32>
    %cst_6 = arith.constant 0.000000e+00 : f32
    %7 = vector.broadcast %cst_6 : f32 to vector<256x64xf32>
    %8 = arith.maximumf %6, %7 : vector<256x64xf32>
    %c0_7 = arith.constant 0 : index
    %c0_8 = arith.constant 0 : index
    %c0_9 = arith.constant 0 : index
    %9 = vector.load %arg4[%c0_7, %c0_8, %c0_9] : memref<1x256x64xf32, #tpu.memory_space<vmem>>, vector<1x256x64xf32>
    %10 = vector.shape_cast %9 : vector<1x256x64xf32> to vector<256x64xf32>
    %11 = vector.shape_cast %8 : vector<256x64xf32> to vector<1x256x64xf32>
    tpu.vector_store %arg4[%c0_7, %c0_8, %c0_9], %11 {strides = array<i32>} : memref<1x256x64xf32, #tpu.memory_space<vmem>>, vector<1x256x64xf32>,
    return
  }
  func.func @transform_0(%arg0: i32) -> (i32, i32, i32) {
    %c0_i32 = arith.constant 0 : i32
    %c0_i32_0 = arith.constant 0 : i32
    %c0_i32_1 = arith.constant 0 : i32
    return %arg0, %c0_i32, %c0_i32_0 : i32, i32, i32
  }
  func.func @transform_1(%arg0: i32) -> (i32, i32) {
    %c0_i32 = arith.constant 0 : i32
    %c0_i32_0 = arith.constant 0 : i32
    %c0_i32_1 = arith.constant 0 : i32
    return %c0_i32, %c0_i32_0 : i32, i32
  }
  func.func @transform_2(%arg0: i32) -> (i32, i32) {
    %c0_i32 = arith.constant 0 : i32
    %c0_i32_0 = arith.constant 0 : i32
    %c0_i32_1 = arith.constant 0 : i32
    return %c0_i32, %c0_i32_0 : i32, i32
  }
  func.func @transform_3(%arg0: i32) -> (i32, i32, i32) {
    %c0_i32 = arith.constant 0 : i32
    %c0_i32_0 = arith.constant 0 : i32
    %c0_i32_1 = arith.constant 0 : i32
    return %arg0, %c0_i32, %c0_i32_0 : i32, i32, i32
  }
}

module attributes {stable_mosaic.version = 11 : i64} {
  func.func @_gemm_bias_act_kernel(%arg0: i32, %arg1: memref<1x256x576xbf16, #tpu.memory_space<vmem>>, %arg2: memref<576x32xbf16, #tpu.memory_space<vmem>>, %arg3: memref<1x32xf32, #tpu.memory_space<vmem>>, %arg4: memref<1x256x32xf32, #tpu.memory_space<vmem>>) attributes {dimension_semantics = [#tpu.dimension_semantics<parallel>], iteration_bounds = array<i64: 2>, scalar_prefetch = 0 : i64, scratch_operands = 0 : i64, tpu.core_type = #tpu.core_type<tc>, window_params = [{transform_indices = @transform_0, window_bounds = array<i64: 1, 256, 576>}, {pipeline_mode = #tpu.pipeline_mode<synchronous>, transform_indices = @transform_1, window_bounds = array<i64: 576, 32>}, {pipeline_mode = #tpu.pipeline_mode<synchronous>, transform_indices = @transform_2, window_bounds = array<i64: 1, 32>}, {transform_indices = @transform_3, window_bounds = array<i64: 1, 256, 32>}]} {
    %c0 = arith.constant 0 : index
    %c0_0 = arith.constant 0 : index
    %c0_1 = arith.constant 0 : index
    %0 = vector.load %arg1[%c0, %c0_0, %c0_1] : memref<1x256x576xbf16, #tpu.memory_space<vmem>>, vector<1x256x576xbf16>
    %1 = vector.shape_cast %0 : vector<1x256x576xbf16> to vector<256x576xbf16>
    %c0_2 = arith.constant 0 : index
    %c0_3 = arith.constant 0 : index
    %2 = vector.load %arg2[%c0_2, %c0_3] : memref<576x32xbf16, #tpu.memory_space<vmem>>, vector<576x32xbf16>
    %cst = arith.constant dense<0.000000e+00> : vector<256x32xf32>
    %3 = tpu.matmul %1, %2, %cst {dimension_numbers = #tpu.dot_dimension_numbers<[1], [0], [0], [1], [0, 0, 1, 1], [], []>} : vector<256x576xbf16>, vector<576x32xbf16>, vector<256x32xf32> -> vector<256x32xf32>
    %c0_4 = arith.constant 0 : index
    %c0_5 = arith.constant 0 : index
    %4 = vector.load %arg3[%c0_4, %c0_5] : memref<1x32xf32, #tpu.memory_space<vmem>>, vector<1x32xf32>
    %5 = vector.broadcast %4 : vector<1x32xf32> to vector<256x32xf32>
    %6 = arith.addf %3, %5 : vector<256x32xf32>
    %c0_6 = arith.constant 0 : index
    %c0_7 = arith.constant 0 : index
    %c0_8 = arith.constant 0 : index
    %7 = vector.load %arg4[%c0_6, %c0_7, %c0_8] : memref<1x256x32xf32, #tpu.memory_space<vmem>>, vector<1x256x32xf32>
    %8 = vector.shape_cast %7 : vector<1x256x32xf32> to vector<256x32xf32>
    %9 = vector.shape_cast %6 : vector<256x32xf32> to vector<1x256x32xf32>
    tpu.vector_store %arg4[%c0_6, %c0_7, %c0_8], %9 {strides = array<i32>} : memref<1x256x32xf32, #tpu.memory_space<vmem>>, vector<1x256x32xf32>,
    return
  }
  func.func @transform_0(%arg0: i32) -> (i32, i32, i32) {
    %c0_i32 = arith.constant 0 : i32
    %c0_i32_0 = arith.constant 0 : i32
    %c0_i32_1 = arith.constant 0 : i32
    return %arg0, %c0_i32, %c0_i32_0 : i32, i32, i32
  }
  func.func @transform_1(%arg0: i32) -> (i32, i32) {
    %c0_i32 = arith.constant 0 : i32
    %c0_i32_0 = arith.constant 0 : i32
    %c0_i32_1 = arith.constant 0 : i32
    return %c0_i32, %c0_i32_0 : i32, i32
  }
  func.func @transform_2(%arg0: i32) -> (i32, i32) {
    %c0_i32 = arith.constant 0 : i32
    %c0_i32_0 = arith.constant 0 : i32
    %c0_i32_1 = arith.constant 0 : i32
    return %c0_i32, %c0_i32_0 : i32, i32
  }
  func.func @transform_3(%arg0: i32) -> (i32, i32, i32) {
    %c0_i32 = arith.constant 0 : i32
    %c0_i32_0 = arith.constant 0 : i32
    %c0_i32_1 = arith.constant 0 : i32
    return %arg0, %c0_i32, %c0_i32_0 : i32, i32, i32
  }
}

module attributes {stable_mosaic.version = 11 : i64} {
  func.func @_gemm_bias_act_kernel(%arg0: i32, %arg1: memref<1x1024x288xbf16, #tpu.memory_space<vmem>>, %arg2: memref<288x32xbf16, #tpu.memory_space<vmem>>, %arg3: memref<1x32xf32, #tpu.memory_space<vmem>>, %arg4: memref<1x1024x32xf32, #tpu.memory_space<vmem>>) attributes {dimension_semantics = [#tpu.dimension_semantics<parallel>], iteration_bounds = array<i64: 2>, scalar_prefetch = 0 : i64, scratch_operands = 0 : i64, tpu.core_type = #tpu.core_type<tc>, window_params = [{transform_indices = @transform_0, window_bounds = array<i64: 1, 1024, 288>}, {pipeline_mode = #tpu.pipeline_mode<synchronous>, transform_indices = @transform_1, window_bounds = array<i64: 288, 32>}, {pipeline_mode = #tpu.pipeline_mode<synchronous>, transform_indices = @transform_2, window_bounds = array<i64: 1, 32>}, {transform_indices = @transform_3, window_bounds = array<i64: 1, 1024, 32>}]} {
    %c0 = arith.constant 0 : index
    %c0_0 = arith.constant 0 : index
    %c0_1 = arith.constant 0 : index
    %0 = vector.load %arg1[%c0, %c0_0, %c0_1] : memref<1x1024x288xbf16, #tpu.memory_space<vmem>>, vector<1x1024x288xbf16>
    %1 = vector.shape_cast %0 : vector<1x1024x288xbf16> to vector<1024x288xbf16>
    %c0_2 = arith.constant 0 : index
    %c0_3 = arith.constant 0 : index
    %2 = vector.load %arg2[%c0_2, %c0_3] : memref<288x32xbf16, #tpu.memory_space<vmem>>, vector<288x32xbf16>
    %cst = arith.constant dense<0.000000e+00> : vector<1024x32xf32>
    %3 = tpu.matmul %1, %2, %cst {dimension_numbers = #tpu.dot_dimension_numbers<[1], [0], [0], [1], [0, 0, 1, 1], [], []>} : vector<1024x288xbf16>, vector<288x32xbf16>, vector<1024x32xf32> -> vector<1024x32xf32>
    %c0_4 = arith.constant 0 : index
    %c0_5 = arith.constant 0 : index
    %4 = vector.load %arg3[%c0_4, %c0_5] : memref<1x32xf32, #tpu.memory_space<vmem>>, vector<1x32xf32>
    %5 = vector.broadcast %4 : vector<1x32xf32> to vector<1024x32xf32>
    %6 = arith.addf %3, %5 : vector<1024x32xf32>
    %cst_6 = arith.constant 0.000000e+00 : f32
    %7 = vector.broadcast %cst_6 : f32 to vector<1024x32xf32>
    %8 = arith.maximumf %6, %7 : vector<1024x32xf32>
    %c0_7 = arith.constant 0 : index
    %c0_8 = arith.constant 0 : index
    %c0_9 = arith.constant 0 : index
    %9 = vector.load %arg4[%c0_7, %c0_8, %c0_9] : memref<1x1024x32xf32, #tpu.memory_space<vmem>>, vector<1x1024x32xf32>
    %10 = vector.shape_cast %9 : vector<1x1024x32xf32> to vector<1024x32xf32>
    %11 = vector.shape_cast %8 : vector<1024x32xf32> to vector<1x1024x32xf32>
    tpu.vector_store %arg4[%c0_7, %c0_8, %c0_9], %11 {strides = array<i32>} : memref<1x1024x32xf32, #tpu.memory_space<vmem>>, vector<1x1024x32xf32>,
    return
  }
  func.func @transform_0(%arg0: i32) -> (i32, i32, i32) {
    %c0_i32 = arith.constant 0 : i32
    %c0_i32_0 = arith.constant 0 : i32
    %c0_i32_1 = arith.constant 0 : i32
    return %arg0, %c0_i32, %c0_i32_0 : i32, i32, i32
  }
  func.func @transform_1(%arg0: i32) -> (i32, i32) {
    %c0_i32 = arith.constant 0 : i32
    %c0_i32_0 = arith.constant 0 : i32
    %c0_i32_1 = arith.constant 0 : i32
    return %c0_i32, %c0_i32_0 : i32, i32
  }
  func.func @transform_2(%arg0: i32) -> (i32, i32) {
    %c0_i32 = arith.constant 0 : i32
    %c0_i32_0 = arith.constant 0 : i32
    %c0_i32_1 = arith.constant 0 : i32
    return %c0_i32, %c0_i32_0 : i32, i32
  }
  func.func @transform_3(%arg0: i32) -> (i32, i32, i32) {
    %c0_i32 = arith.constant 0 : i32
    %c0_i32_0 = arith.constant 0 : i32
    %c0_i32_1 = arith.constant 0 : i32
    return %arg0, %c0_i32, %c0_i32_0 : i32, i32, i32
  }
}

module attributes {stable_mosaic.version = 11 : i64} {
  func.func @_gemm_bias_act_kernel(%arg0: i32, %arg1: memref<1x1024x800xbf16, #tpu.memory_space<vmem>>, %arg2: memref<800x32xbf16, #tpu.memory_space<vmem>>, %arg3: memref<1x32xf32, #tpu.memory_space<vmem>>, %arg4: memref<1x1024x32xf32, #tpu.memory_space<vmem>>) attributes {dimension_semantics = [#tpu.dimension_semantics<parallel>], iteration_bounds = array<i64: 2>, scalar_prefetch = 0 : i64, scratch_operands = 0 : i64, tpu.core_type = #tpu.core_type<tc>, window_params = [{transform_indices = @transform_0, window_bounds = array<i64: 1, 1024, 800>}, {pipeline_mode = #tpu.pipeline_mode<synchronous>, transform_indices = @transform_1, window_bounds = array<i64: 800, 32>}, {pipeline_mode = #tpu.pipeline_mode<synchronous>, transform_indices = @transform_2, window_bounds = array<i64: 1, 32>}, {transform_indices = @transform_3, window_bounds = array<i64: 1, 1024, 32>}]} {
    %c0 = arith.constant 0 : index
    %c0_0 = arith.constant 0 : index
    %c0_1 = arith.constant 0 : index
    %0 = vector.load %arg1[%c0, %c0_0, %c0_1] : memref<1x1024x800xbf16, #tpu.memory_space<vmem>>, vector<1x1024x800xbf16>
    %1 = vector.shape_cast %0 : vector<1x1024x800xbf16> to vector<1024x800xbf16>
    %c0_2 = arith.constant 0 : index
    %c0_3 = arith.constant 0 : index
    %2 = vector.load %arg2[%c0_2, %c0_3] : memref<800x32xbf16, #tpu.memory_space<vmem>>, vector<800x32xbf16>
    %cst = arith.constant dense<0.000000e+00> : vector<1024x32xf32>
    %3 = tpu.matmul %1, %2, %cst {dimension_numbers = #tpu.dot_dimension_numbers<[1], [0], [0], [1], [0, 0, 1, 1], [], []>} : vector<1024x800xbf16>, vector<800x32xbf16>, vector<1024x32xf32> -> vector<1024x32xf32>
    %c0_4 = arith.constant 0 : index
    %c0_5 = arith.constant 0 : index
    %4 = vector.load %arg3[%c0_4, %c0_5] : memref<1x32xf32, #tpu.memory_space<vmem>>, vector<1x32xf32>
    %5 = vector.broadcast %4 : vector<1x32xf32> to vector<1024x32xf32>
    %6 = arith.addf %3, %5 : vector<1024x32xf32>
    %cst_6 = arith.constant 0.000000e+00 : f32
    %7 = vector.broadcast %cst_6 : f32 to vector<1024x32xf32>
    %8 = arith.maximumf %6, %7 : vector<1024x32xf32>
    %c0_7 = arith.constant 0 : index
    %c0_8 = arith.constant 0 : index
    %c0_9 = arith.constant 0 : index
    %9 = vector.load %arg4[%c0_7, %c0_8, %c0_9] : memref<1x1024x32xf32, #tpu.memory_space<vmem>>, vector<1x1024x32xf32>
    %10 = vector.shape_cast %9 : vector<1x1024x32xf32> to vector<1024x32xf32>
    %11 = vector.shape_cast %8 : vector<1024x32xf32> to vector<1x1024x32xf32>
    tpu.vector_store %arg4[%c0_7, %c0_8, %c0_9], %11 {strides = array<i32>} : memref<1x1024x32xf32, #tpu.memory_space<vmem>>, vector<1x1024x32xf32>,
    return
  }
  func.func @transform_0(%arg0: i32) -> (i32, i32, i32) {
    %c0_i32 = arith.constant 0 : i32
    %c0_i32_0 = arith.constant 0 : i32
    %c0_i32_1 = arith.constant 0 : i32
    return %arg0, %c0_i32, %c0_i32_0 : i32, i32, i32
  }
  func.func @transform_1(%arg0: i32) -> (i32, i32) {
    %c0_i32 = arith.constant 0 : i32
    %c0_i32_0 = arith.constant 0 : i32
    %c0_i32_1 = arith.constant 0 : i32
    return %c0_i32, %c0_i32_0 : i32, i32
  }
  func.func @transform_2(%arg0: i32) -> (i32, i32) {
    %c0_i32 = arith.constant 0 : i32
    %c0_i32_0 = arith.constant 0 : i32
    %c0_i32_1 = arith.constant 0 : i32
    return %c0_i32, %c0_i32_0 : i32, i32
  }
  func.func @transform_3(%arg0: i32) -> (i32, i32, i32) {
    %c0_i32 = arith.constant 0 : i32
    %c0_i32_0 = arith.constant 0 : i32
    %c0_i32_1 = arith.constant 0 : i32
    return %arg0, %c0_i32, %c0_i32_0 : i32, i32, i32
  }
}

module attributes {stable_mosaic.version = 11 : i64} {
  func.func @_residual_pw_kernel(%arg0: i32, %arg1: memref<1x256x32xf32, #tpu.memory_space<vmem>>, %arg2: memref<1x256x32xf32, #tpu.memory_space<vmem>>, %arg3: memref<32x32xbf16, #tpu.memory_space<vmem>>, %arg4: memref<1x32xf32, #tpu.memory_space<vmem>>, %arg5: memref<1x256x32xf32, #tpu.memory_space<vmem>>) attributes {dimension_semantics = [#tpu.dimension_semantics<parallel>], iteration_bounds = array<i64: 2>, scalar_prefetch = 0 : i64, scratch_operands = 0 : i64, tpu.core_type = #tpu.core_type<tc>, window_params = [{transform_indices = @transform_0, window_bounds = array<i64: 1, 256, 32>}, {transform_indices = @transform_1, window_bounds = array<i64: 1, 256, 32>}, {pipeline_mode = #tpu.pipeline_mode<synchronous>, transform_indices = @transform_2, window_bounds = array<i64: 32, 32>}, {pipeline_mode = #tpu.pipeline_mode<synchronous>, transform_indices = @transform_3, window_bounds = array<i64: 1, 32>}, {transform_indices = @transform_4, window_bounds = array<i64: 1, 256, 32>}]} {
    %c0 = arith.constant 0 : index
    %c0_0 = arith.constant 0 : index
    %c0_1 = arith.constant 0 : index
    %0 = vector.load %arg1[%c0, %c0_0, %c0_1] : memref<1x256x32xf32, #tpu.memory_space<vmem>>, vector<1x256x32xf32>
    %1 = vector.shape_cast %0 : vector<1x256x32xf32> to vector<256x32xf32>
    %c0_2 = arith.constant 0 : index
    %c0_3 = arith.constant 0 : index
    %c0_4 = arith.constant 0 : index
    %2 = vector.load %arg2[%c0_2, %c0_3, %c0_4] : memref<1x256x32xf32, #tpu.memory_space<vmem>>, vector<1x256x32xf32>
    %3 = vector.shape_cast %2 : vector<1x256x32xf32> to vector<256x32xf32>
    %4 = arith.addf %1, %3 : vector<256x32xf32>
    %5 = arith.truncf %4 : vector<256x32xf32> to vector<256x32xbf16>
    %c0_5 = arith.constant 0 : index
    %c0_6 = arith.constant 0 : index
    %6 = vector.load %arg3[%c0_5, %c0_6] : memref<32x32xbf16, #tpu.memory_space<vmem>>, vector<32x32xbf16>
    %cst = arith.constant dense<0.000000e+00> : vector<256x32xf32>
    %7 = tpu.matmul %5, %6, %cst {dimension_numbers = #tpu.dot_dimension_numbers<[1], [0], [0], [1], [0, 0, 1, 1], [], []>} : vector<256x32xbf16>, vector<32x32xbf16>, vector<256x32xf32> -> vector<256x32xf32>
    %c0_7 = arith.constant 0 : index
    %c0_8 = arith.constant 0 : index
    %8 = vector.load %arg4[%c0_7, %c0_8] : memref<1x32xf32, #tpu.memory_space<vmem>>, vector<1x32xf32>
    %9 = vector.broadcast %8 : vector<1x32xf32> to vector<256x32xf32>
    %10 = arith.addf %7, %9 : vector<256x32xf32>
    %cst_9 = arith.constant 0.000000e+00 : f32
    %11 = vector.broadcast %cst_9 : f32 to vector<256x32xf32>
    %12 = arith.maximumf %10, %11 : vector<256x32xf32>
    %c0_10 = arith.constant 0 : index
    %c0_11 = arith.constant 0 : index
    %c0_12 = arith.constant 0 : index
    %13 = vector.load %arg5[%c0_10, %c0_11, %c0_12] : memref<1x256x32xf32, #tpu.memory_space<vmem>>, vector<1x256x32xf32>
    %14 = vector.shape_cast %13 : vector<1x256x32xf32> to vector<256x32xf32>
    %15 = vector.shape_cast %12 : vector<256x32xf32> to vector<1x256x32xf32>
    tpu.vector_store %arg5[%c0_10, %c0_11, %c0_12], %15 {strides = array<i32>} : memref<1x256x32xf32, #tpu.memory_space<vmem>>, vector<1x256x32xf32>,
    return
  }
  func.func @transform_0(%arg0: i32) -> (i32, i32, i32) {
    %c0_i32 = arith.constant 0 : i32
    %c0_i32_0 = arith.constant 0 : i32
    %c0_i32_1 = arith.constant 0 : i32
    return %arg0, %c0_i32, %c0_i32_0 : i32, i32, i32
  }
  func.func @transform_1(%arg0: i32) -> (i32, i32, i32) {
    %c0_i32 = arith.constant 0 : i32
    %c0_i32_0 = arith.constant 0 : i32
    %c0_i32_1 = arith.constant 0 : i32
    return %arg0, %c0_i32, %c0_i32_0 : i32, i32, i32
  }
  func.func @transform_2(%arg0: i32) -> (i32, i32) {
    %c0_i32 = arith.constant 0 : i32
    %c0_i32_0 = arith.constant 0 : i32
    %c0_i32_1 = arith.constant 0 : i32
    return %c0_i32, %c0_i32_0 : i32, i32
  }
  func.func @transform_3(%arg0: i32) -> (i32, i32) {
    %c0_i32 = arith.constant 0 : i32
    %c0_i32_0 = arith.constant 0 : i32
    %c0_i32_1 = arith.constant 0 : i32
    return %c0_i32, %c0_i32_0 : i32, i32
  }
  func.func @transform_4(%arg0: i32) -> (i32, i32, i32) {
    %c0_i32 = arith.constant 0 : i32
    %c0_i32_0 = arith.constant 0 : i32
    %c0_i32_1 = arith.constant 0 : i32
    return %arg0, %c0_i32, %c0_i32_0 : i32, i32, i32
  }
}

</mosaic_0001>

<bundles_post_ra>
// kernel: encoder_forward.5
= control target key start
LH: loop header
LB: loop body
LE: loop exit
PB: predicated region body
PF: predicated region fallthrough
CT: control target
= control target key end

     0   :  { %s814_s12 = smov 0   ;;  %s981_s0 = inlined_call_operand.vmem [shape: bf16[2,256,36], index: 0, kind: input, shape index: {}]   ;;  %s982_s1 = inlined_call_operand.vmem [shape: bf16[36,64], index: 1, kind: input, shape index: {}]   ;;  %s983_s2 = inlined_call_operand.vmem [shape: f32[1,64], index: 2, kind: input, shape index: {}]   ;;  %s984_s3 = inlined_call_operand.vmem [shape: f32[2,256,64], index: 3, kind: output, shape index: {}]  }
   0x1 LB: > { %s645_s13 = sadd.s32 4294967295, %s792_s12   ;;  %p649_p0 = scmp.ge.s32.totalorder %s792_s12, 1  ;;  %s792_s12 = sphi %s814_s12, %s13_s12  }
   0x2   : > { %p137_p1 = scmp.lt.s32.totalorder %s792_s12, 3 }
   0x4   : > { %p138_p2 = pnand %p649_p0, %p137_p1 }
   0x5   : > { %p161_p3 = scmp.lt.s32.totalorder (!%p138_p2), %s645_s13, 1 }
   0x6   : > { %141 = sbr.rel (%p138_p2) target bundleno = 252 (0xfc), region = 32 }
   0xb   : > { %v767_v0 = vld [vmem:[%s982_s1 + $0x10] ss:$0 sps:$4 sm:$0x33]   ;;  %vm360_vm0 = vcmask 1041408   ;;  %v768_v1 = vld [vmem:[%s982_s1 + $0x8] sm:$0xff]   ;;  %s986_s13 = smov (!%p161_p3, %s645_s13), 1 }
   0xc   : > { %757 = vmatprep.subr.msk.bf16.mxu0 %vm360_vm0, %v767_v0  ;;  %758 = vmatprep.subr.msk.bf16.mxu1 %vm360_vm0, %v767_v0  ;;  %v362_v2 = vsel %vm360_vm0, %v767_v0, 0  ;;  %v769_v3 = vld [vmem:[%s982_s1] sm:$0xff]   ;;  %s692_s20 = sshll.u32 %s986_s13, 7  ;;  %vm311_vm1 = vcmask 293888   ;;  %s693_s26 = sshll.u32 %s986_s13, 8  ;;  %vm557_vm2 = vcmask 523264  }
   0xd   : > { %714 = vmatpush3.bf16.msra.mxu0 %v362_v2  ;;  %754 = vmatpush3.bf16.msra.mxu1 %v362_v2  ;;  %s837_s23 = scalar_lea.vmem %s981_s0, %s692_s20  ;;  %v874_v20 = vld [vmem:[%s983_s2] ss:$0 sm:$0xff]  ;;  %s882_s29 = scalar_lea.vmem %s984_s3, %s693_s26 }
   0xe   : > { %715 = vmatprep.subr.bf16.mxu0 %v768_v1  ;;  %752 = vmatprep.subr.bf16.mxu1 %v768_v1  ;;  %v770_v4 = vld [vmem:[%s837_s23] sm:$0xff]   ;;  %v772_v6 = vld [vmem:[%s837_s23 + $0x8] sm:$0xff]   ;;  %v774_v8 = vld [vmem:[%s837_s23 + $0x10] sm:$0xff]  }
   0xf   : > { %v771_v5 = vld [vmem:[%s837_s23 + $0x40] sm:$0xff]   ;;  %719 = vmatprep.mubr.msk.bf16.mxu0 %vm311_vm1, %v770_v4  ;;  %v773_v7 = vld [vmem:[%s837_s23 + $0x48] sm:$0xff]   ;;  %v775_v9 = vld [vmem:[%s837_s23 + $0x50] sm:$0xff]  }
  0x10   : > { %735 = vmatprep.mubr.msk.bf16.mxu1 %vm311_vm1, %v771_v5  ;;  %v776_v10 = vld [vmem:[%s837_s23 + $0x18] sm:$0xff]   ;;  %v778_v12 = vld [vmem:[%s837_s23 + $0x20] sm:$0xff]   ;;  %v780_v14 = vld [vmem:[%s837_s23 + $0x28] sm:$0xff]  }
  0x11   : > { %716 = vmatpush3.bf16.msra.mxu0 %v768_v1  ;;  %755 = vmatpush3.bf16.msra.mxu1 %v768_v1  ;;  %v777_v11 = vld [vmem:[%s837_s23 + $0x58] sm:$0xff]   ;;  %v779_v13 = vld [vmem:[%s837_s23 + $0x60] sm:$0xff]   ;;  %v781_v15 = vld [vmem:[%s837_s23 + $0x68] sm:$0xff]  }
  0x12   : > { %717 = vmatprep.subr.bf16.mxu0 %v769_v3  ;;  %753 = vmatprep.subr.bf16.mxu1 %v769_v3  ;;  %v782_v16 = vld [vmem:[%s837_s23 + $0x30] sm:$0xff]   ;;  %v784_v18 = vld [vmem:[%s837_s23 + $0x38] sm:$0xff]  }
  0x13   : > { %v783_v17 = vld [vmem:[%s837_s23 + $0x70] sm:$0xff]   ;;  %v785_v19 = vld [vmem:[%s837_s23 + $0x78] sm:$0xff]  }
  0x15   : > { %718 = vmatpush3.bf16.msra.mxu0 %v769_v3  ;;  %756 = vmatpush3.bf16.msra.mxu1 %v769_v3 }
  0x18   : > { %720 = vmatmul.mubr.msk.bf16.vlgmr.msra.gmra.mxu0 %vm311_vm1, %v772_v6  ;;  %736 = vmatmul.mubr.msk.bf16.vlgmr.msra.gmra.mxu1 %vm311_vm1, %v773_v7 }
  0x19   : > { %723 = vmatprep.mubr.msk.bf16.mxu0 %vm311_vm1, %v774_v8  ;;  %739 = vmatprep.mubr.msk.bf16.mxu1 %vm311_vm1, %v775_v9 }
  0x20   : > { %724 = vmatmul.mubr.msk.bf16.gmra.mxu0 %vm311_vm1, %v776_v10  ;;  %740 = vmatmul.mubr.msk.bf16.gmra.mxu1 %vm311_vm1, %v777_v11 }
  0x21   : > { %727 = vmatprep.mubr.msk.bf16.mxu0 %vm311_vm1, %v778_v12  ;;  %743 = vmatprep.mubr.msk.bf16.mxu1 %vm311_vm1, %v779_v13 }
  0x28   : > { %728 = vmatmul.mubr.msk.bf16.gmra.mxu0 %vm311_vm1, %v780_v14  ;;  %744 = vmatmul.mubr.msk.bf16.gmra.mxu1 %vm311_vm1, %v781_v15 }
  0x29   : > { %731 = vmatprep.mubr.msk.bf16.mxu0 %vm311_vm1, %v782_v16  ;;  %747 = vmatprep.mubr.msk.bf16.mxu1 %vm311_vm1, %v783_v17 }
  0x30   : > { %732 = vmatmul.mubr.msk.bf16.gmra.mxu0 %vm311_vm1, %v784_v18  ;;  %748 = vmatmul.mubr.msk.bf16.gmra.mxu1 %vm311_vm1, %v785_v19 }
  0xd8   : > { %v721_v21 = vpop.f32.mrf.mxu0  ;;  %v737_v22 = vpop.f32.mrf.mxu1 }
  0xd9   : > { %v407_v23 = vadd.f32 %v721_v21, %v874_v20  ;;  %v471_v24 = vadd.f32 %v737_v22, %v874_v20 }
  0xda   : > { %v398_v25 = vpop.f32.mrf.mxu0  ;;  %v462_v26 = vpop.f32.mrf.mxu1 }
  0xdb   : > { %v527_v27 = vmax.f32 %v407_v23, 0.0  ;;  %v543_v28 = vmax.f32 %v471_v24, 0.0  ;;  %v399_v29 = vadd.f32 %v874_v20, %v398_v25  ;;  %v463_v30 = vadd.f32 %v874_v20, %v462_v26 }
  0xdc   : > { %v722_v31 = vpop.f32.mrf.mxu0  ;;  %v738_v32 = vpop.f32.mrf.mxu1 }
  0xdd   : > { %560 = vst.msk [vmem:[%s882_s29 + $0x10] sm:$0xff] %vm557_vm2, %v527_v27  ;;  %576 = vst.msk [vmem:[%s882_s29 + $0x90] sm:$0xff] %vm557_vm2, %v543_v28  ;;  %v525_v33 = vmax.f32 %v399_v29, 0.0  ;;  %v541_v34 = vmax.f32 %v463_v30, 0.0  ;;  %v410_v35 = vadd.f32 %v722_v31, %v874_v20  ;;  %v474_v36 = vadd.f32 %v738_v32, %v874_v20 }
  0xde   : > { %v401_v37 = vpop.f32.mrf.mxu0  ;;  %v465_v38 = vpop.f32.mrf.mxu1 }
  0xdf   : > { %558 = vst.msk [vmem:[%s882_s29] sm:$0xff] %vm557_vm2, %v525_v33  ;;  %574 = vst.msk [vmem:[%s882_s29 + $0x80] sm:$0xff] %vm557_vm2, %v541_v34  ;;  %v528_v39 = vmax.f32 %v410_v35, 0.0  ;;  %v544_v40 = vmax.f32 %v474_v36, 0.0  ;;  %v402_v41 = vadd.f32 %v874_v20, %v401_v37  ;;  %v466_v42 = vadd.f32 %v874_v20, %v465_v38 }
  0xe0   : > { %v725_v43 = vpop.f32.mrf.mxu0  ;;  %v741_v44 = vpop.f32.mrf.mxu1 }
  0xe1   : > { %561 = vst.msk [vmem:[%s882_s29 + $0x18] sm:$0xff] %vm557_vm2, %v528_v39  ;;  %577 = vst.msk [vmem:[%s882_s29 + $0x98] sm:$0xff] %vm557_vm2, %v544_v40  ;;  %v526_v45 = vmax.f32 %v402_v41, 0.0  ;;  %v542_v46 = vmax.f32 %v466_v42, 0.0  ;;  %v423_v47 = vadd.f32 %v725_v43, %v874_v20  ;;  %v487_v48 = vadd.f32 %v741_v44, %v874_v20 }
  0xe2   : > { %v414_v49 = vpop.f32.mrf.mxu0  ;;  %v478_v50 = vpop.f32.mrf.mxu1 }
  0xe3   : > { %559 = vst.msk [vmem:[%s882_s29 + $0x8] sm:$0xff] %vm557_vm2, %v526_v45  ;;  %575 = vst.msk [vmem:[%s882_s29 + $0x88] sm:$0xff] %vm557_vm2, %v542_v46  ;;  %v531_v51 = vmax.f32 %v423_v47, 0.0  ;;  %v547_v52 = vmax.f32 %v487_v48, 0.0  ;;  %v415_v53 = vadd.f32 %v874_v20, %v414_v49  ;;  %v479_v54 = vadd.f32 %v874_v20, %v478_v50 }
  0xe4   : > { %v726_v55 = vpop.f32.mrf.mxu0  ;;  %v742_v56 = vpop.f32.mrf.mxu1 }
  0xe5   : > { %564 = vst.msk [vmem:[%s882_s29 + $0x30] sm:$0xff] %vm557_vm2, %v531_v51  ;;  %580 = vst.msk [vmem:[%s882_s29 + $0xb0] sm:$0xff] %vm557_vm2, %v547_v52  ;;  %v529_v57 = vmax.f32 %v415_v53, 0.0  ;;  %v545_v58 = vmax.f32 %v479_v54, 0.0  ;;  %v426_v59 = vadd.f32 %v726_v55, %v874_v20  ;;  %v490_v60 = vadd.f32 %v742_v56, %v874_v20 }
  0xe6   : > { %v417_v61 = vpop.f32.mrf.mxu0  ;;  %v481_v62 = vpop.f32.mrf.mxu1 }
  0xe7   : > { %562 = vst.msk [vmem:[%s882_s29 + $0x20] sm:$0xff] %vm557_vm2, %v529_v57  ;;  %578 = vst.msk [vmem:[%s882_s29 + $0xa0] sm:$0xff] %vm557_vm2, %v545_v58  ;;  %v532_v63 = vmax.f32 %v426_v59, 0.0  ;;  %v548_v0 = vmax.f32 %v490_v60, 0.0  ;;  %v418_v1 = vadd.f32 %v874_v20, %v417_v61  ;;  %v482_v2 = vadd.f32 %v874_v20, %v481_v62 }
  0xe8   : > { %v729_v3 = vpop.f32.mrf.mxu0  ;;  %v745_v4 = vpop.f32.mrf.mxu1 }
  0xe9   : > { %565 = vst.msk [vmem:[%s882_s29 + $0x38] sm:$0xff] %vm557_vm2, %v532_v63  ;;  %581 = vst.msk [vmem:[%s882_s29 + $0xb8] sm:$0xff] %vm557_vm2, %v548_v0  ;;  %v530_v5 = vmax.f32 %v418_v1, 0.0  ;;  %v546_v6 = vmax.f32 %v482_v2, 0.0  ;;  %v439_v7 = vadd.f32 %v729_v3, %v874_v20  ;;  %v503_v8 = vadd.f32 %v745_v4, %v874_v20 }
  0xea   : > { %v430_v9 = vpop.f32.mrf.mxu0  ;;  %v494_v10 = vpop.f32.mrf.mxu1 }
  0xeb   : > { %563 = vst.msk [vmem:[%s882_s29 + $0x28] sm:$0xff] %vm557_vm2, %v530_v5  ;;  %579 = vst.msk [vmem:[%s882_s29 + $0xa8] sm:$0xff] %vm557_vm2, %v546_v6  ;;  %v535_v11 = vmax.f32 %v439_v7, 0.0  ;;  %v551_v12 = vmax.f32 %v503_v8, 0.0  ;;  %v431_v13 = vadd.f32 %v874_v20, %v430_v9  ;;  %v495_v14 = vadd.f32 %v874_v20, %v494_v10 }
  0xec   : > { %v730_v15 = vpop.f32.mrf.mxu0  ;;  %v746_v16 = vpop.f32.mrf.mxu1 }
  0xed   : > { %568 = vst.msk [vmem:[%s882_s29 + $0x50] sm:$0xff] %vm557_vm2, %v535_v11  ;;  %584 = vst.msk [vmem:[%s882_s29 + $0xd0] sm:$0xff] %vm557_vm2, %v551_v12  ;;  %v533_v17 = vmax.f32 %v431_v13, 0.0  ;;  %v549_v18 = vmax.f32 %v495_v14, 0.0  ;;  %v442_v19 = vadd.f32 %v730_v15, %v874_v20  ;;  %v506_v21 = vadd.f32 %v746_v16, %v874_v20 }
  0xee   : > { %v433_v22 = vpop.f32.mrf.mxu0  ;;  %v497_v23 = vpop.f32.mrf.mxu1 }
  0xef   : > { %566 = vst.msk [vmem:[%s882_s29 + $0x40] sm:$0xff] %vm557_vm2, %v533_v17  ;;  %582 = vst.msk [vmem:[%s882_s29 + $0xc0] sm:$0xff] %vm557_vm2, %v549_v18  ;;  %v536_v24 = vmax.f32 %v442_v19, 0.0  ;;  %v552_v25 = vmax.f32 %v506_v21, 0.0  ;;  %v434_v26 = vadd.f32 %v874_v20, %v433_v22  ;;  %v498_v27 = vadd.f32 %v874_v20, %v497_v23 }
  0xf0   : > { %v733_v28 = vpop.f32.mrf.mxu0  ;;  %v749_v29 = vpop.f32.mrf.mxu1 }
  0xf1   : > { %569 = vst.msk [vmem:[%s882_s29 + $0x58] sm:$0xff] %vm557_vm2, %v536_v24  ;;  %585 = vst.msk [vmem:[%s882_s29 + $0xd8] sm:$0xff] %vm557_vm2, %v552_v25  ;;  %v534_v30 = vmax.f32 %v434_v26, 0.0  ;;  %v550_v31 = vmax.f32 %v498_v27, 0.0  ;;  %v455_v32 = vadd.f32 %v733_v28, %v874_v20  ;;  %v519_v33 = vadd.f32 %v749_v29, %v874_v20 }
  0xf2   : > { %v446_v34 = vpop.f32.mrf.mxu0  ;;  %v510_v35 = vpop.f32.mrf.mxu1 }
  0xf3   : > { %567 = vst.msk [vmem:[%s882_s29 + $0x48] sm:$0xff] %vm557_vm2, %v534_v30  ;;  %583 = vst.msk [vmem:[%s882_s29 + $0xc8] sm:$0xff] %vm557_vm2, %v550_v31  ;;  %v539_v36 = vmax.f32 %v455_v32, 0.0  ;;  %v555_v37 = vmax.f32 %v519_v33, 0.0  ;;  %v447_v38 = vadd.f32 %v874_v20, %v446_v34  ;;  %v511_v39 = vadd.f32 %v874_v20, %v510_v35 }
  0xf4   : > { %v734_v40 = vpop.f32.mrf.mxu0  ;;  %v750_v41 = vpop.f32.mrf.mxu1 }
  0xf5   : > { %572 = vst.msk [vmem:[%s882_s29 + $0x70] sm:$0xff] %vm557_vm2, %v539_v36  ;;  %588 = vst.msk [vmem:[%s882_s29 + $0xf0] sm:$0xff] %vm557_vm2, %v555_v37  ;;  %v537_v42 = vmax.f32 %v447_v38, 0.0  ;;  %v553_v43 = vmax.f32 %v511_v39, 0.0  ;;  %v458_v44 = vadd.f32 %v734_v40, %v874_v20  ;;  %v522_v45 = vadd.f32 %v750_v41, %v874_v20 }
  0xf6   : > { %v449_v46 = vpop.f32.mrf.mxu0  ;;  %v513_v47 = vpop.f32.mrf.mxu1 }
  0xf7   : > { %570 = vst.msk [vmem:[%s882_s29 + $0x60] sm:$0xff] %vm557_vm2, %v537_v42  ;;  %586 = vst.msk [vmem:[%s882_s29 + $0xe0] sm:$0xff] %vm557_vm2, %v553_v43  ;;  %v540_v48 = vmax.f32 %v458_v44, 0.0  ;;  %v556_v49 = vmax.f32 %v522_v45, 0.0  ;;  %v450_v50 = vadd.f32 %v874_v20, %v449_v46  ;;  %v514_v51 = vadd.f32 %v874_v20, %v513_v47 }
  0xf9   : > { %573 = vst.msk [vmem:[%s882_s29 + $0x78] sm:$0xff] %vm557_vm2, %v540_v48  ;;  %589 = vst.msk [vmem:[%s882_s29 + $0xf8] sm:$0xff] %vm557_vm2, %v556_v49  ;;  %v538_v52 = vmax.f32 %v450_v50, 0.0  ;;  %v554_v53 = vmax.f32 %v514_v51, 0.0 }
  0xfb   : > { %571 = vst.msk [vmem:[%s882_s29 + $0x68] sm:$0xff] %vm557_vm2, %v538_v52  ;;  %587 = vst.msk [vmem:[%s882_s29 + $0xe8] sm:$0xff] %vm557_vm2, %v554_v53 }
  0xfc PF: > { %s13_s12 = sadd.s32 1, %s792_s12  }
  0xfd   : > { %p10_p4 = scmp.ge.s32.totalorder %s13_s12, 4  }
  0xff   :  { %12 = sbr.rel (!%p10_p4) target bundleno = 1 (0x1), region = 62 }

// kernel: encoder_forward.6
= control target key start
LH: loop header
LB: loop body
LE: loop exit
PB: predicated region body
PF: predicated region fallthrough
CT: control target
= control target key end

     0   :  { %s2212_s12 = smov 0   ;;  %s2782_s0 = inlined_call_operand.vmem [shape: bf16[2,256,576], index: 0, kind: input, shape index: {}]   ;;  %s2783_s1 = inlined_call_operand.vmem [shape: bf16[576,32], index: 1, kind: input, shape index: {}]   ;;  %s2784_s2 = inlined_call_operand.vmem [shape: f32[1,32], index: 2, kind: input, shape index: {}]   ;;  %s2785_s3 = inlined_call_operand.vmem [shape: f32[2,256,32], index: 3, kind: output, shape index: {}]  }
   0x1 LB: > { %s1583_s13 = sadd.s32 4294967295, %s2190_s12   ;;  %p1587_p0 = scmp.ge.s32.totalorder %s2190_s12, 1  ;;  %s2190_s12 = sphi %s2212_s12, %s13_s12  }
   0x2   : > { %p137_p1 = scmp.lt.s32.totalorder %s2190_s12, 3 }
   0x4   : > { %p138_p2 = pnand %p1587_p0, %p137_p1 }
   0x6   : > { %141 = sbr.rel (%p138_p2) target bundleno = 402 (0x192), region = 32 }
   0xb   : > { %v2036_v0 = vld [vmem:[%s2783_s1 + $0x78] sm:$0xff]   ;;  %v2038_v2 = vld [vmem:[%s2783_s1 + $0x70] sm:$0xff]   ;;  %p161_p3 = scmp.lt.s32.totalorder %s1583_s13, 1  ;;  %v2040_v4 = vld [vmem:[%s2783_s1 + $0x68] sm:$0xff]   ;;  %vm963_vm0 = vcmask 523264   ;;  %vm1495_vm1 = vcmask 261120  }
   0xc   : > { %v2037_v1 = vld [vmem:[%s2783_s1 + $0x38] sm:$0xff]   ;;  %1727 = vmatprep.subr.bf16.mxu0 %v2036_v0  ;;  %2011 = vmatprep.subr.bf16.mxu1 %v2036_v0  ;;  %v2039_v3 = vld [vmem:[%s2783_s1 + $0x30] sm:$0xff]   ;;  %v2041_v5 = vld [vmem:[%s2783_s1 + $0x28] sm:$0xff]  }
   0xd   : > { %1728 = vmatpush3.bf16.msra.mxu0 %v2037_v1  ;;  %2019 = vmatpush3.bf16.msra.mxu1 %v2037_v1  ;;  %s2827_s13 = smov (!%p161_p3, %s1583_s13), 1  ;;  %v2042_v6 = vld [vmem:[%s2783_s1 + $0x60] sm:$0xff]   ;;  %v2044_v8 = vld [vmem:[%s2783_s1 + $0x58] sm:$0xff]   ;;  %v2046_v10 = vld [vmem:[%s2783_s1 + $0x50] sm:$0xff]  }
   0xe   : > { %1729 = vmatprep.subr.bf16.mxu0 %v2038_v2  ;;  %2012 = vmatprep.subr.bf16.mxu1 %v2038_v2  ;;  %s2027_s28 = smul.u32 640, %s2827_s13  ;;  %v2043_v7 = vld [vmem:[%s2783_s1 + $0x20] sm:$0xff]   ;;  %v2045_v9 = vld [vmem:[%s2783_s1 + $0x18] sm:$0xff]   ;;  %v2047_v13 = vld [vmem:[%s2783_s1 + $0x10] sm:$0xff]   ;;  %s1726_s18 = sshll.u32 %s2827_s13, 8 }
   0xf   : > { %v2048_v14 = vld [vmem:[%s2783_s1 + $0x48] sm:$0xff]   ;;  %v2050_v16 = vld [vmem:[%s2783_s1 + $0x40] sm:$0xff]   ;;  %v2058_v18 = vld [vmem:[%s2783_s1 + $0xf8] sm:$0xff]   ;;  %s2585_s21 = scalar_lea.vmem %s2785_s3, %s1726_s18 }
  0x10   : > { %s2253_s8 = scalar_lea.vmem %s2782_s0, %s2027_s28  ;;  %v2049_v15 = vld [vmem:[%s2783_s1 + $0x8] sm:$0xff]   ;;  %v2051_v17 = vld [vmem:[%s2783_s1] sm:$0xff]   ;;  %v2061_v19 = vld [vmem:[%s2783_s1 + $0x118] sm:$0xff]  }
  0x11   : > { %1730 = vmatpush3.bf16.msra.mxu0 %v2039_v3  ;;  %2020 = vmatpush3.bf16.msra.mxu1 %v2039_v3  ;;  %v2054_v11 = vld [vmem:[%s2253_s8 + $0x4] ss:$20 sps:$4 sm:$0xff]   ;;  %v2052_v20 = vld [vmem:[%s2253_s8] ss:$20 sps:$4 sm:$0xff]   ;;  %v2067_v27 = vld [vmem:[%s2253_s8 + $0x28] ss:$20 sps:$4 sm:$0xff]  }
  0x12   : > { %1731 = vmatprep.subr.bf16.mxu0 %v2040_v4  ;;  %2013 = vmatprep.subr.bf16.mxu1 %v2040_v4  ;;  %v2057_v12 = vld [vmem:[%s2253_s8 + $0x1e4] ss:$20 sps:$4 sm:$0xff]   ;;  %v2055_v21 = vld [vmem:[%s2253_s8 + $0x1e0] ss:$20 sps:$4 sm:$0xff]   ;;  %v2069_v28 = vld [vmem:[%s2783_s1 + $0xe8] sm:$0xff]  }
  0x13   : > { %1044 = vmatprep.mubr.bf16.mxu0 %v2054_v11  ;;  %1140 = vmatprep.mubr.bf16.mxu1 %v2057_v12  ;;  %v2059_v22 = vld [vmem:[%s2783_s1 + $0xb8] sm:$0xff]   ;;  %v2060_v23 = vld [vmem:[%s2783_s1 + $0xf0] sm:$0xff]   ;;  %v2063_v24 = vld [vmem:[%s2253_s8 + $0x2c] ss:$20 sps:$4 sm:$0xff]  }
  0x14   : > { %v2065_v25 = vld [vmem:[%s2253_s8 + $0x20c] ss:$20 sps:$4 sm:$0xff]   ;;  %v2062_v26 = vld [vmem:[%s2783_s1 + $0xb0] sm:$0xff]   ;;  %v2068_v29 = vld [vmem:[%s2253_s8 + $0x208] ss:$20 sps:$4 sm:$0xff]  }
  0x15   : > { %1732 = vmatpush3.bf16.msra.mxu0 %v2041_v5  ;;  %2021 = vmatpush3.bf16.msra.mxu1 %v2041_v5  ;;  %v2070_v30 = vld [vmem:[%s2783_s1 + $0xa8] sm:$0xff]   ;;  %v2071_v31 = vld [vmem:[%s2783_s1 + $0xe0] sm:$0xff]   ;;  %v2092_v35 = vld [vmem:[%s2783_s1 + $0x110] sm:$0xff]  }
  0x16   : > { %1733 = vmatprep.subr.bf16.mxu0 %v2042_v6  ;;  %2014 = vmatprep.subr.bf16.mxu1 %v2042_v6  ;;  %v2073_v32 = vld [vmem:[%s2253_s8 + $0x54] ss:$20 sps:$4 sm:$0xff]   ;;  %v2072_v34 = vld [vmem:[%s2783_s1 + $0xa0] sm:$0xff]   ;;  %v2079_v37 = vld [vmem:[%s2783_s1 + $0xd8] sm:$0xff]  }
  0x17   : > { %v2075_v33 = vld [vmem:[%s2253_s8 + $0x234] ss:$20 sps:$4 sm:$0xff]   ;;  %v2077_v36 = vld [vmem:[%s2253_s8 + $0x50] ss:$20 sps:$4 sm:$0xff]   ;;  %v2080_v39 = vld [vmem:[%s2783_s1 + $0x98] sm:$0xff]  }
  0x18   : > { %v2078_v38 = vld [vmem:[%s2253_s8 + $0x230] ss:$20 sps:$4 sm:$0xff]   ;;  %v2087_v44 = vld [vmem:[%s2253_s8 + $0x78] ss:$20 sps:$4 sm:$0xff]   ;;  %v2096_v53 = vld [vmem:[%s2253_s8 + $0x8] ss:$20 sps:$4 sm:$0xff]  }
  0x19   : > { %1734 = vmatpush3.bf16.msra.mxu0 %v2043_v7  ;;  %2022 = vmatpush3.bf16.msra.mxu1 %v2043_v7  ;;  %v2081_v40 = vld [vmem:[%s2783_s1 + $0xd0] sm:$0xff]   ;;  %v2088_v45 = vld [vmem:[%s2253_s8 + $0x258] ss:$20 sps:$4 sm:$0xff]   ;;  %v2091_v49 = vld [vmem:[%s2783_s1 + $0xc0] sm:$0xff]  }
  0x1a   : > { %1735 = vmatprep.subr.bf16.mxu0 %v2044_v8  ;;  %2015 = vmatprep.subr.bf16.mxu1 %v2044_v8  ;;  %v2083_v41 = vld [vmem:[%s2253_s8 + $0x7c] ss:$20 sps:$4 sm:$0xff]   ;;  %v2089_v46 = vld [vmem:[%s2783_s1 + $0xc8] sm:$0xff]   ;;  %v2094_v50 = vld [vmem:[%s2253_s8 + $0xa4] ss:$20 sps:$4 sm:$0xff]  }
  0x1b   : > { %v2085_v42 = vld [vmem:[%s2253_s8 + $0x25c] ss:$20 sps:$4 sm:$0xff]   ;;  %v2112_v47 = vld [vmem:[%s2783_s1 + $0x108] sm:$0xff]   ;;  %v2093_v52 = vld [vmem:[%s2783_s1 + $0x80] sm:$0xff]  }
  0x1c   : > { %v2082_v43 = vld [vmem:[%s2783_s1 + $0x90] sm:$0xff]   ;;  %v2090_v48 = vld [vmem:[%s2783_s1 + $0x88] sm:$0xff]   ;;  %v2131_v56 = vld [vmem:[%s2783_s1 + $0x100] sm:$0xff]  }
  0x1d   : > { %1736 = vmatpush3.bf16.msra.mxu0 %v2045_v9  ;;  %2023 = vmatpush3.bf16.msra.mxu1 %v2045_v9  ;;  %v2098_v51 = vld [vmem:[%s2253_s8 + $0xc] ss:$20 sps:$4 sm:$0xff]   ;;  %v2102_v57 = vld [vmem:[%s2253_s8 + $0x34] ss:$20 sps:$4 sm:$0xff]   ;;  %v2105_v59 = vld [vmem:[%s2253_s8 + $0x30] ss:$20 sps:$4 sm:$0xff]  }
  0x1e   : > { %1737 = vmatprep.subr.bf16.mxu0 %v2046_v10  ;;  %2016 = vmatprep.subr.bf16.mxu1 %v2046_v10  ;;  %v2099_v54 = vld [vmem:[%s2253_s8 + $0xa0] ss:$20 sps:$4 sm:$0xff]   ;;  %v2104_v58 = vld [vmem:[%s2253_s8 + $0xc8] ss:$20 sps:$4 sm:$0xff]   ;;  %v2110_v62 = vld [vmem:[%s2253_s8 + $0xf0] ss:$20 sps:$4 sm:$0xff]  }
  0x1f   : > { %v2100_v55 = vld [vmem:[%s2253_s8 + $0xcc] ss:$20 sps:$4 sm:$0xff]   ;;  %v2106_v60 = vld [vmem:[%s2253_s8 + $0xf4] ss:$20 sps:$4 sm:$0xff]   ;;  %v2108_v61 = vld [vmem:[%s2253_s8 + $0x5c] ss:$20 sps:$4 sm:$0xff]  }
  0x20   : > { %v2111_v63 = vld [vmem:[%s2253_s8 + $0x58] ss:$20 sps:$4 sm:$0xff]   ;;  %v2113_v0 = vld [vmem:[%s2253_s8 + $0x11c] ss:$20 sps:$4 sm:$0xff]   ;;  %v2118_v3 = vld [vmem:[%s2253_s8 + $0x80] ss:$20 sps:$4 sm:$0xff]  }
  0x21   : > { %1738 = vmatpush3.bf16.msra.mxu0 %v2047_v13  ;;  %2024 = vmatpush3.bf16.msra.mxu1 %v2047_v13  ;;  %v2115_v1 = vld [vmem:[%s2253_s8 + $0x84] ss:$20 sps:$4 sm:$0xff]   ;;  %v2121_v5 = vld [vmem:[%s2253_s8 + $0xac] ss:$20 sps:$4 sm:$0xff]   ;;  %v2124_v7 = vld [vmem:[%s2253_s8 + $0xa8] ss:$20 sps:$4 sm:$0xff]  }
  0x22   : > { %1739 = vmatprep.subr.bf16.mxu0 %v2048_v14  ;;  %2017 = vmatprep.subr.bf16.mxu1 %v2048_v14  ;;  %v2117_v2 = vld [vmem:[%s2253_s8 + $0x118] ss:$20 sps:$4 sm:$0xff]   ;;  %v2123_v6 = vld [vmem:[%s2253_s8 + $0x140] ss:$20 sps:$4 sm:$0xff]   ;;  %v2129_v10 = vld [vmem:[%s2253_s8 + $0x168] ss:$20 sps:$4 sm:$0xff]  }
  0x23   : > { %v2119_v4 = vld [vmem:[%s2253_s8 + $0x144] ss:$20 sps:$4 sm:$0xff]   ;;  %v2125_v8 = vld [vmem:[%s2253_s8 + $0x16c] ss:$20 sps:$4 sm:$0xff]   ;;  %v2127_v9 = vld [vmem:[%s2253_s8 + $0xd4] ss:$20 sps:$4 sm:$0xff]  }
  0x24   : > { %v2130_v11 = vld [vmem:[%s2253_s8 + $0xd0] ss:$20 sps:$4 sm:$0xff]   ;;  %v2132_v12 = vld [vmem:[%s2253_s8 + $0x194] ss:$20 sps:$4 sm:$0xff]  }
  0x25   : > { %1740 = vmatpush3.bf16.msra.mxu0 %v2049_v15  ;;  %2025 = vmatpush3.bf16.msra.mxu1 %v2049_v15  ;;  %v2134_v13 = vld [vmem:[%s2253_s8 + $0xfc] ss:$20 sps:$4 sm:$0xff]   ;;  %v2137_v15 = vld [vmem:[%s2253_s8 + $0xf8] ss:$20 sps:$4 sm:$0xff]  }
  0x26   : > { %1741 = vmatprep.subr.bf16.mxu0 %v2050_v16  ;;  %2018 = vmatprep.subr.bf16.mxu1 %v2050_v16  ;;  %v2136_v14 = vld [vmem:[%s2253_s8 + $0x190] ss:$20 sps:$4 sm:$0xff]  }
  0x27   : > { %v2138_v16 = vld [vmem:[%s2253_s8 + $0x1bc] ss:$20 sps:$4 sm:$0xff]  }
  0x29   : > { %1742 = vmatpush3.bf16.msra.mxu0 %v2051_v17  ;;  %2026 = vmatpush3.bf16.msra.mxu1 %v2051_v17  ;;  %v2140_v17 = vld [vmem:[%s2253_s8 + $0x124] ss:$20 sps:$4 sm:$0xff]  }
  0x2a   : > { %1839 = vmatprep.subr.bf16.mxu1 %v2058_v18  ;;  %1971 = vmatprep.subr.bf16.mxu0 %v2061_v19  ;;  %v2142_v18 = vld [vmem:[%s2253_s8 + $0x1b8] ss:$20 sps:$4 sm:$0xff]  }
  0x2c   : > { %1045 = vmatmul.mubr.bf16.vlgmr.msra.gmra.mxu0 %v2052_v20  ;;  %1141 = vmatmul.mubr.bf16.vlgmr.msra.gmra.mxu1 %v2055_v21  ;;  %v2144_v20 = vld [vmem:[%s2253_s8 + $0x14c] ss:$20 sps:$4 sm:$0xff]   ;;  %v2146_v21 = vld [vmem:[%s2253_s8 + $0x10] ss:$20 sps:$4 sm:$0xff]  }
  0x2d   : > { %1840 = vmatpush3.bf16.msra.mxu1 %v2059_v22  ;;  %1972 = vmatpush3.bf16.msra.mxu0 %v2061_v19  ;;  %v2143_v19 = vld [vmem:[%s2253_s8 + $0x120] ss:$20 sps:$4 sm:$0xff]   ;;  %v2147_v22 = vld [vmem:[%s2253_s8 + $0x148] ss:$20 sps:$4 sm:$0xff]  }
  0x2e   : > { %1841 = vmatprep.subr.bf16.mxu1 %v2060_v23  ;;  %1052 = vmatprep.mubr.bf16.mxu0 %v2063_v24  ;;  %v2148_v23 = vld [vmem:[%s2253_s8 + $0x38] ss:$20 sps:$4 sm:$0xff]   ;;  %v2149_v24 = vld [vmem:[%s2253_s8 + $0x174] ss:$20 sps:$4 sm:$0xff]  }
  0x2f   : > { %1148 = vmatprep.mubr.bf16.mxu1 %v2065_v25  ;;  %1973 = vmatprep.subr.bf16.mxu0 %v2092_v35  ;;  %v2151_v25 = vld [vmem:[%s2253_s8 + $0x60] ss:$20 sps:$4 sm:$0xff]  }
  0x31   : > { %1842 = vmatpush3.bf16.msra.mxu1 %v2062_v26  ;;  %1974 = vmatpush3.bf16.msra.mxu0 %v2092_v35  ;;  %v2152_v26 = vld [vmem:[%s2253_s8 + $0x170] ss:$20 sps:$4 sm:$0xff]   ;;  %v2163_v35 = vld [vmem:[%s2253_s8 + $0x128] ss:$20 sps:$4 sm:$0xff]  }
  0x32   : > { %1843 = vmatprep.subr.bf16.mxu1 %v2069_v28  ;;  %1975 = vmatprep.subr.bf16.mxu0 %v2112_v47  ;;  %v2154_v28 = vld [vmem:[%s2253_s8 + $0x19c] ss:$20 sps:$4 sm:$0xff]  }
  0x34   : > { %1053 = vmatmul.mubr.bf16.gmra.mxu0 %v2067_v27  ;;  %1149 = vmatmul.mubr.bf16.gmra.mxu1 %v2068_v29  ;;  %v2153_v27 = vld [vmem:[%s2253_s8 + $0x88] ss:$20 sps:$4 sm:$0xff]   ;;  %v2156_v29 = vld [vmem:[%s2253_s8 + $0xb0] ss:$20 sps:$4 sm:$0xff]  }
  0x35   : > { %1844 = vmatpush3.bf16.msra.mxu1 %v2070_v30  ;;  %1060 = vmatprep.mubr.bf16.mxu0 %v2073_v32  ;;  %v2157_v30 = vld [vmem:[%s2253_s8 + $0x198] ss:$20 sps:$4 sm:$0xff]  }
  0x36   : > { %1845 = vmatprep.subr.bf16.mxu1 %v2071_v31  ;;  %1156 = vmatprep.mubr.bf16.mxu1 %v2075_v33  ;;  %v2158_v31 = vld [vmem:[%s2253_s8 + $0xd8] ss:$20 sps:$4 sm:$0xff]   ;;  %v2161_v33 = vld [vmem:[%s2253_s8 + $0x100] ss:$20 sps:$4 sm:$0xff]  }
  0x37   : > { %1976 = vmatpush3.bf16.msra.mxu0 %v2112_v47  ;;  %v2159_v32 = vld [vmem:[%s2253_s8 + $0x1c4] ss:$20 sps:$4 sm:$0xff]  }
  0x38   : > { %1977 = vmatprep.subr.bf16.mxu0 %v2131_v56  ;;  %v2178_v47 = vld [vmem:[%s2253_s8 + $0x218] ss:$20 sps:$4 sm:$0xff]  }
  0x39   : > { %1846 = vmatpush3.bf16.msra.mxu1 %v2072_v34  ;;  %v2162_v34 = vld [vmem:[%s2253_s8 + $0x1c0] ss:$20 sps:$4 sm:$0xff]  }
  0x3a   : > { %1847 = vmatprep.subr.bf16.mxu1 %v2079_v37  ;;  %v2166_v37 = vld [vmem:[%s2253_s8 + $0x150] ss:$20 sps:$4 sm:$0xff]  }
  0x3b   : > { %1978 = vmatpush3.bf16.msra.mxu0 %v2131_v56 }
  0x3c   : > { %1061 = vmatmul.mubr.bf16.gmra.mxu0 %v2077_v36  ;;  %1157 = vmatmul.mubr.bf16.gmra.mxu1 %v2078_v38  ;;  %v2164_v36 = vld [vmem:[%s2253_s8 + $0x1ec] ss:$20 sps:$4 sm:$0xff]   ;;  %v2167_v38 = vld [vmem:[%s2253_s8 + $0x1e8] ss:$20 sps:$4 sm:$0xff]  }
  0x3d   : > { %1848 = vmatpush3.bf16.msra.mxu1 %v2080_v39  ;;  %1068 = vmatprep.mubr.bf16.mxu0 %v2083_v41  ;;  %v2168_v39 = vld [vmem:[%s2253_s8 + $0x178] ss:$20 sps:$4 sm:$0xff]   ;;  %v2171_v41 = vld [vmem:[%s2253_s8 + $0x1a0] ss:$20 sps:$4 sm:$0xff]  }
  0x3e   : > { %1849 = vmatprep.subr.bf16.mxu1 %v2081_v40  ;;  %1164 = vmatprep.mubr.bf16.mxu1 %v2085_v42  ;;  %v2169_v40 = vld [vmem:[%s2253_s8 + $0x214] ss:$20 sps:$4 sm:$0xff]   ;;  %v2172_v42 = vld [vmem:[%s2253_s8 + $0x210] ss:$20 sps:$4 sm:$0xff]  }
  0x41   : > { %1850 = vmatpush3.bf16.msra.mxu1 %v2082_v43  ;;  %v2173_v43 = vld [vmem:[%s2253_s8 + $0x1c8] ss:$20 sps:$4 sm:$0xff]  }
  0x42   : > { %1851 = vmatprep.subr.bf16.mxu1 %v2089_v46  ;;  %v2177_v46 = vld [vmem:[%s2253_s8 + $0x238] ss:$20 sps:$4 sm:$0xff]  }
  0x44   : > { %1069 = vmatmul.mubr.bf16.gmra.mxu0 %v2087_v44  ;;  %1165 = vmatmul.mubr.bf16.gmra.mxu1 %v2088_v45  ;;  %v2174_v44 = vld [vmem:[%s2253_s8 + $0x23c] ss:$20 sps:$4 sm:$0xff]  }
  0x45   : > { %1852 = vmatpush3.bf16.msra.mxu1 %v2090_v48  ;;  %1076 = vmatprep.mubr.bf16.mxu0 %v2094_v50  ;;  %v2176_v45 = vld [vmem:[%s2253_s8 + $0x1f0] ss:$20 sps:$4 sm:$0xff]   ;;  %v2182_v50 = vld [vmem:[%s2253_s8 + $0x260] ss:$20 sps:$4 sm:$0xff]  }
  0x46   : > { %1853 = vmatprep.subr.bf16.mxu1 %v2091_v49  ;;  %1205 = vmatprep.mubr.bf16.mxu1 %v2098_v51  ;;  %v2179_v48 = vld [vmem:[%s2253_s8 + $0x264] ss:$20 sps:$4 sm:$0xff]   ;;  %v2181_v49 = vld [vmem:[%s2253_s8 + $0x240] ss:$20 sps:$4 sm:$0xff]   ;;  %v2183_v51 = vld [vmem:[%s2253_s8 + $0x268] ss:$20 sps:$4 sm:$0xff]  }
  0x49   : > { %1854 = vmatpush3.bf16.msra.mxu1 %v2093_v52 }
  0x4c   : > { %1077 = vmatmul.mubr.bf16.gmra.mxu0 %v2099_v54  ;;  %1206 = vmatmul.mubr.bf16.vlgmr.msra.gmra.mxu1 %v2096_v53 }
  0x4d   : > { %1084 = vmatprep.mubr.bf16.mxu0 %v2100_v55  ;;  %1213 = vmatprep.mubr.bf16.mxu1 %v2102_v57 }
  0x54   : > { %1085 = vmatmul.mubr.bf16.gmra.mxu0 %v2104_v58  ;;  %1214 = vmatmul.mubr.bf16.gmra.mxu1 %v2105_v59 }
  0x55   : > { %1092 = vmatprep.mubr.bf16.mxu0 %v2106_v60  ;;  %1221 = vmatprep.mubr.bf16.mxu1 %v2108_v61 }
  0x5c   : > { %1093 = vmatmul.mubr.bf16.gmra.mxu0 %v2110_v62  ;;  %1222 = vmatmul.mubr.bf16.gmra.mxu1 %v2111_v63 }
  0x5d   : > { %1100 = vmatprep.mubr.bf16.mxu0 %v2113_v0  ;;  %1229 = vmatprep.mubr.bf16.mxu1 %v2115_v1 }
  0x64   : > { %1101 = vmatmul.mubr.bf16.gmra.mxu0 %v2117_v2  ;;  %1230 = vmatmul.mubr.bf16.gmra.mxu1 %v2118_v3 }
  0x65   : > { %1108 = vmatprep.mubr.bf16.mxu0 %v2119_v4  ;;  %1237 = vmatprep.mubr.bf16.mxu1 %v2121_v5 }
  0x6c   : > { %1109 = vmatmul.mubr.bf16.gmra.mxu0 %v2123_v6  ;;  %1238 = vmatmul.mubr.bf16.gmra.mxu1 %v2124_v7 }
  0x6d   : > { %1116 = vmatprep.mubr.bf16.mxu0 %v2125_v8  ;;  %1245 = vmatprep.mubr.bf16.mxu1 %v2127_v9 }
  0x74   : > { %1117 = vmatmul.mubr.bf16.gmra.mxu0 %v2129_v10  ;;  %1246 = vmatmul.mubr.bf16.gmra.mxu1 %v2130_v11 }
  0x75   : > { %1124 = vmatprep.mubr.bf16.mxu0 %v2132_v12  ;;  %1253 = vmatprep.mubr.bf16.mxu1 %v2134_v13 }
  0x7c   : > { %1125 = vmatmul.mubr.bf16.gmra.mxu0 %v2136_v14  ;;  %1254 = vmatmul.mubr.bf16.gmra.mxu1 %v2137_v15 }
  0x7d   : > { %1132 = vmatprep.mubr.bf16.mxu0 %v2138_v16  ;;  %1261 = vmatprep.mubr.bf16.mxu1 %v2140_v17 }
  0x84   : > { %1133 = vmatmul.mubr.bf16.gmra.mxu0 %v2142_v18  ;;  %1262 = vmatmul.mubr.bf16.gmra.mxu1 %v2143_v19 }
  0x85   : > { %1269 = vmatprep.mubr.bf16.mxu1 %v2144_v20  ;;  %1979 = vmatprep.mubr.msk.bf16.mxu0 %vm963_vm0, %v2146_v21 }
  0x8c   : > { %1270 = vmatmul.mubr.bf16.gmra.mxu1 %v2147_v22  ;;  %1980 = vmatmul.mubr.msk.bf16.vlgmr.msra.gmra.mxu0 %vm963_vm0, %v2148_v23 }
  0x8d   : > { %1277 = vmatprep.mubr.bf16.mxu1 %v2149_v24  ;;  %1983 = vmatprep.mubr.msk.bf16.mxu0 %vm963_vm0, %v2151_v25 }
  0x94   : > { %1278 = vmatmul.mubr.bf16.gmra.mxu1 %v2152_v26  ;;  %1984 = vmatmul.mubr.msk.bf16.gmra.mxu0 %vm963_vm0, %v2153_v27 }
  0x95   : > { %1285 = vmatprep.mubr.bf16.mxu1 %v2154_v28  ;;  %1987 = vmatprep.mubr.msk.bf16.mxu0 %vm963_vm0, %v2156_v29 }
  0x9c   : > { %1286 = vmatmul.mubr.bf16.gmra.mxu1 %v2157_v30  ;;  %1988 = vmatmul.mubr.msk.bf16.gmra.mxu0 %vm963_vm0, %v2158_v31 }
  0x9d   : > { %1293 = vmatprep.mubr.bf16.mxu1 %v2159_v32  ;;  %1991 = vmatprep.mubr.msk.bf16.mxu0 %vm963_vm0, %v2161_v33 }
  0xa4   : > { %1294 = vmatmul.mubr.bf16.gmra.mxu1 %v2162_v34  ;;  %1992 = vmatmul.mubr.msk.bf16.gmra.mxu0 %vm963_vm0, %v2163_v35 }
  0xa5   : > { %1301 = vmatprep.mubr.bf16.mxu1 %v2164_v36  ;;  %1995 = vmatprep.mubr.msk.bf16.mxu0 %vm963_vm0, %v2166_v37 }
  0xac   : > { %1302 = vmatmul.mubr.bf16.gmra.mxu1 %v2167_v38  ;;  %1996 = vmatmul.mubr.msk.bf16.gmra.mxu0 %vm963_vm0, %v2168_v39 }
  0xad   : > { %1309 = vmatprep.mubr.bf16.mxu1 %v2169_v40  ;;  %1999 = vmatprep.mubr.msk.bf16.mxu0 %vm963_vm0, %v2171_v41 }
  0xb4   : > { %1310 = vmatmul.mubr.bf16.gmra.mxu1 %v2172_v42  ;;  %2000 = vmatmul.mubr.msk.bf16.gmra.mxu0 %vm963_vm0, %v2173_v43 }
  0xb5   : > { %1317 = vmatprep.mubr.bf16.mxu1 %v2174_v44  ;;  %2003 = vmatprep.mubr.msk.bf16.mxu0 %vm963_vm0, %v2176_v45 }
  0xbc   : > { %1318 = vmatmul.mubr.bf16.gmra.mxu1 %v2177_v46  ;;  %2004 = vmatmul.mubr.msk.bf16.gmra.mxu0 %vm963_vm0, %v2178_v47 }
  0xbd   : > { %1325 = vmatprep.mubr.bf16.mxu1 %v2179_v48  ;;  %2007 = vmatprep.mubr.msk.bf16.mxu0 %vm963_vm0, %v2181_v49 }
  0xc4   : > { %1326 = vmatmul.mubr.bf16.gmra.mxu1 %v2182_v50  ;;  %2008 = vmatmul.mubr.msk.bf16.gmra.mxu0 %vm963_vm0, %v2183_v51 }
  0xec   : > { %v1743_v52 = vpop.f32.mrf.mxu0  ;;  %v1815_v53 = vpop.f32.mrf.mxu1 }
  0xee   : > { %v1744_v54 = vpop.f32.mrf.mxu0  ;;  %v1816_v55 = vpop.f32.mrf.mxu1 }
  0xef   : > { %v2432_v56 = vadd.f32 %v1744_v54, %v1743_v52  ;;  %v2434_v57 = vadd.f32 %v1816_v55, %v1815_v53 }
  0xf0   : > { %v1746_v58 = vpop.f32.mrf.mxu0  ;;  %v1818_v59 = vpop.f32.mrf.mxu1 }
  0xf1   : > { %2786 = vst [vmem:[#allocation2_spill] sm:$0xff] %v2434_v57 }
  0xf2   : > { %v1747_v60 = vpop.f32.mrf.mxu0  ;;  %v1819_v61 = vpop.f32.mrf.mxu1 }
  0xf3   : > { %v2436_v62 = vadd.f32 %v1747_v60, %v1746_v58  ;;  %v2438_v63 = vadd.f32 %v1819_v61, %v1818_v59 }
  0xf4   : > { %v1749_v0 = vpop.f32.mrf.mxu0  ;;  %v1821_v1 = vpop.f32.mrf.mxu1 }
  0xf5   : > { %2787 = vst [vmem:[#allocation3_spill] sm:$0xff] %v2438_v63 }
  0xf6   : > { %v1750_v2 = vpop.f32.mrf.mxu0  ;;  %v1822_v3 = vpop.f32.mrf.mxu1 }
  0xf7   : > { %v2440_v4 = vadd.f32 %v1750_v2, %v1749_v0  ;;  %v2442_v5 = vadd.f32 %v1822_v3, %v1821_v1 }
  0xf8   : > { %v1752_v6 = vpop.f32.mrf.mxu0  ;;  %v1824_v7 = vpop.f32.mrf.mxu1 }
  0xf9   : > { %2788 = vst [vmem:[#allocation4_spill] sm:$0xff] %v2442_v5  ;;  %v2563_v5 = vld [vmem:[%s2784_s2] ss:$0 sm:$0xff] }
  0xfa   : > { %v1753_v8 = vpop.f32.mrf.mxu0  ;;  %v1825_v9 = vpop.f32.mrf.mxu1 }
  0xfb   : > { %v2444_v10 = vadd.f32 %v1753_v8, %v1752_v6  ;;  %v2446_v11 = vadd.f32 %v1825_v9, %v1824_v7 }
  0xfc   : > { %v1755_v12 = vpop.f32.mrf.mxu0  ;;  %v1827_v13 = vpop.f32.mrf.mxu1 }
  0xfd   : > { %2789 = vst [vmem:[#allocation5_spill] sm:$0xff] %v2446_v11 }
  0xfe   : > { %v1756_v14 = vpop.f32.mrf.mxu0  ;;  %v1828_v15 = vpop.f32.mrf.mxu1 }
  0xff   : > { %v2448_v16 = vadd.f32 %v1756_v14, %v1755_v12  ;;  %v2450_v17 = vadd.f32 %v1828_v15, %v1827_v13 }
 0x100   : > { %v1758_v18 = vpop.f32.mrf.mxu0  ;;  %v1830_v19 = vpop.f32.mrf.mxu1 }
 0x101   : > { %2790 = vst [vmem:[#allocation6_spill] sm:$0xff] %v2450_v17 }
 0x102   : > { %v1759_v20 = vpop.f32.mrf.mxu0  ;;  %v1831_v21 = vpop.f32.mrf.mxu1 }
 0x103   : > { %v2452_v22 = vadd.f32 %v1759_v20, %v1758_v18  ;;  %v2454_v23 = vadd.f32 %v1831_v21, %v1830_v19 }
 0x104   : > { %v1761_v24 = vpop.f32.mrf.mxu0  ;;  %v1833_v25 = vpop.f32.mrf.mxu1 }
 0x105   : > { %2791 = vst [vmem:[#allocation7_spill] sm:$0xff] %v2454_v23 }
 0x106   : > { %v1762_v26 = vpop.f32.mrf.mxu0  ;;  %v1834_v27 = vpop.f32.mrf.mxu1 }
 0x107   : > { %v2456_v28 = vadd.f32 %v1762_v26, %v1761_v24  ;;  %v2458_v29 = vadd.f32 %v1834_v27, %v1833_v25 }
 0x108   : > { %v1764_v30 = vpop.f32.mrf.mxu0  ;;  %v1836_v31 = vpop.f32.mrf.mxu1 }
 0x109   : > { %2792 = vst [vmem:[#allocation8_spill] sm:$0xff] %v2458_v29 }
 0x10a   : > { %v1765_v32 = vpop.f32.mrf.mxu0  ;;  %v1837_v33 = vpop.f32.mrf.mxu1 }
 0x10b   : > { %v2460_v34 = vadd.f32 %v1765_v32, %v1764_v30  ;;  %v2462_v35 = vadd.f32 %v1837_v33, %v1836_v31 }
 0x10c   : > { %v1767_v36 = vpop.f32.mrf.mxu0  ;;  %v2464_v37 = vpop.f32.mrf.mxu1 }
 0x10d   : > { %2793 = vst [vmem:[#allocation9_spill] sm:$0xff] %v2462_v35 }
 0x10e   : > { %v1768_v38 = vpop.f32.mrf.mxu0  ;;  %v2466_v39 = vpop.f32.mrf.mxu1 }
 0x10f   : > { %v2468_v40 = vadd.f32 %v1768_v38, %v1767_v36 }
 0x110   : > { %v1770_v41 = vpop.f32.mrf.mxu0  ;;  %v2470_v42 = vpop.f32.mrf.mxu1 }
 0x112   : > { %v1771_v43 = vpop.f32.mrf.mxu0  ;;  %v2472_v44 = vpop.f32.mrf.mxu1 }
 0x113   : > { %v2474_v45 = vadd.f32 %v1771_v43, %v1770_v41 }
 0x114   : > { %v1773_v46 = vpop.f32.mrf.mxu0  ;;  %v1861_v47 = vpop.f32.mrf.mxu1 }
 0x116   : > { %v1774_v48 = vpop.f32.mrf.mxu0  ;;  %v1862_v49 = vpop.f32.mrf.mxu1 }
 0x117   : > { %v2476_v50 = vadd.f32 %v1774_v48, %v1773_v46  ;;  %v1863_v57 = vadd.f32 %v1862_v49, %v1861_v47  ;;  %v1047_v47 = vadd.f32 %v2432_v56, %v2563_v5 }
 0x118   : > { %v1776_v51 = vpop.f32.mrf.mxu0  ;;  %v1864_v52 = vpop.f32.mrf.mxu1 }
 0x11a   : > { %v1777_v53 = vpop.f32.mrf.mxu0  ;;  %v1865_v54 = vpop.f32.mrf.mxu1 }
 0x11b   : > { %v2478_v55 = vadd.f32 %v1777_v53, %v1776_v51  ;;  %v1866_v49 = vadd.f32 %v1865_v54, %v1864_v52  ;;  %v1050_v54 = vadd.f32 %v2436_v62, %v2563_v5 }
 0x11c   : > { %v1779_v58 = vpop.f32.mrf.mxu0  ;;  %v2480_v59 = vpop.f32.mrf.mxu1 }
 0x11e   : > { %v1780_v60 = vpop.f32.mrf.mxu0  ;;  %v2482_v61 = vpop.f32.mrf.mxu1 }
 0x11f   : > { %v2484_v0 = vadd.f32 %v1780_v60, %v1779_v58 }
 0x120   : > { %v1782_v1 = vpop.f32.mrf.mxu0  ;;  %v2486_v2 = vpop.f32.mrf.mxu1 }
 0x122   : > { %v1783_v3 = vpop.f32.mrf.mxu0  ;;  %v2488_v6 = vpop.f32.mrf.mxu1 }
 0x123   : > { %v2490_v7 = vadd.f32 %v1783_v3, %v1782_v1 }
 0x124   : > { %v2492_v8 = vpop.f32.mrf.mxu0  ;;  %v1873_v9 = vpop.f32.mrf.mxu1 }
 0x126   : > { %v2494_v12 = vpop.f32.mrf.mxu0  ;;  %v1874_v13 = vpop.f32.mrf.mxu1 }
 0x128   : > { %v2496_v14 = vpop.f32.mrf.mxu0  ;;  %v2498_v15 = vpop.f32.mrf.mxu1 }
 0x12a   : > { %v2500_v18 = vpop.f32.mrf.mxu0  ;;  %v2502_v19 = vpop.f32.mrf.mxu1 }
 0x12c   : > { %v2504_v20 = vpop.f32.mrf.mxu0  ;;  %v2506_v21 = vpop.f32.mrf.mxu1 }
 0x12e   : > { %v2508_v24 = vpop.f32.mrf.mxu0  ;;  %v2510_v25 = vpop.f32.mrf.mxu1 }
 0x130   : > { %v2512_v26 = vpop.f32.mrf.mxu0  ;;  %v2514_v27 = vpop.f32.mrf.mxu1 }
 0x131   : > { %2794 = vst [vmem:[#allocation10_spill] sm:$0xff] %v2512_v26 }
 0x132   : > { %v2516_v30 = vpop.f32.mrf.mxu0  ;;  %v2518_v31 = vpop.f32.mrf.mxu1 }
 0x133   : > { %2795 = vst [vmem:[#allocation11_spill] sm:$0xff] %v2516_v30 }
 0x134   : > { %v2520_v32 = vpop.f32.mrf.mxu0  ;;  %v2522_v33 = vpop.f32.mrf.mxu1 }
 0x136   : > { %v2524_v36 = vpop.f32.mrf.mxu0  ;;  %v2526_v38 = vpop.f32.mrf.mxu1 }
 0x138   : > { %v2528_v41 = vpop.f32.mrf.mxu0  ;;  %v2530_v43 = vpop.f32.mrf.mxu1 }
 0x13a   : > { %v2532_v46 = vpop.f32.mrf.mxu0  ;;  %v2534_v48 = vpop.f32.mrf.mxu1 }
 0x13b   : > { %2796 = vst [vmem:[#allocation12_spill] sm:$0xff] %v2532_v46 }
 0x13c   : > { %v2536_v51 = vpop.f32.mrf.mxu0  ;;  %v2538_v53 = vpop.f32.mrf.mxu1 }
 0x13d   : > { %2797 = vst [vmem:[#allocation13_spill] sm:$0xff] %v2536_v51  ;;  %v1857_v51 = vadd.f32 %v2466_v39, %v2464_v37  ;;  %v1058_v37 = vadd.f32 %v2444_v10, %v2563_v5  ;;  %v1860_v39 = vadd.f32 %v2472_v44, %v2470_v42  ;;  %v1071_v42 = vadd.f32 %v2456_v28, %v2563_v5 }
 0x13e   : > { %v2540_v58 = vpop.f32.mrf.mxu0  ;;  %v2542_v60 = vpop.f32.mrf.mxu1  ;;  %v1869_v44 = vadd.f32 %v2482_v61, %v2480_v59  ;;  %v1074_v61 = vadd.f32 %v2460_v34, %v2563_v5 }
 0x13f   : > { %2798 = vst [vmem:[#allocation14_spill] sm:$0xff] %v2540_v58  ;;  %v1208_v52 = vadd.f32 %v1857_v51, %v1047_v47  ;;  %v1211_v62 = vadd.f32 %v1860_v39, %v1050_v54  ;;  %v1878_v47 = vadd.f32 %v2502_v19, %v2498_v15  ;;  %v1887_v19 = vadd.f32 %v2526_v38, %v2522_v33 }
 0x140   : > { %v2544_v1 = vpop.f32.mrf.mxu0  ;;  %v2546_v3 = vpop.f32.mrf.mxu1  ;;  %v1079_v38 = vadd.f32 %v2468_v40, %v2563_v5  ;;  %v1884_v40 = vadd.f32 %v2518_v31, %v2514_v27 }
 0x141   : > { %2799 = vst [vmem:[#allocation15_spill] sm:$0xff] %v2544_v1  ;;  %v1235_v39 = vadd.f32 %v1878_v47, %v1074_v61  ;;  %v1095_v61 = vadd.f32 %v2484_v0, %v2563_v5 }
 0x142   : > { %v2548_v35 = vpop.f32.mrf.mxu0  ;;  %v2550_v29 = vpop.f32.mrf.mxu1 }
 0x143   : > { %2800 = vst [vmem:[#allocation16_spill] sm:$0xff] %v2548_v35  ;;  %v1055_v35 = vadd.f32 %v2440_v4, %v2563_v5 }
 0x144   : > { %v2552_v23 = vpop.f32.mrf.mxu0  ;;  %v2554_v17 = vpop.f32.mrf.mxu1 }
 0x145   : > { %2801 = vst [vmem:[#allocation17_spill] sm:$0xff] %v2552_v23  ;;  %v1216_v30 = vadd.f32 %v1863_v57, %v1055_v35 }
 0x146   : > { %v2556_v63 = vpop.f32.mrf.mxu0  ;;  %v2558_v11 = vpop.f32.mrf.mxu1 }
 0x147   : > { %2802 = vst [vmem:[#allocation18_spill] sm:$0xff] %v2556_v63 }
 0x148   : > { %v2565_v1 = vpop.f32.mrf.mxu0  ;;  %v2567_v58 = vpop.f32.mrf.mxu1 }
 0x149   : > { %2803 = vst [vmem:[#allocation19_spill] sm:$0xff] %v2565_v1 }
 0x14a   : > { %v2574_v63 = vpop.f32.mrf.mxu0  ;;  %v2576_v23 = vpop.f32.mrf.mxu1 }
 0x14b   : > { %2804 = vst [vmem:[#allocation20_spill] sm:$0xff] %v2574_v63  ;;  %v1875_v63 = vadd.f32 %v1874_v13, %v1873_v9  ;;  %v1063_v13 = vadd.f32 %v2448_v16, %v2563_v5 }
 0x14c   : > { %v2580_v26 = vpop.f32.mrf.mxu1  ;;  %v1981_v4 = vpop.f32.mrf.mxu0 }
 0x14d   : > { %2805 = vst [vmem:[#allocation21_spill] sm:$0xff] %v2580_v26  ;;  %v1377_v56 = vadd.f32 %v1981_v4, %v1216_v30  ;;  %v1219_v26 = vadd.f32 %v1866_v49, %v1058_v37  ;;  %v1232_v49 = vadd.f32 %v1875_v63, %v1071_v42  ;;  %v1066_v63 = vadd.f32 %v2452_v22, %v2563_v5 }
 0x14e   : > { %v2591_v57 = vpop.f32.mrf.mxu1  ;;  %v1368_v35 = vpop.f32.mrf.mxu0 }
 0x14f   : > { %1498 = vst.msk [vmem:[%s2585_s21 + $0x10] sm:$0xff] %vm1495_vm1, %v1377_v56  ;;  %v1369_v1 = vadd.f32 %v1368_v35, %v1208_v52  ;;  %v1881_v52 = vadd.f32 %v2510_v25, %v2506_v21  ;;  %v1787_v21 = vadd.f32 %v2494_v12, %v2492_v8  ;;  %v1082_v8 = vadd.f32 %v2474_v45, %v2563_v5 }
 0x150   : > { %v2597_v46 = vpop.f32.mrf.mxu1  ;;  %v1982_v10 = vpop.f32.mrf.mxu0  ;;  %v1899_v12 = vadd.f32 %v2558_v11, %v2554_v17 }
 0x151   : > { %1496 = vst.msk [vmem:[%s2585_s21] sm:$0xff] %vm1495_vm1, %v1369_v1  ;;  %v1380_v30 = vadd.f32 %v1982_v10, %v1219_v26  ;;  %v1872_v26 = vadd.f32 %v2488_v6, %v2486_v2  ;;  %v1224_v1 = vadd.f32 %v1869_v44, %v1063_v13  ;;  %v1087_v6 = vadd.f32 %v2476_v50, %v2563_v5 }
 0x152   : > { %v2605_v51 = vpop.f32.mrf.mxu1  ;;  %v1371_v9 = vpop.f32.mrf.mxu0  ;;  %v1890_v10 = vadd.f32 %v2534_v48, %v2530_v43  ;;  %v1240_v48 = vadd.f32 %v1881_v52, %v1079_v38  ;;  %v1103_v27 = vadd.f32 %v1787_v21, %v2563_v5  ;;  %v1243_v17 = vadd.f32 %v1884_v40, %v1082_v8  ;;  %v2809_v38 = vld [vmem:[#allocation11_spill] sm:$0xff]  ;;  %v2811_v21 = vld [vmem:[#allocation18_spill] sm:$0xff] }
 0x153   : > { %1499 = vst.msk [vmem:[%s2585_s21 + $0x18] sm:$0xff] %vm1495_vm1, %v1380_v30  ;;  %v1372_v28 = vadd.f32 %v1371_v9, %v1211_v62  ;;  %v1227_v35 = vadd.f32 %v1872_v26, %v1066_v63  ;;  %v1248_v42 = vadd.f32 %v1887_v19, %v1087_v6  ;;  %v1090_v30 = vadd.f32 %v2478_v55, %v2563_v5  ;;  %v2806_v6 = vld [vmem:[#allocation12_spill] sm:$0xff]  ;;  %v2813_v8 = vld [vmem:[#allocation14_spill] sm:$0xff] }
 0x154   : > { %v2613_v4 = vpop.f32.mrf.mxu1  ;;  %v1985_v59 = vpop.f32.mrf.mxu0  ;;  %v1902_v26 = vadd.f32 %v2576_v23, %v2567_v58  ;;  %v1793_v58 = vadd.f32 %v2508_v24, %v2504_v20  ;;  %v1802_v20 = vadd.f32 %v2806_v6, %v2528_v41  ;;  %v2807_v24 = vld [vmem:[#allocation21_spill] sm:$0xff] }
 0x155   : > { %1497 = vst.msk [vmem:[%s2585_s21 + $0x8] sm:$0xff] %vm1495_vm1, %v1372_v28  ;;  %v1393_v16 = vadd.f32 %v1985_v59, %v1232_v49  ;;  %v1251_v13 = vadd.f32 %v1890_v10, %v1090_v30  ;;  %v1790_v28 = vadd.f32 %v2500_v18, %v2496_v14  ;;  %v1893_v49 = vadd.f32 %v2542_v60, %v2538_v53 }
 0x156   : > { %v2621_v37 = vpop.f32.mrf.mxu1  ;;  %v1384_v15 = vpop.f32.mrf.mxu0  ;;  %v1264_v18 = vadd.f32 %v1899_v12, %v1103_v27  ;;  %v1799_v53 = vadd.f32 %v2524_v36, %v2520_v32  ;;  %v1098_v32 = vadd.f32 %v2490_v7, %v2563_v5  ;;  %v1905_v52 = vadd.f32 %v2591_v57, %v2807_v24 }
 0x157   : > { %1502 = vst.msk [vmem:[%s2585_s21 + $0x30] sm:$0xff] %vm1495_vm1, %v1393_v16  ;;  %v1385_v34 = vadd.f32 %v1384_v15, %v1224_v1  ;;  %v1106_v1 = vadd.f32 %v1790_v28, %v2563_v5  ;;  %v1896_v15 = vadd.f32 %v2550_v29, %v2546_v3  ;;  %v1256_v23 = vadd.f32 %v1893_v49, %v1095_v61 }
 0x158   : > { %v2629_v56 = vpop.f32.mrf.mxu1  ;;  %v1986_v2 = vpop.f32.mrf.mxu0  ;;  %v1911_v36 = vadd.f32 %v2621_v37, %v2613_v4  ;;  %v1111_v37 = vadd.f32 %v1793_v58, %v2563_v5 }
 0x159   : > { %1500 = vst.msk [vmem:[%s2585_s21 + $0x20] sm:$0xff] %vm1495_vm1, %v1385_v34  ;;  %v1396_v22 = vadd.f32 %v1986_v2, %v1235_v39  ;;  %v1267_v3 = vadd.f32 %v1902_v26, %v1106_v1  ;;  %v1119_v34 = vadd.f32 %v1799_v53, %v2563_v5  ;;  %v1259_v4 = vadd.f32 %v1896_v15, %v1098_v32  ;;  %v2816_v1 = vld [vmem:[#allocation15_spill] sm:$0xff]  ;;  %v2817_v15 = vld [vmem:[#allocation16_spill] sm:$0xff] }
 0x15a   : > { %v2637_v54 = vpop.f32.mrf.mxu1  ;;  %v1387_v33 = vpop.f32.mrf.mxu0 }
 0x15b   : > { %1503 = vst.msk [vmem:[%s2585_s21 + $0x38] sm:$0xff] %vm1495_vm1, %v1396_v22  ;;  %v1388_v50 = vadd.f32 %v1387_v33, %v1227_v35  ;;  %v2808_v33 = vld [vmem:[#allocation10_spill] sm:$0xff]  ;;  %v1280_v57 = vadd.f32 %v1911_v36, %v1119_v34 }
 0x15c   : > { %v2647_v25 = vpop.f32.mrf.mxu1  ;;  %v1989_v44 = vpop.f32.mrf.mxu0  ;;  %v1796_v10 = vadd.f32 %v2809_v38, %v2808_v33  ;;  %v2819_v33 = vld [vmem:[#allocation2_spill] sm:$0xff] }
 0x15d   : > { %1501 = vst.msk [vmem:[%s2585_s21 + $0x28] sm:$0xff] %vm1495_vm1, %v1388_v50  ;;  %v1409_v43 = vadd.f32 %v1989_v44, %v1248_v42  ;;  %v1914_v50 = vadd.f32 %v2637_v54, %v2629_v56  ;;  %v2810_v42 = vld [vmem:[#allocation17_spill] sm:$0xff]  ;;  %v1272_v56 = vadd.f32 %v1905_v52, %v1111_v37  ;;  %v1143_v38 = vadd.f32 %v2819_v33, %v2563_v5 }
 0x15e   : > { %v2655_v62 = vpop.f32.mrf.mxu1  ;;  %v1400_v9 = vpop.f32.mrf.mxu0  ;;  %v1811_v44 = vadd.f32 %v2811_v21, %v2810_v42  ;;  %v2812_v54 = vld [vmem:[#allocation13_spill] sm:$0xff]  ;;  %v1114_v27 = vadd.f32 %v1796_v10, %v2563_v5 }
 0x15f   : > { %1506 = vst.msk [vmem:[%s2585_s21 + $0x50] sm:$0xff] %vm1495_vm1, %v1409_v43  ;;  %v1401_v55 = vadd.f32 %v1400_v9, %v1240_v48  ;;  %v1122_v43 = vadd.f32 %v1802_v20, %v2563_v5  ;;  %v1908_v48 = vadd.f32 %v2605_v51, %v2597_v46  ;;  %v1805_v12 = vadd.f32 %v2813_v8, %v2812_v54  ;;  %v2820_v21 = vld [vmem:[#allocation5_spill] sm:$0xff] }
 0x160   : > { %v2664_v31 = vpop.f32.mrf.mxu1  ;;  %v1990_v47 = vpop.f32.mrf.mxu0  ;;  %v1135_v46 = vadd.f32 %v1811_v44, %v2563_v5  ;;  %v1917_v26 = vadd.f32 %v2655_v62, %v2647_v25  ;;  %v1154_v44 = vadd.f32 %v2820_v21, %v2563_v5 }
 0x161   : > { %1504 = vst.msk [vmem:[%s2585_s21 + $0x40] sm:$0xff] %vm1495_vm1, %v1401_v55  ;;  %v1412_v11 = vadd.f32 %v1990_v47, %v1251_v13  ;;  %v1283_v49 = vadd.f32 %v1914_v50, %v1122_v43  ;;  %v1127_v53 = vadd.f32 %v1805_v12, %v2563_v5 }
 0x162   : > { %v2672_v45 = vpop.f32.mrf.mxu1  ;;  %v1403_v59 = vpop.f32.mrf.mxu0 }
 0x163   : > { %1507 = vst.msk [vmem:[%s2585_s21 + $0x58] sm:$0xff] %vm1495_vm1, %v1412_v11  ;;  %v1404_v14 = vadd.f32 %v1403_v59, %v1243_v17  ;;  %v2814_v17 = vld [vmem:[#allocation19_spill] sm:$0xff]  ;;  %v2815_v59 = vld [vmem:[#allocation20_spill] sm:$0xff]  ;;  %v1920_v32 = vadd.f32 %v2672_v45, %v2664_v31 }
 0x164   : > { %v1921_v60 = vpop.f32.mrf.mxu1  ;;  %v1993_v16 = vpop.f32.mrf.mxu0  ;;  %v1814_v61 = vadd.f32 %v2815_v59, %v2814_v17 }
 0x165   : > { %1505 = vst.msk [vmem:[%s2585_s21 + $0x48] sm:$0xff] %vm1495_vm1, %v1404_v14  ;;  %v1425_v0 = vadd.f32 %v1993_v16, %v1264_v18  ;;  %v1275_v18 = vadd.f32 %v1908_v48, %v1114_v27 }
 0x166   : > { %v1922_v63 = vpop.f32.mrf.mxu1  ;;  %v1416_v19 = vpop.f32.mrf.mxu0  ;;  %v1138_v62 = vadd.f32 %v1814_v61, %v2563_v5 }
 0x167   : > { %1510 = vst.msk [vmem:[%s2585_s21 + $0x70] sm:$0xff] %vm1495_vm1, %v1425_v0  ;;  %v1417_v29 = vadd.f32 %v1416_v19, %v1256_v23  ;;  %v1923_v47 = vadd.f32 %v1922_v63, %v1921_v60  ;;  %v1808_v0 = vadd.f32 %v2817_v15, %v2816_v1  ;;  %v2824_v1 = vld [vmem:[#allocation8_spill] sm:$0xff] }
 0x168   : > { %v1924_v39 = vpop.f32.mrf.mxu1  ;;  %v1994_v2 = vpop.f32.mrf.mxu0  ;;  %v1167_v15 = vadd.f32 %v2824_v1, %v2563_v5 }
 0x169   : > { %1508 = vst.msk [vmem:[%s2585_s21 + $0x60] sm:$0xff] %vm1495_vm1, %v1417_v29  ;;  %v1428_v7 = vadd.f32 %v1994_v2, %v1267_v3  ;;  %v1296_v63 = vadd.f32 %v1923_v47, %v1135_v46  ;;  %v1288_v29 = vadd.f32 %v1917_v26, %v1127_v53 }
 0x16a   : > { %v1925_v22 = vpop.f32.mrf.mxu1  ;;  %v1419_v35 = vpop.f32.mrf.mxu0 }
 0x16b   : > { %1511 = vst.msk [vmem:[%s2585_s21 + $0x78] sm:$0xff] %vm1495_vm1, %v1428_v7  ;;  %v1420_v41 = vadd.f32 %v1419_v35, %v1259_v4  ;;  %v1926_v23 = vadd.f32 %v1925_v22, %v1924_v39  ;;  %v1130_v39 = vadd.f32 %v1808_v0, %v2563_v5  ;;  %v2818_v7 = vld [vmem:[#allocation4_spill] sm:$0xff] }
 0x16c   : > { %v1927_v30 = vpop.f32.mrf.mxu1  ;;  %v1997_v40 = vpop.f32.mrf.mxu0  ;;  %v1151_v4 = vadd.f32 %v2818_v7, %v2563_v5 }
 0x16d   : > { %1509 = vst.msk [vmem:[%s2585_s21 + $0x68] sm:$0xff] %vm1495_vm1, %v1420_v41  ;;  %v1441_v9 = vadd.f32 %v1997_v40, %v1280_v57  ;;  %v1299_v20 = vadd.f32 %v1926_v23, %v1138_v62  ;;  %v1291_v37 = vadd.f32 %v1920_v32, %v1130_v39 }
 0x16e   : > { %v1928_v55 = vpop.f32.mrf.mxu1  ;;  %v1432_v13 = vpop.f32.mrf.mxu0 }
 0x16f   : > { %1514 = vst.msk [vmem:[%s2585_s21 + $0x90] sm:$0xff] %vm1495_vm1, %v1441_v9  ;;  %v1433_v28 = vadd.f32 %v1432_v13, %v1272_v56  ;;  %v1929_v31 = vadd.f32 %v1928_v55, %v1927_v30  ;;  %v2821_v56 = vld [vmem:[#allocation3_spill] sm:$0xff] }
 0x170   : > { %v1930_v51 = vpop.f32.mrf.mxu1  ;;  %v1998_v11 = vpop.f32.mrf.mxu0  ;;  %v1146_v54 = vadd.f32 %v2821_v56, %v2563_v5 }
 0x171   : > { %1512 = vst.msk [vmem:[%s2585_s21 + $0x80] sm:$0xff] %vm1495_vm1, %v1433_v28  ;;  %v1444_v14 = vadd.f32 %v1998_v11, %v1283_v49  ;;  %v1304_v43 = vadd.f32 %v1929_v31, %v1143_v38 }
 0x172   : > { %v1931_v60 = vpop.f32.mrf.mxu1  ;;  %v1435_v16 = vpop.f32.mrf.mxu0 }
 0x173   : > { %1515 = vst.msk [vmem:[%s2585_s21 + $0x98] sm:$0xff] %vm1495_vm1, %v1444_v14  ;;  %v1436_v58 = vadd.f32 %v1435_v16, %v1275_v18  ;;  %v1932_v30 = vadd.f32 %v1931_v60, %v1930_v51  ;;  %v2822_v51 = vld [vmem:[#allocation6_spill] sm:$0xff]  ;;  %v2823_v60 = vld [vmem:[#allocation7_spill] sm:$0xff] }
 0x174   : > { %v1933_v19 = vpop.f32.mrf.mxu1  ;;  %v2001_v25 = vpop.f32.mrf.mxu0  ;;  %v1159_v11 = vadd.f32 %v2822_v51, %v2563_v5  ;;  %v1162_v16 = vadd.f32 %v2823_v60, %v2563_v5 }
 0x175   : > { %1513 = vst.msk [vmem:[%s2585_s21 + $0x88] sm:$0xff] %vm1495_vm1, %v1436_v58  ;;  %v1457_v36 = vadd.f32 %v2001_v25, %v1296_v63  ;;  %v1307_v28 = vadd.f32 %v1932_v30, %v1146_v54 }
 0x176   : > { %v1934_v3 = vpop.f32.mrf.mxu1  ;;  %v1448_v34 = vpop.f32.mrf.mxu0 }
 0x177   : > { %1518 = vst.msk [vmem:[%s2585_s21 + $0xb0] sm:$0xff] %vm1495_vm1, %v1457_v36  ;;  %v1935_v2 = vadd.f32 %v1934_v3, %v1933_v19  ;;  %v1449_v6 = vadd.f32 %v1448_v34, %v1288_v29  ;;  %v2825_v36 = vld [vmem:[#allocation9_spill] sm:$0xff] }
 0x178   : > { %v1936_v24 = vpop.f32.mrf.mxu1  ;;  %v2002_v52 = vpop.f32.mrf.mxu0  ;;  %v1170_v29 = vadd.f32 %v2825_v36, %v2563_v5 }
 0x179   : > { %1516 = vst.msk [vmem:[%s2585_s21 + $0xa0] sm:$0xff] %vm1495_vm1, %v1449_v6  ;;  %v1460_v45 = vadd.f32 %v2002_v52, %v1299_v20  ;;  %v1312_v41 = vadd.f32 %v1935_v2, %v1151_v4 }
 0x17a   : > { %v1937_v22 = vpop.f32.mrf.mxu1  ;;  %v1451_v35 = vpop.f32.mrf.mxu0 }
 0x17b   : > { %1519 = vst.msk [vmem:[%s2585_s21 + $0xb8] sm:$0xff] %vm1495_vm1, %v1460_v45  ;;  %v1938_v10 = vadd.f32 %v1937_v22, %v1936_v24  ;;  %v1452_v50 = vadd.f32 %v1451_v35, %v1291_v37 }
 0x17c   : > { %v1939_v57 = vpop.f32.mrf.mxu1  ;;  %v2005_v42 = vpop.f32.mrf.mxu0 }
 0x17d   : > { %1517 = vst.msk [vmem:[%s2585_s21 + $0xa8] sm:$0xff] %vm1495_vm1, %v1452_v50  ;;  %v1473_v40 = vadd.f32 %v2005_v42, %v1312_v41  ;;  %v1315_v12 = vadd.f32 %v1938_v10, %v1154_v44 }
 0x17e   : > { %v1940_v48 = vpop.f32.mrf.mxu1  ;;  %v1464_v9 = vpop.f32.mrf.mxu0 }
 0x17f   : > { %1522 = vst.msk [vmem:[%s2585_s21 + $0xd0] sm:$0xff] %vm1495_vm1, %v1473_v40  ;;  %v1465_v8 = vadd.f32 %v1464_v9, %v1304_v43  ;;  %v1941_v27 = vadd.f32 %v1940_v48, %v1939_v57 }
 0x180   : > { %v1942_v55 = vpop.f32.mrf.mxu1  ;;  %v2006_v13 = vpop.f32.mrf.mxu0 }
 0x181   : > { %1520 = vst.msk [vmem:[%s2585_s21 + $0xc0] sm:$0xff] %vm1495_vm1, %v1465_v8  ;;  %v1476_v47 = vadd.f32 %v2006_v13, %v1315_v12  ;;  %v1320_v14 = vadd.f32 %v1941_v27, %v1159_v11 }
 0x182   : > { %v1943_v49 = vpop.f32.mrf.mxu1  ;;  %v1467_v46 = vpop.f32.mrf.mxu0 }
 0x183   : > { %1523 = vst.msk [vmem:[%s2585_s21 + $0xd8] sm:$0xff] %vm1495_vm1, %v1476_v47  ;;  %v1468_v17 = vadd.f32 %v1467_v46, %v1307_v28  ;;  %v1944_v26 = vadd.f32 %v1943_v49, %v1942_v55 }
 0x184   : > { %v1945_v59 = vpop.f32.mrf.mxu1  ;;  %v2009_v61 = vpop.f32.mrf.mxu0 }
 0x185   : > { %1521 = vst.msk [vmem:[%s2585_s21 + $0xc8] sm:$0xff] %vm1495_vm1, %v1468_v17  ;;  %v1323_v25 = vadd.f32 %v1944_v26, %v1162_v16 }
 0x186   : > { %v1946_v18 = vpop.f32.mrf.mxu1  ;;  %v1480_v53 = vpop.f32.mrf.mxu0 }
 0x187   : > { %v1947_v0 = vadd.f32 %v1946_v18, %v1945_v59  ;;  %v1481_v23 = vadd.f32 %v1480_v53, %v1320_v14 }
 0x188   : > { %v1948_v58 = vpop.f32.mrf.mxu1  ;;  %v2010_v63 = vpop.f32.mrf.mxu0 }
 0x189   : > { %v1328_v19 = vadd.f32 %v1947_v0, %v1167_v15  ;;  %1524 = vst.msk [vmem:[%s2585_s21 + $0xe0] sm:$0xff] %vm1495_vm1, %v1481_v23 }
 0x18a   : > { %v1949_v62 = vpop.f32.mrf.mxu1  ;;  %v1483_v32 = vpop.f32.mrf.mxu0 }
 0x18b   : > { %v1489_v3 = vadd.f32 %v2009_v61, %v1328_v19  ;;  %v1950_v34 = vadd.f32 %v1949_v62, %v1948_v58  ;;  %v1484_v39 = vadd.f32 %v1483_v32, %v1323_v25 }
 0x18d   : > { %1526 = vst.msk [vmem:[%s2585_s21 + $0xf0] sm:$0xff] %vm1495_vm1, %v1489_v3  ;;  %v1331_v2 = vadd.f32 %v1950_v34, %v1170_v29  ;;  %1525 = vst.msk [vmem:[%s2585_s21 + $0xe8] sm:$0xff] %vm1495_vm1, %v1484_v39 }
 0x18f   : > { %v1492_v6 = vadd.f32 %v2010_v63, %v1331_v2 }
 0x191   : > { %1527 = vst.msk [vmem:[%s2585_s21 + $0xf8] sm:$0xff] %vm1495_vm1, %v1492_v6 }
 0x192 PF: > { %s13_s12 = sadd.s32 1, %s2190_s12  }
 0x193   : > { %p10_p4 = scmp.ge.s32.totalorder %s13_s12, 4  }
 0x195   :  { %12 = sbr.rel (!%p10_p4) target bundleno = 1 (0x1), region = 62 }

// kernel: encoder_forward.7
= control target key start
LH: loop header
LB: loop body
LE: loop exit
PB: predicated region body
PF: predicated region fallthrough
CT: control target
= control target key end

     0   :  { %s3963_s12 = smov 0   ;;  %s5036_s0 = inlined_call_operand.vmem [shape: bf16[2,1024,288], index: 0, kind: input, shape index: {}]   ;;  %s5037_s1 = inlined_call_operand.vmem [shape: bf16[288,32], index: 1, kind: input, shape index: {}]   ;;  %s5038_s2 = inlined_call_operand.vmem [shape: f32[1,32], index: 2, kind: input, shape index: {}]   ;;  %s5039_s3 = inlined_call_operand.vmem [shape: f32[2,1024,32], index: 3, kind: output, shape index: {}]  }
   0x1 LB: > { %s3133_s13 = sadd.s32 4294967295, %s3940_s12   ;;  %p3137_p0 = scmp.ge.s32.totalorder %s3940_s12, 1  ;;  %s3940_s12 = sphi %s3963_s12, %s13_s12  }
   0x2   : > { %p137_p1 = scmp.lt.s32.totalorder %s3940_s12, 3 }
   0x4   : > { %p138_p2 = pnand %p3137_p0, %p137_p1 }
   0x6   : > { %141 = sbr.rel (%p138_p2) target bundleno = 656 (0x290), region = 32 }
   0xb   : > { %v3659_v0 = vld [vmem:[%s5037_s1 + $0x38] sm:$0xff]   ;;  %v3942_v1 = vmov 0   ;;  %v3660_v2 = vld [vmem:[%s5037_s1 + $0x30] sm:$0xff]   ;;  %p161_p3 = scmp.lt.s32.totalorder %s3133_s13, 1  ;;  %v3661_v3 = vld [vmem:[%s5037_s1 + $0x28] sm:$0xff]   ;;  %vm1539_vm0 = vcmask 261120  }
   0xc   : > { %1732 = vmatprep.subr.bf16.mxu0 %v3942_v1  ;;  %3617 = vmatprep.subr.bf16.mxu1 %v3942_v1  ;;  %v3662_v4 = vld [vmem:[%s5037_s1 + $0x20] sm:$0xff]   ;;  %v3663_v5 = vld [vmem:[%s5037_s1 + $0x18] sm:$0xff]   ;;  %v3664_v7 = vld [vmem:[%s5037_s1 + $0x10] sm:$0xff]  }
   0xd   : > { %1733 = vmatpush1.bf16.msra.mxu0 %v3659_v0  ;;  %3633 = vmatpush1.bf16.msra.mxu1 %v3659_v0  ;;  %s5075_s13 = smov (!%p161_p3, %s3133_s13), 1  ;;  %v3665_v9 = vld [vmem:[%s5037_s1 + $0x8] sm:$0xff]   ;;  %v3666_v10 = vld [vmem:[%s5037_s1] sm:$0xff]   ;;  %v3667_v11 = vld [vmem:[%s5037_s1 + $0x78] sm:$0xff]  }
   0xe   : > { %1734 = vmatprep.subr.bf16.mxu0 %v3942_v1  ;;  %3618 = vmatprep.subr.bf16.mxu1 %v3942_v1  ;;  %s3649_s22 = smul.u32 1536, %s5075_s13  ;;  %v3668_v12 = vld [vmem:[%s5037_s1 + $0x70] sm:$0xff]   ;;  %v3669_v13 = vld [vmem:[%s5037_s1 + $0x68] sm:$0xff]   ;;  %v3670_v14 = vld [vmem:[%s5037_s1 + $0x60] sm:$0xff]   ;;  %s3418_s5 = sshll.u32 %s5075_s13, 10 }
   0xf   : > { %v3671_v15 = vld [vmem:[%s5037_s1 + $0x58] sm:$0xff]   ;;  %v3672_v16 = vld [vmem:[%s5037_s1 + $0x50] sm:$0xff]   ;;  %v3673_v17 = vld [vmem:[%s5037_s1 + $0x48] sm:$0xff]   ;;  %s4425_s13 = scalar_lea.vmem %s5039_s3, %s3418_s5 }
  0x10   : > { %s4000_s27 = scalar_lea.vmem %s5036_s0, %s3649_s22  ;;  %v3674_v18 = vld [vmem:[%s5037_s1 + $0x40] sm:$0xff]   ;;  %v3681_v19 = vld [vmem:[%s5037_s1 + $0x88] sm:$0xff]  }
  0x11   : > { %1735 = vmatpush1.bf16.msra.mxu0 %v3660_v2  ;;  %3634 = vmatpush1.bf16.msra.mxu1 %v3660_v2  ;;  %v3677_v6 = vld [vmem:[%s4000_s27 + $0x4] ss:$12 sps:$4 sm:$0xff]   ;;  %v3675_v20 = vld [vmem:[%s4000_s27] ss:$12 sps:$4 sm:$0xff]   ;;  %v3682_v22 = vld [vmem:[%s4000_s27 + $0x1c] ss:$12 sps:$4 sm:$0xff]  }
  0x12   : > { %1736 = vmatprep.subr.bf16.mxu0 %v3942_v1  ;;  %3619 = vmatprep.subr.bf16.mxu1 %v3942_v1  ;;  %v3680_v8 = vld [vmem:[%s4000_s27 + $0x484] ss:$12 sps:$4 sm:$0xff]   ;;  %v3678_v21 = vld [vmem:[%s4000_s27 + $0x480] ss:$12 sps:$4 sm:$0xff]   ;;  %v3684_v23 = vld [vmem:[%s4000_s27 + $0x49c] ss:$12 sps:$4 sm:$0xff]  }
  0x13   : > { %1764 = vmatprep.mubr.bf16.mxu0 %v3677_v6  ;;  %2148 = vmatprep.mubr.bf16.mxu1 %v3680_v8  ;;  %v3730_v24 = vld [vmem:[%s5037_s1 + $0x80] sm:$0xff]   ;;  %v3692_v29 = vld [vmem:[%s4000_s27 + $0x30] ss:$12 sps:$4 sm:$0xff]   ;;  %v3694_v31 = vld [vmem:[%s4000_s27 + $0x4c] ss:$12 sps:$4 sm:$0xff]  }
  0x14   : > { %v3686_v25 = vld [vmem:[%s4000_s27 + $0x18] ss:$12 sps:$4 sm:$0xff]   ;;  %v3688_v27 = vld [vmem:[%s4000_s27 + $0x34] ss:$12 sps:$4 sm:$0xff]   ;;  %v3693_v30 = vld [vmem:[%s4000_s27 + $0x4b0] ss:$12 sps:$4 sm:$0xff]  }
  0x15   : > { %1737 = vmatpush1.bf16.msra.mxu0 %v3661_v3  ;;  %3635 = vmatpush1.bf16.msra.mxu1 %v3661_v3  ;;  %v3687_v26 = vld [vmem:[%s4000_s27 + $0x498] ss:$12 sps:$4 sm:$0xff]   ;;  %v3690_v28 = vld [vmem:[%s4000_s27 + $0x4b4] ss:$12 sps:$4 sm:$0xff]   ;;  %v3706_v39 = vld [vmem:[%s4000_s27 + $0x7c] ss:$12 sps:$4 sm:$0xff]  }
  0x16   : > { %1738 = vmatprep.subr.bf16.mxu0 %v3942_v1  ;;  %3620 = vmatprep.subr.bf16.mxu1 %v3942_v1  ;;  %v3696_v32 = vld [vmem:[%s4000_s27 + $0x4cc] ss:$12 sps:$4 sm:$0xff]   ;;  %v3698_v33 = vld [vmem:[%s4000_s27 + $0x48] ss:$12 sps:$4 sm:$0xff]   ;;  %v3700_v35 = vld [vmem:[%s4000_s27 + $0x64] ss:$12 sps:$4 sm:$0xff]  }
  0x17   : > { %v3699_v34 = vld [vmem:[%s4000_s27 + $0x4c8] ss:$12 sps:$4 sm:$0xff]   ;;  %v3702_v36 = vld [vmem:[%s4000_s27 + $0x4e4] ss:$12 sps:$4 sm:$0xff]   ;;  %v3704_v37 = vld [vmem:[%s4000_s27 + $0x60] ss:$12 sps:$4 sm:$0xff]  }
  0x18   : > { %v3705_v38 = vld [vmem:[%s4000_s27 + $0x4e0] ss:$12 sps:$4 sm:$0xff]   ;;  %v3708_v40 = vld [vmem:[%s4000_s27 + $0x4fc] ss:$12 sps:$4 sm:$0xff]   ;;  %v3710_v41 = vld [vmem:[%s4000_s27 + $0x78] ss:$12 sps:$4 sm:$0xff]  }
  0x19   : > { %1739 = vmatpush1.bf16.msra.mxu0 %v3662_v4  ;;  %3636 = vmatpush1.bf16.msra.mxu1 %v3662_v4  ;;  %v3711_v42 = vld [vmem:[%s4000_s27 + $0x4f8] ss:$12 sps:$4 sm:$0xff]   ;;  %v3712_v43 = vld [vmem:[%s4000_s27 + $0x94] ss:$12 sps:$4 sm:$0xff]   ;;  %v3716_v45 = vld [vmem:[%s4000_s27 + $0x90] ss:$12 sps:$4 sm:$0xff]  }
  0x1a   : > { %1740 = vmatprep.subr.bf16.mxu0 %v3942_v1  ;;  %3621 = vmatprep.subr.bf16.mxu1 %v3942_v1  ;;  %v3714_v44 = vld [vmem:[%s4000_s27 + $0x514] ss:$12 sps:$4 sm:$0xff]   ;;  %v3717_v46 = vld [vmem:[%s4000_s27 + $0x510] ss:$12 sps:$4 sm:$0xff]   ;;  %v3718_v47 = vld [vmem:[%s4000_s27 + $0xac] ss:$12 sps:$4 sm:$0xff]  }
  0x1b   : > { %v3720_v48 = vld [vmem:[%s4000_s27 + $0x52c] ss:$12 sps:$4 sm:$0xff]   ;;  %v3722_v49 = vld [vmem:[%s4000_s27 + $0xa8] ss:$12 sps:$4 sm:$0xff]   ;;  %v3724_v51 = vld [vmem:[%s4000_s27 + $0xc4] ss:$12 sps:$4 sm:$0xff]  }
  0x1c   : > { %v3723_v50 = vld [vmem:[%s4000_s27 + $0x528] ss:$12 sps:$4 sm:$0xff]   ;;  %v3726_v52 = vld [vmem:[%s4000_s27 + $0x544] ss:$12 sps:$4 sm:$0xff]   ;;  %v3728_v53 = vld [vmem:[%s4000_s27 + $0xc0] ss:$12 sps:$4 sm:$0xff]  }
  0x1d   : > { %1741 = vmatpush1.bf16.msra.mxu0 %v3663_v5  ;;  %3637 = vmatpush1.bf16.msra.mxu1 %v3663_v5  ;;  %v3729_v54 = vld [vmem:[%s4000_s27 + $0x540] ss:$12 sps:$4 sm:$0xff]   ;;  %v3731_v55 = vld [vmem:[%s4000_s27 + $0xdc] ss:$12 sps:$4 sm:$0xff]   ;;  %v3735_v57 = vld [vmem:[%s4000_s27 + $0xd8] ss:$12 sps:$4 sm:$0xff]  }
  0x1e   : > { %1742 = vmatprep.subr.bf16.mxu0 %v3942_v1  ;;  %3622 = vmatprep.subr.bf16.mxu1 %v3942_v1  ;;  %v3733_v56 = vld [vmem:[%s4000_s27 + $0x55c] ss:$12 sps:$4 sm:$0xff]   ;;  %v3736_v58 = vld [vmem:[%s4000_s27 + $0x558] ss:$12 sps:$4 sm:$0xff]   ;;  %v3737_v59 = vld [vmem:[%s4000_s27 + $0xf4] ss:$12 sps:$4 sm:$0xff]  }
  0x1f   : > { %v3739_v60 = vld [vmem:[%s4000_s27 + $0x574] ss:$12 sps:$4 sm:$0xff]   ;;  %v3741_v61 = vld [vmem:[%s4000_s27 + $0xf0] ss:$12 sps:$4 sm:$0xff]   ;;  %v3743_v63 = vld [vmem:[%s4000_s27 + $0x10c] ss:$12 sps:$4 sm:$0xff]  }
  0x20   : > { %v3742_v62 = vld [vmem:[%s4000_s27 + $0x570] ss:$12 sps:$4 sm:$0xff]   ;;  %v3745_v0 = vld [vmem:[%s4000_s27 + $0x58c] ss:$12 sps:$4 sm:$0xff]   ;;  %v3748_v2 = vld [vmem:[%s4000_s27 + $0x588] ss:$12 sps:$4 sm:$0xff]  }
  0x21   : > { %1743 = vmatpush1.bf16.msra.mxu0 %v3664_v7  ;;  %3638 = vmatpush1.bf16.msra.mxu1 %v3664_v7  ;;  %v3749_v3 = vld [vmem:[%s4000_s27 + $0x124] ss:$12 sps:$4 sm:$0xff]   ;;  %v3753_v5 = vld [vmem:[%s4000_s27 + $0x120] ss:$12 sps:$4 sm:$0xff]   ;;  %v3755_v7 = vld [vmem:[%s4000_s27 + $0x13c] ss:$12 sps:$4 sm:$0xff]  }
  0x22   : > { %1744 = vmatprep.subr.bf16.mxu0 %v3942_v1  ;;  %3623 = vmatprep.subr.bf16.mxu1 %v3942_v1  ;;  %v3751_v4 = vld [vmem:[%s4000_s27 + $0x5a4] ss:$12 sps:$4 sm:$0xff]   ;;  %v3754_v6 = vld [vmem:[%s4000_s27 + $0x5a0] ss:$12 sps:$4 sm:$0xff]   ;;  %v3757_v8 = vld [vmem:[%s4000_s27 + $0x5bc] ss:$12 sps:$4 sm:$0xff]  }
  0x25   : > { %1745 = vmatpush1.bf16.msra.mxu0 %v3665_v9  ;;  %3639 = vmatpush1.bf16.msra.mxu1 %v3665_v9  ;;  %v3759_v9 = vld [vmem:[%s4000_s27 + $0x138] ss:$12 sps:$4 sm:$0xff]  }
  0x26   : > { %1746 = vmatprep.subr.bf16.mxu0 %v3942_v1  ;;  %3624 = vmatprep.subr.bf16.mxu1 %v3942_v1 }
  0x29   : > { %1747 = vmatpush1.bf16.msra.mxu0 %v3666_v10  ;;  %3640 = vmatpush1.bf16.msra.mxu1 %v3666_v10  ;;  %v3760_v10 = vld [vmem:[%s4000_s27 + $0x5b8] ss:$12 sps:$4 sm:$0xff]  }
  0x2a   : > { %1748 = vmatprep.subr.bf16.mxu0 %v3942_v1  ;;  %3625 = vmatprep.subr.bf16.mxu1 %v3942_v1 }
  0x2d   : > { %1749 = vmatpush2.bf16.msra.mxu0 %v3667_v11  ;;  %3641 = vmatpush2.bf16.msra.mxu1 %v3667_v11  ;;  %v3761_v11 = vld [vmem:[%s4000_s27 + $0x154] ss:$12 sps:$4 sm:$0xff]  }
  0x2e   : > { %1750 = vmatprep.subr.bf16.mxu0 %v3942_v1  ;;  %3626 = vmatprep.subr.bf16.mxu1 %v3942_v1 }
  0x31   : > { %1751 = vmatpush2.bf16.msra.mxu0 %v3668_v12  ;;  %3642 = vmatpush2.bf16.msra.mxu1 %v3668_v12  ;;  %v3763_v12 = vld [vmem:[%s4000_s27 + $0x5d4] ss:$12 sps:$4 sm:$0xff]  }
  0x32   : > { %1752 = vmatprep.subr.bf16.mxu0 %v3942_v1  ;;  %3627 = vmatprep.subr.bf16.mxu1 %v3942_v1 }
  0x35   : > { %1753 = vmatpush2.bf16.msra.mxu0 %v3669_v13  ;;  %3643 = vmatpush2.bf16.msra.mxu1 %v3669_v13  ;;  %v3765_v13 = vld [vmem:[%s4000_s27 + $0x150] ss:$12 sps:$4 sm:$0xff]  }
  0x36   : > { %1754 = vmatprep.subr.bf16.mxu0 %v3942_v1  ;;  %3628 = vmatprep.subr.bf16.mxu1 %v3942_v1 }
  0x39   : > { %1755 = vmatpush2.bf16.msra.mxu0 %v3670_v14  ;;  %3644 = vmatpush2.bf16.msra.mxu1 %v3670_v14  ;;  %v3766_v14 = vld [vmem:[%s4000_s27 + $0x5d0] ss:$12 sps:$4 sm:$0xff]  }
  0x3a   : > { %1756 = vmatprep.subr.bf16.mxu0 %v3942_v1  ;;  %3629 = vmatprep.subr.bf16.mxu1 %v3942_v1 }
  0x3d   : > { %1757 = vmatpush2.bf16.msra.mxu0 %v3671_v15  ;;  %3645 = vmatpush2.bf16.msra.mxu1 %v3671_v15  ;;  %v3767_v15 = vld [vmem:[%s4000_s27 + $0x16c] ss:$12 sps:$4 sm:$0xff]  }
  0x3e   : > { %1758 = vmatprep.subr.bf16.mxu0 %v3942_v1  ;;  %3630 = vmatprep.subr.bf16.mxu1 %v3942_v1 }
  0x41   : > { %1759 = vmatpush2.bf16.msra.mxu0 %v3672_v16  ;;  %3646 = vmatpush2.bf16.msra.mxu1 %v3672_v16  ;;  %v3769_v16 = vld [vmem:[%s4000_s27 + $0x5ec] ss:$12 sps:$4 sm:$0xff]  }
  0x42   : > { %1760 = vmatprep.subr.bf16.mxu0 %v3942_v1  ;;  %3631 = vmatprep.subr.bf16.mxu1 %v3942_v1 }
  0x45   : > { %1761 = vmatpush2.bf16.msra.mxu0 %v3673_v17  ;;  %3647 = vmatpush2.bf16.msra.mxu1 %v3673_v17  ;;  %v3771_v17 = vld [vmem:[%s4000_s27 + $0x168] ss:$12 sps:$4 sm:$0xff]  }
  0x46   : > { %1762 = vmatprep.subr.bf16.mxu0 %v3942_v1  ;;  %3632 = vmatprep.subr.bf16.mxu1 %v3942_v1  ;;  %v3747_v1 = vld [vmem:[%s4000_s27 + $0x108] ss:$12 sps:$4 sm:$0xff]  }
  0x49   : > { %1763 = vmatpush2.bf16.msra.mxu0 %v3674_v18  ;;  %3648 = vmatpush2.bf16.msra.mxu1 %v3674_v18  ;;  %v3772_v18 = vld [vmem:[%s4000_s27 + $0x5e8] ss:$12 sps:$4 sm:$0xff]  }
  0x4a   : > { %3485 = vmatprep.subr.bf16.mxu1 %v3681_v19 }
  0x4c   : > { %1765 = vmatmul.mubr.bf16.vlgmr.msra.gmra.mxu0 %v3675_v20  ;;  %2149 = vmatmul.mubr.bf16.vlgmr.msra.gmra.mxu1 %v3678_v21  ;;  %v3775_v20 = vld [vmem:[%s4000_s27 + $0x8] ss:$12 sps:$4 sm:$0xff]   ;;  %v3776_v21 = vld [vmem:[%s4000_s27 + $0x180] ss:$12 sps:$4 sm:$0xff]  }
  0x4d   : > { %3486 = vmatpush3.bf16.msra.mxu1 %v3681_v19  ;;  %1772 = vmatprep.mubr.bf16.mxu0 %v3682_v22  ;;  %v3773_v19 = vld [vmem:[%s4000_s27 + $0x184] ss:$12 sps:$4 sm:$0xff]   ;;  %v3777_v22 = vld [vmem:[%s4000_s27 + $0x20] ss:$12 sps:$4 sm:$0xff]  }
  0x4e   : > { %2156 = vmatprep.mubr.bf16.mxu1 %v3684_v23  ;;  %3487 = vmatprep.subr.bf16.mxu1 %v3730_v24  ;;  %v3778_v23 = vld [vmem:[%s4000_s27 + $0x19c] ss:$12 sps:$4 sm:$0xff]  }
  0x51   : > { %3488 = vmatpush3.bf16.msra.mxu1 %v3730_v24  ;;  %v3780_v24 = vld [vmem:[%s4000_s27 + $0x38] ss:$12 sps:$4 sm:$0xff]  }
  0x54   : > { %1773 = vmatmul.mubr.bf16.gmra.mxu0 %v3686_v25  ;;  %2157 = vmatmul.mubr.bf16.gmra.mxu1 %v3687_v26  ;;  %v3781_v25 = vld [vmem:[%s4000_s27 + $0x198] ss:$12 sps:$4 sm:$0xff]   ;;  %v3782_v26 = vld [vmem:[%s4000_s27 + $0x50] ss:$12 sps:$4 sm:$0xff]  }
  0x55   : > { %1780 = vmatprep.mubr.bf16.mxu0 %v3688_v27  ;;  %2164 = vmatprep.mubr.bf16.mxu1 %v3690_v28  ;;  %v3783_v27 = vld [vmem:[%s4000_s27 + $0x1b4] ss:$12 sps:$4 sm:$0xff]  }
  0x56   : > { %v3785_v28 = vld [vmem:[%s4000_s27 + $0x68] ss:$12 sps:$4 sm:$0xff]  }
  0x5c   : > { %1781 = vmatmul.mubr.bf16.gmra.mxu0 %v3692_v29  ;;  %2165 = vmatmul.mubr.bf16.gmra.mxu1 %v3693_v30  ;;  %v3786_v29 = vld [vmem:[%s4000_s27 + $0x1b0] ss:$12 sps:$4 sm:$0xff]   ;;  %v3787_v30 = vld [vmem:[%s4000_s27 + $0x80] ss:$12 sps:$4 sm:$0xff]  }
  0x5d   : > { %1788 = vmatprep.mubr.bf16.mxu0 %v3694_v31  ;;  %2172 = vmatprep.mubr.bf16.mxu1 %v3696_v32  ;;  %v3788_v31 = vld [vmem:[%s4000_s27 + $0x1cc] ss:$12 sps:$4 sm:$0xff]  }
  0x5e   : > { %v3790_v32 = vld [vmem:[%s4000_s27 + $0x98] ss:$12 sps:$4 sm:$0xff]  }
  0x64   : > { %1789 = vmatmul.mubr.bf16.gmra.mxu0 %v3698_v33  ;;  %2173 = vmatmul.mubr.bf16.gmra.mxu1 %v3699_v34  ;;  %v3791_v33 = vld [vmem:[%s4000_s27 + $0x1c8] ss:$12 sps:$4 sm:$0xff]   ;;  %v3792_v34 = vld [vmem:[%s4000_s27 + $0xb0] ss:$12 sps:$4 sm:$0xff]  }
  0x65   : > { %1796 = vmatprep.mubr.bf16.mxu0 %v3700_v35  ;;  %2180 = vmatprep.mubr.bf16.mxu1 %v3702_v36  ;;  %v3793_v35 = vld [vmem:[%s4000_s27 + $0x1e4] ss:$12 sps:$4 sm:$0xff]   ;;  %v3795_v36 = vld [vmem:[%s4000_s27 + $0xc8] ss:$12 sps:$4 sm:$0xff]  }
  0x6c   : > { %1797 = vmatmul.mubr.bf16.gmra.mxu0 %v3704_v37  ;;  %2181 = vmatmul.mubr.bf16.gmra.mxu1 %v3705_v38  ;;  %v3796_v37 = vld [vmem:[%s4000_s27 + $0x1e0] ss:$12 sps:$4 sm:$0xff]  }
  0x6d   : > { %1804 = vmatprep.mubr.bf16.mxu0 %v3706_v39  ;;  %2188 = vmatprep.mubr.bf16.mxu1 %v3708_v40  ;;  %v3797_v38 = vld [vmem:[%s4000_s27 + $0xe0] ss:$12 sps:$4 sm:$0xff]   ;;  %v3798_v39 = vld [vmem:[%s4000_s27 + $0x1fc] ss:$12 sps:$4 sm:$0xff]   ;;  %v3800_v40 = vld [vmem:[%s4000_s27 + $0xf8] ss:$12 sps:$4 sm:$0xff]  }
  0x74   : > { %1805 = vmatmul.mubr.bf16.gmra.mxu0 %v3710_v41  ;;  %2189 = vmatmul.mubr.bf16.gmra.mxu1 %v3711_v42  ;;  %v3801_v41 = vld [vmem:[%s4000_s27 + $0x1f8] ss:$12 sps:$4 sm:$0xff]   ;;  %v3802_v42 = vld [vmem:[%s4000_s27 + $0x110] ss:$12 sps:$4 sm:$0xff]  }
  0x75   : > { %1812 = vmatprep.mubr.bf16.mxu0 %v3712_v43  ;;  %2196 = vmatprep.mubr.bf16.mxu1 %v3714_v44  ;;  %v3803_v43 = vld [vmem:[%s4000_s27 + $0x214] ss:$12 sps:$4 sm:$0xff]  }
  0x76   : > { %v3805_v44 = vld [vmem:[%s4000_s27 + $0x128] ss:$12 sps:$4 sm:$0xff]  }
  0x7c   : > { %1813 = vmatmul.mubr.bf16.gmra.mxu0 %v3716_v45  ;;  %2197 = vmatmul.mubr.bf16.gmra.mxu1 %v3717_v46  ;;  %v3806_v45 = vld [vmem:[%s4000_s27 + $0x210] ss:$12 sps:$4 sm:$0xff]   ;;  %v3807_v46 = vld [vmem:[%s4000_s27 + $0x140] ss:$12 sps:$4 sm:$0xff]  }
  0x7d   : > { %1820 = vmatprep.mubr.bf16.mxu0 %v3718_v47  ;;  %2204 = vmatprep.mubr.bf16.mxu1 %v3720_v48  ;;  %v3808_v47 = vld [vmem:[%s4000_s27 + $0x22c] ss:$12 sps:$4 sm:$0xff]  }
  0x7e   : > { %v3810_v48 = vld [vmem:[%s4000_s27 + $0x158] ss:$12 sps:$4 sm:$0xff]  }
  0x84   : > { %1821 = vmatmul.mubr.bf16.gmra.mxu0 %v3722_v49  ;;  %2205 = vmatmul.mubr.bf16.gmra.mxu1 %v3723_v50  ;;  %v3811_v49 = vld [vmem:[%s4000_s27 + $0x228] ss:$12 sps:$4 sm:$0xff]   ;;  %v3812_v50 = vld [vmem:[%s4000_s27 + $0x170] ss:$12 sps:$4 sm:$0xff]  }
  0x85   : > { %1828 = vmatprep.mubr.bf16.mxu0 %v3724_v51  ;;  %2212 = vmatprep.mubr.bf16.mxu1 %v3726_v52  ;;  %v3813_v51 = vld [vmem:[%s4000_s27 + $0x244] ss:$12 sps:$4 sm:$0xff]   ;;  %v3815_v52 = vld [vmem:[%s4000_s27 + $0x188] ss:$12 sps:$4 sm:$0xff]  }
  0x8c   : > { %1829 = vmatmul.mubr.bf16.gmra.mxu0 %v3728_v53  ;;  %2213 = vmatmul.mubr.bf16.gmra.mxu1 %v3729_v54  ;;  %v3816_v53 = vld [vmem:[%s4000_s27 + $0x240] ss:$12 sps:$4 sm:$0xff]  }
  0x8d   : > { %1836 = vmatprep.mubr.bf16.mxu0 %v3731_v55  ;;  %2220 = vmatprep.mubr.bf16.mxu1 %v3733_v56  ;;  %v3817_v54 = vld [vmem:[%s4000_s27 + $0x1a0] ss:$12 sps:$4 sm:$0xff]   ;;  %v3818_v55 = vld [vmem:[%s4000_s27 + $0x25c] ss:$12 sps:$4 sm:$0xff]   ;;  %v3820_v56 = vld [vmem:[%s4000_s27 + $0x1b8] ss:$12 sps:$4 sm:$0xff]  }
  0x94   : > { %1837 = vmatmul.mubr.bf16.gmra.mxu0 %v3735_v57  ;;  %2221 = vmatmul.mubr.bf16.gmra.mxu1 %v3736_v58 }
  0x95   : > { %1844 = vmatprep.mubr.bf16.mxu0 %v3737_v59  ;;  %2228 = vmatprep.mubr.bf16.mxu1 %v3739_v60 }
  0x9c   : > { %1845 = vmatmul.mubr.bf16.gmra.mxu0 %v3741_v61  ;;  %2229 = vmatmul.mubr.bf16.gmra.mxu1 %v3742_v62 }
  0x9d   : > { %1852 = vmatprep.mubr.bf16.mxu0 %v3743_v63  ;;  %2236 = vmatprep.mubr.bf16.mxu1 %v3745_v0  ;;  %v3821_v63 = vld [vmem:[%s4000_s27 + $0x258] ss:$12 sps:$4 sm:$0xff]   ;;  %v3822_v0 = vld [vmem:[%s4000_s27 + $0x1d0] ss:$12 sps:$4 sm:$0xff]  }
  0xa4   : > { %1853 = vmatmul.mubr.bf16.gmra.mxu0 %v3747_v1  ;;  %2237 = vmatmul.mubr.bf16.gmra.mxu1 %v3748_v2  ;;  %v3823_v1 = vld [vmem:[%s4000_s27 + $0x274] ss:$12 sps:$4 sm:$0xff]  }
  0xa5   : > { %1860 = vmatprep.mubr.bf16.mxu0 %v3749_v3  ;;  %2244 = vmatprep.mubr.bf16.mxu1 %v3751_v4  ;;  %v3825_v2 = vld [vmem:[%s4000_s27 + $0x1e8] ss:$12 sps:$4 sm:$0xff]  }
  0xac   : > { %1861 = vmatmul.mubr.bf16.gmra.mxu0 %v3753_v5  ;;  %2245 = vmatmul.mubr.bf16.gmra.mxu1 %v3754_v6 }
  0xad   : > { %1868 = vmatprep.mubr.bf16.mxu0 %v3755_v7  ;;  %2252 = vmatprep.mubr.bf16.mxu1 %v3757_v8 }
  0xb4   : > { %1869 = vmatmul.mubr.bf16.gmra.mxu0 %v3759_v9  ;;  %2253 = vmatmul.mubr.bf16.gmra.mxu1 %v3760_v10 }
  0xb5   : > { %1876 = vmatprep.mubr.bf16.mxu0 %v3761_v11  ;;  %2260 = vmatprep.mubr.bf16.mxu1 %v3763_v12  ;;  %v3826_v11 = vld [vmem:[%s4000_s27 + $0x270] ss:$12 sps:$4 sm:$0xff]   ;;  %v3827_v12 = vld [vmem:[%s4000_s27 + $0x200] ss:$12 sps:$4 sm:$0xff]  }
  0xbc   : > { %1877 = vmatmul.mubr.bf16.gmra.mxu0 %v3765_v13  ;;  %2261 = vmatmul.mubr.bf16.gmra.mxu1 %v3766_v14  ;;  %v3828_v13 = vld [vmem:[%s4000_s27 + $0x28c] ss:$12 sps:$4 sm:$0xff]  }
  0xbd   : > { %1884 = vmatprep.mubr.bf16.mxu0 %v3767_v15  ;;  %2268 = vmatprep.mubr.bf16.mxu1 %v3769_v16  ;;  %v3830_v14 = vld [vmem:[%s4000_s27 + $0x218] ss:$12 sps:$4 sm:$0xff]  }
  0xc4   : > { %1885 = vmatmul.mubr.bf16.gmra.mxu0 %v3771_v17  ;;  %2269 = vmatmul.mubr.bf16.gmra.mxu1 %v3772_v18 }
  0xc5   : > { %1892 = vmatprep.mubr.bf16.mxu0 %v3773_v19  ;;  %3489 = vmatprep.mubr.msk.bf16.mxu1 %vm1539_vm0, %v3775_v20 }
  0xcc   : > { %1893 = vmatmul.mubr.bf16.gmra.mxu0 %v3776_v21  ;;  %3490 = vmatmul.mubr.msk.bf16.vlgmr.msra.gmra.mxu1 %vm1539_vm0, %v3777_v22 }
  0xcd   : > { %1900 = vmatprep.mubr.bf16.mxu0 %v3778_v23  ;;  %3493 = vmatprep.mubr.msk.bf16.mxu1 %vm1539_vm0, %v3780_v24  ;;  %v3831_v23 = vld [vmem:[%s4000_s27 + $0x288] ss:$12 sps:$4 sm:$0xff]   ;;  %v3832_v24 = vld [vmem:[%s4000_s27 + $0x230] ss:$12 sps:$4 sm:$0xff]  }
  0xd4   : > { %1901 = vmatmul.mubr.bf16.gmra.mxu0 %v3781_v25  ;;  %3494 = vmatmul.mubr.msk.bf16.gmra.mxu1 %vm1539_vm0, %v3782_v26  ;;  %v3835_v25 = vld [vmem:[%s4000_s27 + $0x2a4] ss:$12 sps:$4 sm:$0xff]   ;;  %v3836_v26 = vld [vmem:[%s4000_s27 + $0x248] ss:$12 sps:$4 sm:$0xff]  }
  0xd5   : > { %1908 = vmatprep.mubr.bf16.mxu0 %v3783_v27  ;;  %3497 = vmatprep.mubr.msk.bf16.mxu1 %vm1539_vm0, %v3785_v28 }
  0xdc   : > { %1909 = vmatmul.mubr.bf16.gmra.mxu0 %v3786_v29  ;;  %3498 = vmatmul.mubr.msk.bf16.gmra.mxu1 %vm1539_vm0, %v3787_v30 }
  0xdd   : > { %1916 = vmatprep.mubr.bf16.mxu0 %v3788_v31  ;;  %3501 = vmatprep.mubr.msk.bf16.mxu1 %vm1539_vm0, %v3790_v32 }
  0xe4   : > { %1917 = vmatmul.mubr.bf16.gmra.mxu0 %v3791_v33  ;;  %3502 = vmatmul.mubr.msk.bf16.gmra.mxu1 %vm1539_vm0, %v3792_v34 }
  0xe5   : > { %1924 = vmatprep.mubr.bf16.mxu0 %v3793_v35  ;;  %3505 = vmatprep.mubr.msk.bf16.mxu1 %vm1539_vm0, %v3795_v36  ;;  %v3833_v35 = vld [vmem:[%s4000_s27 + $0x2a0] ss:$12 sps:$4 sm:$0xff]  }
  0xe6   : > { %v3837_v36 = vld [vmem:[%s4000_s27 + $0x260] ss:$12 sps:$4 sm:$0xff]  }
  0xec   : > { %1925 = vmatmul.mubr.bf16.gmra.mxu0 %v3796_v37  ;;  %3506 = vmatmul.mubr.msk.bf16.gmra.mxu1 %vm1539_vm0, %v3797_v38  ;;  %v3840_v37 = vld [vmem:[%s4000_s27 + $0x2bc] ss:$12 sps:$4 sm:$0xff]   ;;  %v3841_v38 = vld [vmem:[%s4000_s27 + $0x278] ss:$12 sps:$4 sm:$0xff]  }
  0xed   : > { %1932 = vmatprep.mubr.bf16.mxu0 %v3798_v39  ;;  %3509 = vmatprep.mubr.msk.bf16.mxu1 %vm1539_vm0, %v3800_v40 }
  0xf4   : > { %1933 = vmatmul.mubr.bf16.gmra.mxu0 %v3801_v41  ;;  %3510 = vmatmul.mubr.msk.bf16.gmra.mxu1 %vm1539_vm0, %v3802_v42 }
  0xf5   : > { %1940 = vmatprep.mubr.bf16.mxu0 %v3803_v43  ;;  %3513 = vmatprep.mubr.msk.bf16.mxu1 %vm1539_vm0, %v3805_v44 }
  0xfc   : > { %1941 = vmatmul.mubr.bf16.gmra.mxu0 %v3806_v45  ;;  %3514 = vmatmul.mubr.msk.bf16.gmra.mxu1 %vm1539_vm0, %v3807_v46 }
  0xfd   : > { %1948 = vmatprep.mubr.bf16.mxu0 %v3808_v47  ;;  %3517 = vmatprep.mubr.msk.bf16.mxu1 %vm1539_vm0, %v3810_v48  ;;  %v3838_v47 = vld [vmem:[%s4000_s27 + $0x2b8] ss:$12 sps:$4 sm:$0xff]   ;;  %v3842_v48 = vld [vmem:[%s4000_s27 + $0x290] ss:$12 sps:$4 sm:$0xff]  }
 0x104   : > { %1949 = vmatmul.mubr.bf16.gmra.mxu0 %v3811_v49  ;;  %3518 = vmatmul.mubr.msk.bf16.gmra.mxu1 %vm1539_vm0, %v3812_v50  ;;  %v3845_v49 = vld [vmem:[%s4000_s27 + $0x2d4] ss:$12 sps:$4 sm:$0xff]  }
 0x105   : > { %1956 = vmatprep.mubr.bf16.mxu0 %v3813_v51  ;;  %3521 = vmatprep.mubr.msk.bf16.mxu1 %vm1539_vm0, %v3815_v52  ;;  %v3846_v50 = vld [vmem:[%s4000_s27 + $0x2a8] ss:$12 sps:$4 sm:$0xff]  }
 0x10c   : > { %v4184_v57 = vpop.f32.mrf.mxu0  ;;  %1957 = vmatmul.mubr.bf16.gmra.mxu0 %v3816_v53  ;;  %v4186_v58 = vpop.f32.mrf.mxu1  ;;  %3522 = vmatmul.mubr.msk.bf16.gmra.mxu1 %vm1539_vm0, %v3817_v54 }
 0x10d   : > { %1964 = vmatprep.mubr.bf16.mxu0 %v3818_v55  ;;  %3525 = vmatprep.mubr.msk.bf16.mxu1 %vm1539_vm0, %v3820_v56 }
 0x10e   : > { %v1768_v59 = vpop.f32.mrf.mxu0  ;;  %v2152_v60 = vpop.f32.mrf.mxu1 }
 0x110   : > { %v4190_v61 = vpop.f32.mrf.mxu0  ;;  %v4192_v62 = vpop.f32.mrf.mxu1 }
 0x112   : > { %v1771_v3 = vpop.f32.mrf.mxu0  ;;  %v2155_v4 = vpop.f32.mrf.mxu1 }
 0x114   : > { %v4198_v5 = vpop.f32.mrf.mxu0  ;;  %1965 = vmatmul.mubr.bf16.gmra.mxu0 %v3821_v63  ;;  %v4200_v6 = vpop.f32.mrf.mxu1  ;;  %3526 = vmatmul.mubr.msk.bf16.gmra.mxu1 %vm1539_vm0, %v3822_v0  ;;  %v3843_v63 = vld [vmem:[%s4000_s27 + $0x2d0] ss:$12 sps:$4 sm:$0xff]   ;;  %v3847_v0 = vld [vmem:[%s4000_s27 + $0x2c0] ss:$12 sps:$4 sm:$0xff]  }
 0x115   : > { %1972 = vmatprep.mubr.bf16.mxu0 %v3823_v1  ;;  %3529 = vmatprep.mubr.msk.bf16.mxu1 %vm1539_vm0, %v3825_v2  ;;  %v3850_v1 = vld [vmem:[%s4000_s27 + $0x2ec] ss:$12 sps:$4 sm:$0xff]  }
 0x116   : > { %v1776_v7 = vpop.f32.mrf.mxu0  ;;  %v2160_v8 = vpop.f32.mrf.mxu1  ;;  %v3851_v2 = vld [vmem:[%s4000_s27 + $0x2d8] ss:$12 sps:$4 sm:$0xff]  }
 0x118   : > { %v4204_v9 = vpop.f32.mrf.mxu0  ;;  %v4206_v10 = vpop.f32.mrf.mxu1 }
 0x11a   : > { %v1779_v15 = vpop.f32.mrf.mxu0  ;;  %v2163_v16 = vpop.f32.mrf.mxu1 }
 0x11b   : > { %v3848_v15 = vld [vmem:[%s4000_s27 + $0x2e8] ss:$12 sps:$4 sm:$0xff]   ;;  %v3852_v16 = vld [vmem:[%s4000_s27 + $0x2f0] ss:$12 sps:$4 sm:$0xff]  }
 0x11c   : > { %v4212_v17 = vpop.f32.mrf.mxu0  ;;  %1973 = vmatmul.mubr.bf16.gmra.mxu0 %v3826_v11  ;;  %v4214_v18 = vpop.f32.mrf.mxu1  ;;  %3530 = vmatmul.mubr.msk.bf16.gmra.mxu1 %vm1539_vm0, %v3827_v12 }
 0x11d   : > { %1980 = vmatprep.mubr.bf16.mxu0 %v3828_v13  ;;  %3533 = vmatprep.mubr.msk.bf16.mxu1 %vm1539_vm0, %v3830_v14 }
 0x11e   : > { %v1784_v19 = vpop.f32.mrf.mxu0  ;;  %v2168_v20 = vpop.f32.mrf.mxu1 }
 0x11f   : > { %v3855_v19 = vld [vmem:[%s4000_s27 + $0x304] ss:$12 sps:$4 sm:$0xff]   ;;  %v3856_v20 = vld [vmem:[%s4000_s27 + $0x308] ss:$12 sps:$4 sm:$0xff]  }
 0x120   : > { %v4218_v21 = vpop.f32.mrf.mxu0  ;;  %v4220_v22 = vpop.f32.mrf.mxu1 }
 0x122   : > { %v1787_v27 = vpop.f32.mrf.mxu0  ;;  %v2171_v28 = vpop.f32.mrf.mxu1 }
 0x124   : > { %v4226_v29 = vpop.f32.mrf.mxu0  ;;  %1981 = vmatmul.mubr.bf16.gmra.mxu0 %v3831_v23  ;;  %v4228_v30 = vpop.f32.mrf.mxu1  ;;  %3534 = vmatmul.mubr.msk.bf16.gmra.mxu1 %vm1539_vm0, %v3832_v24 }
 0x125   : > { %1988 = vmatprep.mubr.bf16.mxu0 %v3835_v25  ;;  %3537 = vmatprep.mubr.msk.bf16.mxu1 %vm1539_vm0, %v3836_v26 }
 0x126   : > { %v1792_v31 = vpop.f32.mrf.mxu0  ;;  %v2176_v32 = vpop.f32.mrf.mxu1 }
 0x128   : > { %v4232_v33 = vpop.f32.mrf.mxu0  ;;  %v4234_v34 = vpop.f32.mrf.mxu1 }
 0x12a   : > { %v1795_v39 = vpop.f32.mrf.mxu0  ;;  %v2179_v40 = vpop.f32.mrf.mxu1 }
 0x12c   : > { %v4240_v41 = vpop.f32.mrf.mxu0  ;;  %1989 = vmatmul.mubr.bf16.gmra.mxu0 %v3833_v35  ;;  %v4242_v42 = vpop.f32.mrf.mxu1  ;;  %3538 = vmatmul.mubr.msk.bf16.gmra.mxu1 %vm1539_vm0, %v3837_v36  ;;  %v3853_v35 = vld [vmem:[%s4000_s27 + $0x300] ss:$12 sps:$4 sm:$0xff]  }
 0x12d   : > { %1996 = vmatprep.mubr.bf16.mxu0 %v3840_v37  ;;  %3541 = vmatprep.mubr.msk.bf16.mxu1 %vm1539_vm0, %v3841_v38  ;;  %v3857_v36 = vld [vmem:[%s4000_s27 + $0x320] ss:$12 sps:$4 sm:$0xff]   ;;  %v3860_v37 = vld [vmem:[%s4000_s27 + $0x31c] ss:$12 sps:$4 sm:$0xff]   ;;  %v3861_v38 = vld [vmem:[%s4000_s27 + $0x338] ss:$12 sps:$4 sm:$0xff]  }
 0x12e   : > { %v1800_v43 = vpop.f32.mrf.mxu0  ;;  %v2184_v44 = vpop.f32.mrf.mxu1 }
 0x130   : > { %v4246_v45 = vpop.f32.mrf.mxu0  ;;  %v4248_v46 = vpop.f32.mrf.mxu1 }
 0x132   : > { %v1803_v51 = vpop.f32.mrf.mxu0  ;;  %v2187_v52 = vpop.f32.mrf.mxu1 }
 0x133   : > { %v3858_v51 = vld [vmem:[%s4000_s27 + $0x318] ss:$12 sps:$4 sm:$0xff]   ;;  %v3862_v52 = vld [vmem:[%s4000_s27 + $0x350] ss:$12 sps:$4 sm:$0xff]  }
 0x134   : > { %v4254_v53 = vpop.f32.mrf.mxu0  ;;  %1997 = vmatmul.mubr.bf16.gmra.mxu0 %v3838_v47  ;;  %v4256_v54 = vpop.f32.mrf.mxu1  ;;  %3542 = vmatmul.mubr.msk.bf16.gmra.mxu1 %vm1539_vm0, %v3842_v48 }
 0x135   : > { %2004 = vmatprep.mubr.bf16.mxu0 %v3845_v49  ;;  %3545 = vmatprep.mubr.msk.bf16.mxu1 %vm1539_vm0, %v3846_v50 }
 0x136   : > { %v1808_v55 = vpop.f32.mrf.mxu0  ;;  %v2192_v56 = vpop.f32.mrf.mxu1 }
 0x137   : > { %v3865_v55 = vld [vmem:[%s4000_s27 + $0x334] ss:$12 sps:$4 sm:$0xff]  }
 0x138   : > { %v4260_v59 = vpop.f32.mrf.mxu0  ;;  %v4262_v60 = vpop.f32.mrf.mxu1  ;;  %v3866_v56 = vld [vmem:[%s4000_s27 + $0x368] ss:$12 sps:$4 sm:$0xff]  }
 0x13a   : > { %v1811_v3 = vpop.f32.mrf.mxu0  ;;  %v2195_v4 = vpop.f32.mrf.mxu1 }
 0x13c   : > { %v4268_v7 = vpop.f32.mrf.mxu0  ;;  %2005 = vmatmul.mubr.bf16.gmra.mxu0 %v3843_v63  ;;  %v4270_v8 = vpop.f32.mrf.mxu1  ;;  %3546 = vmatmul.mubr.msk.bf16.gmra.mxu1 %vm1539_vm0, %v3847_v0 }
 0x13d   : > { %2012 = vmatprep.mubr.bf16.mxu0 %v3850_v1  ;;  %3549 = vmatprep.mubr.msk.bf16.mxu1 %vm1539_vm0, %v3851_v2 }
 0x13e   : > { %v1816_v11 = vpop.f32.mrf.mxu0  ;;  %v2200_v12 = vpop.f32.mrf.mxu1 }
 0x140   : > { %v4274_v13 = vpop.f32.mrf.mxu0  ;;  %v4276_v14 = vpop.f32.mrf.mxu1 }
 0x141   : > { %5040 = vst [vmem:[#allocation2_spill] sm:$0xff] %v4276_v14 }
 0x142   : > { %v1819_v23 = vpop.f32.mrf.mxu0  ;;  %v2203_v24 = vpop.f32.mrf.mxu1 }
 0x144   : > { %v4282_v25 = vpop.f32.mrf.mxu0  ;;  %2013 = vmatmul.mubr.bf16.gmra.mxu0 %v3848_v15  ;;  %v4284_v26 = vpop.f32.mrf.mxu1  ;;  %3550 = vmatmul.mubr.msk.bf16.gmra.mxu1 %vm1539_vm0, %v3852_v16  ;;  %v3863_v15 = vld [vmem:[%s4000_s27 + $0x330] ss:$12 sps:$4 sm:$0xff]   ;;  %v3867_v16 = vld [vmem:[%s4000_s27 + $0x380] ss:$12 sps:$4 sm:$0xff]  }
 0x145   : > { %2020 = vmatprep.mubr.bf16.mxu0 %v3855_v19  ;;  %3553 = vmatprep.mubr.msk.bf16.mxu1 %vm1539_vm0, %v3856_v20  ;;  %v3870_v19 = vld [vmem:[%s4000_s27 + $0x34c] ss:$12 sps:$4 sm:$0xff]  }
 0x146   : > { %v1824_v27 = vpop.f32.mrf.mxu0  ;;  %v2208_v28 = vpop.f32.mrf.mxu1  ;;  %v3871_v20 = vld [vmem:[%s4000_s27 + $0x398] ss:$12 sps:$4 sm:$0xff]  }
 0x148   : > { %v4288_v31 = vpop.f32.mrf.mxu0  ;;  %v4290_v32 = vpop.f32.mrf.mxu1 }
 0x14a   : > { %v1827_v39 = vpop.f32.mrf.mxu0  ;;  %v2211_v40 = vpop.f32.mrf.mxu1 }
 0x14b   : > { %v3868_v39 = vld [vmem:[%s4000_s27 + $0x348] ss:$12 sps:$4 sm:$0xff]   ;;  %v3872_v40 = vld [vmem:[%s4000_s27 + $0x3b0] ss:$12 sps:$4 sm:$0xff]  }
 0x14c   : > { %v4296_v43 = vpop.f32.mrf.mxu0  ;;  %2021 = vmatmul.mubr.bf16.gmra.mxu0 %v3853_v35  ;;  %v4298_v44 = vpop.f32.mrf.mxu1  ;;  %3554 = vmatmul.mubr.msk.bf16.gmra.mxu1 %vm1539_vm0, %v3857_v36 }
 0x14d   : > { %5041 = vst [vmem:[#allocation3_spill] sm:$0xff] %v4298_v44  ;;  %2028 = vmatprep.mubr.bf16.mxu0 %v3860_v37  ;;  %3557 = vmatprep.mubr.msk.bf16.mxu1 %vm1539_vm0, %v3861_v38  ;;  %v3906_v44 = vld [vmem:[%s4000_s27 + $0x4e8] ss:$12 sps:$4 sm:$0xff]  }
 0x14e   : > { %v1832_v47 = vpop.f32.mrf.mxu0  ;;  %v2216_v48 = vpop.f32.mrf.mxu1 }
 0x14f   : > { %v3875_v47 = vld [vmem:[%s4000_s27 + $0x364] ss:$12 sps:$4 sm:$0xff]   ;;  %v3876_v48 = vld [vmem:[%s4000_s27 + $0x3c8] ss:$12 sps:$4 sm:$0xff]  }
 0x150   : > { %v4302_v49 = vpop.f32.mrf.mxu0  ;;  %v4304_v50 = vpop.f32.mrf.mxu1 }
 0x151   : > { %5042 = vst [vmem:[#allocation4_spill] sm:$0xff] %v4304_v50 }
 0x152   : > { %v1835_v63 = vpop.f32.mrf.mxu0  ;;  %v2219_v0 = vpop.f32.mrf.mxu1 }
 0x154   : > { %v4310_v1 = vpop.f32.mrf.mxu0  ;;  %2029 = vmatmul.mubr.bf16.gmra.mxu0 %v3858_v51  ;;  %v4312_v2 = vpop.f32.mrf.mxu1  ;;  %3558 = vmatmul.mubr.msk.bf16.gmra.mxu1 %vm1539_vm0, %v3862_v52 }
 0x155   : > { %5043 = vst [vmem:[#allocation5_spill] sm:$0xff] %v4312_v2  ;;  %2036 = vmatprep.mubr.bf16.mxu0 %v3865_v55  ;;  %3561 = vmatprep.mubr.msk.bf16.mxu1 %vm1539_vm0, %v3866_v56 }
 0x156   : > { %v1840_v3 = vpop.f32.mrf.mxu0  ;;  %v2224_v4 = vpop.f32.mrf.mxu1 }
 0x158   : > { %v4316_v11 = vpop.f32.mrf.mxu0  ;;  %v4318_v12 = vpop.f32.mrf.mxu1 }
 0x159   : > { %5044 = vst [vmem:[#allocation6_spill] sm:$0xff] %v4318_v12  ;;  %v3905_v12 = vld [vmem:[%s4000_s27 + $0x3f4] ss:$12 sps:$4 sm:$0xff]  }
 0x15a   : > { %v1843_v23 = vpop.f32.mrf.mxu0  ;;  %v2227_v24 = vpop.f32.mrf.mxu1 }
 0x15c   : > { %v4324_v27 = vpop.f32.mrf.mxu0  ;;  %2037 = vmatmul.mubr.bf16.gmra.mxu0 %v3863_v15  ;;  %v4326_v28 = vpop.f32.mrf.mxu1  ;;  %3562 = vmatmul.mubr.msk.bf16.gmra.mxu1 %vm1539_vm0, %v3867_v16  ;;  %v3873_v15 = vld [vmem:[%s4000_s27 + $0x360] ss:$12 sps:$4 sm:$0xff]  }
 0x15d   : > { %5045 = vst [vmem:[#allocation7_spill] sm:$0xff] %v4326_v28  ;;  %2044 = vmatprep.mubr.bf16.mxu0 %v3870_v19  ;;  %3565 = vmatprep.mubr.msk.bf16.mxu1 %vm1539_vm0, %v3871_v20  ;;  %v3877_v16 = vld [vmem:[%s4000_s27 + $0x3e0] ss:$12 sps:$4 sm:$0xff]   ;;  %v3880_v19 = vld [vmem:[%s4000_s27 + $0x37c] ss:$12 sps:$4 sm:$0xff]  }
 0x15e   : > { %v1848_v35 = vpop.f32.mrf.mxu0  ;;  %v2232_v36 = vpop.f32.mrf.mxu1  ;;  %v3881_v20 = vld [vmem:[%s4000_s27 + $0x3f8] ss:$12 sps:$4 sm:$0xff]   ;;  %v3893_v28 = vld [vmem:[%s4000_s27 + $0x3c0] ss:$12 sps:$4 sm:$0xff]  }
 0x160   : > { %v4330_v37 = vpop.f32.mrf.mxu0  ;;  %v4332_v38 = vpop.f32.mrf.mxu1 }
 0x161   : > { %5046 = vst [vmem:[#allocation8_spill] sm:$0xff] %v4332_v38  ;;  %v3888_v38 = vld [vmem:[%s4000_s27 + $0x3a8] ss:$12 sps:$4 sm:$0xff]  }
 0x162   : > { %v1851_v51 = vpop.f32.mrf.mxu0  ;;  %v2235_v52 = vpop.f32.mrf.mxu1 }
 0x163   : > { %v3878_v51 = vld [vmem:[%s4000_s27 + $0x378] ss:$12 sps:$4 sm:$0xff]   ;;  %v3882_v52 = vld [vmem:[%s4000_s27 + $0x410] ss:$12 sps:$4 sm:$0xff]  }
 0x164   : > { %v4338_v55 = vpop.f32.mrf.mxu0  ;;  %2045 = vmatmul.mubr.bf16.gmra.mxu0 %v3868_v39  ;;  %v4340_v56 = vpop.f32.mrf.mxu1  ;;  %3566 = vmatmul.mubr.msk.bf16.gmra.mxu1 %vm1539_vm0, %v3872_v40 }
 0x165   : > { %5047 = vst [vmem:[#allocation9_spill] sm:$0xff] %v4340_v56  ;;  %2052 = vmatprep.mubr.bf16.mxu0 %v3875_v47  ;;  %3569 = vmatprep.mubr.msk.bf16.mxu1 %vm1539_vm0, %v3876_v48  ;;  %v3901_v56 = vld [vmem:[%s4000_s27 + $0x4b8] ss:$12 sps:$4 sm:$0xff]  }
 0x166   : > { %v1856_v63 = vpop.f32.mrf.mxu0  ;;  %v2240_v0 = vpop.f32.mrf.mxu1 }
 0x167   : > { %v3885_v63 = vld [vmem:[%s4000_s27 + $0x394] ss:$12 sps:$4 sm:$0xff]  }
 0x168   : > { %v4344_v3 = vpop.f32.mrf.mxu0  ;;  %v4346_v4 = vpop.f32.mrf.mxu1  ;;  %v3886_v0 = vld [vmem:[%s4000_s27 + $0x428] ss:$12 sps:$4 sm:$0xff]  }
 0x169   : > { %5048 = vst [vmem:[#allocation10_spill] sm:$0xff] %v4346_v4 }
 0x16a   : > { %v1859_v23 = vpop.f32.mrf.mxu0  ;;  %v2243_v24 = vpop.f32.mrf.mxu1 }
 0x16c   : > { %v4352_v35 = vpop.f32.mrf.mxu0  ;;  %2053 = vmatmul.mubr.bf16.gmra.mxu0 %v3873_v15  ;;  %v4354_v36 = vpop.f32.mrf.mxu1  ;;  %3570 = vmatmul.mubr.msk.bf16.gmra.mxu1 %vm1539_vm0, %v3877_v16 }
 0x16d   : > { %5049 = vst [vmem:[#allocation11_spill] sm:$0xff] %v4354_v36  ;;  %2060 = vmatprep.mubr.bf16.mxu0 %v3880_v19  ;;  %3573 = vmatprep.mubr.msk.bf16.mxu1 %vm1539_vm0, %v3881_v20 }
 0x16e   : > { %v1864_v39 = vpop.f32.mrf.mxu0  ;;  %v2248_v40 = vpop.f32.mrf.mxu1 }
 0x170   : > { %v4358_v47 = vpop.f32.mrf.mxu0  ;;  %v4360_v48 = vpop.f32.mrf.mxu1 }
 0x171   : > { %5050 = vst [vmem:[#allocation12_spill] sm:$0xff] %v4360_v48  ;;  %v3883_v48 = vld [vmem:[%s4000_s27 + $0x390] ss:$12 sps:$4 sm:$0xff]  }
 0x172   : > { %v1867_v15 = vpop.f32.mrf.mxu0  ;;  %v2251_v23 = vpop.f32.mrf.mxu1 }
 0x173   : > { %v3887_v15 = vld [vmem:[%s4000_s27 + $0x440] ss:$12 sps:$4 sm:$0xff]  }
 0x174   : > { %v4366_v16 = vpop.f32.mrf.mxu0  ;;  %2061 = vmatmul.mubr.bf16.gmra.mxu0 %v3878_v51  ;;  %v4368_v19 = vpop.f32.mrf.mxu1  ;;  %3574 = vmatmul.mubr.msk.bf16.gmra.mxu1 %vm1539_vm0, %v3882_v52  ;;  %v3890_v23 = vld [vmem:[%s4000_s27 + $0x3ac] ss:$12 sps:$4 sm:$0xff]  }
 0x175   : > { %5051 = vst [vmem:[#allocation13_spill] sm:$0xff] %v4368_v19  ;;  %2068 = vmatprep.mubr.bf16.mxu0 %v3885_v63  ;;  %3577 = vmatprep.mubr.msk.bf16.mxu1 %vm1539_vm0, %v3886_v0  ;;  %v3891_v51 = vld [vmem:[%s4000_s27 + $0x458] ss:$12 sps:$4 sm:$0xff]  }
 0x176   : > { %v1872_v20 = vpop.f32.mrf.mxu0  ;;  %v2256_v24 = vpop.f32.mrf.mxu1 }
 0x178   : > { %v4372_v39 = vpop.f32.mrf.mxu0  ;;  %v4374_v40 = vpop.f32.mrf.mxu1 }
 0x179   : > { %5052 = vst [vmem:[#allocation14_spill] sm:$0xff] %v4374_v40 }
 0x17a   : > { %v1875_v36 = vpop.f32.mrf.mxu0  ;;  %v2259_v19 = vpop.f32.mrf.mxu1 }
 0x17b   : > { %v3892_v36 = vld [vmem:[%s4000_s27 + $0x470] ss:$12 sps:$4 sm:$0xff]  }
 0x17c   : > { %v4380_v52 = vpop.f32.mrf.mxu0  ;;  %2069 = vmatmul.mubr.bf16.gmra.mxu0 %v3883_v48  ;;  %v4382_v63 = vpop.f32.mrf.mxu1  ;;  %3578 = vmatmul.mubr.msk.bf16.gmra.mxu1 %vm1539_vm0, %v3887_v15  ;;  %v3895_v19 = vld [vmem:[%s4000_s27 + $0x3c4] ss:$12 sps:$4 sm:$0xff]   ;;  %v3896_v48 = vld [vmem:[%s4000_s27 + $0x488] ss:$12 sps:$4 sm:$0xff]  }
 0x17d   : > { %5053 = vst [vmem:[#allocation15_spill] sm:$0xff] %v4382_v63  ;;  %2076 = vmatprep.mubr.bf16.mxu0 %v3890_v23  ;;  %3581 = vmatprep.mubr.msk.bf16.mxu1 %vm1539_vm0, %v3891_v51 }
 0x17e   : > { %v1880_v0 = vpop.f32.mrf.mxu0  ;;  %v2264_v20 = vpop.f32.mrf.mxu1 }
 0x180   : > { %v4386_v24 = vpop.f32.mrf.mxu0  ;;  %v4388_v40 = vpop.f32.mrf.mxu1 }
 0x181   : > { %5054 = vst [vmem:[#allocation16_spill] sm:$0xff] %v4388_v40 }
 0x182   : > { %v1883_v63 = vpop.f32.mrf.mxu0  ;;  %v2267_v4 = vpop.f32.mrf.mxu1 }
 0x183   : > { %v3897_v63 = vld [vmem:[%s4000_s27 + $0x4a0] ss:$12 sps:$4 sm:$0xff]   ;;  %v3900_v4 = vld [vmem:[%s4000_s27 + $0x3dc] ss:$12 sps:$4 sm:$0xff]  }
 0x184   : > { %v4394_v15 = vpop.f32.mrf.mxu0  ;;  %2077 = vmatmul.mubr.bf16.gmra.mxu0 %v3888_v38  ;;  %v4396_v23 = vpop.f32.mrf.mxu1  ;;  %3582 = vmatmul.mubr.msk.bf16.gmra.mxu1 %vm1539_vm0, %v3892_v36  ;;  %v4411_v38 = vld [vmem:[%s5038_s2] ss:$0 sm:$0xff] }
 0x185   : > { %5055 = vst [vmem:[#allocation17_spill] sm:$0xff] %v4396_v23  ;;  %2084 = vmatprep.mubr.bf16.mxu0 %v3895_v19  ;;  %3585 = vmatprep.mubr.msk.bf16.mxu1 %vm1539_vm0, %v3896_v48  ;;  %v1775_v19 = vadd.f32 %v4411_v38, %v4198_v5 }
 0x186   : > { %v1888_v51 = vpop.f32.mrf.mxu0  ;;  %v2272_v0 = vpop.f32.mrf.mxu1 }
 0x187   : > { %v1767_v0 = vadd.f32 %v4411_v38, %v4184_v57 }
 0x188   : > { %v4400_v20 = vpop.f32.mrf.mxu0  ;;  %v4402_v40 = vpop.f32.mrf.mxu1 }
 0x189   : > { %5056 = vst [vmem:[#allocation18_spill] sm:$0xff] %v4402_v40 }
 0x18a   : > { %v1891_v23 = vpop.f32.mrf.mxu0  ;;  %v2275_v36 = vpop.f32.mrf.mxu1 }
 0x18b   : > { %v1778_v23 = vadd.f32 %v4411_v38, %v4204_v9 }
 0x18c   : > { %v4416_v48 = vpop.f32.mrf.mxu0  ;;  %2085 = vmatmul.mubr.bf16.gmra.mxu0 %v3893_v28  ;;  %v3491_v51 = vpop.f32.mrf.mxu1  ;;  %3586 = vmatmul.mubr.msk.bf16.gmra.mxu1 %vm1539_vm0, %v3897_v63 }
 0x18d   : > { %v2320_v40 = vadd.f32 %v3491_v51, %v1775_v19  ;;  %2092 = vmatprep.mubr.bf16.mxu0 %v3900_v4  ;;  %3589 = vmatprep.mubr.msk.bf16.mxu1 %vm1539_vm0, %v3901_v56  ;;  %v3898_v19 = vld [vmem:[%s4000_s27 + $0x3d8] ss:$12 sps:$4 sm:$0xff]   ;;  %v3902_v56 = vld [vmem:[%s4000_s27 + $0x4d0] ss:$12 sps:$4 sm:$0xff]   ;;  %v1770_v51 = vadd.f32 %v4411_v38, %v4190_v61 }
 0x18e   : > { %v1896_v5 = vpop.f32.mrf.mxu0  ;;  %v2311_v28 = vpop.f32.mrf.mxu1 }
 0x18f   : > { %v2824_v63 = vmax.f32 %v2320_v40, 0.0  ;;  %v2312_v57 = vadd.f32 %v2311_v28, %v1767_v0  ;;  %v1791_v40 = vadd.f32 %v4411_v38, %v4226_v29 }
 0x190   : > { %v4429_v36 = vpop.f32.mrf.mxu0  ;;  %v3492_v4 = vpop.f32.mrf.mxu1 }
 0x191   : > { %2952 = vst.msk [vmem:[%s4425_s13 + $0x10] sm:$0xff] %vm1539_vm0, %v2824_v63  ;;  %v2822_v50 = vmax.f32 %v2312_v57, 0.0  ;;  %v2323_v5 = vadd.f32 %v3492_v4, %v1778_v23  ;;  %v1794_v57 = vadd.f32 %v4411_v38, %v4232_v33  ;;  %v3911_v33 = vld [vmem:[%s4000_s27 + $0x518] ss:$12 sps:$4 sm:$0xff]  }
 0x192   : > { %v1899_v2 = vpop.f32.mrf.mxu0  ;;  %v2314_v9 = vpop.f32.mrf.mxu1 }
 0x193   : > { %2950 = vst.msk [vmem:[%s4425_s13] sm:$0xff] %vm1539_vm0, %v2822_v50  ;;  %v2825_v0 = vmax.f32 %v2323_v5, 0.0  ;;  %v2315_v28 = vadd.f32 %v2314_v9, %v1770_v51  ;;  %v1783_v2 = vadd.f32 %v4411_v38, %v4212_v17  ;;  %v3903_v51 = vld [vmem:[%s4000_s27 + $0x3f0] ss:$12 sps:$4 sm:$0xff]   ;;  %v3907_v5 = vld [vmem:[%s4000_s27 + $0x500] ss:$12 sps:$4 sm:$0xff]  }
 0x194   : > { %v4443_v14 = vpop.f32.mrf.mxu0  ;;  %2093 = vmatmul.mubr.bf16.gmra.mxu0 %v3898_v19  ;;  %v3495_v61 = vpop.f32.mrf.mxu1  ;;  %3590 = vmatmul.mubr.msk.bf16.gmra.mxu1 %vm1539_vm0, %v3902_v56 }
 0x195   : > { %2953 = vst.msk [vmem:[%s4425_s13 + $0x18] sm:$0xff] %vm1539_vm0, %v2825_v0  ;;  %v2823_v29 = vmax.f32 %v2315_v28, 0.0  ;;  %v2336_v23 = vadd.f32 %v3495_v61, %v1791_v40  ;;  %2100 = vmatprep.mubr.bf16.mxu0 %v3905_v12  ;;  %3593 = vmatprep.mubr.msk.bf16.mxu1 %vm1539_vm0, %v3906_v44  ;;  %v1786_v12 = vadd.f32 %v4411_v38, %v4218_v21  ;;  %v3910_v40 = vld [vmem:[%s4000_s27 + $0x40c] ss:$12 sps:$4 sm:$0xff]  }
 0x196   : > { %v1904_v50 = vpop.f32.mrf.mxu0  ;;  %v2327_v63 = vpop.f32.mrf.mxu1  ;;  %v1807_v61 = vadd.f32 %v4411_v38, %v4254_v53 }
 0x197   : > { %2951 = vst.msk [vmem:[%s4425_s13 + $0x8] sm:$0xff] %vm1539_vm0, %v2823_v29  ;;  %v2828_v4 = vmax.f32 %v2336_v23, 0.0  ;;  %v2328_v17 = vadd.f32 %v2327_v63, %v1783_v2  ;;  %v1799_v50 = vadd.f32 %v4411_v38, %v4240_v41 }
 0x198   : > { %v4455_v19 = vpop.f32.mrf.mxu0  ;;  %v3496_v56 = vpop.f32.mrf.mxu1 }
 0x199   : > { %2956 = vst.msk [vmem:[%s4425_s13 + $0x30] sm:$0xff] %vm1539_vm0, %v2828_v4  ;;  %v2826_v44 = vmax.f32 %v2328_v17, 0.0  ;;  %v2339_v9 = vadd.f32 %v3496_v56, %v1794_v57  ;;  %v1810_v17 = vadd.f32 %v4411_v38, %v4260_v59  ;;  %v3916_v59 = vld [vmem:[%s4000_s27 + $0x548] ss:$12 sps:$4 sm:$0xff]  }
 0x19a   : > { %v1907_v0 = vpop.f32.mrf.mxu0  ;;  %v2330_v28 = vpop.f32.mrf.mxu1 }
 0x19b   : > { %2954 = vst.msk [vmem:[%s4425_s13 + $0x20] sm:$0xff] %vm1539_vm0, %v2826_v44  ;;  %v2829_v2 = vmax.f32 %v2339_v9, 0.0  ;;  %v2331_v29 = vadd.f32 %v2330_v28, %v1786_v12  ;;  %v3908_v12 = vld [vmem:[%s4000_s27 + $0x408] ss:$12 sps:$4 sm:$0xff]   ;;  %v3912_v44 = vld [vmem:[%s4000_s27 + $0x530] ss:$12 sps:$4 sm:$0xff]   ;;  %v1802_v9 = vadd.f32 %v4411_v38, %v4246_v45 }
 0x19c   : > { %v4469_v23 = vpop.f32.mrf.mxu0  ;;  %2101 = vmatmul.mubr.bf16.gmra.mxu0 %v3903_v51  ;;  %v3499_v21 = vpop.f32.mrf.mxu1  ;;  %3594 = vmatmul.mubr.msk.bf16.gmra.mxu1 %vm1539_vm0, %v3907_v5  ;;  %v3915_v0 = vld [vmem:[%s4000_s27 + $0x424] ss:$12 sps:$4 sm:$0xff]  }
 0x19d   : > { %2957 = vst.msk [vmem:[%s4425_s13 + $0x38] sm:$0xff] %vm1539_vm0, %v2829_v2  ;;  %v2827_v53 = vmax.f32 %v2331_v29, 0.0  ;;  %v2352_v63 = vadd.f32 %v3499_v21, %v1807_v61  ;;  %2108 = vmatprep.mubr.bf16.mxu0 %v3910_v40  ;;  %3597 = vmatprep.mubr.msk.bf16.mxu1 %vm1539_vm0, %v3911_v33  ;;  %v1823_v2 = vadd.f32 %v4411_v38, %v4282_v25 }
 0x19e   : > { %v1912_v57 = vpop.f32.mrf.mxu0  ;;  %v2343_v4 = vpop.f32.mrf.mxu1 }
 0x19f   : > { %2955 = vst.msk [vmem:[%s4425_s13 + $0x28] sm:$0xff] %vm1539_vm0, %v2827_v53  ;;  %v2832_v56 = vmax.f32 %v2352_v63, 0.0  ;;  %v2344_v41 = vadd.f32 %v2343_v4, %v1799_v50  ;;  %v1815_v53 = vadd.f32 %v4411_v38, %v4268_v7 }
 0x1a0   : > { %v4481_v51 = vpop.f32.mrf.mxu0  ;;  %v3500_v5 = vpop.f32.mrf.mxu1 }
 0x1a1   : > { %2960 = vst.msk [vmem:[%s4425_s13 + $0x50] sm:$0xff] %vm1539_vm0, %v2832_v56  ;;  %v2830_v40 = vmax.f32 %v2344_v41, 0.0  ;;  %v2355_v33 = vadd.f32 %v3500_v5, %v1810_v17  ;;  %v1826_v17 = vadd.f32 %v4411_v38, %v4288_v31  ;;  %v3921_v31 = vld [vmem:[%s4000_s27 + $0x578] ss:$12 sps:$4 sm:$0xff]  }
 0x1a2   : > { %v1915_v28 = vpop.f32.mrf.mxu0  ;;  %v2346_v61 = vpop.f32.mrf.mxu1 }
 0x1a3   : > { %2958 = vst.msk [vmem:[%s4425_s13 + $0x40] sm:$0xff] %vm1539_vm0, %v2830_v40  ;;  %v2833_v29 = vmax.f32 %v2355_v33, 0.0  ;;  %v2347_v21 = vadd.f32 %v2346_v61, %v1802_v9  ;;  %v1818_v9 = vadd.f32 %v4411_v38, %v4274_v13  ;;  %v1839_v61 = vadd.f32 %v4411_v38, %v4310_v1 }
 0x1a4   : > { %v4495_v50 = vpop.f32.mrf.mxu0  ;;  %2109 = vmatmul.mubr.bf16.gmra.mxu0 %v3908_v12  ;;  %v3503_v45 = vpop.f32.mrf.mxu1  ;;  %3598 = vmatmul.mubr.msk.bf16.gmra.mxu1 %vm1539_vm0, %v3912_v44  ;;  %v3913_v12 = vld [vmem:[%s4000_s27 + $0x420] ss:$12 sps:$4 sm:$0xff]  }
 0x1a5   : > { %2961 = vst.msk [vmem:[%s4425_s13 + $0x58] sm:$0xff] %vm1539_vm0, %v2833_v29  ;;  %v2831_v25 = vmax.f32 %v2347_v21, 0.0  ;;  %v2368_v63 = vadd.f32 %v3503_v45, %v1823_v2  ;;  %2116 = vmatprep.mubr.bf16.mxu0 %v3915_v0  ;;  %3601 = vmatprep.mubr.msk.bf16.mxu1 %vm1539_vm0, %v3916_v59  ;;  %v3917_v44 = vld [vmem:[%s4000_s27 + $0x560] ss:$12 sps:$4 sm:$0xff]   ;;  %v3920_v0 = vld [vmem:[%s4000_s27 + $0x43c] ss:$12 sps:$4 sm:$0xff]   ;;  %v1831_v45 = vadd.f32 %v4411_v38, %v4296_v43 }
 0x1a6   : > { %v1920_v57 = vpop.f32.mrf.mxu0  ;;  %v2359_v4 = vpop.f32.mrf.mxu1 }
 0x1a7   : > { %2959 = vst.msk [vmem:[%s4425_s13 + $0x48] sm:$0xff] %vm1539_vm0, %v2831_v25  ;;  %v2836_v56 = vmax.f32 %v2368_v63, 0.0  ;;  %v2360_v7 = vadd.f32 %v2359_v4, %v1815_v53  ;;  %v1842_v57 = vadd.f32 %v4411_v38, %v4316_v11  ;;  %v3926_v11 = vld [vmem:[%s4000_s27 + $0x5a8] ss:$12 sps:$4 sm:$0xff]  }
 0x1a8   : > { %v4507_v41 = vpop.f32.mrf.mxu0  ;;  %v3504_v5 = vpop.f32.mrf.mxu1 }
 0x1a9   : > { %2964 = vst.msk [vmem:[%s4425_s13 + $0x70] sm:$0xff] %vm1539_vm0, %v2836_v56  ;;  %v2834_v40 = vmax.f32 %v2360_v7, 0.0  ;;  %v2371_v33 = vadd.f32 %v3504_v5, %v1826_v17  ;;  %v3918_v7 = vld [vmem:[%s4000_s27 + $0x438] ss:$12 sps:$4 sm:$0xff]   ;;  %v3922_v5 = vld [vmem:[%s4000_s27 + $0x590] ss:$12 sps:$4 sm:$0xff]  }
 0x1aa   : > { %v1923_v59 = vpop.f32.mrf.mxu0  ;;  %v2362_v28 = vpop.f32.mrf.mxu1 }
 0x1ab   : > { %2962 = vst.msk [vmem:[%s4425_s13 + $0x60] sm:$0xff] %vm1539_vm0, %v2834_v40  ;;  %v2837_v2 = vmax.f32 %v2371_v33, 0.0  ;;  %v2363_v29 = vadd.f32 %v2362_v28, %v1818_v9  ;;  %v3925_v40 = vld [vmem:[%s4000_s27 + $0x454] ss:$12 sps:$4 sm:$0xff]  }
 0x1ac   : > { %v4521_v21 = vpop.f32.mrf.mxu0  ;;  %2117 = vmatmul.mubr.bf16.gmra.mxu0 %v3913_v12  ;;  %v3507_v13 = vpop.f32.mrf.mxu1  ;;  %3602 = vmatmul.mubr.msk.bf16.gmra.mxu1 %vm1539_vm0, %v3917_v44  ;;  %v1834_v12 = vadd.f32 %v4411_v38, %v4302_v49 }
 0x1ad   : > { %2965 = vst.msk [vmem:[%s4425_s13 + $0x78] sm:$0xff] %vm1539_vm0, %v2837_v2  ;;  %v2835_v1 = vmax.f32 %v2363_v29, 0.0  ;;  %v2384_v53 = vadd.f32 %v3507_v13, %v1839_v61  ;;  %2124 = vmatprep.mubr.bf16.mxu0 %v3920_v0  ;;  %3605 = vmatprep.mubr.msk.bf16.mxu1 %vm1539_vm0, %v3921_v31  ;;  %v1855_v31 = vadd.f32 %v4411_v38, %v4338_v55 }
 0x1ae   : > { %v1928_v25 = vpop.f32.mrf.mxu0  ;;  %v2375_v63 = vpop.f32.mrf.mxu1  ;;  %v1847_v2 = vadd.f32 %v4411_v38, %v4324_v27 }
 0x1af   : > { %2963 = vst.msk [vmem:[%s4425_s13 + $0x68] sm:$0xff] %vm1539_vm0, %v2835_v1  ;;  %v2840_v4 = vmax.f32 %v2384_v53, 0.0  ;;  %v2376_v43 = vadd.f32 %v2375_v63, %v1831_v45  ;;  %v1858_v1 = vadd.f32 %v4411_v38, %v4344_v3  ;;  %v3931_v3 = vld [vmem:[%s4000_s27 + $0x5d8] ss:$12 sps:$4 sm:$0xff]  }
 0x1b0   : > { %v4533_v17 = vpop.f32.mrf.mxu0  ;;  %v3508_v56 = vpop.f32.mrf.mxu1 }
 0x1b1   : > { %2968 = vst.msk [vmem:[%s4425_s13 + $0x90] sm:$0xff] %vm1539_vm0, %v2840_v4  ;;  %v2838_v44 = vmax.f32 %v2376_v43, 0.0  ;;  %v2387_v9 = vadd.f32 %v3508_v56, %v1842_v57  ;;  %v3923_v57 = vld [vmem:[%s4000_s27 + $0x450] ss:$12 sps:$4 sm:$0xff]   ;;  %v3927_v4 = vld [vmem:[%s4000_s27 + $0x5c0] ss:$12 sps:$4 sm:$0xff]   ;;  %v1850_v43 = vadd.f32 %v4411_v38, %v4330_v37 }
 0x1b2   : > { %v1931_v33 = vpop.f32.mrf.mxu0  ;;  %v2378_v0 = vpop.f32.mrf.mxu1 }
 0x1b3   : > { %2966 = vst.msk [vmem:[%s4425_s13 + $0x80] sm:$0xff] %vm1539_vm0, %v2838_v44  ;;  %v2841_v59 = vmax.f32 %v2387_v9, 0.0  ;;  %v2379_v28 = vadd.f32 %v2378_v0, %v1834_v12  ;;  %v1871_v9 = vadd.f32 %v4411_v38, %v4366_v16  ;;  %v1863_v0 = vadd.f32 %v4411_v38, %v4352_v35 }
 0x1b4   : > { %v4547_v61 = vpop.f32.mrf.mxu0  ;;  %2125 = vmatmul.mubr.bf16.gmra.mxu0 %v3918_v7  ;;  %v3511_v49 = vpop.f32.mrf.mxu1  ;;  %3606 = vmatmul.mubr.msk.bf16.gmra.mxu1 %vm1539_vm0, %v3922_v5  ;;  %v3930_v5 = vld [vmem:[%s4000_s27 + $0x46c] ss:$12 sps:$4 sm:$0xff]  }
 0x1b5   : > { %2969 = vst.msk [vmem:[%s4425_s13 + $0x98] sm:$0xff] %vm1539_vm0, %v2841_v59  ;;  %v2839_v55 = vmax.f32 %v2379_v28, 0.0  ;;  %v2400_v29 = vadd.f32 %v3511_v49, %v1855_v31  ;;  %2132 = vmatprep.mubr.bf16.mxu0 %v3925_v40  ;;  %3609 = vmatprep.mubr.msk.bf16.mxu1 %vm1539_vm0, %v3926_v11  ;;  %v1874_v49 = vadd.f32 %v4411_v38, %v4372_v39 }
 0x1b6   : > { %v1936_v13 = vpop.f32.mrf.mxu0  ;;  %v2391_v45 = vpop.f32.mrf.mxu1  ;;  %v1887_v39 = vadd.f32 %v4411_v38, %v4394_v15 }
 0x1b7   : > { %2967 = vst.msk [vmem:[%s4425_s13 + $0x88] sm:$0xff] %vm1539_vm0, %v2839_v55  ;;  %v2844_v53 = vmax.f32 %v2400_v29, 0.0  ;;  %v2392_v27 = vadd.f32 %v2391_v45, %v1847_v2  ;;  %v3928_v13 = vld [vmem:[%s4000_s27 + $0x468] ss:$12 sps:$4 sm:$0xff]   ;;  %v3932_v45 = vld [vmem:[%s4000_s27 + $0x5f0] ss:$12 sps:$4 sm:$0xff]  }
 0x1b8   : > { %v4559_v25 = vpop.f32.mrf.mxu0  ;;  %v3512_v63 = vpop.f32.mrf.mxu1 }
 0x1b9   : > { %2972 = vst.msk [vmem:[%s4425_s13 + $0xb0] sm:$0xff] %vm1539_vm0, %v2844_v53  ;;  %v2842_v56 = vmax.f32 %v2392_v27, 0.0  ;;  %v2403_v7 = vadd.f32 %v3512_v63, %v1858_v1  ;;  %v1866_v1 = vadd.f32 %v4411_v38, %v4358_v47  ;;  %v1879_v47 = vadd.f32 %v4411_v38, %v4380_v52 }
 0x1ba   : > { %v1939_v12 = vpop.f32.mrf.mxu0  ;;  %v2394_v44 = vpop.f32.mrf.mxu1  ;;  %v1882_v52 = vadd.f32 %v4411_v38, %v4386_v24  ;;  %v1895_v24 = vadd.f32 %v4411_v38, %v4416_v48  ;;  %v1898_v48 = vadd.f32 %v4411_v38, %v4429_v36  ;;  %v1911_v36 = vadd.f32 %v4411_v38, %v4469_v23 }
 0x1bb   : > { %2970 = vst.msk [vmem:[%s4425_s13 + $0xa0] sm:$0xff] %vm1539_vm0, %v2842_v56  ;;  %v2845_v40 = vmax.f32 %v2403_v7, 0.0  ;;  %v2395_v11 = vadd.f32 %v2394_v44, %v1850_v43  ;;  %v1890_v44 = vadd.f32 %v4411_v38, %v4400_v20  ;;  %v1903_v20 = vadd.f32 %v4411_v38, %v4443_v14 }
 0x1bc   : > { %v4573_v33 = vpop.f32.mrf.mxu0  ;;  %2133 = vmatmul.mubr.bf16.gmra.mxu0 %v3923_v57  ;;  %v3515_v37 = vpop.f32.mrf.mxu1  ;;  %3610 = vmatmul.mubr.msk.bf16.gmra.mxu1 %vm1539_vm0, %v3927_v4  ;;  %v1906_v14 = vadd.f32 %v4411_v38, %v4455_v19  ;;  %v1919_v19 = vadd.f32 %v4411_v38, %v4495_v50  ;;  %v1922_v50 = vadd.f32 %v4411_v38, %v4507_v41 }
 0x1bd   : > { %2973 = vst.msk [vmem:[%s4425_s13 + $0xb8] sm:$0xff] %vm1539_vm0, %v2845_v40  ;;  %v2843_v16 = vmax.f32 %v2395_v11, 0.0  ;;  %v2416_v31 = vadd.f32 %v3515_v37, %v1871_v9  ;;  %2140 = vmatprep.mubr.bf16.mxu0 %v3930_v5  ;;  %3613 = vmatprep.mubr.msk.bf16.mxu1 %vm1539_vm0, %v3931_v3  ;;  %v1914_v23 = vadd.f32 %v4411_v38, %v4481_v51 }
 0x1be   : > { %v1944_v59 = vpop.f32.mrf.mxu0  ;;  %v2407_v28 = vpop.f32.mrf.mxu1  ;;  %v1935_v41 = vadd.f32 %v4411_v38, %v4547_v61  ;;  %v1927_v51 = vadd.f32 %v4411_v38, %v4521_v21  ;;  %v1938_v61 = vadd.f32 %v4411_v38, %v4559_v25  ;;  %v1930_v21 = vadd.f32 %v4411_v38, %v4533_v17 }
 0x1bf   : > { %2971 = vst.msk [vmem:[%s4425_s13 + $0xa8] sm:$0xff] %vm1539_vm0, %v2843_v16  ;;  %v2848_v2 = vmax.f32 %v2416_v31, 0.0  ;;  %v2408_v55 = vadd.f32 %v2407_v28, %v1863_v0  ;;  %v1943_v17 = vadd.f32 %v4411_v38, %v4573_v33 }
 0x1c0   : > { %v4585_v29 = vpop.f32.mrf.mxu0  ;;  %v3516_v35 = vpop.f32.mrf.mxu1 }
 0x1c1   : > { %2976 = vst.msk [vmem:[%s4425_s13 + $0xd0] sm:$0xff] %vm1539_vm0, %v2848_v2  ;;  %v2846_v53 = vmax.f32 %v2408_v55, 0.0  ;;  %v2419_v27 = vadd.f32 %v3516_v35, %v1874_v49  ;;  %v1946_v33 = vadd.f32 %v4411_v38, %v4585_v29 }
 0x1c2   : > { %v1947_v63 = vpop.f32.mrf.mxu0  ;;  %v2410_v57 = vpop.f32.mrf.mxu1 }
 0x1c3   : > { %2974 = vst.msk [vmem:[%s4425_s13 + $0xc0] sm:$0xff] %vm1539_vm0, %v2846_v53  ;;  %v2849_v4 = vmax.f32 %v2419_v27, 0.0  ;;  %v2411_v43 = vadd.f32 %v2410_v57, %v1866_v1 }
 0x1c4   : > { %v4597_v56 = vpop.f32.mrf.mxu0  ;;  %2141 = vmatmul.mubr.bf16.gmra.mxu0 %v3928_v13  ;;  %v3519_v7 = vpop.f32.mrf.mxu1  ;;  %3614 = vmatmul.mubr.msk.bf16.gmra.mxu1 %vm1539_vm0, %v3932_v45 }
 0x1c5   : > { %2977 = vst.msk [vmem:[%s4425_s13 + $0xd8] sm:$0xff] %vm1539_vm0, %v2849_v4  ;;  %v2847_v5 = vmax.f32 %v2411_v43, 0.0  ;;  %v2432_v3 = vadd.f32 %v3519_v7, %v1887_v39  ;;  %v1951_v25 = vadd.f32 %v4411_v38, %v4597_v56 }
 0x1c6   : > { %v1952_v15 = vpop.f32.mrf.mxu0  ;;  %v2423_v12 = vpop.f32.mrf.mxu1 }
 0x1c7   : > { %2975 = vst.msk [vmem:[%s4425_s13 + $0xc8] sm:$0xff] %vm1539_vm0, %v2847_v5  ;;  %v2852_v9 = vmax.f32 %v2432_v3, 0.0  ;;  %v2424_v40 = vadd.f32 %v2423_v12, %v1879_v47 }
 0x1c8   : > { %v4608_v11 = vpop.f32.mrf.mxu0  ;;  %v3520_v37 = vpop.f32.mrf.mxu1 }
 0x1c9   : > { %2980 = vst.msk [vmem:[%s4425_s13 + $0xf0] sm:$0xff] %vm1539_vm0, %v2852_v9  ;;  %v2850_v0 = vmax.f32 %v2424_v40, 0.0  ;;  %v2435_v16 = vadd.f32 %v3520_v37, %v1890_v44  ;;  %v1954_v56 = vadd.f32 %v4411_v38, %v4608_v11 }
 0x1ca   : > { %v1955_v31 = vpop.f32.mrf.mxu0  ;;  %v2426_v59 = vpop.f32.mrf.mxu1 }
 0x1cb   : > { %2978 = vst.msk [vmem:[%s4425_s13 + $0xe0] sm:$0xff] %vm1539_vm0, %v2850_v0  ;;  %v2853_v28 = vmax.f32 %v2435_v16, 0.0  ;;  %v2427_v49 = vadd.f32 %v2426_v59, %v1882_v52 }
 0x1cc   : > { %v4618_v2 = vpop.f32.mrf.mxu0  ;;  %v3523_v55 = vpop.f32.mrf.mxu1 }
 0x1cd   : > { %2981 = vst.msk [vmem:[%s4425_s13 + $0xf8] sm:$0xff] %vm1539_vm0, %v2853_v28  ;;  %v2851_v35 = vmax.f32 %v2427_v49, 0.0  ;;  %v2448_v13 = vadd.f32 %v3523_v55, %v1903_v20  ;;  %v1959_v29 = vadd.f32 %v4411_v38, %v4618_v2 }
 0x1ce   : > { %v1960_v45 = vpop.f32.mrf.mxu0  ;;  %v2439_v1 = vpop.f32.mrf.mxu1 }
 0x1cf   : > { %2979 = vst.msk [vmem:[%s4425_s13 + $0xe8] sm:$0xff] %vm1539_vm0, %v2851_v35  ;;  %v2856_v53 = vmax.f32 %v2448_v13, 0.0  ;;  %v2440_v27 = vadd.f32 %v2439_v1, %v1895_v24 }
 0x1d0   : > { %v4628_v63 = vpop.f32.mrf.mxu0  ;;  %v3524_v57 = vpop.f32.mrf.mxu1 }
 0x1d1   : > { %2984 = vst.msk [vmem:[%s4425_s13 + $0x110] sm:$0xff] %vm1539_vm0, %v2856_v53  ;;  %v2854_v39 = vmax.f32 %v2440_v27, 0.0  ;;  %v2451_v4 = vadd.f32 %v3524_v57, %v1906_v14  ;;  %v1962_v2 = vadd.f32 %v4411_v38, %v4628_v63 }
 0x1d2   : > { %v1963_v43 = vpop.f32.mrf.mxu0  ;;  %v2442_v7 = vpop.f32.mrf.mxu1 }
 0x1d3   : > { %2982 = vst.msk [vmem:[%s4425_s13 + $0x100] sm:$0xff] %vm1539_vm0, %v2854_v39  ;;  %v2857_v47 = vmax.f32 %v2451_v4, 0.0  ;;  %v2443_v5 = vadd.f32 %v2442_v7, %v1898_v48 }
 0x1d4   : > { %v4638_v3 = vpop.f32.mrf.mxu0  ;;  %v3527_v15 = vpop.f32.mrf.mxu1 }
 0x1d5   : > { %2985 = vst.msk [vmem:[%s4425_s13 + $0x118] sm:$0xff] %vm1539_vm0, %v2857_v47  ;;  %v2855_v12 = vmax.f32 %v2443_v5, 0.0  ;;  %v2464_v44 = vadd.f32 %v3527_v15, %v1919_v19  ;;  %v1967_v11 = vadd.f32 %v4411_v38, %v4638_v3 }
 0x1d6   : > { %v1968_v9 = vpop.f32.mrf.mxu0  ;;  %v2455_v40 = vpop.f32.mrf.mxu1 }
 0x1d7   : > { %2983 = vst.msk [vmem:[%s4425_s13 + $0x108] sm:$0xff] %vm1539_vm0, %v2855_v12  ;;  %v2860_v37 = vmax.f32 %v2464_v44, 0.0  ;;  %v2456_v52 = vadd.f32 %v2455_v40, %v1911_v36 }
 0x1d8   : > { %v4648_v0 = vpop.f32.mrf.mxu0  ;;  %v3528_v16 = vpop.f32.mrf.mxu1 }
 0x1d9   : > { %2988 = vst.msk [vmem:[%s4425_s13 + $0x130] sm:$0xff] %vm1539_vm0, %v2860_v37  ;;  %v2858_v31 = vmax.f32 %v2456_v52, 0.0  ;;  %v2467_v59 = vadd.f32 %v3528_v16, %v1922_v50  ;;  %v1970_v3 = vadd.f32 %v4411_v38, %v4648_v0 }
 0x1da   : > { %v1971_v20 = vpop.f32.mrf.mxu0  ;;  %v2458_v28 = vpop.f32.mrf.mxu1 }
 0x1db   : > { %2986 = vst.msk [vmem:[%s4425_s13 + $0x120] sm:$0xff] %vm1539_vm0, %v2858_v31  ;;  %v2861_v49 = vmax.f32 %v2467_v59, 0.0  ;;  %v2459_v55 = vadd.f32 %v2458_v28, %v1914_v23 }
 0x1dc   : > { %v4658_v24 = vpop.f32.mrf.mxu0  ;;  %v3531_v35 = vpop.f32.mrf.mxu1 }
 0x1dd   : > { %2989 = vst.msk [vmem:[%s4425_s13 + $0x138] sm:$0xff] %vm1539_vm0, %v2861_v49  ;;  %v2859_v13 = vmax.f32 %v2459_v55, 0.0  ;;  %v2480_v45 = vadd.f32 %v3531_v35, %v1935_v41 }
 0x1de   : > { %v1976_v1 = vpop.f32.mrf.mxu0  ;;  %v2471_v14 = vpop.f32.mrf.mxu1 }
 0x1df   : > { %2987 = vst.msk [vmem:[%s4425_s13 + $0x128] sm:$0xff] %vm1539_vm0, %v2859_v13  ;;  %v2864_v53 = vmax.f32 %v2480_v45, 0.0  ;;  %v2472_v27 = vadd.f32 %v2471_v14, %v1927_v51 }
 0x1e0   : > { %v4668_v57 = vpop.f32.mrf.mxu0  ;;  %v3532_v48 = vpop.f32.mrf.mxu1 }
 0x1e1   : > { %2992 = vst.msk [vmem:[%s4425_s13 + $0x150] sm:$0xff] %vm1539_vm0, %v2864_v53  ;;  %v2862_v39 = vmax.f32 %v2472_v27, 0.0  ;;  %v2483_v4 = vadd.f32 %v3532_v48, %v1938_v61 }
 0x1e2   : > { %v1979_v43 = vpop.f32.mrf.mxu0  ;;  %v2474_v7 = vpop.f32.mrf.mxu1 }
 0x1e3   : > { %2990 = vst.msk [vmem:[%s4425_s13 + $0x140] sm:$0xff] %vm1539_vm0, %v2862_v39  ;;  %v2865_v19 = vmax.f32 %v2483_v4, 0.0  ;;  %v2475_v47 = vadd.f32 %v2474_v7, %v1930_v21 }
 0x1e4   : > { %v1982_v5 = vpop.f32.mrf.mxu0  ;;  %v3535_v15 = vpop.f32.mrf.mxu1 }
 0x1e5   : > { %2993 = vst.msk [vmem:[%s4425_s13 + $0x158] sm:$0xff] %vm1539_vm0, %v2865_v19  ;;  %v2863_v36 = vmax.f32 %v2475_v47, 0.0  ;;  %v2496_v12 = vadd.f32 %v3535_v15, %v1951_v25  ;;  %v1983_v39 = vadd.f32 %v4411_v38, %v1982_v5  ;;  %v1975_v25 = vadd.f32 %v4411_v38, %v4658_v24 }
 0x1e6   : > { %v1984_v44 = vpop.f32.mrf.mxu0  ;;  %v2487_v9 = vpop.f32.mrf.mxu1 }
 0x1e7   : > { %2991 = vst.msk [vmem:[%s4425_s13 + $0x148] sm:$0xff] %vm1539_vm0, %v2863_v36  ;;  %v2868_v40 = vmax.f32 %v2496_v12, 0.0  ;;  %v2488_v50 = vadd.f32 %v2487_v9, %v1943_v17  ;;  %v1978_v9 = vadd.f32 %v4411_v38, %v4668_v57 }
 0x1e8   : > { %v1985_v37 = vpop.f32.mrf.mxu0  ;;  %v3536_v52 = vpop.f32.mrf.mxu1 }
 0x1e9   : > { %2996 = vst.msk [vmem:[%s4425_s13 + $0x170] sm:$0xff] %vm1539_vm0, %v2868_v40  ;;  %v2866_v16 = vmax.f32 %v2488_v50, 0.0  ;;  %v2499_v23 = vadd.f32 %v3536_v52, %v1954_v56  ;;  %v1986_v17 = vadd.f32 %v4411_v38, %v1985_v37 }
 0x1ea   : > { %v1987_v31 = vpop.f32.mrf.mxu0  ;;  %v2490_v59 = vpop.f32.mrf.mxu1 }
 0x1eb   : > { %2994 = vst.msk [vmem:[%s4425_s13 + $0x160] sm:$0xff] %vm1539_vm0, %v2866_v16  ;;  %v2869_v20 = vmax.f32 %v2499_v23, 0.0  ;;  %v2491_v28 = vadd.f32 %v2490_v59, %v1946_v33 }
 0x1ec   : > { %v1990_v41 = vpop.f32.mrf.mxu0  ;;  %v3539_v49 = vpop.f32.mrf.mxu1 }
 0x1ed   : > { %2997 = vst.msk [vmem:[%s4425_s13 + $0x178] sm:$0xff] %vm1539_vm0, %v2869_v20  ;;  %v2867_v55 = vmax.f32 %v2491_v28, 0.0  ;;  %v2512_v35 = vadd.f32 %v3539_v49, %v1967_v11  ;;  %v1991_v31 = vadd.f32 %v4411_v38, %v1990_v41 }
 0x1ee   : > { %v1992_v51 = vpop.f32.mrf.mxu0  ;;  %v2503_v13 = vpop.f32.mrf.mxu1 }
 0x1ef   : > { %2995 = vst.msk [vmem:[%s4425_s13 + $0x168] sm:$0xff] %vm1539_vm0, %v2867_v55  ;;  %v2872_v45 = vmax.f32 %v2512_v35, 0.0  ;;  %v2504_v1 = vadd.f32 %v2503_v13, %v1959_v29 }
 0x1f0   : > { %v1993_v14 = vpop.f32.mrf.mxu0  ;;  %v3540_v61 = vpop.f32.mrf.mxu1 }
 0x1f1   : > { %3000 = vst.msk [vmem:[%s4425_s13 + $0x190] sm:$0xff] %vm1539_vm0, %v2872_v45  ;;  %v2870_v53 = vmax.f32 %v2504_v1, 0.0  ;;  %v2515_v27 = vadd.f32 %v3540_v61, %v1970_v3  ;;  %v1994_v51 = vadd.f32 %v4411_v38, %v1993_v14 }
 0x1f2   : > { %v1995_v48 = vpop.f32.mrf.mxu0  ;;  %v2506_v21 = vpop.f32.mrf.mxu1 }
 0x1f3   : > { %2998 = vst.msk [vmem:[%s4425_s13 + $0x180] sm:$0xff] %vm1539_vm0, %v2870_v53  ;;  %v2873_v0 = vmax.f32 %v2515_v27, 0.0  ;;  %v2507_v4 = vadd.f32 %v2506_v21, %v1962_v2 }
 0x1f4   : > { %v1998_v43 = vpop.f32.mrf.mxu0  ;;  %v3543_v7 = vpop.f32.mrf.mxu1 }
 0x1f5   : > { %3001 = vst.msk [vmem:[%s4425_s13 + $0x198] sm:$0xff] %vm1539_vm0, %v2873_v0  ;;  %v2871_v63 = vmax.f32 %v2507_v4, 0.0  ;;  %v2528_v19 = vadd.f32 %v3543_v7, %v1983_v39  ;;  %v1999_v52 = vadd.f32 %v4411_v38, %v1998_v43 }
 0x1f6   : > { %v2000_v47 = vpop.f32.mrf.mxu0  ;;  %v2519_v15 = vpop.f32.mrf.mxu1 }
 0x1f7   : > { %2999 = vst.msk [vmem:[%s4425_s13 + $0x188] sm:$0xff] %vm1539_vm0, %v2871_v63  ;;  %v2876_v5 = vmax.f32 %v2528_v19, 0.0  ;;  %v2520_v36 = vadd.f32 %v2519_v15, %v1975_v25 }
 0x1f8   : > { %v2001_v12 = vpop.f32.mrf.mxu0  ;;  %v3544_v44 = vpop.f32.mrf.mxu1 }
 0x1f9   : > { %3004 = vst.msk [vmem:[%s4425_s13 + $0x1b0] sm:$0xff] %vm1539_vm0, %v2876_v5  ;;  %v2874_v24 = vmax.f32 %v2520_v36, 0.0  ;;  %v2531_v56 = vadd.f32 %v3544_v44, %v1986_v17  ;;  %v2002_v28 = vadd.f32 %v4411_v38, %v2001_v12 }
 0x1fa   : > { %v2003_v40 = vpop.f32.mrf.mxu0  ;;  %v2522_v50 = vpop.f32.mrf.mxu1 }
 0x1fb   : > { %3002 = vst.msk [vmem:[%s4425_s13 + $0x1a0] sm:$0xff] %vm1539_vm0, %v2874_v24  ;;  %v2877_v37 = vmax.f32 %v2531_v56, 0.0  ;;  %v2523_v33 = vadd.f32 %v2522_v50, %v1978_v9 }
 0x1fc   : > { %v2006_v16 = vpop.f32.mrf.mxu0  ;;  %v3547_v23 = vpop.f32.mrf.mxu1 }
 0x1fd   : > { %3005 = vst.msk [vmem:[%s4425_s13 + $0x1b8] sm:$0xff] %vm1539_vm0, %v2877_v37  ;;  %v2875_v57 = vmax.f32 %v2523_v33, 0.0  ;;  %v2544_v59 = vadd.f32 %v3547_v23, %v1999_v52  ;;  %v2007_v27 = vadd.f32 %v4411_v38, %v2006_v16 }
 0x1fe   : > { %v2008_v11 = vpop.f32.mrf.mxu0  ;;  %v2535_v20 = vpop.f32.mrf.mxu1 }
 0x1ff   : > { %3003 = vst.msk [vmem:[%s4425_s13 + $0x1a8] sm:$0xff] %vm1539_vm0, %v2875_v57  ;;  %v2880_v49 = vmax.f32 %v2544_v59, 0.0  ;;  %v2536_v29 = vadd.f32 %v2535_v20, %v1991_v31 }
 0x200   : > { %v2009_v55 = vpop.f32.mrf.mxu0  ;;  %v3548_v35 = vpop.f32.mrf.mxu1 }
 0x201   : > { %3008 = vst.msk [vmem:[%s4425_s13 + $0x1d0] sm:$0xff] %vm1539_vm0, %v2880_v49  ;;  %v2878_v41 = vmax.f32 %v2536_v29, 0.0  ;;  %v2547_v13 = vadd.f32 %v3548_v35, %v2002_v28  ;;  %v2010_v25 = vadd.f32 %v4411_v38, %v2009_v55 }
 0x202   : > { %v2011_v3 = vpop.f32.mrf.mxu0  ;;  %v2538_v45 = vpop.f32.mrf.mxu1 }
 0x203   : > { %3006 = vst.msk [vmem:[%s4425_s13 + $0x1c0] sm:$0xff] %vm1539_vm0, %v2878_v41  ;;  %v2881_v1 = vmax.f32 %v2547_v13, 0.0  ;;  %v2539_v61 = vadd.f32 %v2538_v45, %v1994_v51 }
 0x204   : > { %v2014_v2 = vpop.f32.mrf.mxu0  ;;  %v3551_v53 = vpop.f32.mrf.mxu1 }
 0x205   : > { %3009 = vst.msk [vmem:[%s4425_s13 + $0x1d8] sm:$0xff] %vm1539_vm0, %v2881_v1  ;;  %v2879_v48 = vmax.f32 %v2539_v61, 0.0  ;;  %v2015_v14 = vadd.f32 %v4411_v38, %v2014_v2 }
 0x206   : > { %v2016_v21 = vpop.f32.mrf.mxu0  ;;  %v2551_v39 = vpop.f32.mrf.mxu1 }
 0x207   : > { %3007 = vst.msk [vmem:[%s4425_s13 + $0x1c8] sm:$0xff] %vm1539_vm0, %v2879_v48  ;;  %v2560_v0 = vadd.f32 %v3551_v53, %v2015_v14  ;;  %v2552_v4 = vadd.f32 %v2551_v39, %v2007_v27 }
 0x208   : > { %v2017_v43 = vpop.f32.mrf.mxu0  ;;  %v3552_v7 = vpop.f32.mrf.mxu1 }
 0x209   : > { %v2884_v63 = vmax.f32 %v2560_v0, 0.0  ;;  %v2882_v19 = vmax.f32 %v2552_v4, 0.0  ;;  %v2018_v47 = vadd.f32 %v4411_v38, %v2017_v43 }
 0x20a   : > { %v2019_v15 = vpop.f32.mrf.mxu0  ;;  %v2554_v17 = vpop.f32.mrf.mxu1 }
 0x20b   : > { %3012 = vst.msk [vmem:[%s4425_s13 + $0x1f0] sm:$0xff] %vm1539_vm0, %v2884_v63  ;;  %3010 = vst.msk [vmem:[%s4425_s13 + $0x1e0] sm:$0xff] %vm1539_vm0, %v2882_v19  ;;  %v2563_v5 = vadd.f32 %v3552_v7, %v2018_v47  ;;  %v2555_v36 = vadd.f32 %v2554_v17, %v2010_v25 }
 0x20c   : > { %v2022_v12 = vpop.f32.mrf.mxu0  ;;  %v3555_v44 = vpop.f32.mrf.mxu1 }
 0x20d   : > { %v2885_v9 = vmax.f32 %v2563_v5, 0.0  ;;  %v2883_v24 = vmax.f32 %v2555_v36, 0.0  ;;  %v2023_v56 = vadd.f32 %v4411_v38, %v2022_v12 }
 0x20e   : > { %v2024_v40 = vpop.f32.mrf.mxu0  ;;  %v2567_v50 = vpop.f32.mrf.mxu1 }
 0x20f   : > { %3013 = vst.msk [vmem:[%s4425_s13 + $0x1f8] sm:$0xff] %vm1539_vm0, %v2885_v9  ;;  %3011 = vst.msk [vmem:[%s4425_s13 + $0x1e8] sm:$0xff] %vm1539_vm0, %v2883_v24  ;;  %v2568_v52 = vadd.f32 %v2567_v50, %v2023_v56 }
 0x210   : > { %v2025_v37 = vpop.f32.mrf.mxu0  ;;  %v3556_v33 = vpop.f32.mrf.mxu1 }
 0x211   : > { %v2886_v16 = vmax.f32 %v2568_v52, 0.0  ;;  %v2026_v23 = vadd.f32 %v4411_v38, %v2025_v37 }
 0x212   : > { %v2027_v31 = vpop.f32.mrf.mxu0  ;;  %v2570_v57 = vpop.f32.mrf.mxu1 }
 0x213   : > { %3014 = vst.msk [vmem:[%s4425_s13 + $0x200] sm:$0xff] %vm1539_vm0, %v2886_v16  ;;  %v2571_v59 = vadd.f32 %v2570_v57, %v2026_v23 }
 0x214   : > { %v2030_v11 = vpop.f32.mrf.mxu0  ;;  %v3559_v20 = vpop.f32.mrf.mxu1 }
 0x215   : > { %v2887_v28 = vmax.f32 %v2571_v59, 0.0  ;;  %v2031_v49 = vadd.f32 %v4411_v38, %v2030_v11 }
 0x216   : > { %v2032_v29 = vpop.f32.mrf.mxu0  ;;  %v2583_v55 = vpop.f32.mrf.mxu1 }
 0x217   : > { %3015 = vst.msk [vmem:[%s4425_s13 + $0x208] sm:$0xff] %vm1539_vm0, %v2887_v28  ;;  %v2576_v35 = vadd.f32 %v3555_v44, %v2031_v49  ;;  %v4788_v29 = vld [vmem:[%s5038_s2] ss:$0 sm:$0xff] }
 0x218   : > { %v2033_v51 = vpop.f32.mrf.mxu0  ;;  %v3560_v41 = vpop.f32.mrf.mxu1 }
 0x219   : > { %v2888_v13 = vmax.f32 %v2576_v35, 0.0  ;;  %v2034_v3 = vadd.f32 %v4411_v38, %v2033_v51 }
 0x21a   : > { %v2035_v45 = vpop.f32.mrf.mxu0  ;;  %v2586_v1 = vpop.f32.mrf.mxu1 }
 0x21b   : > { %3016 = vst.msk [vmem:[%s4425_s13 + $0x210] sm:$0xff] %vm1539_vm0, %v2888_v13  ;;  %v2579_v61 = vadd.f32 %v3556_v33, %v2034_v3 }
 0x21c   : > { %v2038_v2 = vpop.f32.mrf.mxu0  ;;  %v3563_v53 = vpop.f32.mrf.mxu1 }
 0x21d   : > { %v2889_v27 = vmax.f32 %v2579_v61, 0.0  ;;  %v2039_v48 = vadd.f32 %v4411_v38, %v2038_v2 }
 0x21e   : > { %v2040_v14 = vpop.f32.mrf.mxu0  ;;  %v2599_v21 = vpop.f32.mrf.mxu1 }
 0x21f   : > { %3017 = vst.msk [vmem:[%s4425_s13 + $0x218] sm:$0xff] %vm1539_vm0, %v2889_v27  ;;  %v2584_v39 = vadd.f32 %v2583_v55, %v2039_v48 }
 0x220   : > { %v2041_v0 = vpop.f32.mrf.mxu0  ;;  %v3564_v4 = vpop.f32.mrf.mxu1 }
 0x221   : > { %v2890_v43 = vmax.f32 %v2584_v39, 0.0  ;;  %v2042_v7 = vadd.f32 %v4411_v38, %v2041_v0 }
 0x222   : > { %v2043_v25 = vpop.f32.mrf.mxu0  ;;  %v2602_v63 = vpop.f32.mrf.mxu1 }
 0x223   : > { %3018 = vst.msk [vmem:[%s4425_s13 + $0x220] sm:$0xff] %vm1539_vm0, %v2890_v43  ;;  %v2587_v19 = vadd.f32 %v2586_v1, %v2042_v7 }
 0x224   : > { %v2046_v47 = vpop.f32.mrf.mxu0  ;;  %v4766_v15 = vpop.f32.mrf.mxu1 }
 0x225   : > { %v2891_v17 = vmax.f32 %v2587_v19, 0.0  ;;  %v2047_v5 = vadd.f32 %v4411_v38, %v2046_v47 }
 0x226   : > { %v2048_v36 = vpop.f32.mrf.mxu0  ;;  %v2615_v12 = vpop.f32.mrf.mxu1 }
 0x227   : > { %3019 = vst.msk [vmem:[%s4425_s13 + $0x228] sm:$0xff] %vm1539_vm0, %v2891_v17  ;;  %v2592_v44 = vadd.f32 %v3559_v20, %v2047_v5 }
 0x228   : > { %v2049_v9 = vpop.f32.mrf.mxu0  ;;  %v4771_v24 = vpop.f32.mrf.mxu1 }
 0x229   : > { %v2892_v56 = vmax.f32 %v2592_v44, 0.0  ;;  %v2050_v40 = vadd.f32 %v4411_v38, %v2049_v9 }
 0x22a   : > { %v2051_v50 = vpop.f32.mrf.mxu0  ;;  %v2618_v52 = vpop.f32.mrf.mxu1 }
 0x22b   : > { %3020 = vst.msk [vmem:[%s4425_s13 + $0x230] sm:$0xff] %vm1539_vm0, %v2892_v56  ;;  %v2595_v37 = vadd.f32 %v3560_v41, %v2050_v40 }
 0x22c   : > { %v2054_v33 = vpop.f32.mrf.mxu0  ;;  %v4776_v16 = vpop.f32.mrf.mxu1 }
 0x22d   : > { %v2893_v23 = vmax.f32 %v2595_v37, 0.0  ;;  %v2055_v31 = vadd.f32 %v4411_v38, %v2054_v33 }
 0x22e   : > { %v2056_v57 = vpop.f32.mrf.mxu0  ;;  %v4779_v59 = vpop.f32.mrf.mxu1 }
 0x22f   : > { %3021 = vst.msk [vmem:[%s4425_s13 + $0x238] sm:$0xff] %vm1539_vm0, %v2893_v23  ;;  %v2600_v11 = vadd.f32 %v2599_v21, %v2055_v31 }
 0x230   : > { %v2057_v20 = vpop.f32.mrf.mxu0  ;;  %v4783_v28 = vpop.f32.mrf.mxu1 }
 0x231   : > { %v2894_v49 = vmax.f32 %v2600_v11, 0.0  ;;  %v2058_v55 = vadd.f32 %v4788_v29, %v2057_v20 }
 0x232   : > { %v2059_v35 = vpop.f32.mrf.mxu0  ;;  %v4791_v38 = vpop.f32.mrf.mxu1 }
 0x233   : > { %3022 = vst.msk [vmem:[%s4425_s13 + $0x240] sm:$0xff] %vm1539_vm0, %v2894_v49  ;;  %v2603_v51 = vadd.f32 %v2602_v63, %v2058_v55 }
 0x234   : > { %v2062_v41 = vpop.f32.mrf.mxu0  ;;  %v4795_v13 = vpop.f32.mrf.mxu1 }
 0x235   : > { %v2895_v3 = vmax.f32 %v2603_v51, 0.0  ;;  %v2063_v45 = vadd.f32 %v4788_v29, %v2062_v41  ;;  %v2159_v51 = vadd.f32 %v4788_v29, %v4200_v6 }
 0x236   : > { %v2064_v1 = vpop.f32.mrf.mxu0  ;;  %v4798_v61 = vpop.f32.mrf.mxu1 }
 0x237   : > { %3023 = vst.msk [vmem:[%s4425_s13 + $0x248] sm:$0xff] %vm1539_vm0, %v2895_v3  ;;  %v2608_v2 = vadd.f32 %v3563_v53, %v2063_v45 }
 0x238   : > { %v2065_v27 = vpop.f32.mrf.mxu0  ;;  %v4802_v48 = vpop.f32.mrf.mxu1 }
 0x239   : > { %v2896_v14 = vmax.f32 %v2608_v2, 0.0  ;;  %v2066_v21 = vadd.f32 %v4788_v29, %v2065_v27 }
 0x23a   : > { %v2067_v39 = vpop.f32.mrf.mxu0  ;;  %v4805_v0 = vpop.f32.mrf.mxu1 }
 0x23b   : > { %3024 = vst.msk [vmem:[%s4425_s13 + $0x250] sm:$0xff] %vm1539_vm0, %v2896_v14  ;;  %v2611_v43 = vadd.f32 %v3564_v4, %v2066_v21  ;;  %v2162_v39 = vadd.f32 %v4788_v29, %v4206_v10 }
 0x23c   : > { %v2070_v7 = vpop.f32.mrf.mxu0  ;;  %v4809_v25 = vpop.f32.mrf.mxu1 }
 0x23d   : > { %v2897_v63 = vmax.f32 %v2611_v43, 0.0  ;;  %v2071_v19 = vadd.f32 %v4788_v29, %v2070_v7 }
 0x23e   : > { %v2072_v53 = vpop.f32.mrf.mxu0  ;;  %v4812_v47 = vpop.f32.mrf.mxu1 }
 0x23f   : > { %3025 = vst.msk [vmem:[%s4425_s13 + $0x258] sm:$0xff] %vm1539_vm0, %v2897_v63  ;;  %v2616_v17 = vadd.f32 %v2615_v12, %v2071_v19 }
 0x240   : > { %v2073_v5 = vpop.f32.mrf.mxu0  ;;  %v4816_v36 = vpop.f32.mrf.mxu1 }
 0x241   : > { %v2898_v44 = vmax.f32 %v2616_v17, 0.0  ;;  %v2074_v9 = vadd.f32 %v4788_v29, %v2073_v5 }
 0x242   : > { %v2075_v4 = vpop.f32.mrf.mxu0  ;;  %v4819_v56 = vpop.f32.mrf.mxu1 }
 0x243   : > { %3026 = vst.msk [vmem:[%s4425_s13 + $0x260] sm:$0xff] %vm1539_vm0, %v2898_v44  ;;  %v2619_v40 = vadd.f32 %v2618_v52, %v2074_v9 }
 0x244   : > { %v2078_v50 = vpop.f32.mrf.mxu0  ;;  %v4823_v37 = vpop.f32.mrf.mxu1 }
 0x245   : > { %v2899_v33 = vmax.f32 %v2619_v40, 0.0  ;;  %v2079_v23 = vadd.f32 %v4788_v29, %v2078_v50  ;;  %v2167_v40 = vadd.f32 %v4788_v29, %v4214_v18 }
 0x246   : > { %v2080_v12 = vpop.f32.mrf.mxu0  ;;  %v4826_v31 = vpop.f32.mrf.mxu1 }
 0x247   : > { %3027 = vst.msk [vmem:[%s4425_s13 + $0x268] sm:$0xff] %vm1539_vm0, %v2899_v33  ;;  %v2624_v57 = vadd.f32 %v4766_v15, %v2079_v23  ;;  %v2151_v15 = vadd.f32 %v4788_v29, %v4186_v58  ;;  %v2154_v58 = vadd.f32 %v4788_v29, %v4192_v62 }
 0x248   : > { %v2081_v11 = vpop.f32.mrf.mxu0  ;;  %v4831_v20 = vpop.f32.mrf.mxu1 }
 0x249   : > { %v2900_v49 = vmax.f32 %v2624_v57, 0.0  ;;  %v2082_v52 = vadd.f32 %v4788_v29, %v2081_v11 }
 0x24a   : > { %v2083_v55 = vpop.f32.mrf.mxu0  ;;  %v4834_v35 = vpop.f32.mrf.mxu1 }
 0x24b   : > { %3028 = vst.msk [vmem:[%s4425_s13 + $0x270] sm:$0xff] %vm1539_vm0, %v2900_v49  ;;  %v2627_v41 = vadd.f32 %v4771_v24, %v2082_v52 }
 0x24c   : > { %v2086_v3 = vpop.f32.mrf.mxu0  ;;  %v3587_v45 = vpop.f32.mrf.mxu1 }
 0x24d   : > { %v2901_v1 = vmax.f32 %v2627_v41, 0.0  ;;  %v2087_v2 = vadd.f32 %v4788_v29, %v2086_v3  ;;  %v2704_v27 = vadd.f32 %v3587_v45, %v2159_v51  ;;  %v2170_v51 = vadd.f32 %v4788_v29, %v4220_v22 }
 0x24e   : > { %v2088_v14 = vpop.f32.mrf.mxu0  ;;  %v2695_v21 = vpop.f32.mrf.mxu1 }
 0x24f   : > { %3029 = vst.msk [vmem:[%s4425_s13 + $0x278] sm:$0xff] %vm1539_vm0, %v2901_v1  ;;  %v2632_v6 = vadd.f32 %v4779_v59, %v2087_v2  ;;  %v2920_v24 = vmax.f32 %v2704_v27, 0.0  ;;  %v2696_v43 = vadd.f32 %v2695_v21, %v2151_v15  ;;  %v2175_v59 = vadd.f32 %v4788_v29, %v4228_v30 }
 0x250   : > { %v2089_v7 = vpop.f32.mrf.mxu0  ;;  %v3588_v63 = vpop.f32.mrf.mxu1 }
 0x251   : > { %v2902_v19 = vmax.f32 %v2632_v6, 0.0  ;;  %3048 = vst.msk [vmem:[%s4425_s13 + $0x310] sm:$0xff] %vm1539_vm0, %v2920_v24  ;;  %v2918_v53 = vmax.f32 %v2696_v43, 0.0  ;;  %v2090_v10 = vadd.f32 %v4788_v29, %v2089_v7  ;;  %v2707_v17 = vadd.f32 %v3588_v63, %v2162_v39 }
 0x252   : > { %v2091_v5 = vpop.f32.mrf.mxu0  ;;  %v2698_v44 = vpop.f32.mrf.mxu1  ;;  %v2183_v39 = vadd.f32 %v4788_v29, %v4242_v42 }
 0x253   : > { %3030 = vst.msk [vmem:[%s4425_s13 + $0x280] sm:$0xff] %vm1539_vm0, %v2902_v19  ;;  %3046 = vst.msk [vmem:[%s4425_s13 + $0x300] sm:$0xff] %vm1539_vm0, %v2918_v53  ;;  %v2635_v62 = vadd.f32 %v4791_v38, %v2090_v10  ;;  %v2921_v9 = vmax.f32 %v2707_v17, 0.0  ;;  %v2699_v4 = vadd.f32 %v2698_v44, %v2154_v58  ;;  %v2178_v38 = vadd.f32 %v4788_v29, %v4234_v34 }
 0x254   : > { %v2094_v50 = vpop.f32.mrf.mxu0  ;;  %v3591_v33 = vpop.f32.mrf.mxu1  ;;  %v2186_v17 = vadd.f32 %v4788_v29, %v4248_v46 }
 0x255   : > { %v2903_v23 = vmax.f32 %v2635_v62, 0.0  ;;  %3049 = vst.msk [vmem:[%s4425_s13 + $0x318] sm:$0xff] %vm1539_vm0, %v2921_v9  ;;  %v2919_v30 = vmax.f32 %v2699_v4, 0.0  ;;  %v2095_v12 = vadd.f32 %v4788_v29, %v2094_v50  ;;  %v2720_v57 = vadd.f32 %v3591_v33, %v2175_v59 }
 0x256   : > { %v2096_v11 = vpop.f32.mrf.mxu0  ;;  %v2711_v49 = vpop.f32.mrf.mxu1 }
 0x257   : > { %3031 = vst.msk [vmem:[%s4425_s13 + $0x288] sm:$0xff] %vm1539_vm0, %v2903_v23  ;;  %3047 = vst.msk [vmem:[%s4425_s13 + $0x308] sm:$0xff] %vm1539_vm0, %v2919_v30  ;;  %v2640_v18 = vadd.f32 %v4776_v16, %v2095_v12  ;;  %v2924_v52 = vmax.f32 %v2720_v57, 0.0  ;;  %v2712_v55 = vadd.f32 %v2711_v49, %v2167_v40  ;;  %v2191_v16 = vadd.f32 %v4788_v29, %v4256_v54 }
 0x258   : > { %v2097_v41 = vpop.f32.mrf.mxu0  ;;  %v3592_v3 = vpop.f32.mrf.mxu1  ;;  %v2199_v23 = vadd.f32 %v4788_v29, %v4270_v8 }
 0x259   : > { %v2904_v45 = vmax.f32 %v2640_v18, 0.0  ;;  %3052 = vst.msk [vmem:[%s4425_s13 + $0x330] sm:$0xff] %vm1539_vm0, %v2924_v52  ;;  %v2922_v34 = vmax.f32 %v2712_v55, 0.0  ;;  %v2098_v15 = vadd.f32 %v4788_v29, %v2097_v41  ;;  %v2723_v1 = vadd.f32 %v3592_v3, %v2178_v38 }
 0x25a   : > { %v2099_v2 = vpop.f32.mrf.mxu0  ;;  %v2714_v27 = vpop.f32.mrf.mxu1 }
 0x25b   : > { %3032 = vst.msk [vmem:[%s4425_s13 + $0x290] sm:$0xff] %vm1539_vm0, %v2904_v45  ;;  %3050 = vst.msk [vmem:[%s4425_s13 + $0x320] sm:$0xff] %vm1539_vm0, %v2922_v34  ;;  %v2643_v22 = vadd.f32 %v4783_v28, %v2098_v15  ;;  %v2925_v14 = vmax.f32 %v2723_v1, 0.0  ;;  %v2715_v21 = vadd.f32 %v2714_v27, %v2170_v51  ;;  %v2194_v28 = vadd.f32 %v4788_v29, %v4262_v60  ;;  %v5057_v51 = vld [vmem:[#allocation2_spill] sm:$0xff] }
 0x25c   : > { %v2102_v6 = vpop.f32.mrf.mxu0  ;;  %v3595_v24 = vpop.f32.mrf.mxu1  ;;  %v2202_v41 = vadd.f32 %v4788_v29, %v5057_v51 }
 0x25d   : > { %v2905_v43 = vmax.f32 %v2643_v22, 0.0  ;;  %3053 = vst.msk [vmem:[%s4425_s13 + $0x338] sm:$0xff] %vm1539_vm0, %v2925_v14  ;;  %v2923_v54 = vmax.f32 %v2715_v21, 0.0  ;;  %v2103_v58 = vadd.f32 %v4788_v29, %v2102_v6  ;;  %v2736_v7 = vadd.f32 %v3595_v24, %v2191_v16  ;;  %v5058_v16 = vld [vmem:[#allocation5_spill] sm:$0xff] }
 0x25e   : > { %v2104_v63 = vpop.f32.mrf.mxu0  ;;  %v2727_v19 = vpop.f32.mrf.mxu1 }
 0x25f   : > { %3033 = vst.msk [vmem:[%s4425_s13 + $0x298] sm:$0xff] %vm1539_vm0, %v2905_v43  ;;  %3051 = vst.msk [vmem:[%s4425_s13 + $0x328] sm:$0xff] %vm1539_vm0, %v2923_v54  ;;  %v2648_v42 = vadd.f32 %v4798_v61, %v2103_v58  ;;  %v2928_v53 = vmax.f32 %v2736_v7, 0.0  ;;  %v2728_v10 = vadd.f32 %v2727_v19, %v2183_v39  ;;  %v2207_v61 = vadd.f32 %v4788_v29, %v4284_v26  ;;  %v5059_v39 = vld [vmem:[#allocation3_spill] sm:$0xff] }
 0x260   : > { %v2105_v5 = vpop.f32.mrf.mxu0  ;;  %v3596_v44 = vpop.f32.mrf.mxu1  ;;  %v2215_v6 = vadd.f32 %v4788_v29, %v5059_v39 }
 0x261   : > { %v2906_v59 = vmax.f32 %v2648_v42, 0.0  ;;  %3056 = vst.msk [vmem:[%s4425_s13 + $0x350] sm:$0xff] %vm1539_vm0, %v2928_v53  ;;  %v2926_v60 = vmax.f32 %v2728_v10, 0.0  ;;  %v2106_v62 = vadd.f32 %v4788_v29, %v2105_v5  ;;  %v2739_v9 = vadd.f32 %v3596_v44, %v2194_v28  ;;  %v5060_v42 = vld [vmem:[#allocation6_spill] sm:$0xff]  ;;  %v5061_v5 = vld [vmem:[#allocation4_spill] sm:$0xff] }
 0x262   : > { %v2107_v4 = vpop.f32.mrf.mxu0  ;;  %v2730_v40 = vpop.f32.mrf.mxu1  ;;  %v2218_v44 = vadd.f32 %v4788_v29, %v5061_v5 }
 0x263   : > { %3034 = vst.msk [vmem:[%s4425_s13 + $0x2a0] sm:$0xff] %vm1539_vm0, %v2906_v59  ;;  %3054 = vst.msk [vmem:[%s4425_s13 + $0x340] sm:$0xff] %vm1539_vm0, %v2926_v60  ;;  %v2651_v46 = vadd.f32 %v4805_v0, %v2106_v62  ;;  %v2929_v50 = vmax.f32 %v2739_v9, 0.0  ;;  %v2731_v33 = vadd.f32 %v2730_v40, %v2186_v17  ;;  %v2210_v0 = vadd.f32 %v4788_v29, %v4290_v32 }
 0x264   : > { %v2110_v30 = vpop.f32.mrf.mxu0  ;;  %v3599_v12 = vpop.f32.mrf.mxu1 }
 0x265   : > { %v2907_v57 = vmax.f32 %v2651_v46, 0.0  ;;  %3057 = vst.msk [vmem:[%s4425_s13 + $0x358] sm:$0xff] %vm1539_vm0, %v2929_v50  ;;  %v2927_v26 = vmax.f32 %v2731_v33, 0.0  ;;  %v2111_v11 = vadd.f32 %v4788_v29, %v2110_v30  ;;  %v2752_v49 = vadd.f32 %v3599_v12, %v2207_v61  ;;  %v5062_v50 = vld [vmem:[#allocation9_spill] sm:$0xff]  ;;  %v5063_v12 = vld [vmem:[#allocation7_spill] sm:$0xff] }
 0x266   : > { %v2112_v38 = vpop.f32.mrf.mxu0  ;;  %v2743_v18 = vpop.f32.mrf.mxu1 }
 0x267   : > { %3035 = vst.msk [vmem:[%s4425_s13 + $0x2a8] sm:$0xff] %vm1539_vm0, %v2907_v57  ;;  %3055 = vst.msk [vmem:[%s4425_s13 + $0x348] sm:$0xff] %vm1539_vm0, %v2927_v26  ;;  %v2656_v8 = vadd.f32 %v4795_v13, %v2111_v11  ;;  %v2932_v52 = vmax.f32 %v2752_v49, 0.0  ;;  %v2744_v55 = vadd.f32 %v2743_v18, %v2199_v23  ;;  %v2223_v13 = vadd.f32 %v4788_v29, %v5058_v16 }
 0x268   : > { %v2113_v3 = vpop.f32.mrf.mxu0  ;;  %v3600_v45 = vpop.f32.mrf.mxu1  ;;  %v2231_v57 = vadd.f32 %v4788_v29, %v5063_v12  ;;  %v5071_v12 = vld [vmem:[#allocation15_spill] sm:$0xff] }
 0x269   : > { %v2908_v34 = vmax.f32 %v2656_v8, 0.0  ;;  %3060 = vst.msk [vmem:[%s4425_s13 + $0x370] sm:$0xff] %vm1539_vm0, %v2932_v52  ;;  %v2930_v32 = vmax.f32 %v2744_v55, 0.0  ;;  %v2114_v15 = vadd.f32 %v4788_v29, %v2113_v3  ;;  %v2755_v1 = vadd.f32 %v3600_v45, %v2210_v0  ;;  %v5064_v55 = vld [vmem:[#allocation10_spill] sm:$0xff]  ;;  %v5065_v45 = vld [vmem:[#allocation8_spill] sm:$0xff] }
 0x26a   : > { %v2115_v2 = vpop.f32.mrf.mxu0  ;;  %v2746_v27 = vpop.f32.mrf.mxu1 }
 0x26b   : > { %3036 = vst.msk [vmem:[%s4425_s13 + $0x2b0] sm:$0xff] %vm1539_vm0, %v2908_v34  ;;  %3058 = vst.msk [vmem:[%s4425_s13 + $0x360] sm:$0xff] %vm1539_vm0, %v2930_v32  ;;  %v2659_v22 = vadd.f32 %v4802_v48, %v2114_v15  ;;  %v2933_v14 = vmax.f32 %v2755_v1, 0.0  ;;  %v2747_v21 = vadd.f32 %v2746_v27, %v2202_v41  ;;  %v2226_v48 = vadd.f32 %v4788_v29, %v5060_v42 }
 0x26c   : > { %v2118_v24 = vpop.f32.mrf.mxu0  ;;  %v3603_v43 = vpop.f32.mrf.mxu1  ;;  %v2234_v34 = vadd.f32 %v4788_v29, %v5065_v45 }
 0x26d   : > { %v2909_v54 = vmax.f32 %v2659_v22, 0.0  ;;  %3061 = vst.msk [vmem:[%s4425_s13 + $0x378] sm:$0xff] %vm1539_vm0, %v2933_v14  ;;  %v2931_v58 = vmax.f32 %v2747_v21, 0.0  ;;  %v2119_v7 = vadd.f32 %v4788_v29, %v2118_v24  ;;  %v2768_v63 = vadd.f32 %v3603_v43, %v2223_v13  ;;  %v5066_v14 = vld [vmem:[#allocation13_spill] sm:$0xff]  ;;  %v5067_v24 = vld [vmem:[#allocation11_spill] sm:$0xff] }
 0x26e   : > { %v2120_v19 = vpop.f32.mrf.mxu0  ;;  %v2759_v28 = vpop.f32.mrf.mxu1  ;;  %v2247_v43 = vadd.f32 %v4788_v29, %v5067_v24 }
 0x26f   : > { %3037 = vst.msk [vmem:[%s4425_s13 + $0x2b8] sm:$0xff] %vm1539_vm0, %v2909_v54  ;;  %3059 = vst.msk [vmem:[%s4425_s13 + $0x368] sm:$0xff] %vm1539_vm0, %v2931_v58  ;;  %v2664_v53 = vadd.f32 %v4812_v47, %v2119_v7  ;;  %v2936_v10 = vmax.f32 %v2768_v63, 0.0  ;;  %v2760_v17 = vadd.f32 %v2759_v28, %v2215_v6  ;;  %v2239_v47 = vadd.f32 %v4788_v29, %v5062_v50 }
 0x270   : > { %v2121_v59 = vpop.f32.mrf.mxu0  ;;  %v3604_v60 = vpop.f32.mrf.mxu1 }
 0x271   : > { %v2910_v62 = vmax.f32 %v2664_v53, 0.0  ;;  %3064 = vst.msk [vmem:[%s4425_s13 + $0x390] sm:$0xff] %vm1539_vm0, %v2936_v10  ;;  %v2934_v9 = vmax.f32 %v2760_v17, 0.0  ;;  %v2122_v4 = vadd.f32 %v4788_v29, %v2121_v59  ;;  %v2771_v40 = vadd.f32 %v3604_v60, %v2226_v48  ;;  %v5068_v53 = vld [vmem:[#allocation14_spill] sm:$0xff] }
 0x272   : > { %v2123_v61 = vpop.f32.mrf.mxu0  ;;  %v2762_v46 = vpop.f32.mrf.mxu1 }
 0x273   : > { %3038 = vst.msk [vmem:[%s4425_s13 + $0x2c0] sm:$0xff] %vm1539_vm0, %v2910_v62  ;;  %3062 = vst.msk [vmem:[%s4425_s13 + $0x380] sm:$0xff] %vm1539_vm0, %v2934_v9  ;;  %v2667_v33 = vadd.f32 %v4819_v56, %v2122_v4  ;;  %v2937_v23 = vmax.f32 %v2771_v40, 0.0  ;;  %v2763_v30 = vadd.f32 %v2762_v46, %v2218_v44  ;;  %v2242_v56 = vadd.f32 %v4788_v29, %v5064_v55  ;;  %v5069_v44 = vld [vmem:[#allocation12_spill] sm:$0xff]  ;;  %v5072_v55 = vld [vmem:[#allocation18_spill] sm:$0xff] }
 0x274   : > { %v2126_v26 = vpop.f32.mrf.mxu0  ;;  %v3607_v11 = vpop.f32.mrf.mxu1  ;;  %v2250_v59 = vadd.f32 %v4788_v29, %v5069_v44 }
 0x275   : > { %v2911_v49 = vmax.f32 %v2667_v33, 0.0  ;;  %3065 = vst.msk [vmem:[%s4425_s13 + $0x398] sm:$0xff] %vm1539_vm0, %v2937_v23  ;;  %v2935_v38 = vmax.f32 %v2763_v30, 0.0  ;;  %v2127_v18 = vadd.f32 %v4788_v29, %v2126_v26  ;;  %v2784_v0 = vadd.f32 %v3607_v11, %v2239_v47  ;;  %v5070_v47 = vld [vmem:[#allocation17_spill] sm:$0xff] }
 0x276   : > { %v2128_v8 = vpop.f32.mrf.mxu0  ;;  %v2775_v52 = vpop.f32.mrf.mxu1 }
 0x277   : > { %3039 = vst.msk [vmem:[%s4425_s13 + $0x2c8] sm:$0xff] %vm1539_vm0, %v2911_v49  ;;  %3063 = vst.msk [vmem:[%s4425_s13 + $0x388] sm:$0xff] %vm1539_vm0, %v2935_v38  ;;  %v2672_v51 = vadd.f32 %v4809_v25, %v2127_v18  ;;  %v2940_v41 = vmax.f32 %v2784_v0, 0.0  ;;  %v2776_v3 = vadd.f32 %v2775_v52, %v2231_v57  ;;  %v2255_v25 = vadd.f32 %v4788_v29, %v5066_v14 }
 0x278   : > { %v2129_v32 = vpop.f32.mrf.mxu0  ;;  %v3608_v15 = vpop.f32.mrf.mxu1  ;;  %v2263_v57 = vadd.f32 %v4788_v29, %v5071_v12 }
 0x279   : > { %v2912_v1 = vmax.f32 %v2672_v51, 0.0  ;;  %3068 = vst.msk [vmem:[%s4425_s13 + $0x3b0] sm:$0xff] %vm1539_vm0, %v2940_v41  ;;  %v2938_v2 = vmax.f32 %v2776_v3, 0.0  ;;  %v2130_v27 = vadd.f32 %v4788_v29, %v2129_v32  ;;  %v2787_v16 = vadd.f32 %v3608_v15, %v2242_v56  ;;  %v5073_v3 = vld [vmem:[#allocation16_spill] sm:$0xff] }
 0x27a   : > { %v2131_v13 = vpop.f32.mrf.mxu0  ;;  %v2778_v22 = vpop.f32.mrf.mxu1  ;;  %v2266_v45 = vadd.f32 %v4788_v29, %v5073_v3 }
 0x27b   : > { %3040 = vst.msk [vmem:[%s4425_s13 + $0x2d0] sm:$0xff] %vm1539_vm0, %v2912_v1  ;;  %3066 = vst.msk [vmem:[%s4425_s13 + $0x3a0] sm:$0xff] %vm1539_vm0, %v2938_v2  ;;  %v2675_v21 = vadd.f32 %v4816_v36, %v2130_v27  ;;  %v2941_v39 = vmax.f32 %v2787_v16, 0.0  ;;  %v2779_v6 = vadd.f32 %v2778_v22, %v2234_v34  ;;  %v2258_v36 = vadd.f32 %v4788_v29, %v5068_v53 }
 0x27c   : > { %v2134_v54 = vpop.f32.mrf.mxu0  ;;  %v3611_v58 = vpop.f32.mrf.mxu1 }
 0x27d   : > { %v2913_v7 = vmax.f32 %v2675_v21, 0.0  ;;  %3069 = vst.msk [vmem:[%s4425_s13 + $0x3b8] sm:$0xff] %vm1539_vm0, %v2941_v39  ;;  %v2939_v63 = vmax.f32 %v2779_v6, 0.0  ;;  %v2135_v19 = vadd.f32 %v4788_v29, %v2134_v54  ;;  %v2800_v28 = vadd.f32 %v3611_v58, %v2255_v25 }
 0x27e   : > { %v2136_v42 = vpop.f32.mrf.mxu0  ;;  %v2791_v48 = vpop.f32.mrf.mxu1 }
 0x27f   : > { %3041 = vst.msk [vmem:[%s4425_s13 + $0x2d8] sm:$0xff] %vm1539_vm0, %v2913_v7  ;;  %3067 = vst.msk [vmem:[%s4425_s13 + $0x3a8] sm:$0xff] %vm1539_vm0, %v2939_v63  ;;  %v2680_v10 = vadd.f32 %v4826_v31, %v2135_v19  ;;  %v2944_v17 = vmax.f32 %v2800_v28, 0.0  ;;  %v2792_v5 = vadd.f32 %v2791_v48, %v2247_v43  ;;  %v2271_v31 = vadd.f32 %v4788_v29, %v5070_v47 }
 0x280   : > { %v2137_v60 = vpop.f32.mrf.mxu0  ;;  %v3612_v62 = vpop.f32.mrf.mxu1 }
 0x281   : > { %v2914_v9 = vmax.f32 %v2680_v10, 0.0  ;;  %3072 = vst.msk [vmem:[%s4425_s13 + $0x3d0] sm:$0xff] %vm1539_vm0, %v2944_v17  ;;  %v2942_v4 = vmax.f32 %v2792_v5, 0.0  ;;  %v2138_v40 = vadd.f32 %v4788_v29, %v2137_v60  ;;  %v2803_v61 = vadd.f32 %v3612_v62, %v2258_v36 }
 0x282   : > { %v2139_v46 = vpop.f32.mrf.mxu0  ;;  %v2794_v50 = vpop.f32.mrf.mxu1 }
 0x283   : > { %3042 = vst.msk [vmem:[%s4425_s13 + $0x2e0] sm:$0xff] %vm1539_vm0, %v2914_v9  ;;  %3070 = vst.msk [vmem:[%s4425_s13 + $0x3c0] sm:$0xff] %vm1539_vm0, %v2942_v4  ;;  %v2683_v33 = vadd.f32 %v4834_v35, %v2138_v40  ;;  %v2945_v23 = vmax.f32 %v2803_v61, 0.0  ;;  %v2795_v30 = vadd.f32 %v2794_v50, %v2250_v59  ;;  %v2274_v35 = vadd.f32 %v4788_v29, %v5072_v55 }
 0x284   : > { %v2142_v26 = vpop.f32.mrf.mxu0  ;;  %v3615_v11 = vpop.f32.mrf.mxu1 }
 0x285   : > { %v2915_v49 = vmax.f32 %v2683_v33, 0.0  ;;  %3073 = vst.msk [vmem:[%s4425_s13 + $0x3d8] sm:$0xff] %vm1539_vm0, %v2945_v23  ;;  %v2943_v38 = vmax.f32 %v2795_v30, 0.0  ;;  %v2143_v18 = vadd.f32 %v4788_v29, %v2142_v26  ;;  %v2816_v0 = vadd.f32 %v3615_v11, %v2271_v31 }
 0x286   : > { %v2144_v8 = vpop.f32.mrf.mxu0  ;;  %v2807_v52 = vpop.f32.mrf.mxu1 }
 0x287   : > { %3043 = vst.msk [vmem:[%s4425_s13 + $0x2e8] sm:$0xff] %vm1539_vm0, %v2915_v49  ;;  %3071 = vst.msk [vmem:[%s4425_s13 + $0x3c8] sm:$0xff] %vm1539_vm0, %v2943_v38  ;;  %v2688_v56 = vadd.f32 %v4823_v37, %v2143_v18  ;;  %v2948_v51 = vmax.f32 %v2816_v0, 0.0  ;;  %v2808_v41 = vadd.f32 %v2807_v52, %v2263_v57 }
 0x288   : > { %v2145_v34 = vpop.f32.mrf.mxu0  ;;  %v3616_v32 = vpop.f32.mrf.mxu1 }
 0x289   : > { %v2916_v15 = vmax.f32 %v2688_v56, 0.0  ;;  %3076 = vst.msk [vmem:[%s4425_s13 + $0x3f0] sm:$0xff] %vm1539_vm0, %v2948_v51  ;;  %v2946_v1 = vmax.f32 %v2808_v41, 0.0  ;;  %v2146_v2 = vadd.f32 %v4788_v29, %v2145_v34  ;;  %v2819_v27 = vadd.f32 %v3616_v32, %v2274_v35 }
 0x28a   : > { %v2147_v16 = vpop.f32.mrf.mxu0  ;;  %v2810_v13 = vpop.f32.mrf.mxu1 }
 0x28b   : > { %3044 = vst.msk [vmem:[%s4425_s13 + $0x2f0] sm:$0xff] %vm1539_vm0, %v2916_v15  ;;  %3074 = vst.msk [vmem:[%s4425_s13 + $0x3e0] sm:$0xff] %vm1539_vm0, %v2946_v1  ;;  %v2691_v37 = vadd.f32 %v4831_v20, %v2146_v2  ;;  %v2949_v22 = vmax.f32 %v2819_v27, 0.0  ;;  %v2811_v14 = vadd.f32 %v2810_v13, %v2266_v45 }
 0x28d   : > { %v2917_v25 = vmax.f32 %v2691_v37, 0.0  ;;  %3077 = vst.msk [vmem:[%s4425_s13 + $0x3f8] sm:$0xff] %vm1539_vm0, %v2949_v22  ;;  %v2947_v21 = vmax.f32 %v2811_v14, 0.0 }
 0x28f   : > { %3045 = vst.msk [vmem:[%s4425_s13 + $0x2f8] sm:$0xff] %vm1539_vm0, %v2917_v25  ;;  %3075 = vst.msk [vmem:[%s4425_s13 + $0x3e8] sm:$0xff] %vm1539_vm0, %v2947_v21 }
 0x290 PF: > { %s13_s12 = sadd.s32 1, %s3940_s12  }
 0x291   : > { %p10_p4 = scmp.ge.s32.totalorder %s13_s12, 4  }
 0x293   :  { %12 = sbr.rel (!%p10_p4) target bundleno = 1 (0x1), region = 62 }

// kernel: encoder_forward.8
= control target key start
LH: loop header
LB: loop body
LE: loop exit
PB: predicated region body
PF: predicated region fallthrough
CT: control target
= control target key end

     0   :  { %s7550_s12 = smov 0   ;;  %s9826_s0 = inlined_call_operand.vmem [shape: bf16[2,1024,800], index: 0, kind: input, shape index: {}]   ;;  %s9827_s1 = inlined_call_operand.vmem [shape: bf16[800,32], index: 1, kind: input, shape index: {}]   ;;  %s9828_s2 = inlined_call_operand.vmem [shape: f32[1,32], index: 2, kind: input, shape index: {}]   ;;  %s9829_s3 = inlined_call_operand.vmem [shape: f32[2,1024,32], index: 3, kind: output, shape index: {}]  }
   0x1 LB: > { %s6015_s13 = sadd.s32 4294967295, %s7527_s12   ;;  %p6019_p0 = scmp.ge.s32.totalorder %s7527_s12, 1  ;;  %s7527_s12 = sphi %s7550_s12, %s13_s12  }
   0x2   : > { %p137_p1 = scmp.lt.s32.totalorder %s7527_s12, 3 }
   0x4   : > { %p138_p2 = pnand %p6019_p0, %p137_p1 }
   0x6   : > { %141 = sbr.rel (%p138_p2) target bundleno = 1168 (0x490), region = 32 }
   0xb   : > { %v6829_v0 = vld [vmem:[%s9827_s1 + $0x38] sm:$0xff]   ;;  %v7529_v1 = vmov 0   ;;  %v6830_v2 = vld [vmem:[%s9827_s1 + $0x30] sm:$0xff]   ;;  %p161_p3 = scmp.lt.s32.totalorder %s6015_s13, 1  ;;  %v6831_v3 = vld [vmem:[%s9827_s1 + $0x28] sm:$0xff]   ;;  %vm3331_vm0 = vcmask 261120  }
   0xc   : > { %3524 = vmatprep.subr.bf16.mxu0 %v7529_v1  ;;  %6787 = vmatprep.subr.bf16.mxu1 %v7529_v1  ;;  %v6832_v4 = vld [vmem:[%s9827_s1 + $0x20] sm:$0xff]   ;;  %v6833_v5 = vld [vmem:[%s9827_s1 + $0x18] sm:$0xff]   ;;  %v6834_v7 = vld [vmem:[%s9827_s1 + $0x10] sm:$0xff]  }
   0xd   : > { %3525 = vmatpush1.bf16.msra.mxu0 %v6829_v0  ;;  %6803 = vmatpush1.bf16.msra.mxu1 %v6829_v0  ;;  %s10151_s13 = smov (!%p161_p3, %s6015_s13), 1  ;;  %v6835_v9 = vld [vmem:[%s9827_s1 + $0x8] sm:$0xff]   ;;  %v6836_v10 = vld [vmem:[%s9827_s1] sm:$0xff]   ;;  %v6837_v11 = vld [vmem:[%s9827_s1 + $0x78] sm:$0xff]  }
   0xe   : > { %3526 = vmatprep.subr.bf16.mxu0 %v7529_v1  ;;  %6788 = vmatprep.subr.bf16.mxu1 %v7529_v1  ;;  %s6819_s22 = smul.u32 3584, %s10151_s13  ;;  %v6838_v12 = vld [vmem:[%s9827_s1 + $0x70] sm:$0xff]   ;;  %v6839_v13 = vld [vmem:[%s9827_s1 + $0x68] sm:$0xff]   ;;  %v6840_v14 = vld [vmem:[%s9827_s1 + $0x60] sm:$0xff]   ;;  %s6588_s28 = sshll.u32 %s10151_s13, 10 }
   0xf   : > { %v6841_v15 = vld [vmem:[%s9827_s1 + $0x58] sm:$0xff]   ;;  %v6842_v16 = vld [vmem:[%s9827_s1 + $0x50] sm:$0xff]   ;;  %v6843_v17 = vld [vmem:[%s9827_s1 + $0x48] sm:$0xff]   ;;  %s9240_s13 = scalar_lea.vmem %s9829_s3, %s6588_s28 }
  0x10   : > { %s7587_s27 = scalar_lea.vmem %s9826_s0, %s6819_s22  ;;  %v6844_v18 = vld [vmem:[%s9827_s1 + $0x40] sm:$0xff]   ;;  %v6851_v21 = vld [vmem:[%s9827_s1 + $0xb8] sm:$0xff]   ;;  %v6859_v25 = vld [vmem:[%s9827_s1 + $0xb0] sm:$0xff]  }
  0x11   : > { %3527 = vmatpush1.bf16.msra.mxu0 %v6830_v2  ;;  %6804 = vmatpush1.bf16.msra.mxu1 %v6830_v2  ;;  %v6847_v6 = vld [vmem:[%s7587_s27 + $0x4] ss:$28 sps:$4 sm:$0xff]   ;;  %v6852_v22 = vld [vmem:[%s9827_s1 + $0x138] sm:$0xff]   ;;  %v6874_v26 = vld [vmem:[%s9827_s1 + $0x130] sm:$0xff]  }
  0x12   : > { %3528 = vmatprep.subr.bf16.mxu0 %v7529_v1  ;;  %6789 = vmatprep.subr.bf16.mxu1 %v7529_v1  ;;  %v6850_v8 = vld [vmem:[%s7587_s27 + $0xa84] ss:$28 sps:$4 sm:$0xff]   ;;  %v6853_v23 = vld [vmem:[%s7587_s27 + $0x3c] ss:$28 sps:$4 sm:$0xff]   ;;  %v6860_v29 = vld [vmem:[%s7587_s27 + $0x74] ss:$28 sps:$4 sm:$0xff]  }
  0x13   : > { %3556 = vmatprep.mubr.bf16.mxu0 %v6847_v6  ;;  %3940 = vmatprep.mubr.bf16.mxu1 %v6850_v8  ;;  %v6845_v19 = vld [vmem:[%s7587_s27] ss:$28 sps:$4 sm:$0xff]   ;;  %v6857_v27 = vld [vmem:[%s7587_s27 + $0x38] ss:$28 sps:$4 sm:$0xff]   ;;  %v6866_v31 = vld [vmem:[%s9827_s1 + $0xa8] sm:$0xff]  }
  0x14   : > { %v6848_v20 = vld [vmem:[%s7587_s27 + $0xa80] ss:$28 sps:$4 sm:$0xff]   ;;  %v6858_v28 = vld [vmem:[%s7587_s27 + $0xab8] ss:$28 sps:$4 sm:$0xff]   ;;  %v6896_v32 = vld [vmem:[%s9827_s1 + $0x128] sm:$0xff]  }
  0x15   : > { %3529 = vmatpush1.bf16.msra.mxu0 %v6831_v3  ;;  %6805 = vmatpush1.bf16.msra.mxu1 %v6831_v3  ;;  %v6855_v24 = vld [vmem:[%s7587_s27 + $0xabc] ss:$28 sps:$4 sm:$0xff]   ;;  %v6862_v30 = vld [vmem:[%s7587_s27 + $0xaf4] ss:$28 sps:$4 sm:$0xff]   ;;  %v6873_v33 = vld [vmem:[%s9827_s1 + $0xa0] sm:$0xff]  }
  0x16   : > { %3530 = vmatprep.subr.bf16.mxu0 %v7529_v1  ;;  %6790 = vmatprep.subr.bf16.mxu1 %v7529_v1  ;;  %v6864_v34 = vld [vmem:[%s7587_s27 + $0x70] ss:$28 sps:$4 sm:$0xff]   ;;  %v6918_v35 = vld [vmem:[%s9827_s1 + $0x120] sm:$0xff]   ;;  %v6881_v39 = vld [vmem:[%s9827_s1 + $0x98] sm:$0xff]  }
  0x17   : > { %v6865_v36 = vld [vmem:[%s7587_s27 + $0xaf0] ss:$28 sps:$4 sm:$0xff]   ;;  %v6940_v40 = vld [vmem:[%s9827_s1 + $0x118] sm:$0xff]   ;;  %v6871_v43 = vld [vmem:[%s7587_s27 + $0xa8] ss:$28 sps:$4 sm:$0xff]  }
  0x18   : > { %v6867_v37 = vld [vmem:[%s7587_s27 + $0xac] ss:$28 sps:$4 sm:$0xff]   ;;  %v6888_v41 = vld [vmem:[%s9827_s1 + $0x90] sm:$0xff]   ;;  %v6875_v45 = vld [vmem:[%s7587_s27 + $0xe4] ss:$28 sps:$4 sm:$0xff]  }
  0x19   : > { %3531 = vmatpush1.bf16.msra.mxu0 %v6832_v4  ;;  %6806 = vmatpush1.bf16.msra.mxu1 %v6832_v4  ;;  %v6869_v38 = vld [vmem:[%s7587_s27 + $0xb2c] ss:$28 sps:$4 sm:$0xff]   ;;  %v6962_v42 = vld [vmem:[%s9827_s1 + $0x110] sm:$0xff]   ;;  %v6877_v46 = vld [vmem:[%s7587_s27 + $0xb64] ss:$28 sps:$4 sm:$0xff]  }
  0x1a   : > { %3532 = vmatprep.subr.bf16.mxu0 %v7529_v1  ;;  %6791 = vmatprep.subr.bf16.mxu1 %v7529_v1  ;;  %v6872_v44 = vld [vmem:[%s7587_s27 + $0xb28] ss:$28 sps:$4 sm:$0xff]   ;;  %v6879_v50 = vld [vmem:[%s7587_s27 + $0xe0] ss:$28 sps:$4 sm:$0xff]   ;;  %v6917_v55 = vld [vmem:[%s9827_s1 + $0xf0] sm:$0xff]  }
  0x1b   : > { %v6895_v47 = vld [vmem:[%s9827_s1 + $0x88] sm:$0xff]   ;;  %v6903_v49 = vld [vmem:[%s9827_s1 + $0x80] sm:$0xff]   ;;  %v6882_v52 = vld [vmem:[%s7587_s27 + $0x11c] ss:$28 sps:$4 sm:$0xff]  }
  0x1c   : > { %v6982_v48 = vld [vmem:[%s9827_s1 + $0x108] sm:$0xff]   ;;  %v6880_v51 = vld [vmem:[%s7587_s27 + $0xb60] ss:$28 sps:$4 sm:$0xff]   ;;  %v6886_v56 = vld [vmem:[%s7587_s27 + $0x118] ss:$28 sps:$4 sm:$0xff]  }
  0x1d   : > { %3533 = vmatpush1.bf16.msra.mxu0 %v6833_v5  ;;  %6807 = vmatpush1.bf16.msra.mxu1 %v6833_v5  ;;  %v6884_v53 = vld [vmem:[%s7587_s27 + $0xb9c] ss:$28 sps:$4 sm:$0xff]   ;;  %v6889_v58 = vld [vmem:[%s7587_s27 + $0x154] ss:$28 sps:$4 sm:$0xff]   ;;  %v6925_v60 = vld [vmem:[%s9827_s1 + $0xe8] sm:$0xff]  }
  0x1e   : > { %3534 = vmatprep.subr.bf16.mxu0 %v7529_v1  ;;  %6792 = vmatprep.subr.bf16.mxu1 %v7529_v1  ;;  %v6910_v54 = vld [vmem:[%s9827_s1 + $0xf8] sm:$0xff]   ;;  %v6891_v59 = vld [vmem:[%s7587_s27 + $0xbd4] ss:$28 sps:$4 sm:$0xff]   ;;  %v7001_v61 = vld [vmem:[%s9827_s1 + $0x100] sm:$0xff]  }
  0x1f   : > { %v6887_v57 = vld [vmem:[%s7587_s27 + $0xb98] ss:$28 sps:$4 sm:$0xff]   ;;  %v6932_v62 = vld [vmem:[%s9827_s1 + $0xe0] sm:$0xff]   ;;  %v6893_v63 = vld [vmem:[%s7587_s27 + $0x150] ss:$28 sps:$4 sm:$0xff]  }
  0x20   : > { %v6894_v0 = vld [vmem:[%s7587_s27 + $0xbd0] ss:$28 sps:$4 sm:$0xff]   ;;  %v6939_v4 = vld [vmem:[%s9827_s1 + $0xd8] sm:$0xff]   ;;  %v6901_v6 = vld [vmem:[%s7587_s27 + $0x188] ss:$28 sps:$4 sm:$0xff]  }
  0x21   : > { %3535 = vmatpush1.bf16.msra.mxu0 %v6834_v7  ;;  %6808 = vmatpush1.bf16.msra.mxu1 %v6834_v7  ;;  %v6897_v2 = vld [vmem:[%s7587_s27 + $0x18c] ss:$28 sps:$4 sm:$0xff]   ;;  %v6947_v5 = vld [vmem:[%s9827_s1 + $0xd0] sm:$0xff]   ;;  %v6904_v8 = vld [vmem:[%s7587_s27 + $0x1c4] ss:$28 sps:$4 sm:$0xff]  }
  0x22   : > { %3536 = vmatprep.subr.bf16.mxu0 %v7529_v1  ;;  %6793 = vmatprep.subr.bf16.mxu1 %v7529_v1  ;;  %v6899_v3 = vld [vmem:[%s7587_s27 + $0xc0c] ss:$28 sps:$4 sm:$0xff]  }
  0x23   : > { %v6902_v7 = vld [vmem:[%s7587_s27 + $0xc08] ss:$28 sps:$4 sm:$0xff]  }
  0x25   : > { %3537 = vmatpush1.bf16.msra.mxu0 %v6835_v9  ;;  %6809 = vmatpush1.bf16.msra.mxu1 %v6835_v9  ;;  %v6906_v9 = vld [vmem:[%s7587_s27 + $0xc44] ss:$28 sps:$4 sm:$0xff]  }
  0x26   : > { %3538 = vmatprep.subr.bf16.mxu0 %v7529_v1  ;;  %6794 = vmatprep.subr.bf16.mxu1 %v7529_v1 }
  0x29   : > { %3539 = vmatpush1.bf16.msra.mxu0 %v6836_v10  ;;  %6810 = vmatpush1.bf16.msra.mxu1 %v6836_v10  ;;  %v6954_v10 = vld [vmem:[%s9827_s1 + $0xc8] sm:$0xff]  }
  0x2a   : > { %3540 = vmatprep.subr.bf16.mxu0 %v7529_v1  ;;  %6795 = vmatprep.subr.bf16.mxu1 %v7529_v1 }
  0x2d   : > { %3541 = vmatpush2.bf16.msra.mxu0 %v6837_v11  ;;  %6811 = vmatpush2.bf16.msra.mxu1 %v6837_v11  ;;  %v6961_v11 = vld [vmem:[%s9827_s1 + $0xc0] sm:$0xff]  }
  0x2e   : > { %3542 = vmatprep.subr.bf16.mxu0 %v7529_v1  ;;  %6796 = vmatprep.subr.bf16.mxu1 %v7529_v1 }
  0x31   : > { %3543 = vmatpush2.bf16.msra.mxu0 %v6838_v12  ;;  %6812 = vmatpush2.bf16.msra.mxu1 %v6838_v12  ;;  %v7779_v12 = vld [vmem:[%s9827_s1 + $0x188] sm:$0xff]  }
  0x32   : > { %3544 = vmatprep.subr.bf16.mxu0 %v7529_v1  ;;  %6797 = vmatprep.subr.bf16.mxu1 %v7529_v1 }
  0x35   : > { %3545 = vmatpush2.bf16.msra.mxu0 %v6839_v13  ;;  %6813 = vmatpush2.bf16.msra.mxu1 %v6839_v13  ;;  %v6908_v13 = vld [vmem:[%s7587_s27 + $0x1c0] ss:$28 sps:$4 sm:$0xff]  }
  0x36   : > { %3546 = vmatprep.subr.bf16.mxu0 %v7529_v1  ;;  %6798 = vmatprep.subr.bf16.mxu1 %v7529_v1 }
  0x39   : > { %3547 = vmatpush2.bf16.msra.mxu0 %v6840_v14  ;;  %6814 = vmatpush2.bf16.msra.mxu1 %v6840_v14  ;;  %v6909_v14 = vld [vmem:[%s7587_s27 + $0xc40] ss:$28 sps:$4 sm:$0xff]  }
  0x3a   : > { %3548 = vmatprep.subr.bf16.mxu0 %v7529_v1  ;;  %6799 = vmatprep.subr.bf16.mxu1 %v7529_v1 }
  0x3d   : > { %3549 = vmatpush2.bf16.msra.mxu0 %v6841_v15  ;;  %6815 = vmatpush2.bf16.msra.mxu1 %v6841_v15  ;;  %v6911_v15 = vld [vmem:[%s7587_s27 + $0x1fc] ss:$28 sps:$4 sm:$0xff]  }
  0x3e   : > { %3550 = vmatprep.subr.bf16.mxu0 %v7529_v1  ;;  %6800 = vmatprep.subr.bf16.mxu1 %v7529_v1 }
  0x41   : > { %3551 = vmatpush2.bf16.msra.mxu0 %v6842_v16  ;;  %6816 = vmatpush2.bf16.msra.mxu1 %v6842_v16  ;;  %v6913_v16 = vld [vmem:[%s7587_s27 + $0xc7c] ss:$28 sps:$4 sm:$0xff]  }
  0x42   : > { %3552 = vmatprep.subr.bf16.mxu0 %v7529_v1  ;;  %6801 = vmatprep.subr.bf16.mxu1 %v7529_v1 }
  0x45   : > { %3553 = vmatpush2.bf16.msra.mxu0 %v6843_v17  ;;  %6817 = vmatpush2.bf16.msra.mxu1 %v6843_v17  ;;  %v7020_v17 = vld [vmem:[%s9827_s1 + $0x178] sm:$0xff]  }
  0x46   : > { %3554 = vmatprep.subr.bf16.mxu0 %v7529_v1  ;;  %6802 = vmatprep.subr.bf16.mxu1 %v7529_v1 }
  0x49   : > { %3555 = vmatpush2.bf16.msra.mxu0 %v6844_v18  ;;  %6818 = vmatpush2.bf16.msra.mxu1 %v6844_v18  ;;  %v6915_v18 = vld [vmem:[%s7587_s27 + $0x1f8] ss:$28 sps:$4 sm:$0xff]  }
  0x4a   : > { %4069 = vmatprep.subr.bf16.mxu1 %v7529_v1  ;;  %4614 = vmatprep.subr.bf16.mxu0 %v7529_v1 }
  0x4c   : > { %3557 = vmatmul.mubr.bf16.vlgmr.msra.gmra.mxu0 %v6845_v19  ;;  %3941 = vmatmul.mubr.bf16.vlgmr.msra.gmra.mxu1 %v6848_v20  ;;  %v6916_v19 = vld [vmem:[%s7587_s27 + $0xc78] ss:$28 sps:$4 sm:$0xff]  }
  0x4d   : > { %4070 = vmatpush1.bf16.msra.mxu1 %v6851_v21  ;;  %4615 = vmatpush1.bf16.msra.mxu0 %v6852_v22  ;;  %v6919_v20 = vld [vmem:[%s7587_s27 + $0x234] ss:$28 sps:$4 sm:$0xff]  }
  0x4e   : > { %3564 = vmatprep.mubr.bf16.mxu0 %v6853_v23  ;;  %3948 = vmatprep.mubr.bf16.mxu1 %v6855_v24  ;;  %v6921_v21 = vld [vmem:[%s7587_s27 + $0xcb4] ss:$28 sps:$4 sm:$0xff]   ;;  %v6926_v24 = vld [vmem:[%s7587_s27 + $0x26c] ss:$28 sps:$4 sm:$0xff]  }
  0x4f   : > { %4071 = vmatprep.subr.bf16.mxu1 %v7529_v1  ;;  %4616 = vmatprep.subr.bf16.mxu0 %v7529_v1  ;;  %v6923_v22 = vld [vmem:[%s7587_s27 + $0x230] ss:$28 sps:$4 sm:$0xff]  }
  0x50   : > { %v6924_v23 = vld [vmem:[%s7587_s27 + $0xcb0] ss:$28 sps:$4 sm:$0xff]  }
  0x51   : > { %4072 = vmatpush1.bf16.msra.mxu1 %v6859_v25  ;;  %4617 = vmatpush1.bf16.msra.mxu0 %v6874_v26  ;;  %v6928_v25 = vld [vmem:[%s7587_s27 + $0xcec] ss:$28 sps:$4 sm:$0xff]  }
  0x52   : > { %4073 = vmatprep.subr.bf16.mxu1 %v7529_v1  ;;  %4618 = vmatprep.subr.bf16.mxu0 %v7529_v1  ;;  %v6930_v26 = vld [vmem:[%s7587_s27 + $0x268] ss:$28 sps:$4 sm:$0xff]  }
  0x54   : > { %3565 = vmatmul.mubr.bf16.gmra.mxu0 %v6857_v27  ;;  %3949 = vmatmul.mubr.bf16.gmra.mxu1 %v6858_v28  ;;  %v6931_v27 = vld [vmem:[%s7587_s27 + $0xce8] ss:$28 sps:$4 sm:$0xff]  }
  0x55   : > { %3572 = vmatprep.mubr.bf16.mxu0 %v6860_v29  ;;  %3956 = vmatprep.mubr.bf16.mxu1 %v6862_v30  ;;  %v6933_v28 = vld [vmem:[%s7587_s27 + $0x2a4] ss:$28 sps:$4 sm:$0xff]   ;;  %v7039_v30 = vld [vmem:[%s9827_s1 + $0x170] sm:$0xff]  }
  0x56   : > { %4074 = vmatpush1.bf16.msra.mxu1 %v6866_v31  ;;  %4619 = vmatpush1.bf16.msra.mxu0 %v6896_v32  ;;  %v6935_v29 = vld [vmem:[%s7587_s27 + $0xd24] ss:$28 sps:$4 sm:$0xff]  }
  0x57   : > { %4075 = vmatprep.subr.bf16.mxu1 %v7529_v1  ;;  %4620 = vmatprep.subr.bf16.mxu0 %v7529_v1  ;;  %v6937_v31 = vld [vmem:[%s7587_s27 + $0x2a0] ss:$28 sps:$4 sm:$0xff]  }
  0x58   : > { %v6938_v32 = vld [vmem:[%s7587_s27 + $0xd20] ss:$28 sps:$4 sm:$0xff]  }
  0x5a   : > { %4076 = vmatpush1.bf16.msra.mxu1 %v6873_v33  ;;  %4621 = vmatpush1.bf16.msra.mxu0 %v6918_v35  ;;  %v6941_v33 = vld [vmem:[%s7587_s27 + $0x2dc] ss:$28 sps:$4 sm:$0xff]  }
  0x5b   : > { %4077 = vmatprep.subr.bf16.mxu1 %v7529_v1  ;;  %4622 = vmatprep.subr.bf16.mxu0 %v7529_v1  ;;  %v6945_v35 = vld [vmem:[%s7587_s27 + $0x2d8] ss:$28 sps:$4 sm:$0xff]  }
  0x5c   : > { %3573 = vmatmul.mubr.bf16.gmra.mxu0 %v6864_v34  ;;  %3957 = vmatmul.mubr.bf16.gmra.mxu1 %v6865_v36  ;;  %v6943_v34 = vld [vmem:[%s7587_s27 + $0xd5c] ss:$28 sps:$4 sm:$0xff]  }
  0x5d   : > { %3580 = vmatprep.mubr.bf16.mxu0 %v6867_v37  ;;  %3964 = vmatprep.mubr.bf16.mxu1 %v6869_v38  ;;  %v6946_v36 = vld [vmem:[%s7587_s27 + $0xd58] ss:$28 sps:$4 sm:$0xff]  }
  0x5e   : > { %4078 = vmatpush1.bf16.msra.mxu1 %v6881_v39  ;;  %4623 = vmatpush1.bf16.msra.mxu0 %v6940_v40  ;;  %v6948_v37 = vld [vmem:[%s7587_s27 + $0x314] ss:$28 sps:$4 sm:$0xff]  }
  0x5f   : > { %4079 = vmatprep.subr.bf16.mxu1 %v7529_v1  ;;  %4624 = vmatprep.subr.bf16.mxu0 %v7529_v1  ;;  %v6950_v38 = vld [vmem:[%s7587_s27 + $0xd94] ss:$28 sps:$4 sm:$0xff]  }
  0x60   : > { %v6952_v39 = vld [vmem:[%s7587_s27 + $0x310] ss:$28 sps:$4 sm:$0xff]  }
  0x61   : > { %v6953_v40 = vld [vmem:[%s7587_s27 + $0xd90] ss:$28 sps:$4 sm:$0xff]  }
  0x62   : > { %4080 = vmatpush1.bf16.msra.mxu1 %v6888_v41  ;;  %4625 = vmatpush1.bf16.msra.mxu0 %v6962_v42  ;;  %v6955_v41 = vld [vmem:[%s7587_s27 + $0x34c] ss:$28 sps:$4 sm:$0xff]  }
  0x63   : > { %4081 = vmatprep.subr.bf16.mxu1 %v7529_v1  ;;  %4626 = vmatprep.subr.bf16.mxu0 %v7529_v1  ;;  %v6957_v42 = vld [vmem:[%s7587_s27 + $0xdcc] ss:$28 sps:$4 sm:$0xff]  }
  0x64   : > { %3581 = vmatmul.mubr.bf16.gmra.mxu0 %v6871_v43  ;;  %3965 = vmatmul.mubr.bf16.gmra.mxu1 %v6872_v44  ;;  %v7058_v43 = vld [vmem:[%s9827_s1 + $0x168] sm:$0xff]  }
  0x65   : > { %3588 = vmatprep.mubr.bf16.mxu0 %v6875_v45  ;;  %3972 = vmatprep.mubr.bf16.mxu1 %v6877_v46  ;;  %v6959_v44 = vld [vmem:[%s7587_s27 + $0x348] ss:$28 sps:$4 sm:$0xff]  }
  0x66   : > { %4082 = vmatpush1.bf16.msra.mxu1 %v6895_v47  ;;  %4627 = vmatpush1.bf16.msra.mxu0 %v6982_v48  ;;  %v6960_v45 = vld [vmem:[%s7587_s27 + $0xdc8] ss:$28 sps:$4 sm:$0xff]  }
  0x67   : > { %4083 = vmatprep.subr.bf16.mxu1 %v7529_v1  ;;  %4628 = vmatprep.subr.bf16.mxu0 %v7529_v1  ;;  %v6963_v46 = vld [vmem:[%s7587_s27 + $0x384] ss:$28 sps:$4 sm:$0xff]   ;;  %v6967_v47 = vld [vmem:[%s7587_s27 + $0xc] ss:$28 sps:$4 sm:$0xff]  }
  0x68   : > { %v6965_v48 = vld [vmem:[%s7587_s27 + $0x8] ss:$28 sps:$4 sm:$0xff]  }
  0x6a   : > { %4084 = vmatpush1.bf16.msra.mxu1 %v6903_v49  ;;  %4629 = vmatpush1.bf16.msra.mxu0 %v7001_v61  ;;  %v6968_v49 = vld [vmem:[%s7587_s27 + $0x380] ss:$28 sps:$4 sm:$0xff]   ;;  %v6987_v61 = vld [vmem:[%s7587_s27 + $0x428] ss:$28 sps:$4 sm:$0xff]  }
  0x6b   : > { %4085 = vmatprep.subr.bf16.mxu1 %v7529_v1  ;;  %4630 = vmatprep.subr.bf16.mxu0 %v7529_v1 }
  0x6c   : > { %3589 = vmatmul.mubr.bf16.gmra.mxu0 %v6879_v50  ;;  %3973 = vmatmul.mubr.bf16.gmra.mxu1 %v6880_v51  ;;  %v6970_v50 = vld [vmem:[%s7587_s27 + $0x3bc] ss:$28 sps:$4 sm:$0xff]   ;;  %v6972_v51 = vld [vmem:[%s7587_s27 + $0x44] ss:$28 sps:$4 sm:$0xff]  }
  0x6d   : > { %3596 = vmatprep.mubr.bf16.mxu0 %v6882_v52  ;;  %3980 = vmatprep.mubr.bf16.mxu1 %v6884_v53  ;;  %v6974_v52 = vld [vmem:[%s7587_s27 + $0x3b8] ss:$28 sps:$4 sm:$0xff]   ;;  %v6975_v53 = vld [vmem:[%s7587_s27 + $0x40] ss:$28 sps:$4 sm:$0xff]  }
  0x6e   : > { %4086 = vmatpush2.bf16.msra.mxu1 %v6910_v54  ;;  %4631 = vmatpush2.bf16.msra.mxu0 %v7020_v17  ;;  %v6976_v54 = vld [vmem:[%s7587_s27 + $0x3f4] ss:$28 sps:$4 sm:$0xff]   ;;  %v7014_v17 = vld [vmem:[%s7587_s27 + $0x544] ss:$28 sps:$4 sm:$0xff]  }
  0x6f   : > { %4087 = vmatprep.subr.bf16.mxu1 %v7529_v1  ;;  %4632 = vmatprep.subr.bf16.mxu0 %v7529_v1 }
  0x72   : > { %4088 = vmatpush2.bf16.msra.mxu1 %v6917_v55  ;;  %4633 = vmatpush2.bf16.msra.mxu0 %v7039_v30  ;;  %v6978_v55 = vld [vmem:[%s7587_s27 + $0x7c] ss:$28 sps:$4 sm:$0xff]  }
  0x73   : > { %4089 = vmatprep.subr.bf16.mxu1 %v7529_v1  ;;  %4634 = vmatprep.subr.bf16.mxu0 %v7529_v1 }
  0x74   : > { %3597 = vmatmul.mubr.bf16.gmra.mxu0 %v6886_v56  ;;  %3981 = vmatmul.mubr.bf16.gmra.mxu1 %v6887_v57  ;;  %v7077_v56 = vld [vmem:[%s9827_s1 + $0x160] sm:$0xff]   ;;  %v6980_v57 = vld [vmem:[%s7587_s27 + $0x3f0] ss:$28 sps:$4 sm:$0xff]  }
  0x75   : > { %3604 = vmatprep.mubr.bf16.mxu0 %v6889_v58  ;;  %3988 = vmatprep.mubr.bf16.mxu1 %v6891_v59  ;;  %v6981_v58 = vld [vmem:[%s7587_s27 + $0x78] ss:$28 sps:$4 sm:$0xff]   ;;  %v6983_v59 = vld [vmem:[%s7587_s27 + $0x42c] ss:$28 sps:$4 sm:$0xff]  }
  0x76   : > { %4090 = vmatpush2.bf16.msra.mxu1 %v6925_v60  ;;  %4635 = vmatpush2.bf16.msra.mxu0 %v7058_v43  ;;  %v6985_v60 = vld [vmem:[%s7587_s27 + $0xb4] ss:$28 sps:$4 sm:$0xff]  }
  0x77   : > { %4091 = vmatprep.subr.bf16.mxu1 %v7529_v1  ;;  %4636 = vmatprep.subr.bf16.mxu0 %v7529_v1 }
  0x7a   : > { %4092 = vmatpush2.bf16.msra.mxu1 %v6932_v62  ;;  %4637 = vmatpush2.bf16.msra.mxu0 %v7077_v56  ;;  %v6988_v62 = vld [vmem:[%s7587_s27 + $0xb0] ss:$28 sps:$4 sm:$0xff]  }
  0x7b   : > { %4093 = vmatprep.subr.bf16.mxu1 %v7529_v1  ;;  %4638 = vmatprep.subr.bf16.mxu0 %v7529_v1  ;;  %v7038_v56 = vld [vmem:[%s7587_s27 + $0x270] ss:$28 sps:$4 sm:$0xff]  }
  0x7c   : > { %3605 = vmatmul.mubr.bf16.gmra.mxu0 %v6893_v63  ;;  %3989 = vmatmul.mubr.bf16.gmra.mxu1 %v6894_v0  ;;  %v6989_v63 = vld [vmem:[%s7587_s27 + $0x464] ss:$28 sps:$4 sm:$0xff]   ;;  %v6991_v0 = vld [vmem:[%s7587_s27 + $0xec] ss:$28 sps:$4 sm:$0xff]  }
  0x7d   : > { %3612 = vmatprep.mubr.bf16.mxu0 %v6897_v2  ;;  %3996 = vmatprep.mubr.bf16.mxu1 %v6899_v3  ;;  %v6993_v2 = vld [vmem:[%s7587_s27 + $0x460] ss:$28 sps:$4 sm:$0xff]   ;;  %v6994_v3 = vld [vmem:[%s7587_s27 + $0xe8] ss:$28 sps:$4 sm:$0xff]  }
  0x7e   : > { %4094 = vmatpush2.bf16.msra.mxu1 %v6939_v4  ;;  %v6995_v4 = vld [vmem:[%s7587_s27 + $0x49c] ss:$28 sps:$4 sm:$0xff]  }
  0x7f   : > { %4095 = vmatprep.subr.bf16.mxu1 %v7529_v1 }
  0x82   : > { %4096 = vmatpush2.bf16.msra.mxu1 %v6947_v5  ;;  %v6997_v5 = vld [vmem:[%s7587_s27 + $0x124] ss:$28 sps:$4 sm:$0xff]  }
  0x83   : > { %4097 = vmatprep.subr.bf16.mxu1 %v7529_v1 }
  0x84   : > { %3613 = vmatmul.mubr.bf16.gmra.mxu0 %v6901_v6  ;;  %3997 = vmatmul.mubr.bf16.gmra.mxu1 %v6902_v7  ;;  %v7096_v6 = vld [vmem:[%s9827_s1 + $0x158] sm:$0xff]  }
  0x85   : > { %3620 = vmatprep.mubr.bf16.mxu0 %v6904_v8  ;;  %4004 = vmatprep.mubr.bf16.mxu1 %v6906_v9  ;;  %v6999_v7 = vld [vmem:[%s7587_s27 + $0x498] ss:$28 sps:$4 sm:$0xff]   ;;  %v7000_v8 = vld [vmem:[%s7587_s27 + $0x120] ss:$28 sps:$4 sm:$0xff]  }
  0x86   : > { %4098 = vmatpush2.bf16.msra.mxu1 %v6954_v10  ;;  %4639 = vmatpush2.bf16.msra.mxu0 %v7096_v6  ;;  %v7002_v9 = vld [vmem:[%s7587_s27 + $0x4d4] ss:$28 sps:$4 sm:$0xff]   ;;  %v7004_v10 = vld [vmem:[%s7587_s27 + $0x15c] ss:$28 sps:$4 sm:$0xff]   ;;  %v7051_v6 = vld [vmem:[%s7587_s27 + $0x2e4] ss:$28 sps:$4 sm:$0xff]  }
  0x87   : > { %4099 = vmatprep.subr.bf16.mxu1 %v7529_v1  ;;  %4640 = vmatprep.subr.bf16.mxu0 %v7529_v1 }
  0x8a   : > { %4100 = vmatpush2.bf16.msra.mxu1 %v6961_v11  ;;  %v7006_v11 = vld [vmem:[%s7587_s27 + $0x4d0] ss:$28 sps:$4 sm:$0xff]  }
  0x8b   : > { %6655 = vmatprep.subr.bf16.mxu1 %v7779_v12 }
  0x8c   : > { %3621 = vmatmul.mubr.bf16.gmra.mxu0 %v6908_v13  ;;  %4005 = vmatmul.mubr.bf16.gmra.mxu1 %v6909_v14  ;;  %v7008_v13 = vld [vmem:[%s7587_s27 + $0x50c] ss:$28 sps:$4 sm:$0xff]   ;;  %v7010_v14 = vld [vmem:[%s7587_s27 + $0x194] ss:$28 sps:$4 sm:$0xff]  }
  0x8d   : > { %3628 = vmatprep.mubr.bf16.mxu0 %v6911_v15  ;;  %4012 = vmatprep.mubr.bf16.mxu1 %v6913_v16  ;;  %v7012_v15 = vld [vmem:[%s7587_s27 + $0x508] ss:$28 sps:$4 sm:$0xff]   ;;  %v7013_v16 = vld [vmem:[%s7587_s27 + $0x190] ss:$28 sps:$4 sm:$0xff]  }
  0x94   : > { %3629 = vmatmul.mubr.bf16.gmra.mxu0 %v6915_v18  ;;  %4013 = vmatmul.mubr.bf16.gmra.mxu1 %v6916_v19  ;;  %v7016_v18 = vld [vmem:[%s7587_s27 + $0x1cc] ss:$28 sps:$4 sm:$0xff]   ;;  %v7115_v19 = vld [vmem:[%s9827_s1 + $0x150] sm:$0xff]  }
  0x95   : > { %3636 = vmatprep.mubr.bf16.mxu0 %v6919_v20  ;;  %4020 = vmatprep.mubr.bf16.mxu1 %v6921_v21  ;;  %v7018_v20 = vld [vmem:[%s7587_s27 + $0x540] ss:$28 sps:$4 sm:$0xff]   ;;  %v7019_v21 = vld [vmem:[%s7587_s27 + $0x1c8] ss:$28 sps:$4 sm:$0xff]  }
  0x96   : > { %4641 = vmatpush2.bf16.msra.mxu0 %v7115_v19 }
  0x97   : > { %4642 = vmatprep.subr.bf16.mxu0 %v7529_v1 }
  0x9c   : > { %3637 = vmatmul.mubr.bf16.gmra.mxu0 %v6923_v22  ;;  %4021 = vmatmul.mubr.bf16.gmra.mxu1 %v6924_v23  ;;  %v7021_v22 = vld [vmem:[%s7587_s27 + $0x57c] ss:$28 sps:$4 sm:$0xff]   ;;  %v7023_v23 = vld [vmem:[%s7587_s27 + $0x204] ss:$28 sps:$4 sm:$0xff]  }
  0x9d   : > { %3644 = vmatprep.mubr.bf16.mxu0 %v6926_v24  ;;  %4028 = vmatprep.mubr.bf16.mxu1 %v6928_v25 }
  0xa4   : > { %3645 = vmatmul.mubr.bf16.gmra.mxu0 %v6930_v26  ;;  %4029 = vmatmul.mubr.bf16.gmra.mxu1 %v6931_v27 }
  0xa5   : > { %3652 = vmatprep.mubr.bf16.mxu0 %v6933_v28  ;;  %4036 = vmatprep.mubr.bf16.mxu1 %v6935_v29  ;;  %v7025_v28 = vld [vmem:[%s7587_s27 + $0x578] ss:$28 sps:$4 sm:$0xff]   ;;  %v7026_v29 = vld [vmem:[%s7587_s27 + $0x200] ss:$28 sps:$4 sm:$0xff]  }
  0xac   : > { %3653 = vmatmul.mubr.bf16.gmra.mxu0 %v6937_v31  ;;  %4037 = vmatmul.mubr.bf16.gmra.mxu1 %v6938_v32  ;;  %v7027_v32 = vld [vmem:[%s7587_s27 + $0x5b4] ss:$28 sps:$4 sm:$0xff]  }
  0xad   : > { %3660 = vmatprep.mubr.bf16.mxu0 %v6941_v33  ;;  %4044 = vmatprep.mubr.bf16.mxu1 %v6943_v34  ;;  %v7029_v33 = vld [vmem:[%s7587_s27 + $0x23c] ss:$28 sps:$4 sm:$0xff]  }
  0xb4   : > { %3661 = vmatmul.mubr.bf16.gmra.mxu0 %v6945_v35  ;;  %4045 = vmatmul.mubr.bf16.gmra.mxu1 %v6946_v36 }
  0xb5   : > { %3668 = vmatprep.mubr.bf16.mxu0 %v6948_v37  ;;  %4052 = vmatprep.mubr.bf16.mxu1 %v6950_v38 }
  0xbc   : > { %3669 = vmatmul.mubr.bf16.gmra.mxu0 %v6952_v39  ;;  %4053 = vmatmul.mubr.bf16.gmra.mxu1 %v6953_v40  ;;  %v7031_v40 = vld [vmem:[%s7587_s27 + $0x5b0] ss:$28 sps:$4 sm:$0xff]  }
  0xbd   : > { %3676 = vmatprep.mubr.bf16.mxu0 %v6955_v41  ;;  %4060 = vmatprep.mubr.bf16.mxu1 %v6957_v42  ;;  %v7032_v41 = vld [vmem:[%s7587_s27 + $0x238] ss:$28 sps:$4 sm:$0xff]  }
  0xc4   : > { %3677 = vmatmul.mubr.bf16.gmra.mxu0 %v6959_v44  ;;  %4061 = vmatmul.mubr.bf16.gmra.mxu1 %v6960_v45  ;;  %v7033_v44 = vld [vmem:[%s7587_s27 + $0x5ec] ss:$28 sps:$4 sm:$0xff]   ;;  %v7035_v45 = vld [vmem:[%s7587_s27 + $0x274] ss:$28 sps:$4 sm:$0xff]  }
  0xc5   : > { %3684 = vmatprep.mubr.bf16.mxu0 %v6963_v46  ;;  %4101 = vmatprep.mubr.bf16.mxu1 %v6967_v47 }
  0xcc   : > { %3685 = vmatmul.mubr.bf16.gmra.mxu0 %v6968_v49  ;;  %4102 = vmatmul.mubr.bf16.vlgmr.msra.gmra.mxu1 %v6965_v48 }
  0xcd   : > { %6656 = vmatpush3.bf16.msra.mxu1 %v7779_v12  ;;  %3692 = vmatprep.mubr.bf16.mxu0 %v6970_v50  ;;  %v7007_v12 = vld [vmem:[%s7587_s27 + $0x158] ss:$28 sps:$4 sm:$0xff]   ;;  %v7134_v50 = vld [vmem:[%s9827_s1 + $0x148] sm:$0xff]  }
  0xce   : > { %4109 = vmatprep.mubr.bf16.mxu1 %v6972_v51  ;;  %4643 = vmatpush2.bf16.msra.mxu0 %v7134_v50  ;;  %v7059_v50 = vld [vmem:[%s7587_s27 + $0x6c8] ss:$28 sps:$4 sm:$0xff]  }
  0xcf   : > { %4644 = vmatprep.subr.bf16.mxu0 %v7529_v1 }
  0xd4   : > { %3693 = vmatmul.mubr.bf16.gmra.mxu0 %v6974_v52  ;;  %4110 = vmatmul.mubr.bf16.gmra.mxu1 %v6975_v53  ;;  %v7037_v53 = vld [vmem:[%s7587_s27 + $0x5e8] ss:$28 sps:$4 sm:$0xff]  }
  0xd5   : > { %3700 = vmatprep.mubr.bf16.mxu0 %v6976_v54  ;;  %4117 = vmatprep.mubr.bf16.mxu1 %v6978_v55 }
  0xdc   : > { %3701 = vmatmul.mubr.bf16.gmra.mxu0 %v6980_v57  ;;  %4118 = vmatmul.mubr.bf16.gmra.mxu1 %v6981_v58  ;;  %v7042_v57 = vld [vmem:[%s7587_s27 + $0x624] ss:$28 sps:$4 sm:$0xff]   ;;  %v7045_v58 = vld [vmem:[%s7587_s27 + $0x2ac] ss:$28 sps:$4 sm:$0xff]  }
  0xdd   : > { %3708 = vmatprep.mubr.bf16.mxu0 %v6983_v59  ;;  %4125 = vmatprep.mubr.bf16.mxu1 %v6985_v60 }
  0xe4   : > { %3709 = vmatmul.mubr.bf16.gmra.mxu0 %v6987_v61  ;;  %4126 = vmatmul.mubr.bf16.gmra.mxu1 %v6988_v62 }
  0xe5   : > { %3716 = vmatprep.mubr.bf16.mxu0 %v6989_v63  ;;  %4133 = vmatprep.mubr.bf16.mxu1 %v6991_v0 }
  0xec   : > { %3717 = vmatmul.mubr.bf16.gmra.mxu0 %v6993_v2  ;;  %4134 = vmatmul.mubr.bf16.gmra.mxu1 %v6994_v3  ;;  %v7040_v3 = vld [vmem:[%s7587_s27 + $0x620] ss:$28 sps:$4 sm:$0xff]  }
  0xed   : > { %3724 = vmatprep.mubr.bf16.mxu0 %v6995_v4  ;;  %4141 = vmatprep.mubr.bf16.mxu1 %v6997_v5  ;;  %v7043_v4 = vld [vmem:[%s7587_s27 + $0x2a8] ss:$28 sps:$4 sm:$0xff]   ;;  %v7048_v5 = vld [vmem:[%s7587_s27 + $0x65c] ss:$28 sps:$4 sm:$0xff]  }
  0xf4   : > { %3725 = vmatmul.mubr.bf16.gmra.mxu0 %v6999_v7  ;;  %4142 = vmatmul.mubr.bf16.gmra.mxu1 %v7000_v8 }
  0xf5   : > { %3732 = vmatprep.mubr.bf16.mxu0 %v7002_v9  ;;  %4149 = vmatprep.mubr.bf16.mxu1 %v7004_v10 }
  0xfc   : > { %3733 = vmatmul.mubr.bf16.gmra.mxu0 %v7006_v11  ;;  %4150 = vmatmul.mubr.bf16.gmra.mxu1 %v7007_v12 }
  0xfd   : > { %3740 = vmatprep.mubr.bf16.mxu0 %v7008_v13  ;;  %4157 = vmatprep.mubr.bf16.mxu1 %v7010_v14 }
 0x104   : > { %3741 = vmatmul.mubr.bf16.gmra.mxu0 %v7012_v15  ;;  %4158 = vmatmul.mubr.bf16.gmra.mxu1 %v7013_v16  ;;  %v7046_v15 = vld [vmem:[%s7587_s27 + $0x658] ss:$28 sps:$4 sm:$0xff]   ;;  %v7049_v16 = vld [vmem:[%s7587_s27 + $0x2e0] ss:$28 sps:$4 sm:$0xff]  }
 0x105   : > { %3748 = vmatprep.mubr.bf16.mxu0 %v7014_v17  ;;  %4165 = vmatprep.mubr.bf16.mxu1 %v7016_v18  ;;  %v7054_v17 = vld [vmem:[%s7587_s27 + $0x694] ss:$28 sps:$4 sm:$0xff]   ;;  %v7057_v18 = vld [vmem:[%s7587_s27 + $0x31c] ss:$28 sps:$4 sm:$0xff]  }
 0x10c   : > { %v7876_v24 = vpop.f32.mrf.mxu0  ;;  %3749 = vmatmul.mubr.bf16.gmra.mxu0 %v7018_v20  ;;  %v7878_v25 = vpop.f32.mrf.mxu1  ;;  %4166 = vmatmul.mubr.bf16.gmra.mxu1 %v7019_v21 }
 0x10d   : > { %9830 = vst [vmem:[#allocation2_spill] sm:$0xff] %v7878_v25  ;;  %3756 = vmatprep.mubr.bf16.mxu0 %v7021_v22  ;;  %4173 = vmatprep.mubr.bf16.mxu1 %v7023_v23  ;;  %v7153_v23 = vld [vmem:[%s9827_s1 + $0x140] sm:$0xff]  }
 0x10e   : > { %v3560_v26 = vpop.f32.mrf.mxu0  ;;  %v3944_v27 = vpop.f32.mrf.mxu1  ;;  %4645 = vmatpush2.bf16.msra.mxu0 %v7153_v23  ;;  %v7071_v23 = vld [vmem:[%s7587_s27 + $0x738] ss:$28 sps:$4 sm:$0xff]  }
 0x110   : > { %v7882_v30 = vpop.f32.mrf.mxu0  ;;  %v7884_v31 = vpop.f32.mrf.mxu1 }
 0x111   : > { %9831 = vst [vmem:[#allocation3_spill] sm:$0xff] %v7884_v31  ;;  %v7175_v31 = vld [vmem:[%s7587_s27 + $0x744] ss:$28 sps:$4 sm:$0xff]  }
 0x112   : > { %v3563_v34 = vpop.f32.mrf.mxu0  ;;  %v3947_v35 = vpop.f32.mrf.mxu1 }
 0x113   : > { %v7061_v34 = vld [vmem:[%s7587_s27 + $0x6cc] ss:$28 sps:$4 sm:$0xff]   ;;  %v7064_v35 = vld [vmem:[%s7587_s27 + $0x354] ss:$28 sps:$4 sm:$0xff]  }
 0x114   : > { %v7888_v36 = vpop.f32.mrf.mxu0  ;;  %3757 = vmatmul.mubr.bf16.gmra.mxu0 %v7025_v28  ;;  %v7890_v37 = vpop.f32.mrf.mxu1  ;;  %4174 = vmatmul.mubr.bf16.gmra.mxu1 %v7026_v29 }
 0x115   : > { %9832 = vst [vmem:[#allocation4_spill] sm:$0xff] %v7890_v37  ;;  %3764 = vmatprep.mubr.bf16.mxu0 %v7027_v32  ;;  %4181 = vmatprep.mubr.bf16.mxu1 %v7029_v33  ;;  %v7052_v32 = vld [vmem:[%s7587_s27 + $0x690] ss:$28 sps:$4 sm:$0xff]   ;;  %v7055_v33 = vld [vmem:[%s7587_s27 + $0x318] ss:$28 sps:$4 sm:$0xff]  }
 0x116   : > { %v3568_v38 = vpop.f32.mrf.mxu0  ;;  %v3952_v39 = vpop.f32.mrf.mxu1 }
 0x118   : > { %v7894_v42 = vpop.f32.mrf.mxu0  ;;  %v7896_v43 = vpop.f32.mrf.mxu1 }
 0x119   : > { %9833 = vst [vmem:[#allocation5_spill] sm:$0xff] %v7896_v43  ;;  %v7168_v43 = vld [vmem:[%s7587_s27 + $0x70c] ss:$28 sps:$4 sm:$0xff]  }
 0x11a   : > { %v3571_v46 = vpop.f32.mrf.mxu0  ;;  %v3955_v47 = vpop.f32.mrf.mxu1 }
 0x11c   : > { %v7900_v48 = vpop.f32.mrf.mxu0  ;;  %3765 = vmatmul.mubr.bf16.gmra.mxu0 %v7031_v40  ;;  %v7902_v49 = vpop.f32.mrf.mxu1  ;;  %4182 = vmatmul.mubr.bf16.gmra.mxu1 %v7032_v41 }
 0x11d   : > { %9834 = vst [vmem:[#allocation6_spill] sm:$0xff] %v7902_v49  ;;  %3772 = vmatprep.mubr.bf16.mxu0 %v7033_v44  ;;  %4189 = vmatprep.mubr.bf16.mxu1 %v7035_v45 }
 0x11e   : > { %v3576_v51 = vpop.f32.mrf.mxu0  ;;  %v3960_v52 = vpop.f32.mrf.mxu1 }
 0x11f   : > { %v7062_v51 = vld [vmem:[%s7587_s27 + $0x350] ss:$28 sps:$4 sm:$0xff]   ;;  %v7067_v52 = vld [vmem:[%s7587_s27 + $0x704] ss:$28 sps:$4 sm:$0xff]  }
 0x120   : > { %v7908_v54 = vpop.f32.mrf.mxu0  ;;  %v7910_v55 = vpop.f32.mrf.mxu1 }
 0x121   : > { %9835 = vst [vmem:[#allocation7_spill] sm:$0xff] %v7910_v55  ;;  %v7162_v55 = vld [vmem:[%s7587_s27 + $0xa4c] ss:$28 sps:$4 sm:$0xff]  }
 0x122   : > { %v3579_v59 = vpop.f32.mrf.mxu0  ;;  %v3963_v60 = vpop.f32.mrf.mxu1 }
 0x124   : > { %v7916_v61 = vpop.f32.mrf.mxu0  ;;  %3773 = vmatmul.mubr.bf16.gmra.mxu0 %v7037_v53  ;;  %v7918_v62 = vpop.f32.mrf.mxu1  ;;  %4190 = vmatmul.mubr.bf16.gmra.mxu1 %v7038_v56  ;;  %v7070_v53 = vld [vmem:[%s7587_s27 + $0x38c] ss:$28 sps:$4 sm:$0xff]  }
 0x125   : > { %9836 = vst [vmem:[#allocation8_spill] sm:$0xff] %v7918_v62  ;;  %3780 = vmatprep.mubr.bf16.mxu0 %v7042_v57  ;;  %4197 = vmatprep.mubr.bf16.mxu1 %v7045_v58 }
 0x126   : > { %v3584_v63 = vpop.f32.mrf.mxu0  ;;  %v3968_v0 = vpop.f32.mrf.mxu1 }
 0x128   : > { %v7920_v2 = vpop.f32.mrf.mxu0  ;;  %v7922_v1 = vpop.f32.mrf.mxu1 }
 0x129   : > { %9837 = vst [vmem:[#allocation9_spill] sm:$0xff] %v7922_v1  ;;  %v7156_v1 = vld [vmem:[%s7587_s27 + $0xa14] ss:$28 sps:$4 sm:$0xff]  }
 0x12a   : > { %v3587_v7 = vpop.f32.mrf.mxu0  ;;  %v3971_v8 = vpop.f32.mrf.mxu1 }
 0x12b   : > { %v7076_v7 = vld [vmem:[%s7587_s27 + $0x3c4] ss:$28 sps:$4 sm:$0xff]  }
 0x12c   : > { %v7928_v9 = vpop.f32.mrf.mxu0  ;;  %3781 = vmatmul.mubr.bf16.gmra.mxu0 %v7040_v3  ;;  %v7930_v10 = vpop.f32.mrf.mxu1  ;;  %4198 = vmatmul.mubr.bf16.gmra.mxu1 %v7043_v4  ;;  %v7065_v4 = vld [vmem:[%s7587_s27 + $0x700] ss:$28 sps:$4 sm:$0xff]  }
 0x12d   : > { %9838 = vst [vmem:[#allocation10_spill] sm:$0xff] %v7930_v10  ;;  %3788 = vmatprep.mubr.bf16.mxu0 %v7048_v5  ;;  %4205 = vmatprep.mubr.bf16.mxu1 %v7051_v6  ;;  %v7068_v5 = vld [vmem:[%s7587_s27 + $0x388] ss:$28 sps:$4 sm:$0xff]   ;;  %v7073_v6 = vld [vmem:[%s7587_s27 + $0x73c] ss:$28 sps:$4 sm:$0xff]  }
 0x12e   : > { %v3592_v11 = vpop.f32.mrf.mxu0  ;;  %v3976_v12 = vpop.f32.mrf.mxu1 }
 0x130   : > { %v7932_v13 = vpop.f32.mrf.mxu0  ;;  %v7934_v14 = vpop.f32.mrf.mxu1 }
 0x131   : > { %9839 = vst [vmem:[#allocation11_spill] sm:$0xff] %v7934_v14  ;;  %v7149_v14 = vld [vmem:[%s7587_s27 + $0x9dc] ss:$28 sps:$4 sm:$0xff]  }
 0x132   : > { %v3595_v19 = vpop.f32.mrf.mxu0  ;;  %v3979_v20 = vpop.f32.mrf.mxu1 }
 0x134   : > { %v7940_v21 = vpop.f32.mrf.mxu0  ;;  %3789 = vmatmul.mubr.bf16.gmra.mxu0 %v7046_v15  ;;  %v7942_v22 = vpop.f32.mrf.mxu1  ;;  %4206 = vmatmul.mubr.bf16.gmra.mxu1 %v7049_v16  ;;  %v7172_v16 = vld [vmem:[%s9827_s1 + $0x180] sm:$0xff]  }
 0x135   : > { %9840 = vst [vmem:[#allocation12_spill] sm:$0xff] %v7942_v22  ;;  %3796 = vmatprep.mubr.bf16.mxu0 %v7054_v17  ;;  %4213 = vmatprep.mubr.bf16.mxu1 %v7057_v18 }
 0x136   : > { %v3600_v26 = vpop.f32.mrf.mxu0  ;;  %v3984_v27 = vpop.f32.mrf.mxu1  ;;  %6657 = vmatprep.subr.bf16.mxu1 %v7172_v16 }
 0x137   : > { %v7074_v26 = vld [vmem:[%s7587_s27 + $0x3c0] ss:$28 sps:$4 sm:$0xff]   ;;  %6658 = vmatpush3.bf16.msra.mxu1 %v7172_v16  ;;  %v7080_v27 = vld [vmem:[%s7587_s27 + $0x774] ss:$28 sps:$4 sm:$0xff]  }
 0x138   : > { %v7947_v28 = vpop.f32.mrf.mxu0  ;;  %v7949_v29 = vpop.f32.mrf.mxu1  ;;  %v7087_v16 = vld [vmem:[%s7587_s27 + $0x430] ss:$28 sps:$4 sm:$0xff]  }
 0x139   : > { %9841 = vst [vmem:[#allocation13_spill] sm:$0xff] %v7949_v29  ;;  %v7143_v29 = vld [vmem:[%s7587_s27 + $0x9a4] ss:$28 sps:$4 sm:$0xff]  }
 0x13a   : > { %v3603_v38 = vpop.f32.mrf.mxu0  ;;  %v3987_v39 = vpop.f32.mrf.mxu1 }
 0x13c   : > { %v7955_v40 = vpop.f32.mrf.mxu0  ;;  %3797 = vmatmul.mubr.bf16.gmra.mxu0 %v7052_v32  ;;  %v7957_v41 = vpop.f32.mrf.mxu1  ;;  %4214 = vmatmul.mubr.bf16.gmra.mxu1 %v7055_v33  ;;  %v7083_v32 = vld [vmem:[%s7587_s27 + $0x3fc] ss:$28 sps:$4 sm:$0xff]  }
 0x13d   : > { %9842 = vst [vmem:[#allocation14_spill] sm:$0xff] %v7957_v41  ;;  %3804 = vmatprep.mubr.bf16.mxu0 %v7061_v34  ;;  %4221 = vmatprep.mubr.bf16.mxu1 %v7064_v35 }
 0x13e   : > { %v3608_v44 = vpop.f32.mrf.mxu0  ;;  %v3992_v45 = vpop.f32.mrf.mxu1 }
 0x140   : > { %v7959_v46 = vpop.f32.mrf.mxu0  ;;  %v7961_v47 = vpop.f32.mrf.mxu1 }
 0x141   : > { %9843 = vst [vmem:[#allocation15_spill] sm:$0xff] %v7961_v47  ;;  %v7137_v47 = vld [vmem:[%s7587_s27 + $0x96c] ss:$28 sps:$4 sm:$0xff]  }
 0x142   : > { %v3611_v56 = vpop.f32.mrf.mxu0  ;;  %v3995_v57 = vpop.f32.mrf.mxu1 }
 0x143   : > { %v7089_v56 = vld [vmem:[%s7587_s27 + $0x434] ss:$28 sps:$4 sm:$0xff]  }
 0x144   : > { %v7967_v58 = vpop.f32.mrf.mxu0  ;;  %3805 = vmatmul.mubr.bf16.gmra.mxu0 %v7059_v50  ;;  %v7969_v59 = vpop.f32.mrf.mxu1  ;;  %4222 = vmatmul.mubr.bf16.gmra.mxu1 %v7062_v51  ;;  %v7078_v51 = vld [vmem:[%s7587_s27 + $0x770] ss:$28 sps:$4 sm:$0xff]  }
 0x145   : > { %9844 = vst [vmem:[#allocation16_spill] sm:$0xff] %v7969_v59  ;;  %3812 = vmatprep.mubr.bf16.mxu0 %v7067_v52  ;;  %4229 = vmatprep.mubr.bf16.mxu1 %v7070_v53  ;;  %v7081_v52 = vld [vmem:[%s7587_s27 + $0x3f8] ss:$28 sps:$4 sm:$0xff]   ;;  %v7086_v53 = vld [vmem:[%s7587_s27 + $0x7ac] ss:$28 sps:$4 sm:$0xff]  }
 0x146   : > { %v3616_v60 = vpop.f32.mrf.mxu0  ;;  %v4000_v63 = vpop.f32.mrf.mxu1 }
 0x148   : > { %v7971_v0 = vpop.f32.mrf.mxu0  ;;  %v7973_v3 = vpop.f32.mrf.mxu1 }
 0x149   : > { %9845 = vst [vmem:[#allocation17_spill] sm:$0xff] %v7973_v3  ;;  %v7130_v3 = vld [vmem:[%s7587_s27 + $0x934] ss:$28 sps:$4 sm:$0xff]  }
 0x14a   : > { %v3619_v8 = vpop.f32.mrf.mxu0  ;;  %v4003_v11 = vpop.f32.mrf.mxu1 }
 0x14b   : > { %v7084_v11 = vld [vmem:[%s7587_s27 + $0x7a8] ss:$28 sps:$4 sm:$0xff]  }
 0x14c   : > { %v7979_v12 = vpop.f32.mrf.mxu0  ;;  %3813 = vmatmul.mubr.bf16.gmra.mxu0 %v7065_v4  ;;  %v7981_v15 = vpop.f32.mrf.mxu1  ;;  %4230 = vmatmul.mubr.bf16.gmra.mxu1 %v7068_v5 }
 0x14d   : > { %9846 = vst [vmem:[#allocation18_spill] sm:$0xff] %v7981_v15  ;;  %3820 = vmatprep.mubr.bf16.mxu0 %v7073_v6  ;;  %4237 = vmatprep.mubr.bf16.mxu1 %v7076_v7 }
 0x14e   : > { %v3624_v17 = vpop.f32.mrf.mxu0  ;;  %v4008_v18 = vpop.f32.mrf.mxu1 }
 0x14f   : > { %v7092_v17 = vld [vmem:[%s7587_s27 + $0x7e4] ss:$28 sps:$4 sm:$0xff]   ;;  %v7095_v18 = vld [vmem:[%s7587_s27 + $0x46c] ss:$28 sps:$4 sm:$0xff]  }
 0x150   : > { %v7986_v19 = vpop.f32.mrf.mxu0  ;;  %v7988_v20 = vpop.f32.mrf.mxu1 }
 0x151   : > { %9847 = vst [vmem:[#allocation19_spill] sm:$0xff] %v7988_v20  ;;  %v7125_v20 = vld [vmem:[%s7587_s27 + $0x580] ss:$28 sps:$4 sm:$0xff]  }
 0x152   : > { %v3627_v33 = vpop.f32.mrf.mxu0  ;;  %v4011_v34 = vpop.f32.mrf.mxu1 }
 0x154   : > { %v7994_v35 = vpop.f32.mrf.mxu0  ;;  %3821 = vmatmul.mubr.bf16.gmra.mxu0 %v7071_v23  ;;  %v7996_v38 = vpop.f32.mrf.mxu1  ;;  %4238 = vmatmul.mubr.bf16.gmra.mxu1 %v7074_v26 }
 0x155   : > { %9848 = vst [vmem:[#allocation20_spill] sm:$0xff] %v7996_v38  ;;  %3828 = vmatprep.mubr.bf16.mxu0 %v7080_v27  ;;  %4245 = vmatprep.mubr.bf16.mxu1 %v7083_v32 }
 0x156   : > { %v3632_v39 = vpop.f32.mrf.mxu0  ;;  %v4016_v44 = vpop.f32.mrf.mxu1 }
 0x158   : > { %v7998_v45 = vpop.f32.mrf.mxu0  ;;  %v8000_v50 = vpop.f32.mrf.mxu1 }
 0x159   : > { %9849 = vst [vmem:[#allocation21_spill] sm:$0xff] %v8000_v50 }
 0x15a   : > { %v3635_v57 = vpop.f32.mrf.mxu0  ;;  %v4019_v60 = vpop.f32.mrf.mxu1 }
 0x15c   : > { %v8006_v63 = vpop.f32.mrf.mxu0  ;;  %3829 = vmatmul.mubr.bf16.gmra.mxu0 %v7078_v51  ;;  %v8008_v4 = vpop.f32.mrf.mxu1  ;;  %4246 = vmatmul.mubr.bf16.gmra.mxu1 %v7081_v52  ;;  %v7090_v51 = vld [vmem:[%s7587_s27 + $0x7e0] ss:$28 sps:$4 sm:$0xff]   ;;  %v7093_v52 = vld [vmem:[%s7587_s27 + $0x468] ss:$28 sps:$4 sm:$0xff]  }
 0x15d   : > { %9850 = vst [vmem:[#allocation22_spill] sm:$0xff] %v8008_v4  ;;  %3836 = vmatprep.mubr.bf16.mxu0 %v7086_v53  ;;  %4253 = vmatprep.mubr.bf16.mxu1 %v7089_v56  ;;  %v7099_v53 = vld [vmem:[%s7587_s27 + $0x81c] ss:$28 sps:$4 sm:$0xff]   ;;  %v7102_v56 = vld [vmem:[%s7587_s27 + $0x4a4] ss:$28 sps:$4 sm:$0xff]  }
 0x15e   : > { %v3640_v5 = vpop.f32.mrf.mxu0  ;;  %v4024_v6 = vpop.f32.mrf.mxu1  ;;  %v7124_v4 = vld [vmem:[%s7587_s27 + $0x8fc] ss:$28 sps:$4 sm:$0xff]  }
 0x160   : > { %v8010_v7 = vpop.f32.mrf.mxu0  ;;  %v8012_v8 = vpop.f32.mrf.mxu1 }
 0x161   : > { %9851 = vst [vmem:[#allocation23_spill] sm:$0xff] %v8012_v8  ;;  %v7118_v8 = vld [vmem:[%s7587_s27 + $0x8c4] ss:$28 sps:$4 sm:$0xff]  }
 0x162   : > { %v3643_v23 = vpop.f32.mrf.mxu0  ;;  %v4027_v26 = vpop.f32.mrf.mxu1 }
 0x163   : > { %v7097_v23 = vld [vmem:[%s7587_s27 + $0x818] ss:$28 sps:$4 sm:$0xff]   ;;  %v7100_v26 = vld [vmem:[%s7587_s27 + $0x4a0] ss:$28 sps:$4 sm:$0xff]  }
 0x164   : > { %v8018_v27 = vpop.f32.mrf.mxu0  ;;  %3837 = vmatmul.mubr.bf16.gmra.mxu0 %v7084_v11  ;;  %v8020_v32 = vpop.f32.mrf.mxu1  ;;  %4254 = vmatmul.mubr.bf16.gmra.mxu1 %v7087_v16 }
 0x165   : > { %9852 = vst [vmem:[#allocation24_spill] sm:$0xff] %v8020_v32  ;;  %3844 = vmatprep.mubr.bf16.mxu0 %v7092_v17  ;;  %4261 = vmatprep.mubr.bf16.mxu1 %v7095_v18  ;;  %v7112_v32 = vld [vmem:[%s7587_s27 + $0x510] ss:$28 sps:$4 sm:$0xff]  }
 0x166   : > { %v3648_v33 = vpop.f32.mrf.mxu0  ;;  %v4032_v34 = vpop.f32.mrf.mxu1 }
 0x167   : > { %v7105_v33 = vld [vmem:[%s7587_s27 + $0x854] ss:$28 sps:$4 sm:$0xff]   ;;  %v7108_v34 = vld [vmem:[%s7587_s27 + $0x4dc] ss:$28 sps:$4 sm:$0xff]  }
 0x168   : > { %v8022_v39 = vpop.f32.mrf.mxu0  ;;  %v8024_v44 = vpop.f32.mrf.mxu1 }
 0x169   : > { %9853 = vst [vmem:[#allocation25_spill] sm:$0xff] %v8024_v44 }
 0x16a   : > { %v3651_v57 = vpop.f32.mrf.mxu0  ;;  %v4035_v60 = vpop.f32.mrf.mxu1 }
 0x16c   : > { %v8030_v5 = vpop.f32.mrf.mxu0  ;;  %3845 = vmatmul.mubr.bf16.gmra.mxu0 %v7090_v51  ;;  %v8032_v6 = vpop.f32.mrf.mxu1  ;;  %4262 = vmatmul.mubr.bf16.gmra.mxu1 %v7093_v52 }
 0x16d   : > { %9854 = vst [vmem:[#allocation26_spill] sm:$0xff] %v8032_v6  ;;  %3852 = vmatprep.mubr.bf16.mxu0 %v7099_v53  ;;  %4269 = vmatprep.mubr.bf16.mxu1 %v7102_v56  ;;  %v7106_v6 = vld [vmem:[%s7587_s27 + $0x4d8] ss:$28 sps:$4 sm:$0xff]  }
 0x16e   : > { %v3656_v11 = vpop.f32.mrf.mxu0  ;;  %v4040_v16 = vpop.f32.mrf.mxu1 }
 0x170   : > { %v8034_v17 = vpop.f32.mrf.mxu0  ;;  %v8036_v18 = vpop.f32.mrf.mxu1 }
 0x171   : > { %9855 = vst [vmem:[#allocation27_spill] sm:$0xff] %v8036_v18  ;;  %v7103_v18 = vld [vmem:[%s7587_s27 + $0x850] ss:$28 sps:$4 sm:$0xff]  }
 0x172   : > { %v3659_v51 = vpop.f32.mrf.mxu0  ;;  %v4043_v57 = vpop.f32.mrf.mxu1 }
 0x173   : > { %v7111_v51 = vld [vmem:[%s7587_s27 + $0x88c] ss:$28 sps:$4 sm:$0xff]   ;;  %v7114_v57 = vld [vmem:[%s7587_s27 + $0x514] ss:$28 sps:$4 sm:$0xff]  }
 0x174   : > { %v8042_v60 = vpop.f32.mrf.mxu0  ;;  %3853 = vmatmul.mubr.bf16.gmra.mxu0 %v7097_v23  ;;  %v8044_v52 = vpop.f32.mrf.mxu1  ;;  %4270 = vmatmul.mubr.bf16.gmra.mxu1 %v7100_v26 }
 0x175   : > { %9856 = vst [vmem:[#allocation28_spill] sm:$0xff] %v8044_v52  ;;  %3860 = vmatprep.mubr.bf16.mxu0 %v7105_v33  ;;  %4277 = vmatprep.mubr.bf16.mxu1 %v7108_v34 }
 0x176   : > { %v3664_v53 = vpop.f32.mrf.mxu0  ;;  %v4048_v56 = vpop.f32.mrf.mxu1 }
 0x178   : > { %v8046_v11 = vpop.f32.mrf.mxu0  ;;  %v8048_v16 = vpop.f32.mrf.mxu1 }
 0x179   : > { %9857 = vst [vmem:[#allocation29_spill] sm:$0xff] %v8048_v16  ;;  %v7109_v16 = vld [vmem:[%s7587_s27 + $0x888] ss:$28 sps:$4 sm:$0xff]  }
 0x17a   : > { %v3667_v23 = vpop.f32.mrf.mxu0  ;;  %v4051_v44 = vpop.f32.mrf.mxu1 }
 0x17b   : > { %v7121_v44 = vld [vmem:[%s7587_s27 + $0x54c] ss:$28 sps:$4 sm:$0xff]  }
 0x17c   : > { %v8054_v52 = vpop.f32.mrf.mxu0  ;;  %3861 = vmatmul.mubr.bf16.gmra.mxu0 %v7103_v18  ;;  %v8056_v26 = vpop.f32.mrf.mxu1  ;;  %4278 = vmatmul.mubr.bf16.gmra.mxu1 %v7106_v6 }
 0x17d   : > { %9858 = vst [vmem:[#allocation30_spill] sm:$0xff] %v8056_v26  ;;  %3868 = vmatprep.mubr.bf16.mxu0 %v7111_v51  ;;  %4285 = vmatprep.mubr.bf16.mxu1 %v7114_v57 }
 0x17e   : > { %v3672_v33 = vpop.f32.mrf.mxu0  ;;  %v4056_v34 = vpop.f32.mrf.mxu1 }
 0x17f   : > { %v8073_v33 = vld [vmem:[%s9828_s2] ss:$0 sm:$0xff] }
 0x180   : > { %v8058_v53 = vpop.f32.mrf.mxu0  ;;  %v8060_v56 = vpop.f32.mrf.mxu1 }
 0x181   : > { %9859 = vst [vmem:[#allocation31_spill] sm:$0xff] %v8060_v56  ;;  %v7119_v56 = vld [vmem:[%s7587_s27 + $0x548] ss:$28 sps:$4 sm:$0xff]  }
 0x182   : > { %v3675_v23 = vpop.f32.mrf.mxu0  ;;  %v4059_v18 = vpop.f32.mrf.mxu1 }
 0x183   : > { %v7116_v18 = vld [vmem:[%s7587_s27 + $0x8c0] ss:$28 sps:$4 sm:$0xff]  }
 0x184   : > { %v8066_v26 = vpop.f32.mrf.mxu0  ;;  %3869 = vmatmul.mubr.bf16.gmra.mxu0 %v7109_v16  ;;  %v8068_v6 = vpop.f32.mrf.mxu1  ;;  %4286 = vmatmul.mubr.bf16.gmra.mxu1 %v7112_v32  ;;  %v7127_v16 = vld [vmem:[%s7587_s27 + $0x584] ss:$28 sps:$4 sm:$0xff]   ;;  %v3559_v32 = vadd.f32 %v8073_v33, %v7876_v24  ;;  %v7122_v24 = vld [vmem:[%s7587_s27 + $0x8f8] ss:$28 sps:$4 sm:$0xff]  }
 0x185   : > { %9860 = vst [vmem:[#allocation32_spill] sm:$0xff] %v8068_v6  ;;  %3876 = vmatprep.mubr.bf16.mxu0 %v7118_v8  ;;  %4293 = vmatprep.mubr.bf16.mxu1 %v7121_v44 }
 0x186   : > { %v3680_v51 = vpop.f32.mrf.mxu0  ;;  %v4064_v57 = vpop.f32.mrf.mxu1 }
 0x188   : > { %v8075_v34 = vpop.f32.mrf.mxu0  ;;  %v8077_v23 = vpop.f32.mrf.mxu1 }
 0x189   : > { %9861 = vst [vmem:[#allocation33_spill] sm:$0xff] %v8077_v23 }
 0x18a   : > { %v3683_v6 = vpop.f32.mrf.mxu0  ;;  %v4067_v8 = vpop.f32.mrf.mxu1 }
 0x18b   : > { %v3562_v6 = vadd.f32 %v8073_v33, %v7882_v30 }
 0x18c   : > { %v8085_v44 = vpop.f32.mrf.mxu0  ;;  %3877 = vmatmul.mubr.bf16.gmra.mxu0 %v7116_v18  ;;  %v4103_v51 = vpop.f32.mrf.mxu1  ;;  %4294 = vmatmul.mubr.bf16.gmra.mxu1 %v7119_v56  ;;  %v7133_v18 = vld [vmem:[%s7587_s27 + $0x5bc] ss:$28 sps:$4 sm:$0xff]  }
 0x18d   : > { %v8087_v57 = vadd.f32 %v4103_v51, %v3559_v32  ;;  %3884 = vmatprep.mubr.bf16.mxu0 %v7124_v4  ;;  %4301 = vmatprep.mubr.bf16.mxu1 %v7127_v16  ;;  %v3567_v4 = vadd.f32 %v8073_v33, %v7888_v36  ;;  %v3570_v51 = vadd.f32 %v8073_v33, %v7894_v42  ;;  %v7128_v36 = vld [vmem:[%s7587_s27 + $0x930] ss:$28 sps:$4 sm:$0xff]  }
 0x18e   : > { %v3688_v23 = vpop.f32.mrf.mxu0  ;;  %v4105_v50 = vpop.f32.mrf.mxu1 }
 0x190   : > { %v8091_v8 = vpop.f32.mrf.mxu0  ;;  %v4106_v38 = vpop.f32.mrf.mxu1 }
 0x191   : > { %v8095_v15 = vadd.f32 %v4106_v38, %v3562_v6 }
 0x192   : > { %v3691_v56 = vpop.f32.mrf.mxu0  ;;  %v4108_v32 = vpop.f32.mrf.mxu1 }
 0x193   : > { %v7131_v32 = vld [vmem:[%s7587_s27 + $0x5b8] ss:$28 sps:$4 sm:$0xff]  }
 0x194   : > { %v8101_v50 = vpop.f32.mrf.mxu0  ;;  %3885 = vmatmul.mubr.bf16.gmra.mxu0 %v7122_v24  ;;  %v4111_v30 = vpop.f32.mrf.mxu1  ;;  %4302 = vmatmul.mubr.bf16.gmra.mxu1 %v7125_v20  ;;  %v7140_v24 = vld [vmem:[%s7587_s27 + $0x5f4] ss:$28 sps:$4 sm:$0xff]  }
 0x195   : > { %v8103_v23 = vadd.f32 %v4111_v30, %v3567_v4  ;;  %3892 = vmatprep.mubr.bf16.mxu0 %v7130_v3  ;;  %4309 = vmatprep.mubr.bf16.mxu1 %v7133_v18  ;;  %v3575_v3 = vadd.f32 %v8073_v33, %v7900_v48  ;;  %v7135_v48 = vld [vmem:[%s7587_s27 + $0x968] ss:$28 sps:$4 sm:$0xff]  }
 0x196   : > { %v3696_v38 = vpop.f32.mrf.mxu0  ;;  %v4113_v16 = vpop.f32.mrf.mxu1 }
 0x198   : > { %v8107_v6 = vpop.f32.mrf.mxu0  ;;  %v4114_v56 = vpop.f32.mrf.mxu1 }
 0x199   : > { %v8111_v59 = vadd.f32 %v4114_v56, %v3570_v51  ;;  %v3578_v51 = vadd.f32 %v8073_v33, %v7908_v54 }
 0x19a   : > { %v3699_v20 = vpop.f32.mrf.mxu0  ;;  %v4116_v4 = vpop.f32.mrf.mxu1 }
 0x19b   : > { %v7138_v4 = vld [vmem:[%s7587_s27 + $0x5f0] ss:$28 sps:$4 sm:$0xff]  }
 0x19c   : > { %v8117_v18 = vpop.f32.mrf.mxu0  ;;  %3893 = vmatmul.mubr.bf16.gmra.mxu0 %v7128_v36  ;;  %v4119_v42 = vpop.f32.mrf.mxu1  ;;  %4310 = vmatmul.mubr.bf16.gmra.mxu1 %v7131_v32  ;;  %v7146_v36 = vld [vmem:[%s7587_s27 + $0x62c] ss:$28 sps:$4 sm:$0xff]  }
 0x19d   : > { %v8119_v30 = vadd.f32 %v4119_v42, %v3575_v3  ;;  %3900 = vmatprep.mubr.bf16.mxu0 %v7137_v47  ;;  %4317 = vmatprep.mubr.bf16.mxu1 %v7140_v24  ;;  %v3583_v47 = vadd.f32 %v8073_v33, %v7916_v61  ;;  %v7141_v61 = vld [vmem:[%s7587_s27 + $0x9a0] ss:$28 sps:$4 sm:$0xff]  }
 0x19e   : > { %v3704_v38 = vpop.f32.mrf.mxu0  ;;  %v4121_v16 = vpop.f32.mrf.mxu1 }
 0x1a0   : > { %v8123_v56 = vpop.f32.mrf.mxu0  ;;  %v4122_v20 = vpop.f32.mrf.mxu1 }
 0x1a1   : > { %v8127_v41 = vadd.f32 %v4122_v20, %v3578_v51  ;;  %v3586_v51 = vadd.f32 %v8073_v33, %v7920_v2 }
 0x1a2   : > { %v3707_v32 = vpop.f32.mrf.mxu0  ;;  %v4124_v3 = vpop.f32.mrf.mxu1 }
 0x1a3   : > { %v7144_v3 = vld [vmem:[%s7587_s27 + $0x628] ss:$28 sps:$4 sm:$0xff]  }
 0x1a4   : > { %v8133_v24 = vpop.f32.mrf.mxu0  ;;  %3901 = vmatmul.mubr.bf16.gmra.mxu0 %v7135_v48  ;;  %v4127_v54 = vpop.f32.mrf.mxu1  ;;  %4318 = vmatmul.mubr.bf16.gmra.mxu1 %v7138_v4  ;;  %v7152_v48 = vld [vmem:[%s7587_s27 + $0x664] ss:$28 sps:$4 sm:$0xff]  }
 0x1a5   : > { %v8135_v42 = vadd.f32 %v4127_v54, %v3583_v47  ;;  %3908 = vmatprep.mubr.bf16.mxu0 %v7143_v29  ;;  %4325 = vmatprep.mubr.bf16.mxu1 %v7146_v36  ;;  %v3591_v29 = vadd.f32 %v8073_v33, %v7928_v9  ;;  %v7147_v9 = vld [vmem:[%s7587_s27 + $0x9d8] ss:$28 sps:$4 sm:$0xff]  }
 0x1a6   : > { %v3712_v38 = vpop.f32.mrf.mxu0  ;;  %v4129_v16 = vpop.f32.mrf.mxu1 }
 0x1a8   : > { %v8139_v20 = vpop.f32.mrf.mxu0  ;;  %v4130_v32 = vpop.f32.mrf.mxu1 }
 0x1a9   : > { %v8143_v22 = vadd.f32 %v4130_v32, %v3586_v51  ;;  %v3594_v51 = vadd.f32 %v8073_v33, %v7932_v13 }
 0x1aa   : > { %v3715_v4 = vpop.f32.mrf.mxu0  ;;  %v4132_v47 = vpop.f32.mrf.mxu1 }
 0x1ab   : > { %v7150_v47 = vld [vmem:[%s7587_s27 + $0x660] ss:$28 sps:$4 sm:$0xff]  }
 0x1ac   : > { %v8149_v36 = vpop.f32.mrf.mxu0  ;;  %3909 = vmatmul.mubr.bf16.gmra.mxu0 %v7141_v61  ;;  %v4135_v2 = vpop.f32.mrf.mxu1  ;;  %4326 = vmatmul.mubr.bf16.gmra.mxu1 %v7144_v3  ;;  %v7159_v61 = vld [vmem:[%s7587_s27 + $0x69c] ss:$28 sps:$4 sm:$0xff]  }
 0x1ad   : > { %v8151_v54 = vadd.f32 %v4135_v2, %v3591_v29  ;;  %3916 = vmatprep.mubr.bf16.mxu0 %v7149_v14  ;;  %4333 = vmatprep.mubr.bf16.mxu1 %v7152_v48  ;;  %v3599_v14 = vadd.f32 %v8073_v33, %v7940_v21  ;;  %v7154_v21 = vld [vmem:[%s7587_s27 + $0xa10] ss:$28 sps:$4 sm:$0xff]  }
 0x1ae   : > { %v3720_v38 = vpop.f32.mrf.mxu0  ;;  %v4137_v16 = vpop.f32.mrf.mxu1 }
 0x1b0   : > { %v8155_v32 = vpop.f32.mrf.mxu0  ;;  %v4138_v4 = vpop.f32.mrf.mxu1 }
 0x1b1   : > { %v8159_v10 = vadd.f32 %v4138_v4, %v3594_v51  ;;  %v3602_v51 = vadd.f32 %v8073_v33, %v7947_v28 }
 0x1b2   : > { %v3723_v3 = vpop.f32.mrf.mxu0  ;;  %v4140_v29 = vpop.f32.mrf.mxu1 }
 0x1b3   : > { %v7157_v29 = vld [vmem:[%s7587_s27 + $0x698] ss:$28 sps:$4 sm:$0xff]  }
 0x1b4   : > { %v8165_v48 = vpop.f32.mrf.mxu0  ;;  %3917 = vmatmul.mubr.bf16.gmra.mxu0 %v7147_v9  ;;  %v4143_v13 = vpop.f32.mrf.mxu1  ;;  %4334 = vmatmul.mubr.bf16.gmra.mxu1 %v7150_v47  ;;  %v7165_v9 = vld [vmem:[%s7587_s27 + $0x6d4] ss:$28 sps:$4 sm:$0xff]  }
 0x1b5   : > { %v8167_v2 = vadd.f32 %v4143_v13, %v3599_v14  ;;  %3924 = vmatprep.mubr.bf16.mxu0 %v7156_v1  ;;  %4341 = vmatprep.mubr.bf16.mxu1 %v7159_v61  ;;  %v3607_v1 = vadd.f32 %v8073_v33, %v7955_v40  ;;  %v7160_v40 = vld [vmem:[%s7587_s27 + $0xa48] ss:$28 sps:$4 sm:$0xff]  }
 0x1b6   : > { %v3728_v38 = vpop.f32.mrf.mxu0  ;;  %v4145_v16 = vpop.f32.mrf.mxu1 }
 0x1b8   : > { %v8171_v4 = vpop.f32.mrf.mxu0  ;;  %v4146_v3 = vpop.f32.mrf.mxu1 }
 0x1b9   : > { %v8175_v62 = vadd.f32 %v4146_v3, %v3602_v51  ;;  %v3610_v51 = vadd.f32 %v8073_v33, %v7959_v46 }
 0x1ba   : > { %v3731_v47 = vpop.f32.mrf.mxu0  ;;  %v4148_v14 = vpop.f32.mrf.mxu1 }
 0x1bb   : > { %v7163_v14 = vld [vmem:[%s7587_s27 + $0x6d0] ss:$28 sps:$4 sm:$0xff]  }
 0x1bc   : > { %v8181_v61 = vpop.f32.mrf.mxu0  ;;  %3925 = vmatmul.mubr.bf16.gmra.mxu0 %v7154_v21  ;;  %v4151_v28 = vpop.f32.mrf.mxu1  ;;  %4342 = vmatmul.mubr.bf16.gmra.mxu1 %v7157_v29  ;;  %v7171_v21 = vld [vmem:[%s7587_s27 + $0x14] ss:$28 sps:$4 sm:$0xff]  }
 0x1bd   : > { %v8183_v13 = vadd.f32 %v4151_v28, %v3607_v1  ;;  %3932 = vmatprep.mubr.bf16.mxu0 %v7162_v55  ;;  %4349 = vmatprep.mubr.bf16.mxu1 %v7165_v9  ;;  %v3615_v55 = vadd.f32 %v8073_v33, %v7967_v58  ;;  %v7166_v58 = vld [vmem:[%s7587_s27 + $0x708] ss:$28 sps:$4 sm:$0xff]  }
 0x1be   : > { %v3736_v38 = vpop.f32.mrf.mxu0  ;;  %v4153_v16 = vpop.f32.mrf.mxu1 }
 0x1c0   : > { %v8187_v3 = vpop.f32.mrf.mxu0  ;;  %v4154_v47 = vpop.f32.mrf.mxu1 }
 0x1c1   : > { %v8191_v49 = vadd.f32 %v4154_v47, %v3610_v51  ;;  %v3618_v51 = vadd.f32 %v8073_v33, %v7971_v0 }
 0x1c2   : > { %v3739_v29 = vpop.f32.mrf.mxu0  ;;  %v4156_v1 = vpop.f32.mrf.mxu1 }
 0x1c3   : > { %v7169_v1 = vld [vmem:[%s7587_s27 + $0x10] ss:$28 sps:$4 sm:$0xff]  }
 0x1c4   : > { %v8197_v9 = vpop.f32.mrf.mxu0  ;;  %3933 = vmatmul.mubr.bf16.gmra.mxu0 %v7160_v40  ;;  %v4159_v46 = vpop.f32.mrf.mxu1  ;;  %4350 = vmatmul.mubr.bf16.gmra.mxu1 %v7163_v14  ;;  %v7178_v40 = vld [vmem:[%s7587_s27 + $0x4c] ss:$28 sps:$4 sm:$0xff]  }
 0x1c5   : > { %v8199_v28 = vadd.f32 %v4159_v46, %v3615_v55  ;;  %4357 = vmatprep.mubr.bf16.mxu1 %v7168_v43  ;;  %4646 = vmatprep.mubr.bf16.mxu0 %v7171_v21  ;;  %v3623_v43 = vadd.f32 %v8073_v33, %v7979_v12  ;;  %v7173_v12 = vld [vmem:[%s7587_s27 + $0x740] ss:$28 sps:$4 sm:$0xff]  }
 0x1c6   : > { %v3744_v38 = vpop.f32.mrf.mxu0  ;;  %v4161_v16 = vpop.f32.mrf.mxu1 }
 0x1c7   : > { %9862 = vst [vmem:[#allocation34_spill] sm:$0xff] %v8199_v28  ;;  %v7184_v28 = vld [vmem:[%s7587_s27 + $0x84] ss:$28 sps:$4 sm:$0xff]  }
 0x1c8   : > { %v8203_v47 = vpop.f32.mrf.mxu0  ;;  %v4162_v29 = vpop.f32.mrf.mxu1 }
 0x1c9   : > { %v8207_v37 = vadd.f32 %v4162_v29, %v3618_v51  ;;  %v3626_v51 = vadd.f32 %v8073_v33, %v7986_v19 }
 0x1ca   : > { %v3747_v14 = vpop.f32.mrf.mxu0  ;;  %v4164_v55 = vpop.f32.mrf.mxu1 }
 0x1cb   : > { %9863 = vst [vmem:[#allocation35_spill] sm:$0xff] %v8207_v37  ;;  %v7176_v55 = vld [vmem:[%s7587_s27 + $0x48] ss:$28 sps:$4 sm:$0xff]   ;;  %v7181_v37 = vld [vmem:[%s7587_s27 + $0x77c] ss:$28 sps:$4 sm:$0xff]  }
 0x1cc   : > { %v8213_v21 = vpop.f32.mrf.mxu0  ;;  %v4167_v0 = vpop.f32.mrf.mxu1  ;;  %4358 = vmatmul.mubr.bf16.gmra.mxu1 %v7166_v58  ;;  %4647 = vmatmul.mubr.bf16.vlgmr.msra.gmra.mxu0 %v7169_v1 }
 0x1cd   : > { %v8215_v46 = vadd.f32 %v4167_v0, %v3623_v43  ;;  %4365 = vmatprep.mubr.bf16.mxu1 %v7175_v31  ;;  %4654 = vmatprep.mubr.bf16.mxu0 %v7178_v40  ;;  %v3631_v31 = vadd.f32 %v8073_v33, %v7994_v35  ;;  %v7179_v35 = vld [vmem:[%s7587_s27 + $0x778] ss:$28 sps:$4 sm:$0xff]  }
 0x1ce   : > { %v3752_v38 = vpop.f32.mrf.mxu0  ;;  %v4169_v16 = vpop.f32.mrf.mxu1 }
 0x1cf   : > { %9864 = vst [vmem:[#allocation36_spill] sm:$0xff] %v8215_v46  ;;  %v3634_v16 = vadd.f32 %v8073_v33, %v7998_v45  ;;  %v7190_v46 = vld [vmem:[%s7587_s27 + $0xbc] ss:$28 sps:$4 sm:$0xff]  }
 0x1d0   : > { %v8219_v29 = vpop.f32.mrf.mxu0  ;;  %v4170_v14 = vpop.f32.mrf.mxu1 }
 0x1d1   : > { %v8223_v25 = vadd.f32 %v4170_v14, %v3626_v51 }
 0x1d2   : > { %v3755_v58 = vpop.f32.mrf.mxu0  ;;  %v4172_v1 = vpop.f32.mrf.mxu1 }
 0x1d3   : > { %9865 = vst [vmem:[#allocation37_spill] sm:$0xff] %v8223_v25  ;;  %v7182_v58 = vld [vmem:[%s7587_s27 + $0x80] ss:$28 sps:$4 sm:$0xff]   ;;  %v7187_v25 = vld [vmem:[%s7587_s27 + $0x7b4] ss:$28 sps:$4 sm:$0xff]  }
 0x1d4   : > { %v8229_v40 = vpop.f32.mrf.mxu0  ;;  %v4175_v19 = vpop.f32.mrf.mxu1  ;;  %4366 = vmatmul.mubr.bf16.gmra.mxu1 %v7173_v12  ;;  %4655 = vmatmul.mubr.bf16.gmra.mxu0 %v7176_v55 }
 0x1d5   : > { %v8231_v43 = vadd.f32 %v4175_v19, %v3631_v31  ;;  %4373 = vmatprep.mubr.bf16.mxu1 %v7181_v37  ;;  %4662 = vmatprep.mubr.bf16.mxu0 %v7184_v28  ;;  %v3639_v37 = vadd.f32 %v8073_v33, %v8006_v63  ;;  %v7185_v63 = vld [vmem:[%s7587_s27 + $0x7b0] ss:$28 sps:$4 sm:$0xff]  }
 0x1d6   : > { %v3760_v0 = vpop.f32.mrf.mxu0  ;;  %v4177_v38 = vpop.f32.mrf.mxu1 }
 0x1d7   : > { %9866 = vst [vmem:[#allocation38_spill] sm:$0xff] %v8231_v43  ;;  %v3642_v38 = vadd.f32 %v8073_v33, %v8010_v7  ;;  %v7196_v43 = vld [vmem:[%s7587_s27 + $0xf4] ss:$28 sps:$4 sm:$0xff]  }
 0x1d8   : > { %v8235_v51 = vpop.f32.mrf.mxu0  ;;  %v4178_v14 = vpop.f32.mrf.mxu1 }
 0x1d9   : > { %v8239_v1 = vadd.f32 %v4178_v14, %v3634_v16 }
 0x1da   : > { %v3763_v12 = vpop.f32.mrf.mxu0  ;;  %v4180_v55 = vpop.f32.mrf.mxu1 }
 0x1db   : > { %9867 = vst [vmem:[#allocation39_spill] sm:$0xff] %v8239_v1  ;;  %v7188_v12 = vld [vmem:[%s7587_s27 + $0xb8] ss:$28 sps:$4 sm:$0xff]   ;;  %v7193_v1 = vld [vmem:[%s7587_s27 + $0x7ec] ss:$28 sps:$4 sm:$0xff]  }
 0x1dc   : > { %v8245_v28 = vpop.f32.mrf.mxu0  ;;  %v4183_v45 = vpop.f32.mrf.mxu1  ;;  %4374 = vmatmul.mubr.bf16.gmra.mxu1 %v7179_v35  ;;  %4663 = vmatmul.mubr.bf16.gmra.mxu0 %v7182_v58 }
 0x1dd   : > { %v8247_v31 = vadd.f32 %v4183_v45, %v3639_v37  ;;  %4381 = vmatprep.mubr.bf16.mxu1 %v7187_v25  ;;  %4670 = vmatprep.mubr.bf16.mxu0 %v7190_v46  ;;  %v3647_v25 = vadd.f32 %v8073_v33, %v8018_v27  ;;  %v7191_v27 = vld [vmem:[%s7587_s27 + $0x7e8] ss:$28 sps:$4 sm:$0xff]  }
 0x1de   : > { %v3768_v19 = vpop.f32.mrf.mxu0  ;;  %v4185_v0 = vpop.f32.mrf.mxu1 }
 0x1df   : > { %9868 = vst [vmem:[#allocation40_spill] sm:$0xff] %v8247_v31  ;;  %v3650_v0 = vadd.f32 %v8073_v33, %v8022_v39  ;;  %v7202_v31 = vld [vmem:[%s7587_s27 + $0x12c] ss:$28 sps:$4 sm:$0xff]  }
 0x1e0   : > { %v8251_v16 = vpop.f32.mrf.mxu0  ;;  %v4186_v14 = vpop.f32.mrf.mxu1 }
 0x1e1   : > { %v8255_v55 = vadd.f32 %v4186_v14, %v3642_v38 }
 0x1e2   : > { %v3771_v35 = vpop.f32.mrf.mxu0  ;;  %v4188_v58 = vpop.f32.mrf.mxu1 }
 0x1e3   : > { %9869 = vst [vmem:[#allocation41_spill] sm:$0xff] %v8255_v55  ;;  %v7194_v35 = vld [vmem:[%s7587_s27 + $0xf0] ss:$28 sps:$4 sm:$0xff]   ;;  %v7199_v55 = vld [vmem:[%s7587_s27 + $0x824] ss:$28 sps:$4 sm:$0xff]  }
 0x1e4   : > { %v8261_v46 = vpop.f32.mrf.mxu0  ;;  %v4191_v7 = vpop.f32.mrf.mxu1  ;;  %4382 = vmatmul.mubr.bf16.gmra.mxu1 %v7185_v63  ;;  %4671 = vmatmul.mubr.bf16.gmra.mxu0 %v7188_v12 }
 0x1e5   : > { %v8263_v37 = vadd.f32 %v4191_v7, %v3647_v25  ;;  %4389 = vmatprep.mubr.bf16.mxu1 %v7193_v1  ;;  %4678 = vmatprep.mubr.bf16.mxu0 %v7196_v43  ;;  %v3655_v43 = vadd.f32 %v8073_v33, %v8030_v5  ;;  %v7197_v5 = vld [vmem:[%s7587_s27 + $0x820] ss:$28 sps:$4 sm:$0xff]  }
 0x1e6   : > { %v3776_v45 = vpop.f32.mrf.mxu0  ;;  %v4193_v19 = vpop.f32.mrf.mxu1 }
 0x1e7   : > { %9870 = vst [vmem:[#allocation42_spill] sm:$0xff] %v8263_v37  ;;  %v3658_v19 = vadd.f32 %v8073_v33, %v8034_v17  ;;  %v7208_v37 = vld [vmem:[%s7587_s27 + $0x164] ss:$28 sps:$4 sm:$0xff]  }
 0x1e8   : > { %v8267_v38 = vpop.f32.mrf.mxu0  ;;  %v4194_v14 = vpop.f32.mrf.mxu1 }
 0x1e9   : > { %v8271_v58 = vadd.f32 %v4194_v14, %v3650_v0 }
 0x1ea   : > { %v3779_v63 = vpop.f32.mrf.mxu0  ;;  %v4196_v12 = vpop.f32.mrf.mxu1 }
 0x1eb   : > { %9871 = vst [vmem:[#allocation43_spill] sm:$0xff] %v8271_v58  ;;  %v7200_v63 = vld [vmem:[%s7587_s27 + $0x128] ss:$28 sps:$4 sm:$0xff]   ;;  %v7205_v58 = vld [vmem:[%s7587_s27 + $0x85c] ss:$28 sps:$4 sm:$0xff]  }
 0x1ec   : > { %v8277_v1 = vpop.f32.mrf.mxu0  ;;  %v4199_v39 = vpop.f32.mrf.mxu1  ;;  %4390 = vmatmul.mubr.bf16.gmra.mxu1 %v7191_v27  ;;  %4679 = vmatmul.mubr.bf16.gmra.mxu0 %v7194_v35 }
 0x1ed   : > { %v8279_v25 = vadd.f32 %v4199_v39, %v3655_v43  ;;  %4397 = vmatprep.mubr.bf16.mxu1 %v7199_v55  ;;  %4686 = vmatprep.mubr.bf16.mxu0 %v7202_v31  ;;  %v3663_v31 = vadd.f32 %v8073_v33, %v8042_v60  ;;  %v7203_v60 = vld [vmem:[%s7587_s27 + $0x858] ss:$28 sps:$4 sm:$0xff]  }
 0x1ee   : > { %v3784_v7 = vpop.f32.mrf.mxu0  ;;  %v4201_v45 = vpop.f32.mrf.mxu1 }
 0x1ef   : > { %9872 = vst [vmem:[#allocation44_spill] sm:$0xff] %v8279_v25  ;;  %v3666_v45 = vadd.f32 %v8073_v33, %v8046_v11  ;;  %v7214_v25 = vld [vmem:[%s7587_s27 + $0x19c] ss:$28 sps:$4 sm:$0xff]  }
 0x1f0   : > { %v8283_v0 = vpop.f32.mrf.mxu0  ;;  %v4202_v14 = vpop.f32.mrf.mxu1 }
 0x1f1   : > { %v8287_v12 = vadd.f32 %v4202_v14, %v3658_v19 }
 0x1f2   : > { %v3787_v27 = vpop.f32.mrf.mxu0  ;;  %v4204_v35 = vpop.f32.mrf.mxu1 }
 0x1f3   : > { %9873 = vst [vmem:[#allocation45_spill] sm:$0xff] %v8287_v12  ;;  %v7206_v27 = vld [vmem:[%s7587_s27 + $0x160] ss:$28 sps:$4 sm:$0xff]   ;;  %v7211_v12 = vld [vmem:[%s7587_s27 + $0x894] ss:$28 sps:$4 sm:$0xff]  }
 0x1f4   : > { %v8293_v55 = vpop.f32.mrf.mxu0  ;;  %v4207_v17 = vpop.f32.mrf.mxu1  ;;  %4398 = vmatmul.mubr.bf16.gmra.mxu1 %v7197_v5  ;;  %4687 = vmatmul.mubr.bf16.gmra.mxu0 %v7200_v63 }
 0x1f5   : > { %v8295_v43 = vadd.f32 %v4207_v17, %v3663_v31  ;;  %4405 = vmatprep.mubr.bf16.mxu1 %v7205_v58  ;;  %4694 = vmatprep.mubr.bf16.mxu0 %v7208_v37  ;;  %v3671_v37 = vadd.f32 %v8073_v33, %v8054_v52  ;;  %v7209_v52 = vld [vmem:[%s7587_s27 + $0x890] ss:$28 sps:$4 sm:$0xff]  }
 0x1f6   : > { %v3792_v39 = vpop.f32.mrf.mxu0  ;;  %v4209_v7 = vpop.f32.mrf.mxu1 }
 0x1f7   : > { %9874 = vst [vmem:[#allocation46_spill] sm:$0xff] %v8295_v43  ;;  %v3674_v7 = vadd.f32 %v8073_v33, %v8058_v53  ;;  %v7220_v43 = vld [vmem:[%s7587_s27 + $0x1d4] ss:$28 sps:$4 sm:$0xff]  }
 0x1f8   : > { %v8299_v19 = vpop.f32.mrf.mxu0  ;;  %v4210_v14 = vpop.f32.mrf.mxu1 }
 0x1f9   : > { %v8303_v35 = vadd.f32 %v4210_v14, %v3666_v45 }
 0x1fa   : > { %v3795_v5 = vpop.f32.mrf.mxu0  ;;  %v4212_v63 = vpop.f32.mrf.mxu1 }
 0x1fb   : > { %9875 = vst [vmem:[#allocation47_spill] sm:$0xff] %v8303_v35  ;;  %v7212_v5 = vld [vmem:[%s7587_s27 + $0x198] ss:$28 sps:$4 sm:$0xff]   ;;  %v7217_v35 = vld [vmem:[%s7587_s27 + $0x8cc] ss:$28 sps:$4 sm:$0xff]  }
 0x1fc   : > { %v8309_v58 = vpop.f32.mrf.mxu0  ;;  %v4215_v11 = vpop.f32.mrf.mxu1  ;;  %4406 = vmatmul.mubr.bf16.gmra.mxu1 %v7203_v60  ;;  %4695 = vmatmul.mubr.bf16.gmra.mxu0 %v7206_v27 }
 0x1fd   : > { %v8311_v31 = vadd.f32 %v4215_v11, %v3671_v37  ;;  %4413 = vmatprep.mubr.bf16.mxu1 %v7211_v12  ;;  %4702 = vmatprep.mubr.bf16.mxu0 %v7214_v25  ;;  %v3679_v25 = vadd.f32 %v8073_v33, %v8066_v26  ;;  %v7215_v26 = vld [vmem:[%s7587_s27 + $0x8c8] ss:$28 sps:$4 sm:$0xff]  }
 0x1fe   : > { %v3800_v17 = vpop.f32.mrf.mxu0  ;;  %v4217_v39 = vpop.f32.mrf.mxu1 }
 0x1ff   : > { %9876 = vst [vmem:[#allocation48_spill] sm:$0xff] %v8311_v31  ;;  %v3682_v39 = vadd.f32 %v8073_v33, %v8075_v34  ;;  %v7226_v31 = vld [vmem:[%s7587_s27 + $0x20c] ss:$28 sps:$4 sm:$0xff]  }
 0x200   : > { %v8315_v45 = vpop.f32.mrf.mxu0  ;;  %v4218_v14 = vpop.f32.mrf.mxu1 }
 0x201   : > { %v8319_v63 = vadd.f32 %v4218_v14, %v3674_v7 }
 0x202   : > { %v3803_v60 = vpop.f32.mrf.mxu0  ;;  %v4220_v27 = vpop.f32.mrf.mxu1 }
 0x203   : > { %9877 = vst [vmem:[#allocation49_spill] sm:$0xff] %v8319_v63  ;;  %v7218_v60 = vld [vmem:[%s7587_s27 + $0x1d0] ss:$28 sps:$4 sm:$0xff]   ;;  %v7223_v63 = vld [vmem:[%s7587_s27 + $0x904] ss:$28 sps:$4 sm:$0xff]  }
 0x204   : > { %v8325_v12 = vpop.f32.mrf.mxu0  ;;  %v4223_v53 = vpop.f32.mrf.mxu1  ;;  %4414 = vmatmul.mubr.bf16.gmra.mxu1 %v7209_v52  ;;  %4703 = vmatmul.mubr.bf16.gmra.mxu0 %v7212_v5 }
 0x205   : > { %v8327_v37 = vadd.f32 %v4223_v53, %v3679_v25  ;;  %4421 = vmatprep.mubr.bf16.mxu1 %v7217_v35  ;;  %4710 = vmatprep.mubr.bf16.mxu0 %v7220_v43  ;;  %v3687_v43 = vadd.f32 %v8073_v33, %v8085_v44  ;;  %v7221_v44 = vld [vmem:[%s7587_s27 + $0x900] ss:$28 sps:$4 sm:$0xff]  }
 0x206   : > { %v3808_v11 = vpop.f32.mrf.mxu0  ;;  %v4225_v17 = vpop.f32.mrf.mxu1 }
 0x207   : > { %9878 = vst [vmem:[#allocation50_spill] sm:$0xff] %v8327_v37  ;;  %v3690_v17 = vadd.f32 %v8073_v33, %v8091_v8  ;;  %v7232_v37 = vld [vmem:[%s7587_s27 + $0x244] ss:$28 sps:$4 sm:$0xff]  }
 0x208   : > { %v8331_v7 = vpop.f32.mrf.mxu0  ;;  %v4226_v14 = vpop.f32.mrf.mxu1 }
 0x209   : > { %v8335_v27 = vadd.f32 %v4226_v14, %v3682_v39 }
 0x20a   : > { %v3811_v52 = vpop.f32.mrf.mxu0  ;;  %v4228_v5 = vpop.f32.mrf.mxu1 }
 0x20b   : > { %9879 = vst [vmem:[#allocation51_spill] sm:$0xff] %v8335_v27  ;;  %v7224_v52 = vld [vmem:[%s7587_s27 + $0x208] ss:$28 sps:$4 sm:$0xff]   ;;  %v7229_v27 = vld [vmem:[%s7587_s27 + $0x93c] ss:$28 sps:$4 sm:$0xff]  }
 0x20c   : > { %v8341_v35 = vpop.f32.mrf.mxu0  ;;  %v4231_v34 = vpop.f32.mrf.mxu1  ;;  %4422 = vmatmul.mubr.bf16.gmra.mxu1 %v7215_v26  ;;  %4711 = vmatmul.mubr.bf16.gmra.mxu0 %v7218_v60 }
 0x20d   : > { %v8343_v25 = vadd.f32 %v4231_v34, %v3687_v43  ;;  %4429 = vmatprep.mubr.bf16.mxu1 %v7223_v63  ;;  %4718 = vmatprep.mubr.bf16.mxu0 %v7226_v31  ;;  %v3695_v31 = vadd.f32 %v8073_v33, %v8101_v50  ;;  %v7227_v50 = vld [vmem:[%s7587_s27 + $0x938] ss:$28 sps:$4 sm:$0xff]  }
 0x20e   : > { %v3816_v53 = vpop.f32.mrf.mxu0  ;;  %v4233_v11 = vpop.f32.mrf.mxu1 }
 0x20f   : > { %9880 = vst [vmem:[#allocation52_spill] sm:$0xff] %v8343_v25  ;;  %v3698_v11 = vadd.f32 %v8073_v33, %v8107_v6  ;;  %v7238_v25 = vld [vmem:[%s7587_s27 + $0x27c] ss:$28 sps:$4 sm:$0xff]  }
 0x210   : > { %v8347_v39 = vpop.f32.mrf.mxu0  ;;  %v4234_v14 = vpop.f32.mrf.mxu1 }
 0x211   : > { %v8351_v5 = vadd.f32 %v4234_v14, %v3690_v17 }
 0x212   : > { %v3819_v26 = vpop.f32.mrf.mxu0  ;;  %v4236_v60 = vpop.f32.mrf.mxu1 }
 0x213   : > { %9881 = vst [vmem:[#allocation53_spill] sm:$0xff] %v8351_v5  ;;  %v7230_v26 = vld [vmem:[%s7587_s27 + $0x240] ss:$28 sps:$4 sm:$0xff]   ;;  %v7235_v5 = vld [vmem:[%s7587_s27 + $0x974] ss:$28 sps:$4 sm:$0xff]  }
 0x214   : > { %v8357_v63 = vpop.f32.mrf.mxu0  ;;  %v4239_v8 = vpop.f32.mrf.mxu1  ;;  %4430 = vmatmul.mubr.bf16.gmra.mxu1 %v7221_v44  ;;  %4719 = vmatmul.mubr.bf16.gmra.mxu0 %v7224_v52 }
 0x215   : > { %v8359_v43 = vadd.f32 %v4239_v8, %v3695_v31  ;;  %4437 = vmatprep.mubr.bf16.mxu1 %v7229_v27  ;;  %4726 = vmatprep.mubr.bf16.mxu0 %v7232_v37  ;;  %v3703_v37 = vadd.f32 %v8073_v33, %v8117_v18  ;;  %v7233_v18 = vld [vmem:[%s7587_s27 + $0x970] ss:$28 sps:$4 sm:$0xff]  }
 0x216   : > { %v3824_v34 = vpop.f32.mrf.mxu0  ;;  %v4241_v53 = vpop.f32.mrf.mxu1 }
 0x217   : > { %9882 = vst [vmem:[#allocation54_spill] sm:$0xff] %v8359_v43  ;;  %v3706_v53 = vadd.f32 %v8073_v33, %v8123_v56  ;;  %v7244_v43 = vld [vmem:[%s7587_s27 + $0x2b4] ss:$28 sps:$4 sm:$0xff]  }
 0x218   : > { %v8363_v17 = vpop.f32.mrf.mxu0  ;;  %v4242_v14 = vpop.f32.mrf.mxu1 }
 0x219   : > { %v8367_v60 = vadd.f32 %v4242_v14, %v3698_v11 }
 0x21a   : > { %v3827_v44 = vpop.f32.mrf.mxu0  ;;  %v4244_v52 = vpop.f32.mrf.mxu1 }
 0x21b   : > { %9883 = vst [vmem:[#allocation55_spill] sm:$0xff] %v8367_v60  ;;  %v7236_v44 = vld [vmem:[%s7587_s27 + $0x278] ss:$28 sps:$4 sm:$0xff]   ;;  %v7241_v60 = vld [vmem:[%s7587_s27 + $0x9ac] ss:$28 sps:$4 sm:$0xff]  }
 0x21c   : > { %v8373_v27 = vpop.f32.mrf.mxu0  ;;  %v4247_v6 = vpop.f32.mrf.mxu1  ;;  %4438 = vmatmul.mubr.bf16.gmra.mxu1 %v7227_v50  ;;  %4727 = vmatmul.mubr.bf16.gmra.mxu0 %v7230_v26 }
 0x21d   : > { %v8375_v31 = vadd.f32 %v4247_v6, %v3703_v37  ;;  %4445 = vmatprep.mubr.bf16.mxu1 %v7235_v5  ;;  %4734 = vmatprep.mubr.bf16.mxu0 %v7238_v25  ;;  %v3711_v25 = vadd.f32 %v8073_v33, %v8133_v24  ;;  %v7239_v24 = vld [vmem:[%s7587_s27 + $0x9a8] ss:$28 sps:$4 sm:$0xff]  }
 0x21e   : > { %v3832_v8 = vpop.f32.mrf.mxu0  ;;  %v4249_v34 = vpop.f32.mrf.mxu1 }
 0x21f   : > { %9884 = vst [vmem:[#allocation56_spill] sm:$0xff] %v8375_v31  ;;  %v3714_v34 = vadd.f32 %v8073_v33, %v8139_v20  ;;  %v7250_v31 = vld [vmem:[%s7587_s27 + $0x2ec] ss:$28 sps:$4 sm:$0xff]  }
 0x220   : > { %v8379_v11 = vpop.f32.mrf.mxu0  ;;  %v4250_v14 = vpop.f32.mrf.mxu1 }
 0x221   : > { %v8383_v52 = vadd.f32 %v4250_v14, %v3706_v53 }
 0x222   : > { %v3835_v50 = vpop.f32.mrf.mxu0  ;;  %v4252_v26 = vpop.f32.mrf.mxu1 }
 0x223   : > { %9885 = vst [vmem:[#allocation57_spill] sm:$0xff] %v8383_v52  ;;  %v7242_v50 = vld [vmem:[%s7587_s27 + $0x2b0] ss:$28 sps:$4 sm:$0xff]   ;;  %v7247_v52 = vld [vmem:[%s7587_s27 + $0x9e4] ss:$28 sps:$4 sm:$0xff]  }
 0x224   : > { %v8389_v5 = vpop.f32.mrf.mxu0  ;;  %v4255_v56 = vpop.f32.mrf.mxu1  ;;  %4446 = vmatmul.mubr.bf16.gmra.mxu1 %v7233_v18  ;;  %4735 = vmatmul.mubr.bf16.gmra.mxu0 %v7236_v44 }
 0x225   : > { %v8391_v37 = vadd.f32 %v4255_v56, %v3711_v25  ;;  %4453 = vmatprep.mubr.bf16.mxu1 %v7241_v60  ;;  %4742 = vmatprep.mubr.bf16.mxu0 %v7244_v43  ;;  %v3719_v43 = vadd.f32 %v8073_v33, %v8149_v36  ;;  %v7245_v36 = vld [vmem:[%s7587_s27 + $0x9e0] ss:$28 sps:$4 sm:$0xff]  }
 0x226   : > { %v3840_v6 = vpop.f32.mrf.mxu0  ;;  %v4257_v8 = vpop.f32.mrf.mxu1 }
 0x227   : > { %9886 = vst [vmem:[#allocation58_spill] sm:$0xff] %v8391_v37  ;;  %v3722_v8 = vadd.f32 %v8073_v33, %v8155_v32  ;;  %v7256_v37 = vld [vmem:[%s7587_s27 + $0x324] ss:$28 sps:$4 sm:$0xff]  }
 0x228   : > { %v8395_v53 = vpop.f32.mrf.mxu0  ;;  %v4258_v14 = vpop.f32.mrf.mxu1 }
 0x229   : > { %v8399_v26 = vadd.f32 %v4258_v14, %v3714_v34 }
 0x22a   : > { %v3843_v18 = vpop.f32.mrf.mxu0  ;;  %v4260_v44 = vpop.f32.mrf.mxu1 }
 0x22b   : > { %9887 = vst [vmem:[#allocation59_spill] sm:$0xff] %v8399_v26  ;;  %v7248_v18 = vld [vmem:[%s7587_s27 + $0x2e8] ss:$28 sps:$4 sm:$0xff]   ;;  %v7253_v26 = vld [vmem:[%s7587_s27 + $0xa1c] ss:$28 sps:$4 sm:$0xff]  }
 0x22c   : > { %v8405_v60 = vpop.f32.mrf.mxu0  ;;  %v4263_v20 = vpop.f32.mrf.mxu1  ;;  %4454 = vmatmul.mubr.bf16.gmra.mxu1 %v7239_v24  ;;  %4743 = vmatmul.mubr.bf16.gmra.mxu0 %v7242_v50 }
 0x22d   : > { %v8407_v25 = vadd.f32 %v4263_v20, %v3719_v43  ;;  %4461 = vmatprep.mubr.bf16.mxu1 %v7247_v52  ;;  %4750 = vmatprep.mubr.bf16.mxu0 %v7250_v31  ;;  %v3727_v31 = vadd.f32 %v8073_v33, %v8165_v48  ;;  %v7251_v48 = vld [vmem:[%s7587_s27 + $0xa18] ss:$28 sps:$4 sm:$0xff]  }
 0x22e   : > { %v3848_v56 = vpop.f32.mrf.mxu0  ;;  %v4265_v6 = vpop.f32.mrf.mxu1 }
 0x22f   : > { %9888 = vst [vmem:[#allocation60_spill] sm:$0xff] %v8407_v25  ;;  %v3730_v6 = vadd.f32 %v8073_v33, %v8171_v4  ;;  %v7262_v25 = vld [vmem:[%s7587_s27 + $0x35c] ss:$28 sps:$4 sm:$0xff]  }
 0x230   : > { %v8411_v34 = vpop.f32.mrf.mxu0  ;;  %v4266_v14 = vpop.f32.mrf.mxu1 }
 0x231   : > { %v8415_v44 = vadd.f32 %v4266_v14, %v3722_v8 }
 0x232   : > { %v3851_v24 = vpop.f32.mrf.mxu0  ;;  %v4268_v50 = vpop.f32.mrf.mxu1 }
 0x233   : > { %9889 = vst [vmem:[#allocation61_spill] sm:$0xff] %v8415_v44  ;;  %v7254_v24 = vld [vmem:[%s7587_s27 + $0x320] ss:$28 sps:$4 sm:$0xff]   ;;  %v7259_v44 = vld [vmem:[%s7587_s27 + $0xa54] ss:$28 sps:$4 sm:$0xff]  }
 0x234   : > { %v8421_v52 = vpop.f32.mrf.mxu0  ;;  %v4271_v32 = vpop.f32.mrf.mxu1  ;;  %4462 = vmatmul.mubr.bf16.gmra.mxu1 %v7245_v36  ;;  %4751 = vmatmul.mubr.bf16.gmra.mxu0 %v7248_v18 }
 0x235   : > { %v8423_v43 = vadd.f32 %v4271_v32, %v3727_v31  ;;  %4469 = vmatprep.mubr.bf16.mxu1 %v7253_v26  ;;  %4758 = vmatprep.mubr.bf16.mxu0 %v7256_v37  ;;  %v3735_v37 = vadd.f32 %v8073_v33, %v8181_v61  ;;  %v7257_v61 = vld [vmem:[%s7587_s27 + $0xa50] ss:$28 sps:$4 sm:$0xff]  }
 0x236   : > { %v3856_v20 = vpop.f32.mrf.mxu0  ;;  %v4273_v56 = vpop.f32.mrf.mxu1 }
 0x237   : > { %9890 = vst [vmem:[#allocation62_spill] sm:$0xff] %v8423_v43  ;;  %v3738_v56 = vadd.f32 %v8073_v33, %v8187_v3  ;;  %v7268_v43 = vld [vmem:[%s7587_s27 + $0x394] ss:$28 sps:$4 sm:$0xff]  }
 0x238   : > { %v8427_v8 = vpop.f32.mrf.mxu0  ;;  %v4274_v14 = vpop.f32.mrf.mxu1 }
 0x239   : > { %v8431_v50 = vadd.f32 %v4274_v14, %v3730_v6 }
 0x23a   : > { %v3859_v36 = vpop.f32.mrf.mxu0  ;;  %v4276_v18 = vpop.f32.mrf.mxu1 }
 0x23b   : > { %9891 = vst [vmem:[#allocation63_spill] sm:$0xff] %v8431_v50  ;;  %v7260_v36 = vld [vmem:[%s7587_s27 + $0x358] ss:$28 sps:$4 sm:$0xff]   ;;  %v7265_v50 = vld [vmem:[%s7587_s27 + $0xa8c] ss:$28 sps:$4 sm:$0xff]  }
 0x23c   : > { %v8437_v26 = vpop.f32.mrf.mxu0  ;;  %v4279_v4 = vpop.f32.mrf.mxu1  ;;  %4470 = vmatmul.mubr.bf16.gmra.mxu1 %v7251_v48  ;;  %4759 = vmatmul.mubr.bf16.gmra.mxu0 %v7254_v24 }
 0x23d   : > { %v8439_v31 = vadd.f32 %v4279_v4, %v3735_v37  ;;  %4477 = vmatprep.mubr.bf16.mxu1 %v7259_v44  ;;  %4766 = vmatprep.mubr.bf16.mxu0 %v7262_v25  ;;  %v3743_v25 = vadd.f32 %v8073_v33, %v8197_v9  ;;  %v7263_v9 = vld [vmem:[%s7587_s27 + $0xa88] ss:$28 sps:$4 sm:$0xff]  }
 0x23e   : > { %v3864_v32 = vpop.f32.mrf.mxu0  ;;  %v4281_v20 = vpop.f32.mrf.mxu1 }
 0x23f   : > { %9892 = vst [vmem:[#allocation64_spill] sm:$0xff] %v8439_v31  ;;  %v3746_v20 = vadd.f32 %v8073_v33, %v8203_v47  ;;  %v7274_v31 = vld [vmem:[%s7587_s27 + $0x3cc] ss:$28 sps:$4 sm:$0xff]  }
 0x240   : > { %v8443_v6 = vpop.f32.mrf.mxu0  ;;  %v4282_v14 = vpop.f32.mrf.mxu1 }
 0x241   : > { %v8447_v18 = vadd.f32 %v4282_v14, %v3738_v56 }
 0x242   : > { %v3867_v48 = vpop.f32.mrf.mxu0  ;;  %v4284_v24 = vpop.f32.mrf.mxu1 }
 0x243   : > { %9893 = vst [vmem:[#allocation65_spill] sm:$0xff] %v8447_v18  ;;  %v7266_v48 = vld [vmem:[%s7587_s27 + $0x390] ss:$28 sps:$4 sm:$0xff]   ;;  %v7271_v18 = vld [vmem:[%s7587_s27 + $0xac4] ss:$28 sps:$4 sm:$0xff]  }
 0x244   : > { %v8453_v44 = vpop.f32.mrf.mxu0  ;;  %v4287_v3 = vpop.f32.mrf.mxu1  ;;  %4478 = vmatmul.mubr.bf16.gmra.mxu1 %v7257_v61  ;;  %4767 = vmatmul.mubr.bf16.gmra.mxu0 %v7260_v36 }
 0x245   : > { %v8455_v37 = vadd.f32 %v4287_v3, %v3743_v25  ;;  %4485 = vmatprep.mubr.bf16.mxu1 %v7265_v50  ;;  %4774 = vmatprep.mubr.bf16.mxu0 %v7268_v43  ;;  %v3751_v43 = vadd.f32 %v8073_v33, %v8213_v21  ;;  %v7269_v21 = vld [vmem:[%s7587_s27 + $0xac0] ss:$28 sps:$4 sm:$0xff]  }
 0x246   : > { %v3872_v4 = vpop.f32.mrf.mxu0  ;;  %v4289_v32 = vpop.f32.mrf.mxu1 }
 0x247   : > { %9894 = vst [vmem:[#allocation66_spill] sm:$0xff] %v8455_v37  ;;  %v3754_v32 = vadd.f32 %v8073_v33, %v8219_v29  ;;  %v7280_v37 = vld [vmem:[%s7587_s27 + $0x404] ss:$28 sps:$4 sm:$0xff]  }
 0x248   : > { %v8459_v56 = vpop.f32.mrf.mxu0  ;;  %v4290_v14 = vpop.f32.mrf.mxu1 }
 0x249   : > { %v8463_v24 = vadd.f32 %v4290_v14, %v3746_v20 }
 0x24a   : > { %v3875_v61 = vpop.f32.mrf.mxu0  ;;  %v4292_v36 = vpop.f32.mrf.mxu1 }
 0x24b   : > { %9895 = vst [vmem:[#allocation67_spill] sm:$0xff] %v8463_v24  ;;  %v7272_v61 = vld [vmem:[%s7587_s27 + $0x3c8] ss:$28 sps:$4 sm:$0xff]   ;;  %v7277_v24 = vld [vmem:[%s7587_s27 + $0xafc] ss:$28 sps:$4 sm:$0xff]  }
 0x24c   : > { %v8469_v50 = vpop.f32.mrf.mxu0  ;;  %v4295_v47 = vpop.f32.mrf.mxu1  ;;  %4486 = vmatmul.mubr.bf16.gmra.mxu1 %v7263_v9  ;;  %4775 = vmatmul.mubr.bf16.gmra.mxu0 %v7266_v48 }
 0x24d   : > { %v8471_v25 = vadd.f32 %v4295_v47, %v3751_v43  ;;  %4493 = vmatprep.mubr.bf16.mxu1 %v7271_v18  ;;  %4782 = vmatprep.mubr.bf16.mxu0 %v7274_v31  ;;  %v3759_v31 = vadd.f32 %v8073_v33, %v8229_v40 }
 0x24e   : > { %v3880_v3 = vpop.f32.mrf.mxu0  ;;  %v4297_v4 = vpop.f32.mrf.mxu1 }
 0x24f   : > { %9896 = vst [vmem:[#allocation68_spill] sm:$0xff] %v8471_v25  ;;  %v8492_v4 = vld [vmem:[%s9828_s2] ss:$0 sm:$0xff]  ;;  %v7292_v25 = vld [vmem:[%s7587_s27 + $0x474] ss:$28 sps:$4 sm:$0xff]  }
 0x250   : > { %v8475_v20 = vpop.f32.mrf.mxu0  ;;  %v4298_v14 = vpop.f32.mrf.mxu1  ;;  %v3762_v33 = vadd.f32 %v8492_v4, %v8235_v51 }
 0x251   : > { %v8479_v36 = vadd.f32 %v4298_v14, %v3754_v32  ;;  %v7275_v14 = vld [vmem:[%s7587_s27 + $0xaf8] ss:$28 sps:$4 sm:$0xff]  }
 0x252   : > { %v3883_v9 = vpop.f32.mrf.mxu0  ;;  %v4300_v48 = vpop.f32.mrf.mxu1 }
 0x253   : > { %9897 = vst [vmem:[#allocation69_spill] sm:$0xff] %v8479_v36  ;;  %v7283_v9 = vld [vmem:[%s7587_s27 + $0xb34] ss:$28 sps:$4 sm:$0xff]   ;;  %v7289_v36 = vld [vmem:[%s7587_s27 + $0xb6c] ss:$28 sps:$4 sm:$0xff]  }
 0x254   : > { %v8485_v18 = vpop.f32.mrf.mxu0  ;;  %v4303_v29 = vpop.f32.mrf.mxu1  ;;  %4494 = vmatmul.mubr.bf16.gmra.mxu1 %v7269_v21  ;;  %4783 = vmatmul.mubr.bf16.gmra.mxu0 %v7272_v61  ;;  %v7278_v21 = vld [vmem:[%s7587_s27 + $0x400] ss:$28 sps:$4 sm:$0xff]  }
 0x255   : > { %v8487_v43 = vadd.f32 %v4303_v29, %v3759_v31  ;;  %4501 = vmatprep.mubr.bf16.mxu1 %v7277_v24  ;;  %4790 = vmatprep.mubr.bf16.mxu0 %v7280_v37  ;;  %v7286_v24 = vld [vmem:[%s7587_s27 + $0x43c] ss:$28 sps:$4 sm:$0xff]   ;;  %v3767_v31 = vadd.f32 %v8492_v4, %v8245_v28  ;;  %v7281_v28 = vld [vmem:[%s7587_s27 + $0xb30] ss:$28 sps:$4 sm:$0xff]  }
 0x256   : > { %v3888_v47 = vpop.f32.mrf.mxu0  ;;  %v4305_v3 = vpop.f32.mrf.mxu1 }
 0x257   : > { %9898 = vst [vmem:[#allocation70_spill] sm:$0xff] %v8487_v43 }
 0x258   : > { %v8496_v40 = vpop.f32.mrf.mxu0  ;;  %v4306_v32 = vpop.f32.mrf.mxu1 }
 0x259   : > { %v8500_v61 = vadd.f32 %v4306_v32, %v3762_v33  ;;  %v3770_v32 = vadd.f32 %v8492_v4, %v8251_v16 }
 0x25a   : > { %v3891_v37 = vpop.f32.mrf.mxu0  ;;  %v4308_v48 = vpop.f32.mrf.mxu1 }
 0x25b   : > { %9899 = vst [vmem:[#allocation71_spill] sm:$0xff] %v8500_v61  ;;  %v7284_v61 = vld [vmem:[%s7587_s27 + $0x438] ss:$28 sps:$4 sm:$0xff]  }
 0x25c   : > { %v8506_v29 = vpop.f32.mrf.mxu0  ;;  %v4311_v51 = vpop.f32.mrf.mxu1  ;;  %4502 = vmatmul.mubr.bf16.gmra.mxu1 %v7275_v14  ;;  %4791 = vmatmul.mubr.bf16.gmra.mxu0 %v7278_v21 }
 0x25d   : > { %v8508_v47 = vadd.f32 %v4311_v51, %v3767_v31  ;;  %4509 = vmatprep.mubr.bf16.mxu1 %v7283_v9  ;;  %4798 = vmatprep.mubr.bf16.mxu0 %v7286_v24  ;;  %v3775_v9 = vadd.f32 %v8492_v4, %v8261_v46  ;;  %v7287_v46 = vld [vmem:[%s7587_s27 + $0xb68] ss:$28 sps:$4 sm:$0xff]  }
 0x25e   : > { %v3896_v3 = vpop.f32.mrf.mxu0  ;;  %v4313_v33 = vpop.f32.mrf.mxu1 }
 0x25f   : > { %9900 = vst [vmem:[#allocation72_spill] sm:$0xff] %v8508_v47  ;;  %v3778_v33 = vadd.f32 %v8492_v4, %v8267_v38  ;;  %v7298_v47 = vld [vmem:[%s7587_s27 + $0x4ac] ss:$28 sps:$4 sm:$0xff]  }
 0x260   : > { %v8512_v37 = vpop.f32.mrf.mxu0  ;;  %v4314_v48 = vpop.f32.mrf.mxu1 }
 0x261   : > { %v8516_v43 = vadd.f32 %v4314_v48, %v3770_v32 }
 0x262   : > { %v3899_v14 = vpop.f32.mrf.mxu0  ;;  %v4316_v21 = vpop.f32.mrf.mxu1 }
 0x263   : > { %9901 = vst [vmem:[#allocation73_spill] sm:$0xff] %v8516_v43  ;;  %v7290_v14 = vld [vmem:[%s7587_s27 + $0x470] ss:$28 sps:$4 sm:$0xff]   ;;  %v7295_v43 = vld [vmem:[%s7587_s27 + $0xba4] ss:$28 sps:$4 sm:$0xff]  }
 0x264   : > { %v8522_v24 = vpop.f32.mrf.mxu0  ;;  %v4319_v16 = vpop.f32.mrf.mxu1  ;;  %4510 = vmatmul.mubr.bf16.gmra.mxu1 %v7281_v28  ;;  %4799 = vmatmul.mubr.bf16.gmra.mxu0 %v7284_v61 }
 0x265   : > { %v8524_v31 = vadd.f32 %v4319_v16, %v3775_v9  ;;  %4517 = vmatprep.mubr.bf16.mxu1 %v7289_v36  ;;  %4806 = vmatprep.mubr.bf16.mxu0 %v7292_v25  ;;  %v3783_v25 = vadd.f32 %v8492_v4, %v8277_v1  ;;  %v7293_v1 = vld [vmem:[%s7587_s27 + $0xba0] ss:$28 sps:$4 sm:$0xff]  }
 0x266   : > { %v3904_v51 = vpop.f32.mrf.mxu0  ;;  %v4321_v3 = vpop.f32.mrf.mxu1 }
 0x267   : > { %9902 = vst [vmem:[#allocation74_spill] sm:$0xff] %v8524_v31  ;;  %v3786_v3 = vadd.f32 %v8492_v4, %v8283_v0  ;;  %v7304_v31 = vld [vmem:[%s7587_s27 + $0x4e4] ss:$28 sps:$4 sm:$0xff]  }
 0x268   : > { %v8528_v32 = vpop.f32.mrf.mxu0  ;;  %v4322_v48 = vpop.f32.mrf.mxu1 }
 0x269   : > { %v8532_v21 = vadd.f32 %v4322_v48, %v3778_v33 }
 0x26a   : > { %v3907_v61 = vpop.f32.mrf.mxu0  ;;  %v4324_v28 = vpop.f32.mrf.mxu1 }
 0x26b   : > { %9903 = vst [vmem:[#allocation75_spill] sm:$0xff] %v8532_v21  ;;  %v7296_v61 = vld [vmem:[%s7587_s27 + $0x4a8] ss:$28 sps:$4 sm:$0xff]   ;;  %v7301_v21 = vld [vmem:[%s7587_s27 + $0xbdc] ss:$28 sps:$4 sm:$0xff]  }
 0x26c   : > { %v8538_v36 = vpop.f32.mrf.mxu0  ;;  %v4327_v38 = vpop.f32.mrf.mxu1  ;;  %4518 = vmatmul.mubr.bf16.gmra.mxu1 %v7287_v46  ;;  %4807 = vmatmul.mubr.bf16.gmra.mxu0 %v7290_v14 }
 0x26d   : > { %v8540_v9 = vadd.f32 %v4327_v38, %v3783_v25  ;;  %4525 = vmatprep.mubr.bf16.mxu1 %v7295_v43  ;;  %4814 = vmatprep.mubr.bf16.mxu0 %v7298_v47  ;;  %v3791_v43 = vadd.f32 %v8492_v4, %v8293_v55  ;;  %v7299_v55 = vld [vmem:[%s7587_s27 + $0xbd8] ss:$28 sps:$4 sm:$0xff]  }
 0x26e   : > { %v3912_v16 = vpop.f32.mrf.mxu0  ;;  %v4329_v51 = vpop.f32.mrf.mxu1 }
 0x26f   : > { %9904 = vst [vmem:[#allocation76_spill] sm:$0xff] %v8540_v9  ;;  %v3794_v51 = vadd.f32 %v8492_v4, %v8299_v19  ;;  %v7310_v9 = vld [vmem:[%s7587_s27 + $0x51c] ss:$28 sps:$4 sm:$0xff]  }
 0x270   : > { %v8544_v33 = vpop.f32.mrf.mxu0  ;;  %v4330_v48 = vpop.f32.mrf.mxu1 }
 0x271   : > { %v8548_v28 = vadd.f32 %v4330_v48, %v3786_v3 }
 0x272   : > { %v3915_v46 = vpop.f32.mrf.mxu0  ;;  %v4332_v14 = vpop.f32.mrf.mxu1 }
 0x273   : > { %9905 = vst [vmem:[#allocation77_spill] sm:$0xff] %v8548_v28  ;;  %v7302_v46 = vld [vmem:[%s7587_s27 + $0x4e0] ss:$28 sps:$4 sm:$0xff]   ;;  %v7307_v28 = vld [vmem:[%s7587_s27 + $0xc14] ss:$28 sps:$4 sm:$0xff]  }
 0x274   : > { %v8554_v47 = vpop.f32.mrf.mxu0  ;;  %v4335_v0 = vpop.f32.mrf.mxu1  ;;  %4526 = vmatmul.mubr.bf16.gmra.mxu1 %v7293_v1  ;;  %4815 = vmatmul.mubr.bf16.gmra.mxu0 %v7296_v61 }
 0x275   : > { %v8556_v25 = vadd.f32 %v4335_v0, %v3791_v43  ;;  %4533 = vmatprep.mubr.bf16.mxu1 %v7301_v21  ;;  %4822 = vmatprep.mubr.bf16.mxu0 %v7304_v31  ;;  %v3799_v31 = vadd.f32 %v8492_v4, %v8309_v58  ;;  %v7305_v58 = vld [vmem:[%s7587_s27 + $0xc10] ss:$28 sps:$4 sm:$0xff]  }
 0x276   : > { %v3920_v38 = vpop.f32.mrf.mxu0  ;;  %v4337_v16 = vpop.f32.mrf.mxu1 }
 0x277   : > { %9906 = vst [vmem:[#allocation78_spill] sm:$0xff] %v8556_v25  ;;  %v3802_v16 = vadd.f32 %v8492_v4, %v8315_v45  ;;  %v7316_v25 = vld [vmem:[%s7587_s27 + $0x554] ss:$28 sps:$4 sm:$0xff]  }
 0x278   : > { %v8560_v3 = vpop.f32.mrf.mxu0  ;;  %v4338_v48 = vpop.f32.mrf.mxu1 }
 0x279   : > { %v8564_v14 = vadd.f32 %v4338_v48, %v3794_v51 }
 0x27a   : > { %v3923_v1 = vpop.f32.mrf.mxu0  ;;  %v4340_v61 = vpop.f32.mrf.mxu1 }
 0x27b   : > { %9907 = vst [vmem:[#allocation79_spill] sm:$0xff] %v8564_v14  ;;  %v7308_v1 = vld [vmem:[%s7587_s27 + $0x518] ss:$28 sps:$4 sm:$0xff]   ;;  %v7313_v14 = vld [vmem:[%s7587_s27 + $0xc4c] ss:$28 sps:$4 sm:$0xff]  }
 0x27c   : > { %v8570_v21 = vpop.f32.mrf.mxu0  ;;  %v4343_v19 = vpop.f32.mrf.mxu1  ;;  %4534 = vmatmul.mubr.bf16.gmra.mxu1 %v7299_v55  ;;  %4823 = vmatmul.mubr.bf16.gmra.mxu0 %v7302_v46 }
 0x27d   : > { %v8572_v43 = vadd.f32 %v4343_v19, %v3799_v31  ;;  %4541 = vmatprep.mubr.bf16.mxu1 %v7307_v28  ;;  %4830 = vmatprep.mubr.bf16.mxu0 %v7310_v9  ;;  %v3807_v9 = vadd.f32 %v8492_v4, %v8325_v12  ;;  %v7311_v12 = vld [vmem:[%s7587_s27 + $0xc48] ss:$28 sps:$4 sm:$0xff]  }
 0x27e   : > { %v3928_v0 = vpop.f32.mrf.mxu0  ;;  %v4345_v38 = vpop.f32.mrf.mxu1 }
 0x27f   : > { %9908 = vst [vmem:[#allocation80_spill] sm:$0xff] %v8572_v43  ;;  %v3810_v38 = vadd.f32 %v8492_v4, %v8331_v7  ;;  %v7322_v43 = vld [vmem:[%s7587_s27 + $0x58c] ss:$28 sps:$4 sm:$0xff]  }
 0x280   : > { %v8576_v51 = vpop.f32.mrf.mxu0  ;;  %v4346_v48 = vpop.f32.mrf.mxu1 }
 0x281   : > { %v8580_v61 = vadd.f32 %v4346_v48, %v3802_v16 }
 0x282   : > { %v3931_v55 = vpop.f32.mrf.mxu0  ;;  %v4348_v46 = vpop.f32.mrf.mxu1 }
 0x283   : > { %9909 = vst [vmem:[#allocation81_spill] sm:$0xff] %v8580_v61  ;;  %v7314_v55 = vld [vmem:[%s7587_s27 + $0x550] ss:$28 sps:$4 sm:$0xff]   ;;  %v7319_v61 = vld [vmem:[%s7587_s27 + $0xc84] ss:$28 sps:$4 sm:$0xff]  }
 0x284   : > { %v8586_v28 = vpop.f32.mrf.mxu0  ;;  %v4351_v45 = vpop.f32.mrf.mxu1  ;;  %4542 = vmatmul.mubr.bf16.gmra.mxu1 %v7305_v58  ;;  %4831 = vmatmul.mubr.bf16.gmra.mxu0 %v7308_v1 }
 0x285   : > { %v8588_v31 = vadd.f32 %v4351_v45, %v3807_v9  ;;  %4549 = vmatprep.mubr.bf16.mxu1 %v7313_v14  ;;  %4838 = vmatprep.mubr.bf16.mxu0 %v7316_v25  ;;  %v3815_v25 = vadd.f32 %v8492_v4, %v8341_v35 }
 0x286   : > { %v3936_v19 = vpop.f32.mrf.mxu0  ;;  %v4353_v0 = vpop.f32.mrf.mxu1 }
 0x288   : > { %v8592_v16 = vpop.f32.mrf.mxu0  ;;  %v4354_v48 = vpop.f32.mrf.mxu1 }
 0x289   : > { %v8596_v46 = vadd.f32 %v4354_v48, %v3810_v38  ;;  %v3818_v38 = vadd.f32 %v8492_v4, %v8347_v39 }
 0x28a   : > { %v3939_v58 = vpop.f32.mrf.mxu0  ;;  %v4356_v1 = vpop.f32.mrf.mxu1 }
 0x28b   : > { %v7317_v58 = vld [vmem:[%s7587_s27 + $0xc80] ss:$28 sps:$4 sm:$0xff]  }
 0x28c   : > { %v4359_v14 = vpop.f32.mrf.mxu1  ;;  %4550 = vmatmul.mubr.bf16.gmra.mxu1 %v7311_v12  ;;  %v4648_v7 = vpop.f32.mrf.mxu0  ;;  %4839 = vmatmul.mubr.bf16.gmra.mxu0 %v7314_v55  ;;  %v7320_v12 = vld [vmem:[%s7587_s27 + $0x588] ss:$28 sps:$4 sm:$0xff]  }
 0x28d   : > { %v8602_v9 = vadd.f32 %v4359_v14, %v3815_v25  ;;  %v8605_v45 = vadd.f32 %v4648_v7, %v8087_v57  ;;  %4557 = vmatprep.mubr.bf16.mxu1 %v7319_v61  ;;  %4846 = vmatprep.mubr.bf16.mxu0 %v7322_v43  ;;  %v7325_v25 = vld [vmem:[%s7587_s27 + $0xcbc] ss:$28 sps:$4 sm:$0xff]   ;;  %v7328_v14 = vld [vmem:[%s7587_s27 + $0x5c4] ss:$28 sps:$4 sm:$0xff]   ;;  %v3823_v43 = vadd.f32 %v8492_v4, %v8357_v63 }
 0x28e   : > { %v4361_v19 = vpop.f32.mrf.mxu1  ;;  %v4650_v0 = vpop.f32.mrf.mxu0 }
 0x290   : > { %v4362_v48 = vpop.f32.mrf.mxu1  ;;  %v4651_v35 = vpop.f32.mrf.mxu0 }
 0x291   : > { %v8611_v1 = vadd.f32 %v4362_v48, %v3818_v38  ;;  %v8614_v55 = vadd.f32 %v4651_v35, %v8095_v15  ;;  %v3826_v48 = vadd.f32 %v8492_v4, %v8363_v17 }
 0x292   : > { %v4364_v57 = vpop.f32.mrf.mxu1  ;;  %v4653_v61 = vpop.f32.mrf.mxu0 }
 0x293   : > { %v7323_v57 = vld [vmem:[%s7587_s27 + $0xcb8] ss:$28 sps:$4 sm:$0xff]  }
 0x294   : > { %v4367_v7 = vpop.f32.mrf.mxu1  ;;  %4558 = vmatmul.mubr.bf16.gmra.mxu1 %v7317_v58  ;;  %v4656_v39 = vpop.f32.mrf.mxu0  ;;  %4847 = vmatmul.mubr.bf16.gmra.mxu0 %v7320_v12  ;;  %v7326_v58 = vld [vmem:[%s7587_s27 + $0x5c0] ss:$28 sps:$4 sm:$0xff]  }
 0x295   : > { %v8620_v19 = vadd.f32 %v4367_v7, %v3823_v43  ;;  %v8623_v15 = vadd.f32 %v4656_v39, %v8103_v23  ;;  %4565 = vmatprep.mubr.bf16.mxu1 %v7325_v25  ;;  %4854 = vmatprep.mubr.bf16.mxu0 %v7328_v14  ;;  %v7331_v43 = vld [vmem:[%s7587_s27 + $0xcf4] ss:$28 sps:$4 sm:$0xff]   ;;  %v7334_v7 = vld [vmem:[%s7587_s27 + $0x5fc] ss:$28 sps:$4 sm:$0xff]   ;;  %v3831_v14 = vadd.f32 %v8492_v4, %v8373_v27 }
 0x296   : > { %v4369_v0 = vpop.f32.mrf.mxu1  ;;  %v4658_v38 = vpop.f32.mrf.mxu0 }
 0x298   : > { %v4370_v35 = vpop.f32.mrf.mxu1  ;;  %v4659_v63 = vpop.f32.mrf.mxu0 }
 0x299   : > { %v8629_v61 = vadd.f32 %v4370_v35, %v3826_v48  ;;  %v8632_v12 = vadd.f32 %v4659_v63, %v8111_v59  ;;  %v3834_v35 = vadd.f32 %v8492_v4, %v8379_v11 }
 0x29a   : > { %v4372_v23 = vpop.f32.mrf.mxu1  ;;  %v4661_v25 = vpop.f32.mrf.mxu0 }
 0x29b   : > { %v7329_v23 = vld [vmem:[%s7587_s27 + $0xcf0] ss:$28 sps:$4 sm:$0xff]  }
 0x29c   : > { %v4375_v39 = vpop.f32.mrf.mxu1  ;;  %4566 = vmatmul.mubr.bf16.gmra.mxu1 %v7323_v57  ;;  %v4664_v17 = vpop.f32.mrf.mxu0  ;;  %4855 = vmatmul.mubr.bf16.gmra.mxu0 %v7326_v58  ;;  %v7332_v57 = vld [vmem:[%s7587_s27 + $0x5f8] ss:$28 sps:$4 sm:$0xff]  }
 0x29d   : > { %v8638_v0 = vadd.f32 %v4375_v39, %v3831_v14  ;;  %v8641_v59 = vadd.f32 %v4664_v17, %v8119_v30  ;;  %4573 = vmatprep.mubr.bf16.mxu1 %v7331_v43  ;;  %4862 = vmatprep.mubr.bf16.mxu0 %v7334_v7  ;;  %v7337_v14 = vld [vmem:[%s7587_s27 + $0xd2c] ss:$28 sps:$4 sm:$0xff]   ;;  %v7340_v39 = vld [vmem:[%s7587_s27 + $0x634] ss:$28 sps:$4 sm:$0xff]   ;;  %v3839_v7 = vadd.f32 %v8492_v4, %v8389_v5 }
 0x29e   : > { %v4377_v38 = vpop.f32.mrf.mxu1  ;;  %v4666_v48 = vpop.f32.mrf.mxu0 }
 0x2a0   : > { %v4378_v63 = vpop.f32.mrf.mxu1  ;;  %v4667_v27 = vpop.f32.mrf.mxu0 }
 0x2a1   : > { %v8647_v25 = vadd.f32 %v4378_v63, %v3834_v35  ;;  %v8650_v58 = vadd.f32 %v4667_v27, %v8127_v41  ;;  %v3842_v63 = vadd.f32 %v8492_v4, %v8395_v53 }
 0x2a2   : > { %v4380_v30 = vpop.f32.mrf.mxu1  ;;  %v4669_v43 = vpop.f32.mrf.mxu0 }
 0x2a3   : > { %v7335_v30 = vld [vmem:[%s7587_s27 + $0xd28] ss:$28 sps:$4 sm:$0xff]  }
 0x2a4   : > { %v4383_v17 = vpop.f32.mrf.mxu1  ;;  %4574 = vmatmul.mubr.bf16.gmra.mxu1 %v7329_v23  ;;  %v4672_v11 = vpop.f32.mrf.mxu0  ;;  %4863 = vmatmul.mubr.bf16.gmra.mxu0 %v7332_v57  ;;  %v7338_v23 = vld [vmem:[%s7587_s27 + $0x630] ss:$28 sps:$4 sm:$0xff]  }
 0x2a5   : > { %v8656_v38 = vadd.f32 %v4383_v17, %v3839_v7  ;;  %v8659_v41 = vadd.f32 %v4672_v11, %v8135_v42  ;;  %4581 = vmatprep.mubr.bf16.mxu1 %v7337_v14  ;;  %4870 = vmatprep.mubr.bf16.mxu0 %v7340_v39  ;;  %v7343_v7 = vld [vmem:[%s7587_s27 + $0xd64] ss:$28 sps:$4 sm:$0xff]   ;;  %v7346_v17 = vld [vmem:[%s7587_s27 + $0x66c] ss:$28 sps:$4 sm:$0xff]   ;;  %v3847_v39 = vadd.f32 %v8492_v4, %v8405_v60 }
 0x2a6   : > { %v4385_v48 = vpop.f32.mrf.mxu1  ;;  %v4674_v35 = vpop.f32.mrf.mxu0 }
 0x2a8   : > { %v4386_v27 = vpop.f32.mrf.mxu1  ;;  %v4675_v5 = vpop.f32.mrf.mxu0 }
 0x2a9   : > { %v8665_v43 = vadd.f32 %v4386_v27, %v3842_v63  ;;  %v8668_v57 = vadd.f32 %v4675_v5, %v8143_v22  ;;  %v3850_v27 = vadd.f32 %v8492_v4, %v8411_v34 }
 0x2aa   : > { %v4388_v42 = vpop.f32.mrf.mxu1  ;;  %v4677_v14 = vpop.f32.mrf.mxu0 }
 0x2ab   : > { %v7341_v42 = vld [vmem:[%s7587_s27 + $0xd60] ss:$28 sps:$4 sm:$0xff]  }
 0x2ac   : > { %v4391_v11 = vpop.f32.mrf.mxu1  ;;  %4582 = vmatmul.mubr.bf16.gmra.mxu1 %v7335_v30  ;;  %v4680_v53 = vpop.f32.mrf.mxu0  ;;  %4871 = vmatmul.mubr.bf16.gmra.mxu0 %v7338_v23  ;;  %v7344_v30 = vld [vmem:[%s7587_s27 + $0x668] ss:$28 sps:$4 sm:$0xff]  }
 0x2ad   : > { %v8674_v48 = vadd.f32 %v4391_v11, %v3847_v39  ;;  %v8677_v22 = vadd.f32 %v4680_v53, %v8151_v54  ;;  %4589 = vmatprep.mubr.bf16.mxu1 %v7343_v7  ;;  %4878 = vmatprep.mubr.bf16.mxu0 %v7346_v17  ;;  %v7349_v39 = vld [vmem:[%s7587_s27 + $0xd9c] ss:$28 sps:$4 sm:$0xff]   ;;  %v7352_v11 = vld [vmem:[%s7587_s27 + $0x6a4] ss:$28 sps:$4 sm:$0xff]   ;;  %v3855_v17 = vadd.f32 %v8492_v4, %v8421_v52 }
 0x2ae   : > { %v4393_v35 = vpop.f32.mrf.mxu1  ;;  %v4682_v63 = vpop.f32.mrf.mxu0 }
 0x2b0   : > { %v4394_v5 = vpop.f32.mrf.mxu1  ;;  %v4683_v60 = vpop.f32.mrf.mxu0 }
 0x2b1   : > { %v8683_v14 = vadd.f32 %v4394_v5, %v3850_v27  ;;  %v8686_v23 = vadd.f32 %v4683_v60, %v8159_v10  ;;  %v3858_v5 = vadd.f32 %v8492_v4, %v8427_v8 }
 0x2b2   : > { %v4396_v54 = vpop.f32.mrf.mxu1  ;;  %v4685_v7 = vpop.f32.mrf.mxu0 }
 0x2b3   : > { %v7347_v54 = vld [vmem:[%s7587_s27 + $0xd98] ss:$28 sps:$4 sm:$0xff]  }
 0x2b4   : > { %v4399_v53 = vpop.f32.mrf.mxu1  ;;  %4590 = vmatmul.mubr.bf16.gmra.mxu1 %v7341_v42  ;;  %v4688_v34 = vpop.f32.mrf.mxu0  ;;  %4879 = vmatmul.mubr.bf16.gmra.mxu0 %v7344_v30  ;;  %v7350_v42 = vld [vmem:[%s7587_s27 + $0x6a0] ss:$28 sps:$4 sm:$0xff]  }
 0x2b5   : > { %v8692_v35 = vadd.f32 %v4399_v53, %v3855_v17  ;;  %v8695_v10 = vadd.f32 %v4688_v34, %v8167_v2  ;;  %4597 = vmatprep.mubr.bf16.mxu1 %v7349_v39  ;;  %4886 = vmatprep.mubr.bf16.mxu0 %v7352_v11  ;;  %v7355_v17 = vld [vmem:[%s7587_s27 + $0xdd4] ss:$28 sps:$4 sm:$0xff]   ;;  %v7358_v53 = vld [vmem:[%s7587_s27 + $0x6dc] ss:$28 sps:$4 sm:$0xff]   ;;  %v3863_v11 = vadd.f32 %v8492_v4, %v8437_v26 }
 0x2b6   : > { %v4401_v63 = vpop.f32.mrf.mxu1  ;;  %v4690_v27 = vpop.f32.mrf.mxu0 }
 0x2b8   : > { %v4402_v60 = vpop.f32.mrf.mxu1  ;;  %v4691_v52 = vpop.f32.mrf.mxu0 }
 0x2b9   : > { %v8701_v7 = vadd.f32 %v4402_v60, %v3858_v5  ;;  %v8704_v30 = vadd.f32 %v4691_v52, %v8175_v62  ;;  %v3866_v60 = vadd.f32 %v8492_v4, %v8443_v6 }
 0x2ba   : > { %v4404_v2 = vpop.f32.mrf.mxu1  ;;  %v4693_v39 = vpop.f32.mrf.mxu0 }
 0x2bb   : > { %v7353_v2 = vld [vmem:[%s7587_s27 + $0xdd0] ss:$28 sps:$4 sm:$0xff]  }
 0x2bc   : > { %v4407_v34 = vpop.f32.mrf.mxu1  ;;  %4598 = vmatmul.mubr.bf16.gmra.mxu1 %v7347_v54  ;;  %v4696_v8 = vpop.f32.mrf.mxu0  ;;  %4887 = vmatmul.mubr.bf16.gmra.mxu0 %v7350_v42  ;;  %v7356_v54 = vld [vmem:[%s7587_s27 + $0x6d8] ss:$28 sps:$4 sm:$0xff]  }
 0x2bd   : > { %v8710_v63 = vadd.f32 %v4407_v34, %v3863_v11  ;;  %v8713_v62 = vadd.f32 %v4696_v8, %v8183_v13  ;;  %4605 = vmatprep.mubr.bf16.mxu1 %v7355_v17  ;;  %4894 = vmatprep.mubr.bf16.mxu0 %v7358_v53  ;;  %v7361_v11 = vld [vmem:[%s7587_s27 + $0x714] ss:$28 sps:$4 sm:$0xff]   ;;  %v3871_v17 = vadd.f32 %v8492_v4, %v8453_v44 }
 0x2be   : > { %v4409_v27 = vpop.f32.mrf.mxu1  ;;  %v4698_v5 = vpop.f32.mrf.mxu0  ;;  %v7362_v34 = vld [vmem:[%s7587_s27 + $0x18] ss:$28 sps:$4 sm:$0xff]  }
 0x2c0   : > { %v4410_v52 = vpop.f32.mrf.mxu1  ;;  %v4699_v26 = vpop.f32.mrf.mxu0 }
 0x2c1   : > { %v8719_v39 = vadd.f32 %v4410_v52, %v3866_v60  ;;  %v8722_v42 = vadd.f32 %v4699_v26, %v8191_v49  ;;  %v9912_v49 = vld [vmem:[#allocation34_spill] sm:$0xff]  ;;  %v3874_v26 = vadd.f32 %v8492_v4, %v8459_v56 }
 0x2c2   : > { %v4412_v13 = vpop.f32.mrf.mxu1  ;;  %v4701_v8 = vpop.f32.mrf.mxu0 }
 0x2c3   : > { %9910 = vst [vmem:[#allocation82_spill] sm:$0xff] %v8719_v39  ;;  %v7363_v8 = vld [vmem:[%s7587_s27 + $0x50] ss:$28 sps:$4 sm:$0xff]  }
 0x2c4   : > { %v4415_v6 = vpop.f32.mrf.mxu1  ;;  %4606 = vmatmul.mubr.bf16.gmra.mxu1 %v7353_v2  ;;  %v4704_v53 = vpop.f32.mrf.mxu0  ;;  %4895 = vmatmul.mubr.bf16.gmra.mxu0 %v7356_v54  ;;  %v7359_v2 = vld [vmem:[%s7587_s27 + $0x710] ss:$28 sps:$4 sm:$0xff]  }
 0x2c5   : > { %v8728_v27 = vadd.f32 %v4415_v6, %v3871_v17  ;;  %v8731_v5 = vadd.f32 %v4704_v53, %v9912_v49  ;;  %4902 = vmatprep.mubr.bf16.mxu0 %v7361_v11  ;;  %6659 = vmatprep.mubr.msk.bf16.mxu1 %vm3331_vm0, %v7362_v34  ;;  %v9914_v54 = vld [vmem:[#allocation35_spill] sm:$0xff]  ;;  %v3879_v34 = vadd.f32 %v8492_v4, %v8469_v50 }
 0x2c6   : > { %v4417_v60 = vpop.f32.mrf.mxu1  ;;  %v4706_v52 = vpop.f32.mrf.mxu0  ;;  %v7366_v6 = vld [vmem:[%s7587_s27 + $0x74c] ss:$28 sps:$4 sm:$0xff]   ;;  %v3882_v50 = vadd.f32 %v8492_v4, %v8475_v20 }
 0x2c7   : > { %9911 = vst [vmem:[#allocation83_spill] sm:$0xff] %v8728_v27  ;;  %v7367_v53 = vld [vmem:[%s7587_s27 + $0x88] ss:$28 sps:$4 sm:$0xff]  }
 0x2c8   : > { %v4418_v44 = vpop.f32.mrf.mxu1  ;;  %v4707_v13 = vpop.f32.mrf.mxu0 }
 0x2c9   : > { %v8738_v39 = vadd.f32 %v4418_v44, %v3874_v26  ;;  %v8741_v17 = vadd.f32 %v4707_v13, %v9914_v54  ;;  %v9916_v26 = vld [vmem:[#allocation36_spill] sm:$0xff] }
 0x2ca   : > { %v4420_v49 = vpop.f32.mrf.mxu1  ;;  %v4709_v11 = vpop.f32.mrf.mxu0 }
 0x2cb   : > { %9913 = vst [vmem:[#allocation34_spill] sm:$0xff] %v8738_v39  ;;  %v7364_v39 = vld [vmem:[%s7587_s27 + $0x748] ss:$28 sps:$4 sm:$0xff]  }
 0x2cc   : > { %v4423_v60 = vpop.f32.mrf.mxu1  ;;  %v4712_v56 = vpop.f32.mrf.mxu0  ;;  %4903 = vmatmul.mubr.bf16.gmra.mxu0 %v7359_v2  ;;  %6660 = vmatmul.mubr.msk.bf16.vlgmr.msra.gmra.mxu1 %vm3331_vm0, %v7363_v8  ;;  %v7368_v2 = vld [vmem:[%s7587_s27 + $0xc0] ss:$28 sps:$4 sm:$0xff]  }
 0x2cd   : > { %v8748_v52 = vadd.f32 %v4423_v60, %v3879_v34  ;;  %v8751_v44 = vadd.f32 %v4712_v56, %v9916_v26  ;;  %4910 = vmatprep.mubr.bf16.mxu0 %v7366_v6  ;;  %6663 = vmatprep.mubr.msk.bf16.mxu1 %vm3331_vm0, %v7367_v53  ;;  %v9918_v8 = vld [vmem:[#allocation37_spill] sm:$0xff]  ;;  %v7371_v60 = vld [vmem:[%s7587_s27 + $0x784] ss:$28 sps:$4 sm:$0xff]   ;;  %v3887_v53 = vadd.f32 %v8492_v4, %v8485_v18 }
 0x2ce   : > { %v4425_v13 = vpop.f32.mrf.mxu1  ;;  %v4714_v54 = vpop.f32.mrf.mxu0  ;;  %v7372_v56 = vld [vmem:[%s7587_s27 + $0xf8] ss:$28 sps:$4 sm:$0xff]   ;;  %v3890_v18 = vadd.f32 %v8492_v4, %v8496_v40 }
 0x2cf   : > { %9915 = vst [vmem:[#allocation35_spill] sm:$0xff] %v8748_v52 }
 0x2d0   : > { %v4426_v49 = vpop.f32.mrf.mxu1  ;;  %v4715_v11 = vpop.f32.mrf.mxu0 }
 0x2d1   : > { %v8758_v27 = vadd.f32 %v4426_v49, %v3882_v50  ;;  %v8761_v34 = vadd.f32 %v4715_v11, %v9918_v8  ;;  %v9920_v50 = vld [vmem:[#allocation38_spill] sm:$0xff] }
 0x2d2   : > { %v4428_v26 = vpop.f32.mrf.mxu1  ;;  %v4717_v6 = vpop.f32.mrf.mxu0 }
 0x2d3   : > { %9917 = vst [vmem:[#allocation36_spill] sm:$0xff] %v8758_v27  ;;  %v7369_v27 = vld [vmem:[%s7587_s27 + $0x780] ss:$28 sps:$4 sm:$0xff]  }
 0x2d4   : > { %v4431_v13 = vpop.f32.mrf.mxu1  ;;  %v4720_v20 = vpop.f32.mrf.mxu0  ;;  %4911 = vmatmul.mubr.bf16.gmra.mxu0 %v7364_v39  ;;  %6664 = vmatmul.mubr.msk.bf16.gmra.mxu1 %vm3331_vm0, %v7368_v2  ;;  %v7373_v39 = vld [vmem:[%s7587_s27 + $0x130] ss:$28 sps:$4 sm:$0xff]  }
 0x2d5   : > { %v8768_v54 = vadd.f32 %v4431_v13, %v3887_v53  ;;  %v8771_v49 = vadd.f32 %v4720_v20, %v9920_v50  ;;  %4918 = vmatprep.mubr.bf16.mxu0 %v7371_v60  ;;  %6667 = vmatprep.mubr.msk.bf16.mxu1 %vm3331_vm0, %v7372_v56  ;;  %v9922_v2 = vld [vmem:[#allocation39_spill] sm:$0xff]  ;;  %v7376_v13 = vld [vmem:[%s7587_s27 + $0x7bc] ss:$28 sps:$4 sm:$0xff]   ;;  %v3895_v56 = vadd.f32 %v8492_v4, %v8506_v29 }
 0x2d6   : > { %v4433_v11 = vpop.f32.mrf.mxu1  ;;  %v4722_v8 = vpop.f32.mrf.mxu0  ;;  %v7377_v20 = vld [vmem:[%s7587_s27 + $0x168] ss:$28 sps:$4 sm:$0xff]   ;;  %v3898_v29 = vadd.f32 %v8492_v4, %v8512_v37 }
 0x2d7   : > { %9919 = vst [vmem:[#allocation37_spill] sm:$0xff] %v8768_v54 }
 0x2d8   : > { %v4434_v26 = vpop.f32.mrf.mxu1  ;;  %v4723_v6 = vpop.f32.mrf.mxu0 }
 0x2d9   : > { %v8778_v52 = vadd.f32 %v4434_v26, %v3890_v18  ;;  %v8781_v53 = vadd.f32 %v4723_v6, %v9922_v2  ;;  %v9924_v18 = vld [vmem:[#allocation40_spill] sm:$0xff] }
 0x2da   : > { %v4436_v50 = vpop.f32.mrf.mxu1  ;;  %v4725_v60 = vpop.f32.mrf.mxu0 }
 0x2db   : > { %9921 = vst [vmem:[#allocation38_spill] sm:$0xff] %v8778_v52  ;;  %v7374_v52 = vld [vmem:[%s7587_s27 + $0x7b8] ss:$28 sps:$4 sm:$0xff]  }
 0x2dc   : > { %v4439_v11 = vpop.f32.mrf.mxu1  ;;  %v4728_v40 = vpop.f32.mrf.mxu0  ;;  %4919 = vmatmul.mubr.bf16.gmra.mxu0 %v7369_v27  ;;  %6668 = vmatmul.mubr.msk.bf16.gmra.mxu1 %vm3331_vm0, %v7373_v39  ;;  %v7378_v27 = vld [vmem:[%s7587_s27 + $0x1a0] ss:$28 sps:$4 sm:$0xff]  }
 0x2dd   : > { %v8788_v8 = vadd.f32 %v4439_v11, %v3895_v56  ;;  %v8791_v26 = vadd.f32 %v4728_v40, %v9924_v18  ;;  %4926 = vmatprep.mubr.bf16.mxu0 %v7376_v13  ;;  %6671 = vmatprep.mubr.msk.bf16.mxu1 %vm3331_vm0, %v7377_v20  ;;  %v9926_v39 = vld [vmem:[#allocation41_spill] sm:$0xff]  ;;  %v7381_v11 = vld [vmem:[%s7587_s27 + $0x7f4] ss:$28 sps:$4 sm:$0xff]   ;;  %v3903_v20 = vadd.f32 %v8492_v4, %v8522_v24 }
 0x2de   : > { %v4441_v6 = vpop.f32.mrf.mxu1  ;;  %v4730_v2 = vpop.f32.mrf.mxu0  ;;  %v7382_v40 = vld [vmem:[%s7587_s27 + $0x1d8] ss:$28 sps:$4 sm:$0xff]   ;;  %v3906_v24 = vadd.f32 %v8492_v4, %v8528_v32 }
 0x2df   : > { %9923 = vst [vmem:[#allocation39_spill] sm:$0xff] %v8788_v8 }
 0x2e0   : > { %v4442_v50 = vpop.f32.mrf.mxu1  ;;  %v4731_v60 = vpop.f32.mrf.mxu0 }
 0x2e1   : > { %v8798_v54 = vadd.f32 %v4442_v50, %v3898_v29  ;;  %v8801_v56 = vadd.f32 %v4731_v60, %v9926_v39  ;;  %v9928_v29 = vld [vmem:[#allocation42_spill] sm:$0xff] }
 0x2e2   : > { %v4444_v18 = vpop.f32.mrf.mxu1  ;;  %v4733_v13 = vpop.f32.mrf.mxu0 }
 0x2e3   : > { %9925 = vst [vmem:[#allocation40_spill] sm:$0xff] %v8798_v54  ;;  %v7379_v54 = vld [vmem:[%s7587_s27 + $0x7f0] ss:$28 sps:$4 sm:$0xff]  }
 0x2e4   : > { %v4447_v6 = vpop.f32.mrf.mxu1  ;;  %v4736_v37 = vpop.f32.mrf.mxu0  ;;  %4927 = vmatmul.mubr.bf16.gmra.mxu0 %v7374_v52  ;;  %6672 = vmatmul.mubr.msk.bf16.gmra.mxu1 %vm3331_vm0, %v7378_v27  ;;  %v7383_v52 = vld [vmem:[%s7587_s27 + $0x210] ss:$28 sps:$4 sm:$0xff]  }
 0x2e5   : > { %v8808_v2 = vadd.f32 %v4447_v6, %v3903_v20  ;;  %v8811_v50 = vadd.f32 %v4736_v37, %v9928_v29  ;;  %4934 = vmatprep.mubr.bf16.mxu0 %v7381_v11  ;;  %6675 = vmatprep.mubr.msk.bf16.mxu1 %vm3331_vm0, %v7382_v40  ;;  %v9930_v27 = vld [vmem:[#allocation43_spill] sm:$0xff]  ;;  %v3911_v40 = vadd.f32 %v8492_v4, %v8538_v36 }
 0x2e6   : > { %v4449_v60 = vpop.f32.mrf.mxu1  ;;  %v4738_v39 = vpop.f32.mrf.mxu0  ;;  %v7386_v6 = vld [vmem:[%s7587_s27 + $0x82c] ss:$28 sps:$4 sm:$0xff]   ;;  %v3914_v36 = vadd.f32 %v8492_v4, %v8544_v33 }
 0x2e7   : > { %9927 = vst [vmem:[#allocation41_spill] sm:$0xff] %v8808_v2  ;;  %v7387_v37 = vld [vmem:[%s7587_s27 + $0x248] ss:$28 sps:$4 sm:$0xff]  }
 0x2e8   : > { %v4450_v18 = vpop.f32.mrf.mxu1  ;;  %v4739_v13 = vpop.f32.mrf.mxu0 }
 0x2e9   : > { %v8818_v8 = vadd.f32 %v4450_v18, %v3906_v24  ;;  %v8821_v20 = vadd.f32 %v4739_v13, %v9930_v27  ;;  %v9932_v24 = vld [vmem:[#allocation44_spill] sm:$0xff] }
 0x2ea   : > { %v4452_v29 = vpop.f32.mrf.mxu1  ;;  %v4741_v11 = vpop.f32.mrf.mxu0 }
 0x2eb   : > { %9929 = vst [vmem:[#allocation42_spill] sm:$0xff] %v8818_v8  ;;  %v7384_v8 = vld [vmem:[%s7587_s27 + $0x828] ss:$28 sps:$4 sm:$0xff]  }
 0x2ec   : > { %v4455_v60 = vpop.f32.mrf.mxu1  ;;  %v4744_v32 = vpop.f32.mrf.mxu0  ;;  %4935 = vmatmul.mubr.bf16.gmra.mxu0 %v7379_v54  ;;  %6676 = vmatmul.mubr.msk.bf16.gmra.mxu1 %vm3331_vm0, %v7383_v52  ;;  %v7388_v54 = vld [vmem:[%s7587_s27 + $0x280] ss:$28 sps:$4 sm:$0xff]  }
 0x2ed   : > { %v8828_v39 = vadd.f32 %v4455_v60, %v3911_v40  ;;  %v8831_v18 = vadd.f32 %v4744_v32, %v9932_v24  ;;  %4942 = vmatprep.mubr.bf16.mxu0 %v7386_v6  ;;  %6679 = vmatprep.mubr.msk.bf16.mxu1 %vm3331_vm0, %v7387_v37  ;;  %v9934_v52 = vld [vmem:[#allocation45_spill] sm:$0xff]  ;;  %v7391_v60 = vld [vmem:[%s7587_s27 + $0x864] ss:$28 sps:$4 sm:$0xff]   ;;  %v3919_v37 = vadd.f32 %v8492_v4, %v8554_v47 }
 0x2ee   : > { %v4457_v13 = vpop.f32.mrf.mxu1  ;;  %v4746_v27 = vpop.f32.mrf.mxu0  ;;  %v7392_v32 = vld [vmem:[%s7587_s27 + $0x2b8] ss:$28 sps:$4 sm:$0xff]   ;;  %v3922_v47 = vadd.f32 %v8492_v4, %v8560_v3 }
 0x2ef   : > { %9931 = vst [vmem:[#allocation43_spill] sm:$0xff] %v8828_v39 }
 0x2f0   : > { %v4458_v29 = vpop.f32.mrf.mxu1  ;;  %v4747_v11 = vpop.f32.mrf.mxu0 }
 0x2f1   : > { %v8838_v2 = vadd.f32 %v4458_v29, %v3914_v36  ;;  %v8841_v40 = vadd.f32 %v4747_v11, %v9934_v52  ;;  %v9936_v36 = vld [vmem:[#allocation46_spill] sm:$0xff] }
 0x2f2   : > { %v4460_v24 = vpop.f32.mrf.mxu1  ;;  %v4749_v6 = vpop.f32.mrf.mxu0 }
 0x2f3   : > { %9933 = vst [vmem:[#allocation44_spill] sm:$0xff] %v8838_v2  ;;  %v7389_v2 = vld [vmem:[%s7587_s27 + $0x860] ss:$28 sps:$4 sm:$0xff]  }
 0x2f4   : > { %v4463_v13 = vpop.f32.mrf.mxu1  ;;  %v4752_v33 = vpop.f32.mrf.mxu0  ;;  %4943 = vmatmul.mubr.bf16.gmra.mxu0 %v7384_v8  ;;  %6680 = vmatmul.mubr.msk.bf16.gmra.mxu1 %vm3331_vm0, %v7388_v54  ;;  %v7393_v8 = vld [vmem:[%s7587_s27 + $0x2f0] ss:$28 sps:$4 sm:$0xff]  }
 0x2f5   : > { %v8848_v27 = vadd.f32 %v4463_v13, %v3919_v37  ;;  %v8851_v29 = vadd.f32 %v4752_v33, %v9936_v36  ;;  %4950 = vmatprep.mubr.bf16.mxu0 %v7391_v60  ;;  %6683 = vmatprep.mubr.msk.bf16.mxu1 %vm3331_vm0, %v7392_v32  ;;  %v9938_v54 = vld [vmem:[#allocation47_spill] sm:$0xff]  ;;  %v7396_v13 = vld [vmem:[%s7587_s27 + $0x89c] ss:$28 sps:$4 sm:$0xff]   ;;  %v3927_v32 = vadd.f32 %v8492_v4, %v8570_v21 }
 0x2f6   : > { %v4465_v11 = vpop.f32.mrf.mxu1  ;;  %v4754_v52 = vpop.f32.mrf.mxu0  ;;  %v7397_v33 = vld [vmem:[%s7587_s27 + $0x328] ss:$28 sps:$4 sm:$0xff]   ;;  %v3930_v21 = vadd.f32 %v8492_v4, %v8576_v51 }
 0x2f7   : > { %9935 = vst [vmem:[#allocation45_spill] sm:$0xff] %v8848_v27 }
 0x2f8   : > { %v4466_v24 = vpop.f32.mrf.mxu1  ;;  %v4755_v6 = vpop.f32.mrf.mxu0 }
 0x2f9   : > { %v8858_v39 = vadd.f32 %v4466_v24, %v3922_v47  ;;  %v8861_v37 = vadd.f32 %v4755_v6, %v9938_v54  ;;  %v9940_v47 = vld [vmem:[#allocation48_spill] sm:$0xff] }
 0x2fa   : > { %v4468_v36 = vpop.f32.mrf.mxu1  ;;  %v4757_v60 = vpop.f32.mrf.mxu0 }
 0x2fb   : > { %9937 = vst [vmem:[#allocation46_spill] sm:$0xff] %v8858_v39  ;;  %v7394_v39 = vld [vmem:[%s7587_s27 + $0x898] ss:$28 sps:$4 sm:$0xff]  }
 0x2fc   : > { %v4471_v11 = vpop.f32.mrf.mxu1  ;;  %v4760_v3 = vpop.f32.mrf.mxu0  ;;  %4951 = vmatmul.mubr.bf16.gmra.mxu0 %v7389_v2  ;;  %6684 = vmatmul.mubr.msk.bf16.gmra.mxu1 %vm3331_vm0, %v7393_v8  ;;  %v7398_v2 = vld [vmem:[%s7587_s27 + $0x360] ss:$28 sps:$4 sm:$0xff]  }
 0x2fd   : > { %v8868_v52 = vadd.f32 %v4471_v11, %v3927_v32  ;;  %v8871_v24 = vadd.f32 %v4760_v3, %v9940_v47  ;;  %4958 = vmatprep.mubr.bf16.mxu0 %v7396_v13  ;;  %6687 = vmatprep.mubr.msk.bf16.mxu1 %vm3331_vm0, %v7397_v33  ;;  %v9942_v8 = vld [vmem:[#allocation49_spill] sm:$0xff]  ;;  %v7401_v11 = vld [vmem:[%s7587_s27 + $0x8d4] ss:$28 sps:$4 sm:$0xff]   ;;  %v3935_v33 = vadd.f32 %v8492_v4, %v8586_v28 }
 0x2fe   : > { %v4473_v6 = vpop.f32.mrf.mxu1  ;;  %v4762_v54 = vpop.f32.mrf.mxu0  ;;  %v7402_v3 = vld [vmem:[%s7587_s27 + $0x398] ss:$28 sps:$4 sm:$0xff]   ;;  %v3938_v28 = vadd.f32 %v8492_v4, %v8592_v16 }
 0x2ff   : > { %9939 = vst [vmem:[#allocation47_spill] sm:$0xff] %v8868_v52 }
 0x300   : > { %v4474_v36 = vpop.f32.mrf.mxu1  ;;  %v4763_v60 = vpop.f32.mrf.mxu0 }
 0x301   : > { %v8878_v27 = vadd.f32 %v4474_v36, %v3930_v21  ;;  %v8881_v32 = vadd.f32 %v4763_v60, %v9942_v8  ;;  %v9945_v21 = vld [vmem:[#allocation50_spill] sm:$0xff] }
 0x302   : > { %v4476_v47 = vpop.f32.mrf.mxu1  ;;  %v4765_v13 = vpop.f32.mrf.mxu0 }
 0x303   : > { %9941 = vst [vmem:[#allocation48_spill] sm:$0xff] %v8878_v27  ;;  %9943 = vst [vmem:[#allocation49_spill] sm:$0xff] %v8881_v32  ;;  %v7399_v27 = vld [vmem:[%s7587_s27 + $0x8d0] ss:$28 sps:$4 sm:$0xff]   ;;  %v7404_v32 = vld [vmem:[%s7587_s27 + $0x908] ss:$28 sps:$4 sm:$0xff]  }
 0x304   : > { %v4479_v6 = vpop.f32.mrf.mxu1  ;;  %v4768_v51 = vpop.f32.mrf.mxu0  ;;  %4959 = vmatmul.mubr.bf16.gmra.mxu0 %v7394_v39  ;;  %6688 = vmatmul.mubr.msk.bf16.gmra.mxu1 %vm3331_vm0, %v7398_v2  ;;  %v7403_v39 = vld [vmem:[%s7587_s27 + $0x3d0] ss:$28 sps:$4 sm:$0xff]  }
 0x305   : > { %v8888_v54 = vadd.f32 %v4479_v6, %v3935_v33  ;;  %v8891_v36 = vadd.f32 %v4768_v51, %v9945_v21  ;;  %4966 = vmatprep.mubr.bf16.mxu0 %v7401_v11  ;;  %6691 = vmatprep.mubr.msk.bf16.mxu1 %vm3331_vm0, %v7402_v3  ;;  %v9947_v2 = vld [vmem:[#allocation51_spill] sm:$0xff]  ;;  %v9949_v3 = vld [vmem:[#allocation2_spill] sm:$0xff] }
 0x306   : > { %v4481_v60 = vpop.f32.mrf.mxu1  ;;  %v4770_v8 = vpop.f32.mrf.mxu0  ;;  %v7406_v6 = vld [vmem:[%s7587_s27 + $0x90c] ss:$28 sps:$4 sm:$0xff]  }
 0x307   : > { %9944 = vst [vmem:[#allocation84_spill] sm:$0xff] %v8888_v54  ;;  %v7407_v51 = vld [vmem:[%s7587_s27 + $0x408] ss:$28 sps:$4 sm:$0xff]   ;;  %v3943_v60 = vadd.f32 %v8492_v4, %v9949_v3 }
 0x308   : > { %v4482_v47 = vpop.f32.mrf.mxu1  ;;  %v4771_v13 = vpop.f32.mrf.mxu0 }
 0x309   : > { %v8898_v52 = vadd.f32 %v4482_v47, %v3938_v28  ;;  %v8901_v33 = vadd.f32 %v4771_v13, %v9947_v2  ;;  %v9951_v47 = vld [vmem:[#allocation52_spill] sm:$0xff] }
 0x30a   : > { %v4484_v21 = vpop.f32.mrf.mxu1  ;;  %v4773_v11 = vpop.f32.mrf.mxu0 }
 0x30b   : > { %9946 = vst [vmem:[#allocation50_spill] sm:$0xff] %v8898_v52  ;;  %9948 = vst [vmem:[#allocation51_spill] sm:$0xff] %v8901_v33  ;;  %v9953_v11 = vld [vmem:[#allocation3_spill] sm:$0xff] }
 0x30c   : > { %v4487_v8 = vpop.f32.mrf.mxu1  ;;  %v4776_v16 = vpop.f32.mrf.mxu0  ;;  %4967 = vmatmul.mubr.bf16.gmra.mxu0 %v7399_v27  ;;  %6692 = vmatmul.mubr.msk.bf16.gmra.mxu1 %vm3331_vm0, %v7403_v39  ;;  %v3946_v3 = vadd.f32 %v8492_v4, %v9953_v11  ;;  %v7408_v27 = vld [vmem:[%s7587_s27 + $0x440] ss:$28 sps:$4 sm:$0xff]  }
 0x30d   : > { %v8908_v28 = vadd.f32 %v4487_v8, %v3943_v60  ;;  %v8911_v13 = vadd.f32 %v4776_v16, %v9951_v47  ;;  %4974 = vmatprep.mubr.bf16.mxu0 %v7406_v6  ;;  %6695 = vmatprep.mubr.msk.bf16.mxu1 %vm3331_vm0, %v7407_v51  ;;  %v9955_v39 = vld [vmem:[#allocation53_spill] sm:$0xff]  ;;  %v7411_v8 = vld [vmem:[%s7587_s27 + $0x944] ss:$28 sps:$4 sm:$0xff]  }
 0x30e   : > { %v4489_v2 = vpop.f32.mrf.mxu1  ;;  %v4778_v21 = vpop.f32.mrf.mxu0  ;;  %v7412_v16 = vld [vmem:[%s7587_s27 + $0x478] ss:$28 sps:$4 sm:$0xff]  }
 0x30f   : > { %9950 = vst [vmem:[#allocation2_spill] sm:$0xff] %v8908_v28  ;;  %9952 = vst [vmem:[#allocation52_spill] sm:$0xff] %v8911_v13  ;;  %v9957_v28 = vld [vmem:[#allocation4_spill] sm:$0xff] }
 0x310   : > { %v4490_v52 = vpop.f32.mrf.mxu1  ;;  %v4779_v54 = vpop.f32.mrf.mxu0  ;;  %v3951_v51 = vadd.f32 %v8492_v4, %v9957_v28  ;;  %v8937_v4 = vld [vmem:[%s9828_s2] ss:$0 sm:$0xff]  ;;  %v7414_v13 = vld [vmem:[%s7587_s27 + $0x978] ss:$28 sps:$4 sm:$0xff]  }
 0x311   : > { %v8918_v33 = vadd.f32 %v4490_v52, %v3946_v3  ;;  %v8921_v60 = vadd.f32 %v4779_v54, %v9955_v39  ;;  %v9959_v54 = vld [vmem:[#allocation54_spill] sm:$0xff] }
 0x312   : > { %v4492_v47 = vpop.f32.mrf.mxu1  ;;  %v4781_v6 = vpop.f32.mrf.mxu0 }
 0x313   : > { %9954 = vst [vmem:[#allocation3_spill] sm:$0xff] %v8918_v33  ;;  %9956 = vst [vmem:[#allocation53_spill] sm:$0xff] %v8921_v60  ;;  %v7409_v6 = vld [vmem:[%s7587_s27 + $0x940] ss:$28 sps:$4 sm:$0xff]  }
 0x314   : > { %v4495_v2 = vpop.f32.mrf.mxu1  ;;  %v4784_v21 = vpop.f32.mrf.mxu0  ;;  %4975 = vmatmul.mubr.bf16.gmra.mxu0 %v7404_v32  ;;  %6696 = vmatmul.mubr.msk.bf16.gmra.mxu1 %vm3331_vm0, %v7408_v27  ;;  %v9961_v32 = vld [vmem:[#allocation5_spill] sm:$0xff] }
 0x315   : > { %v8928_v52 = vadd.f32 %v4495_v2, %v3951_v51  ;;  %v8931_v11 = vadd.f32 %v4784_v21, %v9959_v54  ;;  %4982 = vmatprep.mubr.bf16.mxu0 %v7411_v8  ;;  %6699 = vmatprep.mubr.msk.bf16.mxu1 %vm3331_vm0, %v7412_v16  ;;  %v3954_v28 = vadd.f32 %v8937_v4, %v9961_v32  ;;  %v7413_v51 = vld [vmem:[%s7587_s27 + $0x4b0] ss:$28 sps:$4 sm:$0xff]   ;;  %v7416_v16 = vld [vmem:[%s7587_s27 + $0x97c] ss:$28 sps:$4 sm:$0xff]   ;;  %v7417_v54 = vld [vmem:[%s7587_s27 + $0x4e8] ss:$28 sps:$4 sm:$0xff]  }
 0x316   : > { %v4497_v3 = vpop.f32.mrf.mxu1  ;;  %v4786_v39 = vpop.f32.mrf.mxu0  ;;  %v9963_v21 = vld [vmem:[#allocation55_spill] sm:$0xff] }
 0x317   : > { %9958 = vst [vmem:[#allocation4_spill] sm:$0xff] %v8928_v52  ;;  %9960 = vst [vmem:[#allocation54_spill] sm:$0xff] %v8931_v11  ;;  %v9965_v52 = vld [vmem:[#allocation6_spill] sm:$0xff] }
 0x318   : > { %v4498_v27 = vpop.f32.mrf.mxu1  ;;  %v4787_v47 = vpop.f32.mrf.mxu0  ;;  %v3959_v33 = vadd.f32 %v8937_v4, %v9965_v52 }
 0x319   : > { %v8943_v2 = vadd.f32 %v4498_v27, %v3954_v28  ;;  %v8946_v8 = vadd.f32 %v4787_v47, %v9963_v21  ;;  %v9967_v27 = vld [vmem:[#allocation56_spill] sm:$0xff] }
 0x31a   : > { %v4500_v3 = vpop.f32.mrf.mxu1  ;;  %v4789_v39 = vpop.f32.mrf.mxu0 }
 0x31b   : > { %9962 = vst [vmem:[#allocation5_spill] sm:$0xff] %v8943_v2  ;;  %9964 = vst [vmem:[#allocation55_spill] sm:$0xff] %v8946_v8  ;;  %v9969_v39 = vld [vmem:[#allocation7_spill] sm:$0xff] }
 0x31c   : > { %v4503_v60 = vpop.f32.mrf.mxu1  ;;  %v4792_v32 = vpop.f32.mrf.mxu0  ;;  %4983 = vmatmul.mubr.bf16.gmra.mxu0 %v7409_v6  ;;  %6700 = vmatmul.mubr.msk.bf16.gmra.mxu1 %vm3331_vm0, %v7413_v51  ;;  %v3962_v52 = vadd.f32 %v8937_v4, %v9969_v39  ;;  %v7418_v6 = vld [vmem:[%s7587_s27 + $0x520] ss:$28 sps:$4 sm:$0xff]  }
 0x31d   : > { %v8953_v28 = vadd.f32 %v4503_v60, %v3959_v33  ;;  %v8956_v47 = vadd.f32 %v4792_v32, %v9967_v27  ;;  %4990 = vmatprep.mubr.bf16.mxu0 %v7416_v16  ;;  %6703 = vmatprep.mubr.msk.bf16.mxu1 %vm3331_vm0, %v7417_v54  ;;  %v9971_v51 = vld [vmem:[#allocation57_spill] sm:$0xff]  ;;  %v7421_v60 = vld [vmem:[%s7587_s27 + $0x9b4] ss:$28 sps:$4 sm:$0xff]  }
 0x31e   : > { %v4505_v21 = vpop.f32.mrf.mxu1  ;;  %v4794_v3 = vpop.f32.mrf.mxu0  ;;  %v7422_v32 = vld [vmem:[%s7587_s27 + $0x558] ss:$28 sps:$4 sm:$0xff]  }
 0x31f   : > { %9966 = vst [vmem:[#allocation6_spill] sm:$0xff] %v8953_v28  ;;  %9968 = vst [vmem:[#allocation56_spill] sm:$0xff] %v8956_v47  ;;  %v9973_v54 = vld [vmem:[#allocation8_spill] sm:$0xff] }
 0x320   : > { %v4506_v2 = vpop.f32.mrf.mxu1  ;;  %v4795_v8 = vpop.f32.mrf.mxu0  ;;  %v3967_v21 = vadd.f32 %v8937_v4, %v9973_v54 }
 0x321   : > { %v8963_v11 = vadd.f32 %v4506_v2, %v3962_v52  ;;  %v8966_v33 = vadd.f32 %v4795_v8, %v9971_v51  ;;  %v9975_v8 = vld [vmem:[#allocation58_spill] sm:$0xff] }
 0x322   : > { %v4508_v27 = vpop.f32.mrf.mxu1  ;;  %v4797_v16 = vpop.f32.mrf.mxu0 }
 0x323   : > { %9970 = vst [vmem:[#allocation7_spill] sm:$0xff] %v8963_v11  ;;  %9972 = vst [vmem:[#allocation57_spill] sm:$0xff] %v8966_v33  ;;  %v9977_v16 = vld [vmem:[#allocation9_spill] sm:$0xff]  ;;  %v7419_v33 = vld [vmem:[%s7587_s27 + $0x9b0] ss:$28 sps:$4 sm:$0xff]  }
 0x324   : > { %v4511_v3 = vpop.f32.mrf.mxu1  ;;  %v4800_v39 = vpop.f32.mrf.mxu0  ;;  %4991 = vmatmul.mubr.bf16.gmra.mxu0 %v7414_v13  ;;  %6704 = vmatmul.mubr.msk.bf16.gmra.mxu1 %vm3331_vm0, %v7418_v6  ;;  %v3970_v54 = vadd.f32 %v8937_v4, %v9977_v16  ;;  %v7423_v13 = vld [vmem:[%s7587_s27 + $0x590] ss:$28 sps:$4 sm:$0xff]  }
 0x325   : > { %v8973_v2 = vadd.f32 %v4511_v3, %v3967_v21  ;;  %v8976_v52 = vadd.f32 %v4800_v39, %v9975_v8  ;;  %4998 = vmatprep.mubr.bf16.mxu0 %v7421_v60  ;;  %6707 = vmatprep.mubr.msk.bf16.mxu1 %vm3331_vm0, %v7422_v32  ;;  %v9979_v6 = vld [vmem:[#allocation59_spill] sm:$0xff]  ;;  %v9981_v32 = vld [vmem:[#allocation10_spill] sm:$0xff] }
 0x326   : > { %v4513_v51 = vpop.f32.mrf.mxu1  ;;  %v4802_v27 = vpop.f32.mrf.mxu0  ;;  %v7426_v3 = vld [vmem:[%s7587_s27 + $0x9ec] ss:$28 sps:$4 sm:$0xff]  }
 0x327   : > { %9974 = vst [vmem:[#allocation8_spill] sm:$0xff] %v8973_v2  ;;  %9976 = vst [vmem:[#allocation58_spill] sm:$0xff] %v8976_v52  ;;  %v7427_v39 = vld [vmem:[%s7587_s27 + $0x5c8] ss:$28 sps:$4 sm:$0xff]   ;;  %v3975_v51 = vadd.f32 %v8937_v4, %v9981_v32 }
 0x328   : > { %v4514_v11 = vpop.f32.mrf.mxu1  ;;  %v4803_v28 = vpop.f32.mrf.mxu0 }
 0x329   : > { %v8983_v47 = vadd.f32 %v4514_v11, %v3970_v54  ;;  %v8986_v21 = vadd.f32 %v4803_v28, %v9979_v6  ;;  %v9983_v28 = vld [vmem:[#allocation60_spill] sm:$0xff] }
 0x32a   : > { %v4516_v8 = vpop.f32.mrf.mxu1  ;;  %v4805_v60 = vpop.f32.mrf.mxu0 }
 0x32b   : > { %9978 = vst [vmem:[#allocation9_spill] sm:$0xff] %v8983_v47  ;;  %9980 = vst [vmem:[#allocation59_spill] sm:$0xff] %v8986_v21  ;;  %v9985_v60 = vld [vmem:[#allocation11_spill] sm:$0xff] }
 0x32c   : > { %v4519_v27 = vpop.f32.mrf.mxu1  ;;  %v4808_v16 = vpop.f32.mrf.mxu0  ;;  %4999 = vmatmul.mubr.bf16.gmra.mxu0 %v7419_v33  ;;  %6708 = vmatmul.mubr.msk.bf16.gmra.mxu1 %vm3331_vm0, %v7423_v13  ;;  %v3978_v32 = vadd.f32 %v8937_v4, %v9985_v60  ;;  %v7424_v21 = vld [vmem:[%s7587_s27 + $0x9e8] ss:$28 sps:$4 sm:$0xff]   ;;  %v7428_v33 = vld [vmem:[%s7587_s27 + $0x600] ss:$28 sps:$4 sm:$0xff]  }
 0x32d   : > { %v8993_v11 = vadd.f32 %v4519_v27, %v3975_v51  ;;  %v8996_v54 = vadd.f32 %v4808_v16, %v9983_v28  ;;  %5006 = vmatprep.mubr.bf16.mxu0 %v7426_v3  ;;  %6711 = vmatprep.mubr.msk.bf16.mxu1 %vm3331_vm0, %v7427_v39  ;;  %v9987_v13 = vld [vmem:[#allocation61_spill] sm:$0xff]  ;;  %v7431_v27 = vld [vmem:[%s7587_s27 + $0xa24] ss:$28 sps:$4 sm:$0xff]   ;;  %v9989_v39 = vld [vmem:[#allocation12_spill] sm:$0xff] }
 0x32e   : > { %v4521_v6 = vpop.f32.mrf.mxu1  ;;  %v4810_v8 = vpop.f32.mrf.mxu0  ;;  %v7432_v16 = vld [vmem:[%s7587_s27 + $0x638] ss:$28 sps:$4 sm:$0xff]  }
 0x32f   : > { %9982 = vst [vmem:[#allocation10_spill] sm:$0xff] %v8993_v11  ;;  %9984 = vst [vmem:[#allocation60_spill] sm:$0xff] %v8996_v54  ;;  %v3983_v6 = vadd.f32 %v8937_v4, %v9989_v39 }
 0x330   : > { %v4522_v47 = vpop.f32.mrf.mxu1  ;;  %v4811_v2 = vpop.f32.mrf.mxu0 }
 0x331   : > { %v9003_v52 = vadd.f32 %v4522_v47, %v3978_v32  ;;  %v9006_v51 = vadd.f32 %v4811_v2, %v9987_v13  ;;  %v9991_v2 = vld [vmem:[#allocation62_spill] sm:$0xff] }
 0x332   : > { %v4524_v28 = vpop.f32.mrf.mxu1  ;;  %v4813_v3 = vpop.f32.mrf.mxu0 }
 0x333   : > { %9986 = vst [vmem:[#allocation11_spill] sm:$0xff] %v9003_v52  ;;  %9988 = vst [vmem:[#allocation61_spill] sm:$0xff] %v9006_v51  ;;  %v9993_v3 = vld [vmem:[#allocation13_spill] sm:$0xff] }
 0x334   : > { %v4527_v8 = vpop.f32.mrf.mxu1  ;;  %v4816_v60 = vpop.f32.mrf.mxu0  ;;  %5007 = vmatmul.mubr.bf16.gmra.mxu0 %v7424_v21  ;;  %6712 = vmatmul.mubr.msk.bf16.gmra.mxu1 %vm3331_vm0, %v7428_v33  ;;  %v3986_v39 = vadd.f32 %v8937_v4, %v9993_v3  ;;  %v7429_v51 = vld [vmem:[%s7587_s27 + $0xa20] ss:$28 sps:$4 sm:$0xff]   ;;  %v7433_v21 = vld [vmem:[%s7587_s27 + $0x670] ss:$28 sps:$4 sm:$0xff]  }
 0x335   : > { %v9013_v47 = vadd.f32 %v4527_v8, %v3983_v6  ;;  %v9016_v32 = vadd.f32 %v4816_v60, %v9991_v2  ;;  %5014 = vmatprep.mubr.bf16.mxu0 %v7431_v27  ;;  %6715 = vmatprep.mubr.msk.bf16.mxu1 %vm3331_vm0, %v7432_v16  ;;  %v9995_v33 = vld [vmem:[#allocation63_spill] sm:$0xff]  ;;  %v7436_v8 = vld [vmem:[%s7587_s27 + $0xa5c] ss:$28 sps:$4 sm:$0xff]   ;;  %v9997_v16 = vld [vmem:[#allocation14_spill] sm:$0xff] }
 0x336   : > { %v4529_v13 = vpop.f32.mrf.mxu1  ;;  %v4818_v28 = vpop.f32.mrf.mxu0  ;;  %v7437_v60 = vld [vmem:[%s7587_s27 + $0x6a8] ss:$28 sps:$4 sm:$0xff]  }
 0x337   : > { %9990 = vst [vmem:[#allocation12_spill] sm:$0xff] %v9013_v47  ;;  %9992 = vst [vmem:[#allocation62_spill] sm:$0xff] %v9016_v32  ;;  %v3991_v13 = vadd.f32 %v8937_v4, %v9997_v16 }
 0x338   : > { %v4530_v52 = vpop.f32.mrf.mxu1  ;;  %v4819_v11 = vpop.f32.mrf.mxu0 }
 0x339   : > { %v9023_v54 = vadd.f32 %v4530_v52, %v3986_v39  ;;  %v9026_v6 = vadd.f32 %v4819_v11, %v9995_v33  ;;  %v9999_v11 = vld [vmem:[#allocation64_spill] sm:$0xff] }
 0x33a   : > { %v4532_v2 = vpop.f32.mrf.mxu1  ;;  %v4821_v27 = vpop.f32.mrf.mxu0 }
 0x33b   : > { %9994 = vst [vmem:[#allocation13_spill] sm:$0xff] %v9023_v54  ;;  %9996 = vst [vmem:[#allocation63_spill] sm:$0xff] %v9026_v6  ;;  %v10001_v27 = vld [vmem:[#allocation15_spill] sm:$0xff]  ;;  %v7434_v6 = vld [vmem:[%s7587_s27 + $0xa58] ss:$28 sps:$4 sm:$0xff]  }
 0x33c   : > { %v4535_v28 = vpop.f32.mrf.mxu1  ;;  %v4824_v3 = vpop.f32.mrf.mxu0  ;;  %5015 = vmatmul.mubr.bf16.gmra.mxu0 %v7429_v51  ;;  %6716 = vmatmul.mubr.msk.bf16.gmra.mxu1 %vm3331_vm0, %v7433_v21  ;;  %v3994_v16 = vadd.f32 %v8937_v4, %v10001_v27  ;;  %v7438_v51 = vld [vmem:[%s7587_s27 + $0x6e0] ss:$28 sps:$4 sm:$0xff]  }
 0x33d   : > { %v9033_v52 = vadd.f32 %v4535_v28, %v3991_v13  ;;  %v9036_v39 = vadd.f32 %v4824_v3, %v9999_v11  ;;  %5022 = vmatprep.mubr.bf16.mxu0 %v7436_v8  ;;  %6719 = vmatprep.mubr.msk.bf16.mxu1 %vm3331_vm0, %v7437_v60  ;;  %v10003_v21 = vld [vmem:[#allocation65_spill] sm:$0xff]  ;;  %v7441_v28 = vld [vmem:[%s7587_s27 + $0xa94] ss:$28 sps:$4 sm:$0xff]  }
 0x33e   : > { %v4537_v33 = vpop.f32.mrf.mxu1  ;;  %v4826_v2 = vpop.f32.mrf.mxu0  ;;  %v7442_v3 = vld [vmem:[%s7587_s27 + $0x718] ss:$28 sps:$4 sm:$0xff]  }
 0x33f   : > { %9998 = vst [vmem:[#allocation14_spill] sm:$0xff] %v9033_v52  ;;  %10000 = vst [vmem:[#allocation64_spill] sm:$0xff] %v9036_v39  ;;  %v10005_v60 = vld [vmem:[#allocation16_spill] sm:$0xff] }
 0x340   : > { %v4538_v54 = vpop.f32.mrf.mxu1  ;;  %v4827_v47 = vpop.f32.mrf.mxu0  ;;  %v3999_v33 = vadd.f32 %v8937_v4, %v10005_v60 }
 0x341   : > { %v9043_v32 = vadd.f32 %v4538_v54, %v3994_v16  ;;  %v9046_v13 = vadd.f32 %v4827_v47, %v10003_v21  ;;  %v10007_v47 = vld [vmem:[#allocation66_spill] sm:$0xff] }
 0x342   : > { %v4540_v11 = vpop.f32.mrf.mxu1  ;;  %v4829_v8 = vpop.f32.mrf.mxu0 }
 0x343   : > { %10002 = vst [vmem:[#allocation15_spill] sm:$0xff] %v9043_v32  ;;  %10004 = vst [vmem:[#allocation65_spill] sm:$0xff] %v9046_v13  ;;  %v10009_v8 = vld [vmem:[#allocation17_spill] sm:$0xff]  ;;  %v7439_v13 = vld [vmem:[%s7587_s27 + $0xa90] ss:$28 sps:$4 sm:$0xff]  }
 0x344   : > { %v4543_v2 = vpop.f32.mrf.mxu1  ;;  %v4832_v27 = vpop.f32.mrf.mxu0  ;;  %5023 = vmatmul.mubr.bf16.gmra.mxu0 %v7434_v6  ;;  %6720 = vmatmul.mubr.msk.bf16.gmra.mxu1 %vm3331_vm0, %v7438_v51  ;;  %v4002_v60 = vadd.f32 %v8937_v4, %v10009_v8  ;;  %v7443_v6 = vld [vmem:[%s7587_s27 + $0x750] ss:$28 sps:$4 sm:$0xff]  }
 0x345   : > { %v9053_v54 = vadd.f32 %v4543_v2, %v3999_v33  ;;  %v9056_v16 = vadd.f32 %v4832_v27, %v10007_v47  ;;  %5030 = vmatprep.mubr.bf16.mxu0 %v7441_v28  ;;  %6723 = vmatprep.mubr.msk.bf16.mxu1 %vm3331_vm0, %v7442_v3  ;;  %v10011_v51 = vld [vmem:[#allocation67_spill] sm:$0xff]  ;;  %v10013_v3 = vld [vmem:[#allocation18_spill] sm:$0xff] }
 0x346   : > { %v4545_v21 = vpop.f32.mrf.mxu1  ;;  %v4834_v11 = vpop.f32.mrf.mxu0  ;;  %v7446_v2 = vld [vmem:[%s7587_s27 + $0xacc] ss:$28 sps:$4 sm:$0xff]  }
 0x347   : > { %10006 = vst [vmem:[#allocation16_spill] sm:$0xff] %v9053_v54  ;;  %10008 = vst [vmem:[#allocation66_spill] sm:$0xff] %v9056_v16  ;;  %v7447_v27 = vld [vmem:[%s7587_s27 + $0x788] ss:$28 sps:$4 sm:$0xff]   ;;  %v4007_v21 = vadd.f32 %v8937_v4, %v10013_v3 }
 0x348   : > { %v4546_v32 = vpop.f32.mrf.mxu1  ;;  %v4835_v52 = vpop.f32.mrf.mxu0 }
 0x349   : > { %v9063_v39 = vadd.f32 %v4546_v32, %v4002_v60  ;;  %v9066_v33 = vadd.f32 %v4835_v52, %v10011_v51  ;;  %v10015_v52 = vld [vmem:[#allocation68_spill] sm:$0xff] }
 0x34a   : > { %v4548_v47 = vpop.f32.mrf.mxu1  ;;  %v4837_v28 = vpop.f32.mrf.mxu0 }
 0x34b   : > { %10010 = vst [vmem:[#allocation17_spill] sm:$0xff] %v9063_v39  ;;  %10012 = vst [vmem:[#allocation67_spill] sm:$0xff] %v9066_v33  ;;  %v10017_v28 = vld [vmem:[#allocation19_spill] sm:$0xff] }
 0x34c   : > { %v4551_v11 = vpop.f32.mrf.mxu1  ;;  %v4840_v8 = vpop.f32.mrf.mxu0  ;;  %5031 = vmatmul.mubr.bf16.gmra.mxu0 %v7439_v13  ;;  %6724 = vmatmul.mubr.msk.bf16.gmra.mxu1 %vm3331_vm0, %v7443_v6  ;;  %v4010_v3 = vadd.f32 %v8937_v4, %v10017_v28  ;;  %v7444_v33 = vld [vmem:[%s7587_s27 + $0xac8] ss:$28 sps:$4 sm:$0xff]   ;;  %v7448_v13 = vld [vmem:[%s7587_s27 + $0x7c0] ss:$28 sps:$4 sm:$0xff]  }
 0x34d   : > { %v9073_v32 = vadd.f32 %v4551_v11, %v4007_v21  ;;  %v9076_v60 = vadd.f32 %v4840_v8, %v10015_v52  ;;  %5038 = vmatprep.mubr.bf16.mxu0 %v7446_v2  ;;  %6727 = vmatprep.mubr.msk.bf16.mxu1 %vm3331_vm0, %v7447_v27  ;;  %v10019_v6 = vld [vmem:[#allocation69_spill] sm:$0xff]  ;;  %v7451_v11 = vld [vmem:[%s7587_s27 + $0xb04] ss:$28 sps:$4 sm:$0xff]   ;;  %v10021_v27 = vld [vmem:[#allocation20_spill] sm:$0xff] }
 0x34e   : > { %v4553_v51 = vpop.f32.mrf.mxu1  ;;  %v4842_v47 = vpop.f32.mrf.mxu0  ;;  %v7452_v8 = vld [vmem:[%s7587_s27 + $0x7f8] ss:$28 sps:$4 sm:$0xff]  }
 0x34f   : > { %10014 = vst [vmem:[#allocation18_spill] sm:$0xff] %v9073_v32  ;;  %10016 = vst [vmem:[#allocation68_spill] sm:$0xff] %v9076_v60  ;;  %v4015_v51 = vadd.f32 %v8937_v4, %v10021_v27 }
 0x350   : > { %v4554_v39 = vpop.f32.mrf.mxu1  ;;  %v4843_v54 = vpop.f32.mrf.mxu0 }
 0x351   : > { %v9083_v16 = vadd.f32 %v4554_v39, %v4010_v3  ;;  %v9086_v21 = vadd.f32 %v4843_v54, %v10019_v6  ;;  %v10023_v54 = vld [vmem:[#allocation70_spill] sm:$0xff] }
 0x352   : > { %v4556_v52 = vpop.f32.mrf.mxu1  ;;  %v4845_v2 = vpop.f32.mrf.mxu0 }
 0x353   : > { %10018 = vst [vmem:[#allocation19_spill] sm:$0xff] %v9083_v16  ;;  %10020 = vst [vmem:[#allocation69_spill] sm:$0xff] %v9086_v21  ;;  %v10025_v2 = vld [vmem:[#allocation21_spill] sm:$0xff] }
 0x354   : > { %v4559_v47 = vpop.f32.mrf.mxu1  ;;  %v4848_v28 = vpop.f32.mrf.mxu0  ;;  %5039 = vmatmul.mubr.bf16.gmra.mxu0 %v7444_v33  ;;  %6728 = vmatmul.mubr.msk.bf16.gmra.mxu1 %vm3331_vm0, %v7448_v13  ;;  %v4018_v27 = vadd.f32 %v8937_v4, %v10025_v2  ;;  %v7449_v21 = vld [vmem:[%s7587_s27 + $0xb00] ss:$28 sps:$4 sm:$0xff]   ;;  %v7453_v33 = vld [vmem:[%s7587_s27 + $0x830] ss:$28 sps:$4 sm:$0xff]  }
 0x355   : > { %v9093_v39 = vadd.f32 %v4559_v47, %v4015_v51  ;;  %v9096_v3 = vadd.f32 %v4848_v28, %v10023_v54  ;;  %5046 = vmatprep.mubr.bf16.mxu0 %v7451_v11  ;;  %6731 = vmatprep.mubr.msk.bf16.mxu1 %vm3331_vm0, %v7452_v8  ;;  %v10027_v13 = vld [vmem:[#allocation71_spill] sm:$0xff]  ;;  %v7456_v47 = vld [vmem:[%s7587_s27 + $0xb3c] ss:$28 sps:$4 sm:$0xff]   ;;  %v10029_v8 = vld [vmem:[#allocation22_spill] sm:$0xff] }
 0x356   : > { %v4561_v6 = vpop.f32.mrf.mxu1  ;;  %v4850_v52 = vpop.f32.mrf.mxu0  ;;  %v7457_v28 = vld [vmem:[%s7587_s27 + $0x868] ss:$28 sps:$4 sm:$0xff]  }
 0x357   : > { %10022 = vst [vmem:[#allocation20_spill] sm:$0xff] %v9093_v39  ;;  %10024 = vst [vmem:[#allocation70_spill] sm:$0xff] %v9096_v3  ;;  %v4023_v6 = vadd.f32 %v8937_v4, %v10029_v8 }
 0x358   : > { %v4562_v16 = vpop.f32.mrf.mxu1  ;;  %v4851_v32 = vpop.f32.mrf.mxu0 }
 0x359   : > { %v9103_v60 = vadd.f32 %v4562_v16, %v4018_v27  ;;  %v9106_v51 = vadd.f32 %v4851_v32, %v10027_v13  ;;  %v10031_v32 = vld [vmem:[#allocation72_spill] sm:$0xff] }
 0x35a   : > { %v4564_v54 = vpop.f32.mrf.mxu1  ;;  %v4853_v11 = vpop.f32.mrf.mxu0 }
 0x35b   : > { %10026 = vst [vmem:[#allocation21_spill] sm:$0xff] %v9103_v60  ;;  %10028 = vst [vmem:[#allocation71_spill] sm:$0xff] %v9106_v51  ;;  %v10033_v11 = vld [vmem:[#allocation23_spill] sm:$0xff]  ;;  %v7454_v51 = vld [vmem:[%s7587_s27 + $0xb38] ss:$28 sps:$4 sm:$0xff]  }
 0x35c   : > { %v4567_v52 = vpop.f32.mrf.mxu1  ;;  %v4856_v2 = vpop.f32.mrf.mxu0  ;;  %5047 = vmatmul.mubr.bf16.gmra.mxu0 %v7449_v21  ;;  %6732 = vmatmul.mubr.msk.bf16.gmra.mxu1 %vm3331_vm0, %v7453_v33  ;;  %v4026_v8 = vadd.f32 %v8937_v4, %v10033_v11  ;;  %v7458_v21 = vld [vmem:[%s7587_s27 + $0x8a0] ss:$28 sps:$4 sm:$0xff]  }
 0x35d   : > { %v9113_v16 = vadd.f32 %v4567_v52, %v4023_v6  ;;  %v9116_v27 = vadd.f32 %v4856_v2, %v10031_v32  ;;  %5054 = vmatprep.mubr.bf16.mxu0 %v7456_v47  ;;  %6735 = vmatprep.mubr.msk.bf16.mxu1 %vm3331_vm0, %v7457_v28  ;;  %v10035_v33 = vld [vmem:[#allocation73_spill] sm:$0xff]  ;;  %v7461_v52 = vld [vmem:[%s7587_s27 + $0xb74] ss:$28 sps:$4 sm:$0xff]  }
 0x35e   : > { %v4569_v13 = vpop.f32.mrf.mxu1  ;;  %v4858_v54 = vpop.f32.mrf.mxu0  ;;  %v7462_v2 = vld [vmem:[%s7587_s27 + $0x8d8] ss:$28 sps:$4 sm:$0xff]  }
 0x35f   : > { %10030 = vst [vmem:[#allocation22_spill] sm:$0xff] %v9113_v16  ;;  %10032 = vst [vmem:[#allocation72_spill] sm:$0xff] %v9116_v27  ;;  %v10037_v28 = vld [vmem:[#allocation24_spill] sm:$0xff] }
 0x360   : > { %v4570_v60 = vpop.f32.mrf.mxu1  ;;  %v4859_v39 = vpop.f32.mrf.mxu0  ;;  %v4031_v13 = vadd.f32 %v8937_v4, %v10037_v28 }
 0x361   : > { %v9123_v3 = vadd.f32 %v4570_v60, %v4026_v8  ;;  %v9126_v6 = vadd.f32 %v4859_v39, %v10035_v33  ;;  %v10039_v39 = vld [vmem:[#allocation74_spill] sm:$0xff] }
 0x362   : > { %v4572_v32 = vpop.f32.mrf.mxu1  ;;  %v4861_v47 = vpop.f32.mrf.mxu0 }
 0x363   : > { %10034 = vst [vmem:[#allocation23_spill] sm:$0xff] %v9123_v3  ;;  %10036 = vst [vmem:[#allocation73_spill] sm:$0xff] %v9126_v6  ;;  %v10041_v47 = vld [vmem:[#allocation25_spill] sm:$0xff]  ;;  %v7459_v6 = vld [vmem:[%s7587_s27 + $0xb70] ss:$28 sps:$4 sm:$0xff]  }
 0x364   : > { %v4575_v54 = vpop.f32.mrf.mxu1  ;;  %v4864_v11 = vpop.f32.mrf.mxu0  ;;  %5055 = vmatmul.mubr.bf16.gmra.mxu0 %v7454_v51  ;;  %6736 = vmatmul.mubr.msk.bf16.gmra.mxu1 %vm3331_vm0, %v7458_v21  ;;  %v4034_v28 = vadd.f32 %v8937_v4, %v10041_v47  ;;  %v7463_v51 = vld [vmem:[%s7587_s27 + $0x910] ss:$28 sps:$4 sm:$0xff]  }
 0x365   : > { %v9133_v60 = vadd.f32 %v4575_v54, %v4031_v13  ;;  %v9136_v8 = vadd.f32 %v4864_v11, %v10039_v39  ;;  %5062 = vmatprep.mubr.bf16.mxu0 %v7461_v52  ;;  %6739 = vmatprep.mubr.msk.bf16.mxu1 %vm3331_vm0, %v7462_v2  ;;  %v10043_v21 = vld [vmem:[#allocation75_spill] sm:$0xff]  ;;  %v10045_v2 = vld [vmem:[#allocation26_spill] sm:$0xff] }
 0x366   : > { %v4577_v33 = vpop.f32.mrf.mxu1  ;;  %v4866_v32 = vpop.f32.mrf.mxu0  ;;  %v7466_v54 = vld [vmem:[%s7587_s27 + $0xbac] ss:$28 sps:$4 sm:$0xff]  }
 0x367   : > { %10038 = vst [vmem:[#allocation24_spill] sm:$0xff] %v9133_v60  ;;  %10040 = vst [vmem:[#allocation74_spill] sm:$0xff] %v9136_v8  ;;  %v7467_v11 = vld [vmem:[%s7587_s27 + $0x948] ss:$28 sps:$4 sm:$0xff]   ;;  %v4039_v33 = vadd.f32 %v8937_v4, %v10045_v2 }
 0x368   : > { %v4578_v3 = vpop.f32.mrf.mxu1  ;;  %v4867_v16 = vpop.f32.mrf.mxu0 }
 0x369   : > { %v9143_v27 = vadd.f32 %v4578_v3, %v4034_v28  ;;  %v9146_v13 = vadd.f32 %v4867_v16, %v10043_v21  ;;  %v10047_v16 = vld [vmem:[#allocation76_spill] sm:$0xff] }
 0x36a   : > { %v4580_v39 = vpop.f32.mrf.mxu1  ;;  %v4869_v52 = vpop.f32.mrf.mxu0 }
 0x36b   : > { %10042 = vst [vmem:[#allocation25_spill] sm:$0xff] %v9143_v27  ;;  %10044 = vst [vmem:[#allocation75_spill] sm:$0xff] %v9146_v13  ;;  %v10049_v52 = vld [vmem:[#allocation27_spill] sm:$0xff] }
 0x36c   : > { %v4583_v32 = vpop.f32.mrf.mxu1  ;;  %v4872_v47 = vpop.f32.mrf.mxu0  ;;  %5063 = vmatmul.mubr.bf16.gmra.mxu0 %v7459_v6  ;;  %6740 = vmatmul.mubr.msk.bf16.gmra.mxu1 %vm3331_vm0, %v7463_v51  ;;  %v4042_v2 = vadd.f32 %v8937_v4, %v10049_v52  ;;  %v7464_v13 = vld [vmem:[%s7587_s27 + $0xba8] ss:$28 sps:$4 sm:$0xff]   ;;  %v7468_v6 = vld [vmem:[%s7587_s27 + $0x980] ss:$28 sps:$4 sm:$0xff]  }
 0x36d   : > { %v9153_v3 = vadd.f32 %v4583_v32, %v4039_v33  ;;  %v9156_v28 = vadd.f32 %v4872_v47, %v10047_v16  ;;  %5070 = vmatprep.mubr.bf16.mxu0 %v7466_v54  ;;  %6743 = vmatprep.mubr.msk.bf16.mxu1 %vm3331_vm0, %v7467_v11  ;;  %v10051_v51 = vld [vmem:[#allocation77_spill] sm:$0xff]  ;;  %v7471_v32 = vld [vmem:[%s7587_s27 + $0xbe4] ss:$28 sps:$4 sm:$0xff]   ;;  %v10053_v11 = vld [vmem:[#allocation28_spill] sm:$0xff] }
 0x36e   : > { %v4585_v21 = vpop.f32.mrf.mxu1  ;;  %v4874_v39 = vpop.f32.mrf.mxu0  ;;  %v7472_v47 = vld [vmem:[%s7587_s27 + $0x9b8] ss:$28 sps:$4 sm:$0xff]  }
 0x36f   : > { %10046 = vst [vmem:[#allocation26_spill] sm:$0xff] %v9153_v3  ;;  %10048 = vst [vmem:[#allocation76_spill] sm:$0xff] %v9156_v28  ;;  %v4047_v21 = vadd.f32 %v8937_v4, %v10053_v11 }
 0x370   : > { %v4586_v27 = vpop.f32.mrf.mxu1  ;;  %v4875_v60 = vpop.f32.mrf.mxu0 }
 0x371   : > { %v9163_v8 = vadd.f32 %v4586_v27, %v4042_v2  ;;  %v9166_v33 = vadd.f32 %v4875_v60, %v10051_v51  ;;  %v10055_v60 = vld [vmem:[#allocation78_spill] sm:$0xff] }
 0x372   : > { %v4588_v16 = vpop.f32.mrf.mxu1  ;;  %v4877_v54 = vpop.f32.mrf.mxu0 }
 0x373   : > { %10050 = vst [vmem:[#allocation27_spill] sm:$0xff] %v9163_v8  ;;  %10052 = vst [vmem:[#allocation77_spill] sm:$0xff] %v9166_v33  ;;  %v10057_v54 = vld [vmem:[#allocation29_spill] sm:$0xff] }
 0x374   : > { %v4591_v39 = vpop.f32.mrf.mxu1  ;;  %v4880_v52 = vpop.f32.mrf.mxu0  ;;  %5071 = vmatmul.mubr.bf16.gmra.mxu0 %v7464_v13  ;;  %6744 = vmatmul.mubr.msk.bf16.gmra.mxu1 %vm3331_vm0, %v7468_v6  ;;  %v4050_v11 = vadd.f32 %v8937_v4, %v10057_v54  ;;  %v7469_v33 = vld [vmem:[%s7587_s27 + $0xbe0] ss:$28 sps:$4 sm:$0xff]   ;;  %v7473_v13 = vld [vmem:[%s7587_s27 + $0x9f0] ss:$28 sps:$4 sm:$0xff]  }
 0x375   : > { %v9173_v27 = vadd.f32 %v4591_v39, %v4047_v21  ;;  %v9176_v2 = vadd.f32 %v4880_v52, %v10055_v60  ;;  %5078 = vmatprep.mubr.bf16.mxu0 %v7471_v32  ;;  %6747 = vmatprep.mubr.msk.bf16.mxu1 %vm3331_vm0, %v7472_v47  ;;  %v10059_v6 = vld [vmem:[#allocation79_spill] sm:$0xff]  ;;  %v7476_v39 = vld [vmem:[%s7587_s27 + $0xc1c] ss:$28 sps:$4 sm:$0xff]   ;;  %v10061_v47 = vld [vmem:[#allocation30_spill] sm:$0xff] }
 0x376   : > { %v4593_v51 = vpop.f32.mrf.mxu1  ;;  %v4882_v16 = vpop.f32.mrf.mxu0  ;;  %v7477_v52 = vld [vmem:[%s7587_s27 + $0xa28] ss:$28 sps:$4 sm:$0xff]  }
 0x377   : > { %10054 = vst [vmem:[#allocation28_spill] sm:$0xff] %v9173_v27  ;;  %10056 = vst [vmem:[#allocation78_spill] sm:$0xff] %v9176_v2  ;;  %v4055_v51 = vadd.f32 %v8937_v4, %v10061_v47 }
 0x378   : > { %v4594_v8 = vpop.f32.mrf.mxu1  ;;  %v4883_v3 = vpop.f32.mrf.mxu0 }
 0x379   : > { %v9183_v28 = vadd.f32 %v4594_v8, %v4050_v11  ;;  %v9186_v21 = vadd.f32 %v4883_v3, %v10059_v6  ;;  %v10063_v3 = vld [vmem:[#allocation80_spill] sm:$0xff] }
 0x37a   : > { %v4596_v60 = vpop.f32.mrf.mxu1  ;;  %v4885_v32 = vpop.f32.mrf.mxu0 }
 0x37b   : > { %10058 = vst [vmem:[#allocation29_spill] sm:$0xff] %v9183_v28  ;;  %10060 = vst [vmem:[#allocation79_spill] sm:$0xff] %v9186_v21  ;;  %v10064_v32 = vld [vmem:[#allocation31_spill] sm:$0xff]  ;;  %v7474_v21 = vld [vmem:[%s7587_s27 + $0xc18] ss:$28 sps:$4 sm:$0xff]  }
 0x37c   : > { %v4599_v16 = vpop.f32.mrf.mxu1  ;;  %v4888_v54 = vpop.f32.mrf.mxu0  ;;  %5079 = vmatmul.mubr.bf16.gmra.mxu0 %v7469_v33  ;;  %6748 = vmatmul.mubr.msk.bf16.gmra.mxu1 %vm3331_vm0, %v7473_v13  ;;  %v4058_v47 = vadd.f32 %v8937_v4, %v10064_v32  ;;  %v7478_v33 = vld [vmem:[%s7587_s27 + $0xa60] ss:$28 sps:$4 sm:$0xff]  }
 0x37d   : > { %v9193_v8 = vadd.f32 %v4599_v16, %v4055_v51  ;;  %v9196_v11 = vadd.f32 %v4888_v54, %v10063_v3  ;;  %5086 = vmatprep.mubr.bf16.mxu0 %v7476_v39  ;;  %6751 = vmatprep.mubr.msk.bf16.mxu1 %vm3331_vm0, %v7477_v52  ;;  %v10066_v13 = vld [vmem:[#allocation81_spill] sm:$0xff]  ;;  %v7481_v16 = vld [vmem:[%s7587_s27 + $0xc54] ss:$28 sps:$4 sm:$0xff]  }
 0x37e   : > { %v4601_v6 = vpop.f32.mrf.mxu1  ;;  %v4890_v60 = vpop.f32.mrf.mxu0  ;;  %v7482_v54 = vld [vmem:[%s7587_s27 + $0xa98] ss:$28 sps:$4 sm:$0xff]  }
 0x37f   : > { %10062 = vst [vmem:[#allocation30_spill] sm:$0xff] %v9193_v8  ;;  %v10068_v52 = vld [vmem:[#allocation32_spill] sm:$0xff] }
 0x380   : > { %v4602_v28 = vpop.f32.mrf.mxu1  ;;  %v4891_v27 = vpop.f32.mrf.mxu0  ;;  %v4063_v6 = vadd.f32 %v8937_v4, %v10068_v52  ;;  %v7483_v8 = vld [vmem:[%s7587_s27 + $0xad0] ss:$28 sps:$4 sm:$0xff]  }
 0x381   : > { %v9203_v2 = vadd.f32 %v4602_v28, %v4058_v47  ;;  %v9206_v51 = vadd.f32 %v4891_v27, %v10066_v13 }
 0x382   : > { %v4604_v3 = vpop.f32.mrf.mxu1  ;;  %v4893_v39 = vpop.f32.mrf.mxu0 }
 0x383   : > { %10065 = vst [vmem:[#allocation80_spill] sm:$0xff] %v9203_v2  ;;  %10067 = vst [vmem:[#allocation31_spill] sm:$0xff] %v9206_v51  ;;  %v10069_v3 = vld [vmem:[#allocation33_spill] sm:$0xff] }
 0x384   : > { %v4607_v60 = vpop.f32.mrf.mxu1  ;;  %v4896_v32 = vpop.f32.mrf.mxu0  ;;  %5087 = vmatmul.mubr.bf16.gmra.mxu0 %v7474_v21  ;;  %6752 = vmatmul.mubr.msk.bf16.gmra.mxu1 %vm3331_vm0, %v7478_v33  ;;  %v4066_v39 = vadd.f32 %v8937_v4, %v10069_v3  ;;  %v7479_v21 = vld [vmem:[%s7587_s27 + $0xc50] ss:$28 sps:$4 sm:$0xff]  }
 0x385   : > { %v9213_v28 = vadd.f32 %v4607_v60, %v4063_v6  ;;  %v9216_v27 = vadd.f32 %v4896_v32, %v8588_v31  ;;  %5094 = vmatprep.mubr.bf16.mxu0 %v7481_v16  ;;  %6755 = vmatprep.mubr.msk.bf16.mxu1 %vm3331_vm0, %v7482_v54  ;;  %v7486_v31 = vld [vmem:[%s7587_s27 + $0xc8c] ss:$28 sps:$4 sm:$0xff]  }
 0x386   : > { %v4609_v47 = vpop.f32.mrf.mxu1  ;;  %v4898_v13 = vpop.f32.mrf.mxu0  ;;  %v7487_v6 = vld [vmem:[%s7587_s27 + $0xb08] ss:$28 sps:$4 sm:$0xff]  }
 0x388   : > { %v4610_v52 = vpop.f32.mrf.mxu1  ;;  %v4899_v2 = vpop.f32.mrf.mxu0 }
 0x389   : > { %v9223_v51 = vadd.f32 %v4610_v52, %v4066_v39  ;;  %v9226_v33 = vadd.f32 %v4899_v2, %v8596_v46  ;;  %v7488_v39 = vld [vmem:[%s7587_s27 + $0xb40] ss:$28 sps:$4 sm:$0xff]  }
 0x38a   : > { %v4612_v60 = vpop.f32.mrf.mxu1  ;;  %v4901_v16 = vpop.f32.mrf.mxu0 }
 0x38b   : > { %v7492_v60 = vld [vmem:[%s7587_s27 + $0xb78] ss:$28 sps:$4 sm:$0xff]  }
 0x38c   : > { %v4904_v54 = vpop.f32.mrf.mxu0  ;;  %5095 = vmatmul.mubr.bf16.gmra.mxu0 %v7479_v21  ;;  %v6661_v32 = vpop.f32.mrf.mxu1  ;;  %6756 = vmatmul.mubr.msk.bf16.gmra.mxu1 %vm3331_vm0, %v7483_v8 }
 0x38d   : > { %v9233_v4 = vadd.f32 %v4904_v54, %v8602_v9  ;;  %v5202_v47 = vadd.f32 %v6661_v32, %v8623_v15  ;;  %5102 = vmatprep.mubr.bf16.mxu0 %v7486_v31  ;;  %6759 = vmatprep.mubr.msk.bf16.mxu1 %vm3331_vm0, %v7487_v6  ;;  %v7484_v15 = vld [vmem:[%s7587_s27 + $0xc88] ss:$28 sps:$4 sm:$0xff]  }
 0x38e   : > { %v4906_v46 = vpop.f32.mrf.mxu0  ;;  %v5193_v2 = vpop.f32.mrf.mxu1  ;;  %v7491_v6 = vld [vmem:[%s7587_s27 + $0xcc4] ss:$28 sps:$4 sm:$0xff]  }
 0x38f   : > { %v5706_v8 = vmax.f32 %v5202_v47, 0.0  ;;  %v5194_v9 = vadd.f32 %v5193_v2, %v8605_v45 }
 0x390   : > { %v4907_v13 = vpop.f32.mrf.mxu0  ;;  %v6662_v3 = vpop.f32.mrf.mxu1 }
 0x391   : > { %5834 = vst.msk [vmem:[%s9240_s13 + $0x10] sm:$0xff] %vm3331_vm0, %v5706_v8  ;;  %v5704_v52 = vmax.f32 %v5194_v9, 0.0  ;;  %v9248_v21 = vadd.f32 %v4907_v13, %v8611_v1  ;;  %v5205_v31 = vadd.f32 %v6662_v3, %v8632_v12 }
 0x392   : > { %v4909_v16 = vpop.f32.mrf.mxu0  ;;  %v5196_v54 = vpop.f32.mrf.mxu1 }
 0x393   : > { %5832 = vst.msk [vmem:[%s9240_s13] sm:$0xff] %vm3331_vm0, %v5704_v52  ;;  %v5707_v45 = vmax.f32 %v5205_v31, 0.0  ;;  %v5197_v32 = vadd.f32 %v5196_v54, %v8614_v55 }
 0x394   : > { %v4912_v47 = vpop.f32.mrf.mxu0  ;;  %5103 = vmatmul.mubr.bf16.gmra.mxu0 %v7484_v15  ;;  %v6665_v46 = vpop.f32.mrf.mxu1  ;;  %6760 = vmatmul.mubr.msk.bf16.gmra.mxu1 %vm3331_vm0, %v7488_v39  ;;  %v7489_v39 = vld [vmem:[%s7587_s27 + $0xcc0] ss:$28 sps:$4 sm:$0xff]  }
 0x395   : > { %5835 = vst.msk [vmem:[%s9240_s13 + $0x18] sm:$0xff] %vm3331_vm0, %v5707_v45  ;;  %v5705_v1 = vmax.f32 %v5197_v32, 0.0  ;;  %v9260_v12 = vadd.f32 %v4912_v47, %v8620_v19  ;;  %v5218_v2 = vadd.f32 %v6665_v46, %v8659_v41  ;;  %5110 = vmatprep.mubr.bf16.mxu0 %v7491_v6  ;;  %6763 = vmatprep.mubr.msk.bf16.mxu1 %vm3331_vm0, %v7492_v60  ;;  %v7493_v19 = vld [vmem:[%s7587_s27 + $0xbb0] ss:$28 sps:$4 sm:$0xff]   ;;  %v7496_v6 = vld [vmem:[%s7587_s27 + $0xcfc] ss:$28 sps:$4 sm:$0xff]  }
 0x396   : > { %v4914_v55 = vpop.f32.mrf.mxu0  ;;  %v5209_v8 = vpop.f32.mrf.mxu1  ;;  %v7497_v60 = vld [vmem:[%s7587_s27 + $0xbe8] ss:$28 sps:$4 sm:$0xff]  }
 0x397   : > { %5833 = vst.msk [vmem:[%s9240_s13 + $0x8] sm:$0xff] %vm3331_vm0, %v5705_v1  ;;  %v5710_v9 = vmax.f32 %v5218_v2, 0.0  ;;  %v5210_v13 = vadd.f32 %v5209_v8, %v8641_v59 }
 0x398   : > { %v4915_v3 = vpop.f32.mrf.mxu0  ;;  %v6666_v15 = vpop.f32.mrf.mxu1 }
 0x399   : > { %5838 = vst.msk [vmem:[%s9240_s13 + $0x30] sm:$0xff] %vm3331_vm0, %v5710_v9  ;;  %v5708_v41 = vmax.f32 %v5210_v13, 0.0  ;;  %v9272_v52 = vadd.f32 %v4915_v3, %v8629_v61  ;;  %v5221_v31 = vadd.f32 %v6666_v15, %v8668_v57  ;;  %v7494_v13 = vld [vmem:[%s7587_s27 + $0xcf8] ss:$28 sps:$4 sm:$0xff]  }
 0x39a   : > { %v4917_v16 = vpop.f32.mrf.mxu0  ;;  %v5212_v54 = vpop.f32.mrf.mxu1 }
 0x39b   : > { %5836 = vst.msk [vmem:[%s9240_s13 + $0x20] sm:$0xff] %vm3331_vm0, %v5708_v41  ;;  %v5711_v59 = vmax.f32 %v5221_v31, 0.0  ;;  %v5213_v45 = vadd.f32 %v5212_v54, %v8650_v58 }
 0x39c   : > { %v4920_v32 = vpop.f32.mrf.mxu0  ;;  %5111 = vmatmul.mubr.bf16.gmra.mxu0 %v7489_v39  ;;  %v6669_v47 = vpop.f32.mrf.mxu1  ;;  %6764 = vmatmul.mubr.msk.bf16.gmra.mxu1 %vm3331_vm0, %v7493_v19  ;;  %v7501_v39 = vld [vmem:[%s7587_s27 + $0xd34] ss:$28 sps:$4 sm:$0xff]  }
 0x39d   : > { %5839 = vst.msk [vmem:[%s9240_s13 + $0x38] sm:$0xff] %vm3331_vm0, %v5711_v59  ;;  %v5709_v61 = vmax.f32 %v5213_v45, 0.0  ;;  %v9284_v57 = vadd.f32 %v4920_v32, %v8638_v0  ;;  %v5234_v46 = vadd.f32 %v6669_v47, %v8695_v10  ;;  %5118 = vmatprep.mubr.bf16.mxu0 %v7496_v6  ;;  %6767 = vmatprep.mubr.msk.bf16.mxu1 %vm3331_vm0, %v7497_v60  ;;  %v7498_v0 = vld [vmem:[%s7587_s27 + $0xc20] ss:$28 sps:$4 sm:$0xff]   ;;  %v7502_v19 = vld [vmem:[%s7587_s27 + $0xc58] ss:$28 sps:$4 sm:$0xff]  }
 0x39e   : > { %v4922_v58 = vpop.f32.mrf.mxu0  ;;  %v5225_v1 = vpop.f32.mrf.mxu1 }
 0x39f   : > { %5837 = vst.msk [vmem:[%s9240_s13 + $0x28] sm:$0xff] %vm3331_vm0, %v5709_v61  ;;  %v5714_v2 = vmax.f32 %v5234_v46, 0.0  ;;  %v5226_v55 = vadd.f32 %v5225_v1, %v8677_v22  ;;  %v7499_v46 = vld [vmem:[%s7587_s27 + $0xd30] ss:$28 sps:$4 sm:$0xff]  }
 0x3a0   : > { %v4923_v8 = vpop.f32.mrf.mxu0  ;;  %v6670_v9 = vpop.f32.mrf.mxu1 }
 0x3a1   : > { %5842 = vst.msk [vmem:[%s9240_s13 + $0x50] sm:$0xff] %vm3331_vm0, %v5714_v2  ;;  %v5712_v10 = vmax.f32 %v5226_v55, 0.0  ;;  %v9296_v3 = vadd.f32 %v4923_v8, %v8647_v25  ;;  %v5237_v15 = vadd.f32 %v6670_v9, %v8704_v30  ;;  %v7506_v2 = vld [vmem:[%s7587_s27 + $0xd6c] ss:$28 sps:$4 sm:$0xff]  }
 0x3a2   : > { %v4925_v41 = vpop.f32.mrf.mxu0  ;;  %v5228_v31 = vpop.f32.mrf.mxu1  ;;  %v7507_v55 = vld [vmem:[%s7587_s27 + $0xcc8] ss:$28 sps:$4 sm:$0xff]  }
 0x3a3   : > { %5840 = vst.msk [vmem:[%s9240_s13 + $0x40] sm:$0xff] %vm3331_vm0, %v5712_v10  ;;  %v5715_v22 = vmax.f32 %v5237_v15, 0.0  ;;  %v5229_v6 = vadd.f32 %v5228_v31, %v8686_v23 }
 0x3a4   : > { %v4928_v60 = vpop.f32.mrf.mxu0  ;;  %5119 = vmatmul.mubr.bf16.gmra.mxu0 %v7494_v13  ;;  %v6673_v16 = vpop.f32.mrf.mxu1  ;;  %6768 = vmatmul.mubr.msk.bf16.gmra.mxu1 %vm3331_vm0, %v7498_v0 }
 0x3a5   : > { %5843 = vst.msk [vmem:[%s9240_s13 + $0x58] sm:$0xff] %vm3331_vm0, %v5715_v22  ;;  %v5713_v25 = vmax.f32 %v5229_v6, 0.0  ;;  %v9308_v30 = vadd.f32 %v4928_v60, %v8656_v38  ;;  %v5250_v54 = vadd.f32 %v6673_v16, %v8731_v5  ;;  %5126 = vmatprep.mubr.bf16.mxu0 %v7501_v39  ;;  %6771 = vmatprep.mubr.msk.bf16.mxu1 %vm3331_vm0, %v7502_v19  ;;  %v7503_v38 = vld [vmem:[%s7587_s27 + $0xc90] ss:$28 sps:$4 sm:$0xff]   ;;  %v7504_v6 = vld [vmem:[%s7587_s27 + $0xd68] ss:$28 sps:$4 sm:$0xff]  }
 0x3a6   : > { %v4930_v23 = vpop.f32.mrf.mxu0  ;;  %v5241_v59 = vpop.f32.mrf.mxu1 }
 0x3a7   : > { %5841 = vst.msk [vmem:[%s9240_s13 + $0x48] sm:$0xff] %vm3331_vm0, %v5713_v25  ;;  %v5718_v45 = vmax.f32 %v5250_v54, 0.0  ;;  %v5242_v32 = vadd.f32 %v5241_v59, %v8713_v62  ;;  %v7511_v25 = vld [vmem:[%s7587_s27 + $0xda4] ss:$28 sps:$4 sm:$0xff]   ;;  %v7512_v54 = vld [vmem:[%s7587_s27 + $0xd38] ss:$28 sps:$4 sm:$0xff]  }
 0x3a8   : > { %v4931_v47 = vpop.f32.mrf.mxu0  ;;  %v6674_v61 = vpop.f32.mrf.mxu1 }
 0x3a9   : > { %5846 = vst.msk [vmem:[%s9240_s13 + $0x70] sm:$0xff] %vm3331_vm0, %v5718_v45  ;;  %v5716_v5 = vmax.f32 %v5242_v32, 0.0  ;;  %v9320_v58 = vadd.f32 %v4931_v47, %v8665_v43  ;;  %v5253_v1 = vadd.f32 %v6674_v61, %v8741_v17 }
 0x3aa   : > { %v4933_v8 = vpop.f32.mrf.mxu0  ;;  %v5244_v9 = vpop.f32.mrf.mxu1 }
 0x3ab   : > { %5844 = vst.msk [vmem:[%s9240_s13 + $0x60] sm:$0xff] %vm3331_vm0, %v5716_v5  ;;  %v5719_v62 = vmax.f32 %v5253_v1, 0.0  ;;  %v5245_v13 = vadd.f32 %v5244_v9, %v8722_v42 }
 0x3ac   : > { %v4936_v0 = vpop.f32.mrf.mxu0  ;;  %5127 = vmatmul.mubr.bf16.gmra.mxu0 %v7499_v46  ;;  %v6677_v10 = vpop.f32.mrf.mxu1  ;;  %6772 = vmatmul.mubr.msk.bf16.gmra.mxu1 %vm3331_vm0, %v7503_v38 }
 0x3ad   : > { %5847 = vst.msk [vmem:[%s9240_s13 + $0x78] sm:$0xff] %vm3331_vm0, %v5719_v62  ;;  %v5717_v43 = vmax.f32 %v5245_v13, 0.0  ;;  %v9332_v17 = vadd.f32 %v4936_v0, %v8674_v48  ;;  %v5266_v15 = vadd.f32 %v6677_v10, %v8771_v49  ;;  %5134 = vmatprep.mubr.bf16.mxu0 %v7506_v2  ;;  %6775 = vmatprep.mubr.msk.bf16.mxu1 %vm3331_vm0, %v7507_v55  ;;  %v7508_v48 = vld [vmem:[%s7587_s27 + $0xd00] ss:$28 sps:$4 sm:$0xff]   ;;  %v7517_v13 = vld [vmem:[%s7587_s27 + $0xda8] ss:$28 sps:$4 sm:$0xff]  }
 0x3ae   : > { %v4938_v42 = vpop.f32.mrf.mxu0  ;;  %v5257_v39 = vpop.f32.mrf.mxu1  ;;  %v7509_v55 = vld [vmem:[%s7587_s27 + $0xda0] ss:$28 sps:$4 sm:$0xff]  }
 0x3af   : > { %5845 = vst.msk [vmem:[%s9240_s13 + $0x68] sm:$0xff] %vm3331_vm0, %v5717_v43  ;;  %v5722_v19 = vmax.f32 %v5266_v15, 0.0  ;;  %v5258_v41 = vadd.f32 %v5257_v39, %v8751_v44  ;;  %v7516_v62 = vld [vmem:[%s7587_s27 + $0xddc] ss:$28 sps:$4 sm:$0xff]  }
 0x3b0   : > { %v4939_v31 = vpop.f32.mrf.mxu0  ;;  %v6678_v22 = vpop.f32.mrf.mxu1 }
 0x3b1   : > { %5850 = vst.msk [vmem:[%s9240_s13 + $0x90] sm:$0xff] %vm3331_vm0, %v5722_v19  ;;  %v5720_v49 = vmax.f32 %v5258_v41, 0.0  ;;  %v9344_v60 = vadd.f32 %v4939_v31, %v8683_v14  ;;  %v5269_v16 = vadd.f32 %v6678_v22, %v8781_v53 }
 0x3b2   : > { %v4941_v23 = vpop.f32.mrf.mxu0  ;;  %v5260_v59 = vpop.f32.mrf.mxu1 }
 0x3b3   : > { %5848 = vst.msk [vmem:[%s9240_s13 + $0x80] sm:$0xff] %vm3331_vm0, %v5720_v49  ;;  %v5723_v44 = vmax.f32 %v5269_v16, 0.0  ;;  %v5261_v45 = vadd.f32 %v5260_v59, %v8761_v34  ;;  %v7518_v49 = vld [vmem:[%s7587_s27 + $0xde0] ss:$28 sps:$4 sm:$0xff]  }
 0x3b4   : > { %v4944_v32 = vpop.f32.mrf.mxu0  ;;  %5135 = vmatmul.mubr.bf16.gmra.mxu0 %v7504_v6  ;;  %v6681_v47 = vpop.f32.mrf.mxu1  ;;  %6776 = vmatmul.mubr.msk.bf16.gmra.mxu1 %vm3331_vm0, %v7508_v48  ;;  %v7514_v48 = vld [vmem:[%s7587_s27 + $0xdd8] ss:$28 sps:$4 sm:$0xff]  }
 0x3b5   : > { %5851 = vst.msk [vmem:[%s9240_s13 + $0x98] sm:$0xff] %vm3331_vm0, %v5723_v44  ;;  %v5721_v14 = vmax.f32 %v5261_v45, 0.0  ;;  %v9356_v53 = vadd.f32 %v4944_v32, %v8692_v35  ;;  %v5282_v61 = vadd.f32 %v6681_v47, %v8811_v50  ;;  %5142 = vmatprep.mubr.bf16.mxu0 %v7511_v25  ;;  %6779 = vmatprep.mubr.msk.bf16.mxu1 %vm3331_vm0, %v7512_v54  ;;  %v7513_v35 = vld [vmem:[%s7587_s27 + $0xd70] ss:$28 sps:$4 sm:$0xff]  }
 0x3b6   : > { %v4946_v34 = vpop.f32.mrf.mxu0  ;;  %v5273_v46 = vpop.f32.mrf.mxu1  ;;  %v10071_v47 = vld [vmem:[#allocation83_spill] sm:$0xff] }
 0x3b7   : > { %5849 = vst.msk [vmem:[%s9240_s13 + $0x88] sm:$0xff] %vm3331_vm0, %v5721_v14  ;;  %v5726_v38 = vmax.f32 %v5282_v61, 0.0  ;;  %v5274_v5 = vadd.f32 %v5273_v46, %v8791_v26 }
 0x3b8   : > { %v4947_v1 = vpop.f32.mrf.mxu0  ;;  %v6682_v2 = vpop.f32.mrf.mxu1 }
 0x3b9   : > { %5854 = vst.msk [vmem:[%s9240_s13 + $0xb0] sm:$0xff] %vm3331_vm0, %v5726_v38  ;;  %v5724_v50 = vmax.f32 %v5274_v5, 0.0  ;;  %v9368_v8 = vadd.f32 %v4947_v1, %v8701_v7  ;;  %v5285_v9 = vadd.f32 %v6682_v2, %v8821_v20  ;;  %v10072_v2 = vld [vmem:[#allocation34_spill] sm:$0xff] }
 0x3ba   : > { %v4949_v0 = vpop.f32.mrf.mxu0  ;;  %v5276_v10 = vpop.f32.mrf.mxu1 }
 0x3bb   : > { %5852 = vst.msk [vmem:[%s9240_s13 + $0xa0] sm:$0xff] %vm3331_vm0, %v5724_v50  ;;  %v5727_v26 = vmax.f32 %v5285_v9, 0.0  ;;  %v5277_v43 = vadd.f32 %v5276_v10, %v8801_v56 }
 0x3bc   : > { %v4952_v15 = vpop.f32.mrf.mxu0  ;;  %5143 = vmatmul.mubr.bf16.gmra.mxu0 %v7509_v55  ;;  %v6685_v42 = vpop.f32.mrf.mxu1  ;;  %6780 = vmatmul.mubr.msk.bf16.gmra.mxu1 %vm3331_vm0, %v7513_v35  ;;  %v10073_v35 = vld [vmem:[#allocation51_spill] sm:$0xff] }
 0x3bd   : > { %5855 = vst.msk [vmem:[%s9240_s13 + $0xb8] sm:$0xff] %vm3331_vm0, %v5727_v26  ;;  %v5725_v7 = vmax.f32 %v5277_v43, 0.0  ;;  %v9380_v20 = vadd.f32 %v4952_v15, %v8710_v63  ;;  %v5298_v39 = vadd.f32 %v6685_v42, %v8851_v29  ;;  %5150 = vmatprep.mubr.bf16.mxu0 %v7516_v62  ;;  %6783 = vmatprep.mubr.msk.bf16.mxu1 %vm3331_vm0, %v7517_v13  ;;  %v10070_v29 = vld [vmem:[#allocation82_spill] sm:$0xff]  ;;  %v10074_v13 = vld [vmem:[#allocation49_spill] sm:$0xff]  ;;  %v10075_v43 = vld [vmem:[#allocation35_spill] sm:$0xff] }
 0x3be   : > { %v4954_v56 = vpop.f32.mrf.mxu0  ;;  %v5289_v19 = vpop.f32.mrf.mxu1  ;;  %v10076_v42 = vld [vmem:[#allocation54_spill] sm:$0xff] }
 0x3bf   : > { %5853 = vst.msk [vmem:[%s9240_s13 + $0xa8] sm:$0xff] %vm3331_vm0, %v5725_v7  ;;  %v5730_v41 = vmax.f32 %v5298_v39, 0.0  ;;  %v5290_v31 = vadd.f32 %v5289_v19, %v8831_v18 }
 0x3c0   : > { %v4955_v22 = vpop.f32.mrf.mxu0  ;;  %v6686_v6 = vpop.f32.mrf.mxu1 }
 0x3c1   : > { %5858 = vst.msk [vmem:[%s9240_s13 + $0xd0] sm:$0xff] %vm3331_vm0, %v5730_v41  ;;  %v5728_v63 = vmax.f32 %v5290_v31, 0.0  ;;  %v9392_v16 = vadd.f32 %v4955_v22, %v10070_v29  ;;  %v5301_v25 = vadd.f32 %v6686_v6, %v8861_v37  ;;  %v10077_v41 = vld [vmem:[#allocation52_spill] sm:$0xff]  ;;  %v10079_v29 = vld [vmem:[#allocation55_spill] sm:$0xff] }
 0x3c2   : > { %v4957_v54 = vpop.f32.mrf.mxu0  ;;  %v5292_v23 = vpop.f32.mrf.mxu1 }
 0x3c3   : > { %5856 = vst.msk [vmem:[%s9240_s13 + $0xc0] sm:$0xff] %vm3331_vm0, %v5728_v63  ;;  %v5731_v59 = vmax.f32 %v5301_v25, 0.0  ;;  %v5293_v18 = vadd.f32 %v5292_v23, %v8841_v40 }
 0x3c4   : > { %v4960_v44 = vpop.f32.mrf.mxu0  ;;  %5151 = vmatmul.mubr.bf16.gmra.mxu0 %v7514_v48  ;;  %v6689_v45 = vpop.f32.mrf.mxu1  ;;  %6784 = vmatmul.mubr.msk.bf16.gmra.mxu1 %vm3331_vm0, %v7518_v49  ;;  %v10078_v49 = vld [vmem:[#allocation36_spill] sm:$0xff] }
 0x3c5   : > { %5859 = vst.msk [vmem:[%s9240_s13 + $0xd8] sm:$0xff] %vm3331_vm0, %v5731_v59  ;;  %v5729_v32 = vmax.f32 %v5293_v18, 0.0  ;;  %v9402_v37 = vadd.f32 %v4960_v44, %v10071_v47  ;;  %v5314_v14 = vadd.f32 %v6689_v45, %v8891_v36  ;;  %v10080_v18 = vld [vmem:[#allocation53_spill] sm:$0xff] }
 0x3c6   : > { %v4962_v61 = vpop.f32.mrf.mxu0  ;;  %v5305_v34 = vpop.f32.mrf.mxu1 }
 0x3c7   : > { %5857 = vst.msk [vmem:[%s9240_s13 + $0xc8] sm:$0xff] %vm3331_vm0, %v5729_v32  ;;  %v5734_v40 = vmax.f32 %v5314_v14, 0.0  ;;  %v5306_v46 = vadd.f32 %v5305_v34, %v8871_v24  ;;  %v10081_v14 = vld [vmem:[#allocation37_spill] sm:$0xff]  ;;  %v10082_v34 = vld [vmem:[#allocation58_spill] sm:$0xff] }
 0x3c8   : > { %v4963_v38 = vpop.f32.mrf.mxu0  ;;  %v6690_v5 = vpop.f32.mrf.mxu1 }
 0x3c9   : > { %5862 = vst.msk [vmem:[%s9240_s13 + $0xf0] sm:$0xff] %vm3331_vm0, %v5734_v40  ;;  %v5732_v1 = vmax.f32 %v5306_v46, 0.0  ;;  %v9411_v55 = vadd.f32 %v4963_v38, %v10072_v2  ;;  %v5317_v50 = vadd.f32 %v6690_v5, %v10073_v35 }
 0x3ca   : > { %v4965_v36 = vpop.f32.mrf.mxu0  ;;  %v5308_v9 = vpop.f32.mrf.mxu1 }
 0x3cb   : > { %5860 = vst.msk [vmem:[%s9240_s13 + $0xe0] sm:$0xff] %vm3331_vm0, %v5732_v1  ;;  %v5735_v62 = vmax.f32 %v5317_v50, 0.0  ;;  %v5309_v0 = vadd.f32 %v5308_v9, %v10074_v13  ;;  %v10083_v1 = vld [vmem:[#allocation56_spill] sm:$0xff]  ;;  %v10084_v9 = vld [vmem:[#allocation38_spill] sm:$0xff]  ;;  %v10085_v13 = vld [vmem:[#allocation59_spill] sm:$0xff] }
 0x3cc   : > { %v4968_v24 = vpop.f32.mrf.mxu0  ;;  %v6693_v10 = vpop.f32.mrf.mxu1 }
 0x3cd   : > { %5863 = vst.msk [vmem:[%s9240_s13 + $0xf8] sm:$0xff] %vm3331_vm0, %v5735_v62  ;;  %v5733_v26 = vmax.f32 %v5309_v0, 0.0  ;;  %v9420_v15 = vadd.f32 %v4968_v24, %v10075_v43  ;;  %v5330_v7 = vadd.f32 %v6693_v10, %v10076_v42  ;;  %v10086_v43 = vld [vmem:[#allocation57_spill] sm:$0xff] }
 0x3ce   : > { %v4970_v39 = vpop.f32.mrf.mxu0  ;;  %v5321_v56 = vpop.f32.mrf.mxu1 }
 0x3cf   : > { %5861 = vst.msk [vmem:[%s9240_s13 + $0xe8] sm:$0xff] %vm3331_vm0, %v5733_v26  ;;  %v5738_v19 = vmax.f32 %v5330_v7, 0.0  ;;  %v5322_v31 = vadd.f32 %v5321_v56, %v10077_v41 }
 0x3d0   : > { %v4971_v22 = vpop.f32.mrf.mxu0  ;;  %v6694_v6 = vpop.f32.mrf.mxu1 }
 0x3d1   : > { %5866 = vst.msk [vmem:[%s9240_s13 + $0x110] sm:$0xff] %vm3331_vm0, %v5738_v19  ;;  %v5736_v48 = vmax.f32 %v5322_v31, 0.0  ;;  %v9429_v63 = vadd.f32 %v4971_v22, %v10078_v49  ;;  %v5333_v25 = vadd.f32 %v6694_v6, %v10079_v29  ;;  %v10087_v19 = vld [vmem:[#allocation39_spill] sm:$0xff]  ;;  %v10088_v31 = vld [vmem:[#allocation62_spill] sm:$0xff]  ;;  %v10089_v29 = vld [vmem:[#allocation60_spill] sm:$0xff] }
 0x3d2   : > { %v4973_v54 = vpop.f32.mrf.mxu0  ;;  %v5324_v23 = vpop.f32.mrf.mxu1 }
 0x3d3   : > { %5864 = vst.msk [vmem:[%s9240_s13 + $0x100] sm:$0xff] %vm3331_vm0, %v5736_v48  ;;  %v5739_v59 = vmax.f32 %v5333_v25, 0.0  ;;  %v5325_v44 = vadd.f32 %v5324_v23, %v10080_v18  ;;  %v10090_v18 = vld [vmem:[#allocation40_spill] sm:$0xff] }
 0x3d4   : > { %v4976_v45 = vpop.f32.mrf.mxu0  ;;  %v6697_v32 = vpop.f32.mrf.mxu1 }
 0x3d5   : > { %5867 = vst.msk [vmem:[%s9240_s13 + $0x118] sm:$0xff] %vm3331_vm0, %v5739_v59  ;;  %v5737_v47 = vmax.f32 %v5325_v44, 0.0  ;;  %v9438_v61 = vadd.f32 %v4976_v45, %v10081_v14  ;;  %v5346_v40 = vadd.f32 %v6697_v32, %v10082_v34  ;;  %v10091_v45 = vld [vmem:[#allocation63_spill] sm:$0xff] }
 0x3d6   : > { %v4978_v46 = vpop.f32.mrf.mxu0  ;;  %v5337_v38 = vpop.f32.mrf.mxu1 }
 0x3d7   : > { %5865 = vst.msk [vmem:[%s9240_s13 + $0x108] sm:$0xff] %vm3331_vm0, %v5737_v47  ;;  %v5742_v5 = vmax.f32 %v5346_v40, 0.0  ;;  %v5338_v2 = vadd.f32 %v5337_v38, %v10083_v1  ;;  %v10092_v40 = vld [vmem:[#allocation61_spill] sm:$0xff] }
 0x3d8   : > { %v4979_v35 = vpop.f32.mrf.mxu0  ;;  %v6698_v50 = vpop.f32.mrf.mxu1 }
 0x3d9   : > { %5870 = vst.msk [vmem:[%s9240_s13 + $0x130] sm:$0xff] %vm3331_vm0, %v5742_v5  ;;  %v5740_v36 = vmax.f32 %v5338_v2, 0.0  ;;  %v9447_v62 = vadd.f32 %v4979_v35, %v10084_v9  ;;  %v5349_v0 = vadd.f32 %v6698_v50, %v10085_v13  ;;  %v10093_v2 = vld [vmem:[#allocation41_spill] sm:$0xff]  ;;  %v10094_v50 = vld [vmem:[#allocation66_spill] sm:$0xff] }
 0x3da   : > { %v4981_v24 = vpop.f32.mrf.mxu0  ;;  %v5340_v10 = vpop.f32.mrf.mxu1 }
 0x3db   : > { %5868 = vst.msk [vmem:[%s9240_s13 + $0x120] sm:$0xff] %vm3331_vm0, %v5740_v36  ;;  %v5743_v26 = vmax.f32 %v5349_v0, 0.0  ;;  %v5341_v42 = vadd.f32 %v5340_v10, %v10086_v43  ;;  %v10095_v24 = vld [vmem:[#allocation64_spill] sm:$0xff] }
 0x3dc   : > { %v4984_v7 = vpop.f32.mrf.mxu0  ;;  %v6701_v39 = vpop.f32.mrf.mxu1 }
 0x3dd   : > { %5871 = vst.msk [vmem:[%s9240_s13 + $0x138] sm:$0xff] %vm3331_vm0, %v5743_v26  ;;  %v5741_v56 = vmax.f32 %v5341_v42, 0.0  ;;  %v9456_v41 = vadd.f32 %v4984_v7, %v10087_v19  ;;  %v5362_v22 = vadd.f32 %v6701_v39, %v10088_v31  ;;  %v10096_v7 = vld [vmem:[#allocation42_spill] sm:$0xff] }
 0x3de   : > { %v4986_v6 = vpop.f32.mrf.mxu0  ;;  %v5353_v48 = vpop.f32.mrf.mxu1 }
 0x3df   : > { %5869 = vst.msk [vmem:[%s9240_s13 + $0x128] sm:$0xff] %vm3331_vm0, %v5741_v56  ;;  %v5746_v49 = vmax.f32 %v5362_v22, 0.0  ;;  %v5354_v25 = vadd.f32 %v5353_v48, %v10089_v29  ;;  %v10097_v56 = vld [vmem:[#allocation67_spill] sm:$0xff]  ;;  %v10098_v48 = vld [vmem:[#allocation65_spill] sm:$0xff] }
 0x3e0   : > { %v4987_v54 = vpop.f32.mrf.mxu0  ;;  %v6702_v23 = vpop.f32.mrf.mxu1 }
 0x3e1   : > { %5874 = vst.msk [vmem:[%s9240_s13 + $0x150] sm:$0xff] %vm3331_vm0, %v5746_v49  ;;  %v5744_v59 = vmax.f32 %v5354_v25, 0.0  ;;  %v9465_v44 = vadd.f32 %v4987_v54, %v10090_v18  ;;  %v5365_v32 = vadd.f32 %v6702_v23, %v10091_v45  ;;  %v10099_v23 = vld [vmem:[#allocation43_spill] sm:$0xff]  ;;  %v10100_v18 = vld [vmem:[#allocation70_spill] sm:$0xff] }
 0x3e2   : > { %v4989_v47 = vpop.f32.mrf.mxu0  ;;  %v5356_v14 = vpop.f32.mrf.mxu1 }
 0x3e3   : > { %5872 = vst.msk [vmem:[%s9240_s13 + $0x140] sm:$0xff] %vm3331_vm0, %v5744_v59  ;;  %v5747_v34 = vmax.f32 %v5365_v32, 0.0  ;;  %v5357_v46 = vadd.f32 %v5356_v14, %v10092_v40 }
 0x3e4   : > { %v4992_v38 = vpop.f32.mrf.mxu0  ;;  %v6705_v5 = vpop.f32.mrf.mxu1 }
 0x3e5   : > { %5875 = vst.msk [vmem:[%s9240_s13 + $0x158] sm:$0xff] %vm3331_vm0, %v5747_v34  ;;  %v5745_v1 = vmax.f32 %v5357_v46, 0.0  ;;  %v9474_v35 = vadd.f32 %v4992_v38, %v10093_v2  ;;  %v5378_v36 = vadd.f32 %v6705_v5, %v10094_v50  ;;  %v10101_v34 = vld [vmem:[#allocation68_spill] sm:$0xff]  ;;  %v10103_v50 = vld [vmem:[#allocation71_spill] sm:$0xff] }
 0x3e6   : > { %v4994_v9 = vpop.f32.mrf.mxu0  ;;  %v5369_v13 = vpop.f32.mrf.mxu1 }
 0x3e7   : > { %5873 = vst.msk [vmem:[%s9240_s13 + $0x148] sm:$0xff] %vm3331_vm0, %v5745_v1  ;;  %v5750_v0 = vmax.f32 %v5378_v36, 0.0  ;;  %v5370_v10 = vadd.f32 %v5369_v13, %v10095_v24  ;;  %v10102_v1 = vld [vmem:[#allocation44_spill] sm:$0xff]  ;;  %v10104_v24 = vld [vmem:[#allocation69_spill] sm:$0xff] }
 0x3e8   : > { %v4995_v26 = vpop.f32.mrf.mxu0  ;;  %v6706_v43 = vpop.f32.mrf.mxu1 }
 0x3e9   : > { %5878 = vst.msk [vmem:[%s9240_s13 + $0x170] sm:$0xff] %vm3331_vm0, %v5750_v0  ;;  %v5748_v42 = vmax.f32 %v5370_v10, 0.0  ;;  %v9483_v39 = vadd.f32 %v4995_v26, %v10096_v7  ;;  %v5381_v19 = vadd.f32 %v6706_v43, %v10097_v56  ;;  %v10105_v7 = vld [vmem:[#allocation45_spill] sm:$0xff] }
 0x3ea   : > { %v4997_v31 = vpop.f32.mrf.mxu0  ;;  %v5372_v22 = vpop.f32.mrf.mxu1 }
 0x3eb   : > { %5876 = vst.msk [vmem:[%s9240_s13 + $0x160] sm:$0xff] %vm3331_vm0, %v5748_v42  ;;  %v5751_v6 = vmax.f32 %v5381_v19, 0.0  ;;  %v5373_v49 = vadd.f32 %v5372_v22, %v10098_v48  ;;  %v10106_v19 = vld [vmem:[#allocation74_spill] sm:$0xff] }
 0x3ec   : > { %v5000_v29 = vpop.f32.mrf.mxu0  ;;  %v6709_v25 = vpop.f32.mrf.mxu1 }
 0x3ed   : > { %5879 = vst.msk [vmem:[%s9240_s13 + $0x178] sm:$0xff] %vm3331_vm0, %v5751_v6  ;;  %v5749_v54 = vmax.f32 %v5373_v49, 0.0  ;;  %v9492_v59 = vadd.f32 %v5000_v29, %v10099_v23  ;;  %v5394_v45 = vadd.f32 %v6709_v25, %v10100_v18  ;;  %v10107_v49 = vld [vmem:[#allocation72_spill] sm:$0xff]  ;;  %v10108_v18 = vld [vmem:[#allocation46_spill] sm:$0xff] }
 0x3ee   : > { %v5002_v32 = vpop.f32.mrf.mxu0  ;;  %v5385_v47 = vpop.f32.mrf.mxu1 }
 0x3ef   : > { %5877 = vst.msk [vmem:[%s9240_s13 + $0x168] sm:$0xff] %vm3331_vm0, %v5749_v54  ;;  %v5754_v14 = vmax.f32 %v5394_v45, 0.0  ;;  %v5386_v40 = vadd.f32 %v5385_v47, %v10101_v34  ;;  %v10109_v32 = vld [vmem:[#allocation75_spill] sm:$0xff] }
 0x3f0   : > { %v5003_v46 = vpop.f32.mrf.mxu0  ;;  %v6710_v38 = vpop.f32.mrf.mxu1 }
 0x3f1   : > { %5882 = vst.msk [vmem:[%s9240_s13 + $0x190] sm:$0xff] %vm3331_vm0, %v5754_v14  ;;  %v5752_v5 = vmax.f32 %v5386_v40, 0.0  ;;  %v9501_v2 = vadd.f32 %v5003_v46, %v10102_v1  ;;  %v5397_v36 = vadd.f32 %v6710_v38, %v10103_v50  ;;  %v10110_v46 = vld [vmem:[#allocation73_spill] sm:$0xff] }
 0x3f2   : > { %v5005_v9 = vpop.f32.mrf.mxu0  ;;  %v5388_v13 = vpop.f32.mrf.mxu1 }
 0x3f3   : > { %5880 = vst.msk [vmem:[%s9240_s13 + $0x180] sm:$0xff] %vm3331_vm0, %v5752_v5  ;;  %v5755_v0 = vmax.f32 %v5397_v36, 0.0  ;;  %v5389_v10 = vadd.f32 %v5388_v13, %v10104_v24  ;;  %v10111_v36 = vld [vmem:[#allocation47_spill] sm:$0xff]  ;;  %v10112_v13 = vld [vmem:[#allocation78_spill] sm:$0xff] }
 0x3f4   : > { %v5008_v26 = vpop.f32.mrf.mxu0  ;;  %v6713_v43 = vpop.f32.mrf.mxu1 }
 0x3f5   : > { %5883 = vst.msk [vmem:[%s9240_s13 + $0x198] sm:$0xff] %vm3331_vm0, %v5755_v0  ;;  %v5753_v42 = vmax.f32 %v5389_v10, 0.0  ;;  %v9510_v56 = vadd.f32 %v5008_v26, %v10105_v7  ;;  %v5410_v31 = vadd.f32 %v6713_v43, %v10106_v19  ;;  %v10113_v43 = vld [vmem:[#allocation76_spill] sm:$0xff] }
 0x3f6   : > { %v5010_v22 = vpop.f32.mrf.mxu0  ;;  %v5401_v6 = vpop.f32.mrf.mxu1 }
 0x3f7   : > { %5881 = vst.msk [vmem:[%s9240_s13 + $0x188] sm:$0xff] %vm3331_vm0, %v5753_v42  ;;  %v5758_v48 = vmax.f32 %v5410_v31, 0.0  ;;  %v5402_v29 = vadd.f32 %v5401_v6, %v10107_v49  ;;  %v10114_v22 = vld [vmem:[#allocation48_spill] sm:$0xff] }
 0x3f8   : > { %v5011_v25 = vpop.f32.mrf.mxu0  ;;  %v6714_v54 = vpop.f32.mrf.mxu1 }
 0x3f9   : > { %5886 = vst.msk [vmem:[%s9240_s13 + $0x1b0] sm:$0xff] %vm3331_vm0, %v5758_v48  ;;  %v5756_v23 = vmax.f32 %v5402_v29, 0.0  ;;  %v9519_v45 = vadd.f32 %v5011_v25, %v10108_v18  ;;  %v5413_v47 = vadd.f32 %v6714_v54, %v10109_v32  ;;  %v10115_v48 = vld [vmem:[#allocation79_spill] sm:$0xff] }
 0x3fa   : > { %v5013_v14 = vpop.f32.mrf.mxu0  ;;  %v5404_v34 = vpop.f32.mrf.mxu1 }
 0x3fb   : > { %5884 = vst.msk [vmem:[%s9240_s13 + $0x1a0] sm:$0xff] %vm3331_vm0, %v5756_v23  ;;  %v5759_v40 = vmax.f32 %v5413_v47, 0.0  ;;  %v5405_v38 = vadd.f32 %v5404_v34, %v10110_v46  ;;  %v10116_v23 = vld [vmem:[#allocation77_spill] sm:$0xff] }
 0x3fc   : > { %v5016_v5 = vpop.f32.mrf.mxu0  ;;  %v6717_v1 = vpop.f32.mrf.mxu1 }
 0x3fd   : > { %5887 = vst.msk [vmem:[%s9240_s13 + $0x1b8] sm:$0xff] %vm3331_vm0, %v5759_v40  ;;  %v5757_v50 = vmax.f32 %v5405_v38, 0.0  ;;  %v9528_v9 = vadd.f32 %v5016_v5, %v10111_v36  ;;  %v5426_v0 = vadd.f32 %v6717_v1, %v10112_v13 }
 0x3fe   : > { %v5018_v24 = vpop.f32.mrf.mxu0  ;;  %v5417_v10 = vpop.f32.mrf.mxu1 }
 0x3ff   : > { %5885 = vst.msk [vmem:[%s9240_s13 + $0x1a8] sm:$0xff] %vm3331_vm0, %v5757_v50  ;;  %v5762_v26 = vmax.f32 %v5426_v0, 0.0  ;;  %v5418_v42 = vadd.f32 %v5417_v10, %v10113_v43  ;;  %v10117_v10 = vld [vmem:[#allocation31_spill] sm:$0xff] }
 0x400   : > { %v5019_v7 = vpop.f32.mrf.mxu0  ;;  %v6718_v19 = vpop.f32.mrf.mxu1 }
 0x401   : > { %5890 = vst.msk [vmem:[%s9240_s13 + $0x1d0] sm:$0xff] %vm3331_vm0, %v5762_v26  ;;  %v5760_v31 = vmax.f32 %v5418_v42, 0.0  ;;  %v9537_v6 = vadd.f32 %v5019_v7, %v10114_v22  ;;  %v5429_v49 = vadd.f32 %v6718_v19, %v10115_v48  ;;  %v10118_v7 = vld [vmem:[#allocation2_spill] sm:$0xff] }
 0x402   : > { %v5021_v29 = vpop.f32.mrf.mxu0  ;;  %v5420_v25 = vpop.f32.mrf.mxu1 }
 0x403   : > { %5888 = vst.msk [vmem:[%s9240_s13 + $0x1c0] sm:$0xff] %vm3331_vm0, %v5760_v31  ;;  %v5763_v54 = vmax.f32 %v5429_v49, 0.0  ;;  %v5421_v18 = vadd.f32 %v5420_v25, %v10116_v23  ;;  %v10119_v23 = vld [vmem:[#allocation3_spill] sm:$0xff] }
 0x404   : > { %v9543_v32 = vpop.f32.mrf.mxu0  ;;  %v6721_v47 = vpop.f32.mrf.mxu1 }
 0x405   : > { %5891 = vst.msk [vmem:[%s9240_s13 + $0x1d8] sm:$0xff] %vm3331_vm0, %v5763_v54  ;;  %v5761_v14 = vmax.f32 %v5421_v18, 0.0  ;;  %v5442_v34 = vadd.f32 %v6721_v47, %v9216_v27 }
 0x406   : > { %v5026_v40 = vpop.f32.mrf.mxu0  ;;  %v5433_v46 = vpop.f32.mrf.mxu1 }
 0x407   : > { %5889 = vst.msk [vmem:[%s9240_s13 + $0x1c8] sm:$0xff] %vm3331_vm0, %v5761_v14  ;;  %v5766_v38 = vmax.f32 %v5442_v34, 0.0  ;;  %v5434_v5 = vadd.f32 %v5433_v46, %v9196_v11 }
 0x408   : > { %v9551_v1 = vpop.f32.mrf.mxu0  ;;  %v6722_v50 = vpop.f32.mrf.mxu1 }
 0x409   : > { %5894 = vst.msk [vmem:[%s9240_s13 + $0x1f0] sm:$0xff] %vm3331_vm0, %v5766_v38  ;;  %v5764_v36 = vmax.f32 %v5434_v5, 0.0  ;;  %v5445_v13 = vadd.f32 %v6722_v50, %v9226_v33 }
 0x40a   : > { %v5029_v0 = vpop.f32.mrf.mxu0  ;;  %v5436_v24 = vpop.f32.mrf.mxu1 }
 0x40b   : > { %5892 = vst.msk [vmem:[%s9240_s13 + $0x1e0] sm:$0xff] %vm3331_vm0, %v5764_v36  ;;  %v5767_v27 = vmax.f32 %v5445_v13, 0.0  ;;  %v5437_v26 = vadd.f32 %v5436_v24, %v10117_v10 }
 0x40c   : > { %v5032_v43 = vpop.f32.mrf.mxu0  ;;  %v6725_v42 = vpop.f32.mrf.mxu1 }
 0x40d   : > { %5895 = vst.msk [vmem:[%s9240_s13 + $0x1f8] sm:$0xff] %vm3331_vm0, %v5767_v27  ;;  %v5765_v11 = vmax.f32 %v5437_v26, 0.0  ;;  %v9562_v19 = vadd.f32 %v5032_v43, %v10118_v7  ;;  %v5458_v31 = vadd.f32 %v6725_v42, %v9260_v12 }
 0x40e   : > { %v5034_v33 = vpop.f32.mrf.mxu0  ;;  %v5449_v22 = vpop.f32.mrf.mxu1 }
 0x40f   : > { %5893 = vst.msk [vmem:[%s9240_s13 + $0x1e8] sm:$0xff] %vm3331_vm0, %v5765_v11  ;;  %v5770_v48 = vmax.f32 %v5458_v31, 0.0  ;;  %v5450_v49 = vadd.f32 %v5449_v22, %v9233_v4 }
 0x410   : > { %v5035_v29 = vpop.f32.mrf.mxu0  ;;  %v6726_v25 = vpop.f32.mrf.mxu1 }
 0x411   : > { %5898 = vst.msk [vmem:[%s9240_s13 + $0x210] sm:$0xff] %vm3331_vm0, %v5770_v48  ;;  %v5768_v54 = vmax.f32 %v5450_v49, 0.0  ;;  %v9571_v18 = vadd.f32 %v5035_v29, %v10119_v23  ;;  %v5461_v47 = vadd.f32 %v6726_v25, %v9272_v52 }
 0x412   : > { %v5037_v12 = vpop.f32.mrf.mxu0  ;;  %v5452_v14 = vpop.f32.mrf.mxu1 }
 0x413   : > { %5896 = vst.msk [vmem:[%s9240_s13 + $0x200] sm:$0xff] %vm3331_vm0, %v5768_v54  ;;  %v5771_v34 = vmax.f32 %v5461_v47, 0.0  ;;  %v5453_v40 = vadd.f32 %v5452_v14, %v9248_v21 }
 0x414   : > { %v9577_v4 = vpop.f32.mrf.mxu0  ;;  %v6729_v46 = vpop.f32.mrf.mxu1 }
 0x415   : > { %5899 = vst.msk [vmem:[%s9240_s13 + $0x218] sm:$0xff] %vm3331_vm0, %v5771_v34  ;;  %v5769_v38 = vmax.f32 %v5453_v40, 0.0  ;;  %v5474_v5 = vadd.f32 %v6729_v46, %v9308_v30 }
 0x416   : > { %v5042_v50 = vpop.f32.mrf.mxu0  ;;  %v5465_v36 = vpop.f32.mrf.mxu1 }
 0x417   : > { %5897 = vst.msk [vmem:[%s9240_s13 + $0x208] sm:$0xff] %vm3331_vm0, %v5769_v38  ;;  %v5774_v52 = vmax.f32 %v5474_v5, 0.0  ;;  %v5466_v13 = vadd.f32 %v5465_v36, %v9284_v57 }
 0x418   : > { %v9585_v0 = vpop.f32.mrf.mxu0  ;;  %v6730_v21 = vpop.f32.mrf.mxu1 }
 0x419   : > { %5902 = vst.msk [vmem:[%s9240_s13 + $0x230] sm:$0xff] %vm3331_vm0, %v5774_v52  ;;  %v5772_v24 = vmax.f32 %v5466_v13, 0.0  ;;  %v5477_v27 = vadd.f32 %v6730_v21, %v9320_v58 }
 0x41a   : > { %v5045_v10 = vpop.f32.mrf.mxu0  ;;  %v5468_v26 = vpop.f32.mrf.mxu1 }
 0x41b   : > { %5900 = vst.msk [vmem:[%s9240_s13 + $0x220] sm:$0xff] %vm3331_vm0, %v5772_v24  ;;  %v5775_v30 = vmax.f32 %v5477_v27, 0.0  ;;  %v5469_v43 = vadd.f32 %v5468_v26, %v9296_v3 }
 0x41c   : > { %v9593_v42 = vpop.f32.mrf.mxu0  ;;  %v6733_v57 = vpop.f32.mrf.mxu1 }
 0x41d   : > { %5903 = vst.msk [vmem:[%s9240_s13 + $0x238] sm:$0xff] %vm3331_vm0, %v5775_v30  ;;  %v5773_v11 = vmax.f32 %v5469_v43, 0.0  ;;  %v5490_v7 = vadd.f32 %v6733_v57, %v9356_v53 }
 0x41e   : > { %v5050_v31 = vpop.f32.mrf.mxu0  ;;  %v5481_v33 = vpop.f32.mrf.mxu1 }
 0x41f   : > { %5901 = vst.msk [vmem:[%s9240_s13 + $0x228] sm:$0xff] %vm3331_vm0, %v5773_v11  ;;  %v5778_v58 = vmax.f32 %v5490_v7, 0.0  ;;  %v5482_v22 = vadd.f32 %v5481_v33, %v9332_v17 }
 0x420   : > { %v9601_v48 = vpop.f32.mrf.mxu0  ;;  %v6734_v3 = vpop.f32.mrf.mxu1 }
 0x421   : > { %5906 = vst.msk [vmem:[%s9240_s13 + $0x250] sm:$0xff] %vm3331_vm0, %v5778_v58  ;;  %v5776_v49 = vmax.f32 %v5482_v22, 0.0  ;;  %v5493_v29 = vadd.f32 %v6734_v3, %v9368_v8 }
 0x422   : > { %v5053_v25 = vpop.f32.mrf.mxu0  ;;  %v5484_v54 = vpop.f32.mrf.mxu1 }
 0x423   : > { %5904 = vst.msk [vmem:[%s9240_s13 + $0x240] sm:$0xff] %vm3331_vm0, %v5776_v49  ;;  %v5779_v53 = vmax.f32 %v5493_v29, 0.0  ;;  %v5485_v23 = vadd.f32 %v5484_v54, %v9344_v60 }
 0x424   : > { %v9609_v47 = vpop.f32.mrf.mxu0  ;;  %v6737_v17 = vpop.f32.mrf.mxu1 }
 0x425   : > { %5907 = vst.msk [vmem:[%s9240_s13 + $0x258] sm:$0xff] %vm3331_vm0, %v5779_v53  ;;  %v5777_v12 = vmax.f32 %v5485_v23, 0.0  ;;  %v5506_v14 = vadd.f32 %v6737_v17, %v9402_v37 }
 0x426   : > { %v5058_v34 = vpop.f32.mrf.mxu0  ;;  %v5497_v40 = vpop.f32.mrf.mxu1 }
 0x427   : > { %5905 = vst.msk [vmem:[%s9240_s13 + $0x248] sm:$0xff] %vm3331_vm0, %v5777_v12  ;;  %v5782_v8 = vmax.f32 %v5506_v14, 0.0  ;;  %v5498_v46 = vadd.f32 %v5497_v40, %v9380_v20 }
 0x428   : > { %v9617_v38 = vpop.f32.mrf.mxu0  ;;  %v6738_v60 = vpop.f32.mrf.mxu1 }
 0x429   : > { %5910 = vst.msk [vmem:[%s9240_s13 + $0x270] sm:$0xff] %vm3331_vm0, %v5782_v8  ;;  %v5780_v5 = vmax.f32 %v5498_v46, 0.0  ;;  %v5509_v50 = vadd.f32 %v6738_v60, %v9411_v55 }
 0x42a   : > { %v5061_v36 = vpop.f32.mrf.mxu0  ;;  %v5500_v52 = vpop.f32.mrf.mxu1 }
 0x42b   : > { %5908 = vst.msk [vmem:[%s9240_s13 + $0x260] sm:$0xff] %vm3331_vm0, %v5780_v5  ;;  %v5783_v37 = vmax.f32 %v5509_v50, 0.0  ;;  %v5501_v13 = vadd.f32 %v5500_v52, %v9392_v16 }
 0x42c   : > { %v9625_v21 = vpop.f32.mrf.mxu0  ;;  %v6741_v20 = vpop.f32.mrf.mxu1 }
 0x42d   : > { %5911 = vst.msk [vmem:[%s9240_s13 + $0x278] sm:$0xff] %vm3331_vm0, %v5783_v37  ;;  %v5781_v24 = vmax.f32 %v5501_v13, 0.0  ;;  %v5522_v27 = vadd.f32 %v6741_v20, %v9438_v61 }
 0x42e   : > { %v5066_v10 = vpop.f32.mrf.mxu0  ;;  %v5513_v26 = vpop.f32.mrf.mxu1 }
 0x42f   : > { %5909 = vst.msk [vmem:[%s9240_s13 + $0x268] sm:$0xff] %vm3331_vm0, %v5781_v24  ;;  %v5786_v55 = vmax.f32 %v5522_v27, 0.0  ;;  %v5514_v30 = vadd.f32 %v5513_v26, %v9420_v15 }
 0x430   : > { %v9633_v43 = vpop.f32.mrf.mxu0  ;;  %v6742_v16 = vpop.f32.mrf.mxu1 }
 0x431   : > { %5914 = vst.msk [vmem:[%s9240_s13 + $0x290] sm:$0xff] %vm3331_vm0, %v5786_v55  ;;  %v5784_v57 = vmax.f32 %v5514_v30, 0.0  ;;  %v5525_v11 = vadd.f32 %v6742_v16, %v9447_v62  ;;  %v10121_v16 = vld [vmem:[#allocation50_spill] sm:$0xff] }
 0x432   : > { %v5069_v7 = vpop.f32.mrf.mxu0  ;;  %v5516_v31 = vpop.f32.mrf.mxu1 }
 0x433   : > { %5912 = vst.msk [vmem:[%s9240_s13 + $0x280] sm:$0xff] %vm3331_vm0, %v5784_v57  ;;  %v5787_v61 = vmax.f32 %v5525_v11, 0.0  ;;  %v5517_v33 = vadd.f32 %v5516_v31, %v9429_v63  ;;  %v5028_v57 = vadd.f32 %v9551_v1, %v10121_v16 }
 0x434   : > { %v9641_v58 = vpop.f32.mrf.mxu0  ;;  %v6745_v15 = vpop.f32.mrf.mxu1 }
 0x435   : > { %5915 = vst.msk [vmem:[%s9240_s13 + $0x298] sm:$0xff] %vm3331_vm0, %v5787_v61  ;;  %v5785_v22 = vmax.f32 %v5517_v33, 0.0  ;;  %v5538_v3 = vadd.f32 %v6745_v15, %v9474_v35 }
 0x436   : > { %v5074_v49 = vpop.f32.mrf.mxu0  ;;  %v5529_v29 = vpop.f32.mrf.mxu1 }
 0x437   : > { %5913 = vst.msk [vmem:[%s9240_s13 + $0x288] sm:$0xff] %vm3331_vm0, %v5785_v22  ;;  %v5790_v62 = vmax.f32 %v5538_v3, 0.0  ;;  %v5530_v25 = vadd.f32 %v5529_v29, %v9456_v41  ;;  %v10122_v22 = vld [vmem:[#allocation4_spill] sm:$0xff] }
 0x438   : > { %v9649_v54 = vpop.f32.mrf.mxu0  ;;  %v6746_v63 = vpop.f32.mrf.mxu1  ;;  %v5041_v3 = vadd.f32 %v9577_v4, %v10122_v22 }
 0x439   : > { %5918 = vst.msk [vmem:[%s9240_s13 + $0x2b0] sm:$0xff] %vm3331_vm0, %v5790_v62  ;;  %v5788_v53 = vmax.f32 %v5530_v25, 0.0  ;;  %v5541_v23 = vadd.f32 %v6746_v63, %v9483_v39 }
 0x43a   : > { %v5077_v17 = vpop.f32.mrf.mxu0  ;;  %v5532_v12 = vpop.f32.mrf.mxu1 }
 0x43b   : > { %5916 = vst.msk [vmem:[%s9240_s13 + $0x2a0] sm:$0xff] %vm3331_vm0, %v5788_v53  ;;  %v5791_v35 = vmax.f32 %v5541_v23, 0.0  ;;  %v5533_v14 = vadd.f32 %v5532_v12, %v9465_v44  ;;  %v10123_v23 = vld [vmem:[#allocation5_spill] sm:$0xff] }
 0x43c   : > { %v9657_v34 = vpop.f32.mrf.mxu0  ;;  %v6749_v41 = vpop.f32.mrf.mxu1  ;;  %v5044_v17 = vadd.f32 %v9585_v0, %v10123_v23 }
 0x43d   : > { %5919 = vst.msk [vmem:[%s9240_s13 + $0x2b8] sm:$0xff] %vm3331_vm0, %v5791_v35  ;;  %v5789_v40 = vmax.f32 %v5533_v14, 0.0  ;;  %v5554_v8 = vadd.f32 %v6749_v41, %v9510_v56  ;;  %v10120_v56 = vld [vmem:[#allocation84_spill] sm:$0xff] }
 0x43e   : > { %v5082_v46 = vpop.f32.mrf.mxu0  ;;  %v5545_v60 = vpop.f32.mrf.mxu1  ;;  %v5025_v20 = vadd.f32 %v9543_v32, %v10120_v56 }
 0x43f   : > { %5917 = vst.msk [vmem:[%s9240_s13 + $0x2a8] sm:$0xff] %vm3331_vm0, %v5789_v40  ;;  %v5794_v39 = vmax.f32 %v5554_v8, 0.0  ;;  %v5546_v5 = vadd.f32 %v5545_v60, %v9492_v59  ;;  %v10124_v46 = vld [vmem:[#allocation8_spill] sm:$0xff] }
 0x440   : > { %v9665_v50 = vpop.f32.mrf.mxu0  ;;  %v6750_v44 = vpop.f32.mrf.mxu1  ;;  %v5057_v60 = vadd.f32 %v9609_v47, %v10124_v46  ;;  %v10126_v47 = vld [vmem:[#allocation9_spill] sm:$0xff] }
 0x441   : > { %5922 = vst.msk [vmem:[%s9240_s13 + $0x2d0] sm:$0xff] %vm3331_vm0, %v5794_v39  ;;  %v5792_v36 = vmax.f32 %v5546_v5, 0.0  ;;  %v5557_v52 = vadd.f32 %v6750_v44, %v9519_v45  ;;  %v10125_v44 = vld [vmem:[#allocation6_spill] sm:$0xff] }
 0x442   : > { %v5085_v37 = vpop.f32.mrf.mxu0  ;;  %v5548_v13 = vpop.f32.mrf.mxu1 }
 0x443   : > { %5920 = vst.msk [vmem:[%s9240_s13 + $0x2c0] sm:$0xff] %vm3331_vm0, %v5792_v36  ;;  %v5795_v24 = vmax.f32 %v5557_v52, 0.0  ;;  %v5549_v59 = vadd.f32 %v5548_v13, %v9501_v2  ;;  %v5049_v36 = vadd.f32 %v9593_v42, %v10125_v44 }
 0x444   : > { %v9675_v27 = vpop.f32.mrf.mxu0  ;;  %v6753_v10 = vpop.f32.mrf.mxu1 }
 0x445   : > { %5923 = vst.msk [vmem:[%s9240_s13 + $0x2d8] sm:$0xff] %vm3331_vm0, %v5795_v24  ;;  %v5793_v26 = vmax.f32 %v5549_v59, 0.0  ;;  %v5570_v55 = vadd.f32 %v6753_v10, %v5025_v20  ;;  %v5060_v20 = vadd.f32 %v9617_v38, %v10126_v47 }
 0x446   : > { %v5090_v45 = vpop.f32.mrf.mxu0  ;;  %v5561_v30 = vpop.f32.mrf.mxu1 }
 0x447   : > { %5921 = vst.msk [vmem:[%s9240_s13 + $0x2c8] sm:$0xff] %vm3331_vm0, %v5793_v26  ;;  %v5798_v32 = vmax.f32 %v5570_v55, 0.0  ;;  %v5562_v11 = vadd.f32 %v5561_v30, %v9528_v9  ;;  %v10127_v26 = vld [vmem:[#allocation7_spill] sm:$0xff] }
 0x448   : > { %v9684_v2 = vpop.f32.mrf.mxu0  ;;  %v6754_v7 = vpop.f32.mrf.mxu1  ;;  %v5052_v42 = vadd.f32 %v9601_v48, %v10127_v26 }
 0x449   : > { %5926 = vst.msk [vmem:[%s9240_s13 + $0x2f0] sm:$0xff] %vm3331_vm0, %v5798_v32  ;;  %v5796_v31 = vmax.f32 %v5562_v11, 0.0  ;;  %v5573_v61 = vadd.f32 %v6754_v7, %v5028_v57  ;;  %v10128_v57 = vld [vmem:[#allocation12_spill] sm:$0xff] }
 0x44a   : > { %v5093_v33 = vpop.f32.mrf.mxu0  ;;  %v5564_v15 = vpop.f32.mrf.mxu1  ;;  %v5073_v38 = vadd.f32 %v9641_v58, %v10128_v57 }
 0x44b   : > { %5924 = vst.msk [vmem:[%s9240_s13 + $0x2e0] sm:$0xff] %vm3331_vm0, %v5796_v31  ;;  %v5799_v1 = vmax.f32 %v5573_v61, 0.0  ;;  %v5565_v49 = vadd.f32 %v5564_v15, %v9537_v6  ;;  %v10129_v61 = vld [vmem:[#allocation10_spill] sm:$0xff] }
 0x44c   : > { %v9693_v9 = vpop.f32.mrf.mxu0  ;;  %v6757_v29 = vpop.f32.mrf.mxu1  ;;  %v5065_v48 = vadd.f32 %v9625_v21, %v10129_v61 }
 0x44d   : > { %5927 = vst.msk [vmem:[%s9240_s13 + $0x2f8] sm:$0xff] %vm3331_vm0, %v5799_v1  ;;  %v5797_v62 = vmax.f32 %v5565_v49, 0.0  ;;  %v5586_v25 = vadd.f32 %v6757_v29, %v5041_v3  ;;  %v10130_v1 = vld [vmem:[#allocation13_spill] sm:$0xff] }
 0x44e   : > { %v5098_v63 = vpop.f32.mrf.mxu0  ;;  %v5577_v53 = vpop.f32.mrf.mxu1  ;;  %v5076_v58 = vadd.f32 %v9649_v54, %v10130_v1 }
 0x44f   : > { %5925 = vst.msk [vmem:[%s9240_s13 + $0x2e8] sm:$0xff] %vm3331_vm0, %v5797_v62  ;;  %v5802_v4 = vmax.f32 %v5586_v25, 0.0  ;;  %v5578_v12 = vadd.f32 %v5577_v53, %v9562_v19  ;;  %v10131_v63 = vld [vmem:[#allocation11_spill] sm:$0xff] }
 0x450   : > { %v9702_v6 = vpop.f32.mrf.mxu0  ;;  %v6758_v35 = vpop.f32.mrf.mxu1  ;;  %v5068_v21 = vadd.f32 %v9633_v43, %v10131_v63 }
 0x451   : > { %5930 = vst.msk [vmem:[%s9240_s13 + $0x310] sm:$0xff] %vm3331_vm0, %v5802_v4  ;;  %v5800_v14 = vmax.f32 %v5578_v12, 0.0  ;;  %v5589_v41 = vadd.f32 %v6758_v35, %v5044_v17  ;;  %v10132_v12 = vld [vmem:[#allocation16_spill] sm:$0xff] }
 0x452   : > { %v5101_v40 = vpop.f32.mrf.mxu0  ;;  %v5580_v8 = vpop.f32.mrf.mxu1  ;;  %v5089_v54 = vadd.f32 %v9675_v27, %v10132_v12  ;;  %v10142_v12 = vld [vmem:[#allocation25_spill] sm:$0xff] }
 0x453   : > { %5928 = vst.msk [vmem:[%s9240_s13 + $0x300] sm:$0xff] %vm3331_vm0, %v5800_v14  ;;  %v5803_v0 = vmax.f32 %v5589_v41, 0.0  ;;  %v5581_v39 = vadd.f32 %v5580_v8, %v9571_v18  ;;  %v10133_v8 = vld [vmem:[#allocation14_spill] sm:$0xff] }
 0x454   : > { %v9711_v19 = vpop.f32.mrf.mxu0  ;;  %v6761_v5 = vpop.f32.mrf.mxu1  ;;  %v5081_v43 = vadd.f32 %v9657_v34, %v10133_v8  ;;  %v10143_v8 = vld [vmem:[#allocation23_spill] sm:$0xff] }
 0x455   : > { %5931 = vst.msk [vmem:[%s9240_s13 + $0x318] sm:$0xff] %vm3331_vm0, %v5803_v0  ;;  %v5801_v52 = vmax.f32 %v5581_v39, 0.0  ;;  %v5602_v37 = vadd.f32 %v6761_v5, %v5057_v60  ;;  %v10134_v5 = vld [vmem:[#allocation17_spill] sm:$0xff] }
 0x456   : > { %v5106_v13 = vpop.f32.mrf.mxu0  ;;  %v5593_v56 = vpop.f32.mrf.mxu1  ;;  %v5092_v27 = vadd.f32 %v9684_v2, %v10134_v5 }
 0x457   : > { %5929 = vst.msk [vmem:[%s9240_s13 + $0x308] sm:$0xff] %vm3331_vm0, %v5801_v52  ;;  %v5806_v18 = vmax.f32 %v5602_v37, 0.0  ;;  %v5594_v24 = vadd.f32 %v5593_v56, %v5049_v36  ;;  %v10135_v13 = vld [vmem:[#allocation15_spill] sm:$0xff] }
 0x458   : > { %v9721_v59 = vpop.f32.mrf.mxu0  ;;  %v6762_v10 = vpop.f32.mrf.mxu1  ;;  %v5084_v34 = vadd.f32 %v9665_v50, %v10135_v13 }
 0x459   : > { %5934 = vst.msk [vmem:[%s9240_s13 + $0x330] sm:$0xff] %vm3331_vm0, %v5806_v18  ;;  %v5804_v55 = vmax.f32 %v5594_v24, 0.0  ;;  %v5605_v45 = vadd.f32 %v6762_v10, %v5060_v20  ;;  %v10136_v24 = vld [vmem:[#allocation20_spill] sm:$0xff] }
 0x45a   : > { %v5109_v30 = vpop.f32.mrf.mxu0  ;;  %v5596_v16 = vpop.f32.mrf.mxu1  ;;  %v5105_v2 = vadd.f32 %v9711_v19, %v10136_v24 }
 0x45b   : > { %5932 = vst.msk [vmem:[%s9240_s13 + $0x320] sm:$0xff] %vm3331_vm0, %v5804_v55  ;;  %v5807_v32 = vmax.f32 %v5605_v45, 0.0  ;;  %v5597_v11 = vadd.f32 %v5596_v16, %v5052_v42  ;;  %v10137_v45 = vld [vmem:[#allocation18_spill] sm:$0xff] }
 0x45c   : > { %v9731_v7 = vpop.f32.mrf.mxu0  ;;  %v6765_v31 = vpop.f32.mrf.mxu1  ;;  %v5097_v50 = vadd.f32 %v9693_v9, %v10137_v45 }
 0x45d   : > { %5935 = vst.msk [vmem:[%s9240_s13 + $0x338] sm:$0xff] %vm3331_vm0, %v5807_v32  ;;  %v5805_v33 = vmax.f32 %v5597_v11, 0.0  ;;  %v5618_v15 = vadd.f32 %v6765_v31, %v5073_v38  ;;  %v10138_v32 = vld [vmem:[#allocation21_spill] sm:$0xff] }
 0x45e   : > { %v5114_v22 = vpop.f32.mrf.mxu0  ;;  %v5609_v3 = vpop.f32.mrf.mxu1  ;;  %v5108_v19 = vadd.f32 %v9721_v59, %v10138_v32 }
 0x45f   : > { %5933 = vst.msk [vmem:[%s9240_s13 + $0x328] sm:$0xff] %vm3331_vm0, %v5805_v33  ;;  %v5810_v49 = vmax.f32 %v5618_v15, 0.0  ;;  %v5610_v29 = vadd.f32 %v5609_v3, %v5065_v48  ;;  %v10139_v33 = vld [vmem:[#allocation19_spill] sm:$0xff] }
 0x460   : > { %v9741_v62 = vpop.f32.mrf.mxu0  ;;  %v6766_v25 = vpop.f32.mrf.mxu1  ;;  %v5100_v9 = vadd.f32 %v9702_v6, %v10139_v33 }
 0x461   : > { %5938 = vst.msk [vmem:[%s9240_s13 + $0x350] sm:$0xff] %vm3331_vm0, %v5810_v49  ;;  %v5808_v53 = vmax.f32 %v5610_v29, 0.0  ;;  %v5621_v23 = vadd.f32 %v6766_v25, %v5076_v58  ;;  %v10140_v58 = vld [vmem:[#allocation24_spill] sm:$0xff] }
 0x462   : > { %v5117_v17 = vpop.f32.mrf.mxu0  ;;  %v5612_v4 = vpop.f32.mrf.mxu1 }
 0x463   : > { %5936 = vst.msk [vmem:[%s9240_s13 + $0x340] sm:$0xff] %vm3331_vm0, %v5808_v53  ;;  %v5811_v35 = vmax.f32 %v5621_v23, 0.0  ;;  %v5613_v14 = vadd.f32 %v5612_v4, %v5068_v21  ;;  %v10141_v21 = vld [vmem:[#allocation22_spill] sm:$0xff] }
 0x464   : > { %v5120_v41 = vpop.f32.mrf.mxu0  ;;  %v6769_v40 = vpop.f32.mrf.mxu1  ;;  %v5113_v53 = vadd.f32 %v9731_v7, %v10141_v21 }
 0x465   : > { %5939 = vst.msk [vmem:[%s9240_s13 + $0x358] sm:$0xff] %vm3331_vm0, %v5811_v35  ;;  %v5809_v46 = vmax.f32 %v5613_v14, 0.0  ;;  %v5634_v60 = vadd.f32 %v6769_v40, %v5089_v54  ;;  %v5121_v49 = vadd.f32 %v5120_v41, %v10140_v58  ;;  %v10149_v58 = vld [vmem:[#allocation80_spill] sm:$0xff] }
 0x466   : > { %v5122_v0 = vpop.f32.mrf.mxu0  ;;  %v5625_v39 = vpop.f32.mrf.mxu1 }
 0x467   : > { %5937 = vst.msk [vmem:[%s9240_s13 + $0x348] sm:$0xff] %vm3331_vm0, %v5809_v46  ;;  %v5814_v44 = vmax.f32 %v5634_v60, 0.0  ;;  %v5626_v36 = vadd.f32 %v5625_v39, %v5081_v43  ;;  %v5116_v43 = vadd.f32 %v9741_v62, %v10143_v8  ;;  %v10144_v39 = vld [vmem:[#allocation28_spill] sm:$0xff] }
 0x468   : > { %v5123_v52 = vpop.f32.mrf.mxu0  ;;  %v6770_v37 = vpop.f32.mrf.mxu1 }
 0x469   : > { %5942 = vst.msk [vmem:[%s9240_s13 + $0x370] sm:$0xff] %vm3331_vm0, %v5814_v44  ;;  %v5812_v56 = vmax.f32 %v5626_v36, 0.0  ;;  %v5637_v47 = vadd.f32 %v6770_v37, %v5092_v27  ;;  %v5124_v54 = vadd.f32 %v5123_v52, %v10142_v12  ;;  %v10145_v37 = vld [vmem:[#allocation26_spill] sm:$0xff] }
 0x46a   : > { %v5125_v20 = vpop.f32.mrf.mxu0  ;;  %v5628_v18 = vpop.f32.mrf.mxu1 }
 0x46b   : > { %5940 = vst.msk [vmem:[%s9240_s13 + $0x360] sm:$0xff] %vm3331_vm0, %v5812_v56  ;;  %v5815_v10 = vmax.f32 %v5637_v47, 0.0  ;;  %v5629_v26 = vadd.f32 %v5628_v18, %v5084_v34  ;;  %v10146_v20 = vld [vmem:[#allocation29_spill] sm:$0xff] }
 0x46c   : > { %v5128_v42 = vpop.f32.mrf.mxu0  ;;  %v6773_v55 = vpop.f32.mrf.mxu1 }
 0x46d   : > { %5943 = vst.msk [vmem:[%s9240_s13 + $0x378] sm:$0xff] %vm3331_vm0, %v5815_v10  ;;  %v5813_v30 = vmax.f32 %v5629_v26, 0.0  ;;  %v5650_v16 = vadd.f32 %v6773_v55, %v5105_v2  ;;  %v5129_v13 = vadd.f32 %v5128_v42, %v10145_v37  ;;  %v10147_v55 = vld [vmem:[#allocation27_spill] sm:$0xff] }
 0x46e   : > { %v5130_v57 = vpop.f32.mrf.mxu0  ;;  %v5641_v38 = vpop.f32.mrf.mxu1 }
 0x46f   : > { %5941 = vst.msk [vmem:[%s9240_s13 + $0x368] sm:$0xff] %vm3331_vm0, %v5813_v30  ;;  %v5818_v11 = vmax.f32 %v5650_v16, 0.0  ;;  %v5642_v31 = vadd.f32 %v5641_v38, %v5097_v50 }
 0x470   : > { %v5131_v61 = vpop.f32.mrf.mxu0  ;;  %v6774_v48 = vpop.f32.mrf.mxu1 }
 0x471   : > { %5946 = vst.msk [vmem:[%s9240_s13 + $0x390] sm:$0xff] %vm3331_vm0, %v5818_v11  ;;  %v5816_v15 = vmax.f32 %v5642_v31, 0.0  ;;  %v5653_v22 = vadd.f32 %v6774_v48, %v5108_v19  ;;  %v5132_v45 = vadd.f32 %v5131_v61, %v10147_v55  ;;  %v10148_v11 = vld [vmem:[#allocation30_spill] sm:$0xff] }
 0x472   : > { %v5133_v3 = vpop.f32.mrf.mxu0  ;;  %v5644_v1 = vpop.f32.mrf.mxu1 }
 0x473   : > { %5944 = vst.msk [vmem:[%s9240_s13 + $0x380] sm:$0xff] %vm3331_vm0, %v5816_v15  ;;  %v5819_v59 = vmax.f32 %v5653_v22, 0.0  ;;  %v5645_v29 = vadd.f32 %v5644_v1, %v5100_v9 }
 0x474   : > { %v5136_v25 = vpop.f32.mrf.mxu0  ;;  %v6777_v63 = vpop.f32.mrf.mxu1 }
 0x475   : > { %5947 = vst.msk [vmem:[%s9240_s13 + $0x398] sm:$0xff] %vm3331_vm0, %v5819_v59  ;;  %v5817_v6 = vmax.f32 %v5645_v29, 0.0  ;;  %v5666_v23 = vadd.f32 %v6777_v63, %v5121_v49  ;;  %v5137_v5 = vadd.f32 %v5136_v25, %v10144_v39 }
 0x476   : > { %v5138_v17 = vpop.f32.mrf.mxu0  ;;  %v5657_v4 = vpop.f32.mrf.mxu1 }
 0x477   : > { %5945 = vst.msk [vmem:[%s9240_s13 + $0x388] sm:$0xff] %vm3331_vm0, %v5817_v6  ;;  %v5822_v35 = vmax.f32 %v5666_v23, 0.0  ;;  %v5658_v14 = vadd.f32 %v5657_v4, %v5113_v53 }
 0x478   : > { %v5139_v41 = vpop.f32.mrf.mxu0  ;;  %v6778_v40 = vpop.f32.mrf.mxu1 }
 0x479   : > { %5950 = vst.msk [vmem:[%s9240_s13 + $0x3b0] sm:$0xff] %vm3331_vm0, %v5822_v35  ;;  %v5820_v7 = vmax.f32 %v5658_v14, 0.0  ;;  %v5669_v46 = vadd.f32 %v6778_v40, %v5124_v54  ;;  %v5140_v18 = vadd.f32 %v5139_v41, %v10146_v20 }
 0x47a   : > { %v5141_v60 = vpop.f32.mrf.mxu0  ;;  %v5660_v0 = vpop.f32.mrf.mxu1 }
 0x47b   : > { %5948 = vst.msk [vmem:[%s9240_s13 + $0x3a0] sm:$0xff] %vm3331_vm0, %v5820_v7  ;;  %v5823_v27 = vmax.f32 %v5669_v46, 0.0  ;;  %v5661_v44 = vadd.f32 %v5660_v0, %v5116_v43 }
 0x47c   : > { %v5144_v36 = vpop.f32.mrf.mxu0  ;;  %v6781_v52 = vpop.f32.mrf.mxu1 }
 0x47d   : > { %5951 = vst.msk [vmem:[%s9240_s13 + $0x3b8] sm:$0xff] %vm3331_vm0, %v5823_v27  ;;  %v5821_v62 = vmax.f32 %v5661_v44, 0.0  ;;  %v5682_v34 = vadd.f32 %v6781_v52, %v5137_v5  ;;  %v5145_v31 = vadd.f32 %v5144_v36, %v10148_v11 }
 0x47e   : > { %v5146_v56 = vpop.f32.mrf.mxu0  ;;  %v5673_v47 = vpop.f32.mrf.mxu1 }
 0x47f   : > { %5949 = vst.msk [vmem:[%s9240_s13 + $0x3a8] sm:$0xff] %vm3331_vm0, %v5821_v62  ;;  %v5826_v24 = vmax.f32 %v5682_v34, 0.0  ;;  %v5674_v2 = vadd.f32 %v5673_v47, %v5129_v13 }
 0x480   : > { %v5147_v10 = vpop.f32.mrf.mxu0  ;;  %v6782_v26 = vpop.f32.mrf.mxu1 }
 0x481   : > { %5954 = vst.msk [vmem:[%s9240_s13 + $0x3d0] sm:$0xff] %vm3331_vm0, %v5826_v24  ;;  %v5824_v42 = vmax.f32 %v5674_v2, 0.0  ;;  %v5685_v50 = vadd.f32 %v6782_v26, %v5140_v18  ;;  %v5148_v49 = vadd.f32 %v5147_v10, %v10149_v58 }
 0x482   : > { %v5149_v30 = vpop.f32.mrf.mxu0  ;;  %v5676_v16 = vpop.f32.mrf.mxu1 }
 0x483   : > { %5952 = vst.msk [vmem:[%s9240_s13 + $0x3c0] sm:$0xff] %vm3331_vm0, %v5824_v42  ;;  %v5827_v57 = vmax.f32 %v5685_v50, 0.0  ;;  %v5677_v38 = vadd.f32 %v5676_v16, %v5132_v45 }
 0x484   : > { %v5152_v32 = vpop.f32.mrf.mxu0  ;;  %v6785_v19 = vpop.f32.mrf.mxu1 }
 0x485   : > { %5955 = vst.msk [vmem:[%s9240_s13 + $0x3d8] sm:$0xff] %vm3331_vm0, %v5827_v57  ;;  %v5825_v48 = vmax.f32 %v5677_v38, 0.0  ;;  %v5153_v61 = vadd.f32 %v5152_v32, %v9213_v28 }
 0x486   : > { %v5154_v33 = vpop.f32.mrf.mxu0  ;;  %v5689_v9 = vpop.f32.mrf.mxu1 }
 0x487   : > { %5953 = vst.msk [vmem:[%s9240_s13 + $0x3c8] sm:$0xff] %vm3331_vm0, %v5825_v48  ;;  %v5698_v15 = vadd.f32 %v6785_v19, %v5153_v61  ;;  %v5690_v22 = vadd.f32 %v5689_v9, %v5145_v31 }
 0x488   : > { %v5155_v3 = vpop.f32.mrf.mxu0  ;;  %v6786_v1 = vpop.f32.mrf.mxu1 }
 0x489   : > { %v5830_v59 = vmax.f32 %v5698_v15, 0.0  ;;  %v5828_v29 = vmax.f32 %v5690_v22, 0.0  ;;  %v5156_v25 = vadd.f32 %v5155_v3, %v9223_v51 }
 0x48a   : > { %v5157_v63 = vpop.f32.mrf.mxu0  ;;  %v5692_v21 = vpop.f32.mrf.mxu1 }
 0x48b   : > { %5958 = vst.msk [vmem:[%s9240_s13 + $0x3f0] sm:$0xff] %vm3331_vm0, %v5830_v59  ;;  %5956 = vst.msk [vmem:[%s9240_s13 + $0x3e0] sm:$0xff] %vm3331_vm0, %v5828_v29  ;;  %v5701_v28 = vadd.f32 %v6786_v1, %v5156_v25  ;;  %v5693_v53 = vadd.f32 %v5692_v21, %v5148_v49 }
 0x48d   : > { %v5831_v6 = vmax.f32 %v5701_v28, 0.0  ;;  %v5829_v23 = vmax.f32 %v5693_v53, 0.0 }
 0x48f   : > { %5959 = vst.msk [vmem:[%s9240_s13 + $0x3f8] sm:$0xff] %vm3331_vm0, %v5831_v6  ;;  %5957 = vst.msk [vmem:[%s9240_s13 + $0x3e8] sm:$0xff] %vm3331_vm0, %v5829_v23 }
 0x490 PF: > { %s13_s12 = sadd.s32 1, %s7527_s12  }
 0x491   : > { %p10_p4 = scmp.ge.s32.totalorder %s13_s12, 4  }
 0x493   :  { %12 = sbr.rel (!%p10_p4) target bundleno = 1 (0x1), region = 62 }

// kernel: encoder_forward.9
= control target key start
LH: loop header
LB: loop body
LE: loop exit
PB: predicated region body
PF: predicated region fallthrough
CT: control target
= control target key end

     0   :  { %9 = vsyncpa [#allocation3], 0  ;;  %s1244_s0 = inlined_call_operand.vmem [shape: f32[2,256,32], index: 0, kind: input, shape index: {}]   ;;  %s1245_s1 = inlined_call_operand.vmem [shape: f32[2,256,32], index: 1, kind: input, shape index: {}]   ;;  %s1246_s2 = inlined_call_operand.vmem [shape: bf16[32,32], index: 2, kind: input, shape index: {}]   ;;  %s1247_s3 = inlined_call_operand.vmem [shape: f32[1,32], index: 3, kind: input, shape index: {}]   ;;  %s1248_s4 = inlined_call_operand.hbm [shape: f32[2,256,32], index: 4, kind: output, shape index: {}]  }
   0x1   :  { %11 = vsyncpa [#allocation3 + $0x1], 0  ;;  %s941_s15 = smov 0   ;;  %s943_s16 = smov 0  }
   0x2   :  { %s945_s17 = smov 0   ;;  %s947_s18 = smov 0  }
   0x3 LB: > { %s962_s19 = sadd.s32 4294967295, %s911_s18   ;;  %s714_s20 = sadd.s32 4294967294, %s911_s18   ;;  %s911_s18 = sphi %s947_s18, %s1254_s18   ;;  %s907_s17 = sphi %s945_s17, %s1253_s17   ;;  %s903_s16 = sphi %s943_s16, %s1252_s16   ;;  %s899_s15 = sphi %s941_s15, %s1251_s15  }
   0x4   : > { %s966_s21 = sadd.s32 1, %s911_s18   ;;  %s118_s22 = sadd.s32 1, %s907_s17 }
   0x5   : > { %s115_s23 = ssub.s32 %s911_s18, %s966_s21  ;;  %p128_p0 = scmp.ne.s32.totalorder %s907_s17, %s903_s16 }
   0x6   : > { %p116_p1 = scmp.eq.s32.totalorder %s115_s23, 0  ;;  %p129_p2 = scmp.eq.s32.totalorder %s962_s19, 1 }
   0x7   : > { %p134_p3 = scmp.ne.s32.totalorder %s903_s16, %s899_s15  ;;  %p135_p4 = scmp.eq.s32.totalorder %s714_s20, 1 }
   0x8   : > { %s977_s24 = scalar_select %p116_p1, %s907_s17, %s118_s22  }
   0x9   : > { %p979_p5 = por %p129_p2, %p128_p0  ;;  %p983_p6 = por %p135_p4, %p134_p3 }
   0xa   : > { %p717_p7 = scmp.ge.s32.totalorder %s911_s18, 1  ;;  %p175_p8 = scmp.lt.s32.totalorder %s911_s18, 3 }
   0xc   : > { %p176_p9 = pnand %p717_p7, %p175_p8 }
   0xd   : > { %p206_p10 = scmp.lt.s32.totalorder (!%p176_p9), %s962_s19, 1  ;;  %s203_s13 = sand.u32 (!%p176_p9), 1, %s903_s16  }
   0xe   : > { %179 = sbr.rel (%p176_p9) target bundleno = 274 (0x112), region = 36  ;;  %s718_s22 = sshll.u32 (!%p176_p9), %s203_s13, 8 }
   0xf   : > { %s1098_s23 = scalar_lea.vmem (!%p176_p9), [#allocation2], %s718_s22  ;;  %s749_s27 = sshll.u32 (!%p176_p9), %s962_s19, 12 }
  0x10   : > { %s640_s28 = sshll.u32 (!%p176_p9), %s1098_s23, 4  ;;  %s913_s7 = smov (!%p176_p9), [#allocation2]   ;;  %s1194_s28 = int_to_ptr.vmem [resolvable:$true] %s640_s28 }
  0x11   : > { %s855_s8 = sshll.u32 (!%p176_p9), %s913_s7, 4  ;;  %s856_s8 = int_to_ptr.vmem [resolvable:$false] %s855_s8 }
  0x12   : > { %p858_p0 = scmp.lt.s32.totalorder (!%p176_p9), %s1194_s28, %s856_s8 }
  0x13   : > { %v849_v0 = vld [vmem:[%s1246_s2 + $0x8] sm:$0xff]   ;;  %v850_v1 = vld [vmem:[%s1246_s2] sm:$0xff]   ;;  %s207_s5 = scalar_select %p206_p10, %s962_s19, 1  ;;  %vm352_vm0 = vcmask 261120  }
  0x14   : > { %768 = vmatprep.subr.bf16.mxu0 %v849_v0  ;;  %804 = vmatprep.subr.bf16.mxu1 %v849_v0  ;;  %s1204_s19 = scalar_lea.sflag [#allocation3], %s203_s13 }
  0x15   : > { %769 = vmatpush3.bf16.msra.mxu0 %v849_v0  ;;  %806 = vmatpush3.bf16.msra.mxu1 %v849_v0  ;;  %s747_s6 = sshll.u32 %s207_s5, 8  ;;  %s1192_s5 = scalar_lea.hbm %s1248_s4, %s749_s27 }
  0x16   : > { %770 = vmatprep.subr.bf16.mxu0 %v850_v1  ;;  %805 = vmatprep.subr.bf16.mxu1 %v850_v1  ;;  %s1000_s9 = scalar_lea.vmem %s1244_s0, %s747_s6  ;;  %s1005_s12 = scalar_lea.vmem %s1245_s1, %s747_s6 }
  0x17   : > { %v217_v2 = vld [vmem:[%s1000_s9] sm:$0xff]  ;;  %v218_v3 = vld [vmem:[%s1000_s9 + $0x8] sm:$0xff]  ;;  %v219_v12 = vld [vmem:[%s1000_s9 + $0x10] sm:$0xff]  ;;  %s851_s6 = scalar_lea.vmem %s1194_s28, 4096 }
  0x18   : > { %v249_v4 = vld [vmem:[%s1005_s12] sm:$0xff]  ;;  %v250_v5 = vld [vmem:[%s1005_s12 + $0x8] sm:$0xff]  ;;  %v220_v15 = vld [vmem:[%s1000_s9 + $0x18] sm:$0xff]  ;;  %p852_p11 = scmp.ne.s32.totalorder %s1194_s28, %s851_s6 }
  0x19   : > { %771 = vmatpush3.bf16.msra.mxu0 %v850_v1  ;;  %807 = vmatpush3.bf16.msra.mxu1 %v850_v1  ;;  %v281_v6 = vadd.f32 %v249_v4, %v217_v2  ;;  %v233_v7 = vld [vmem:[%s1000_s9 + $0x80] sm:$0xff]  ;;  %v234_v8 = vld [vmem:[%s1000_s9 + $0x88] sm:$0xff]  ;;  %v282_v9 = vadd.f32 %v250_v5, %v218_v3  ;;  %v251_v16 = vld [vmem:[%s1005_s12 + $0x10] sm:$0xff] }
  0x1a   : > { %v265_v10 = vld [vmem:[%s1005_s12 + $0x80] sm:$0xff]  ;;  %v266_v11 = vld [vmem:[%s1005_s12 + $0x88] sm:$0xff]  ;;  %v252_v17 = vld [vmem:[%s1005_s12 + $0x18] sm:$0xff]  ;;  %v283_v19 = vadd.f32 %v251_v16, %v219_v12  ;;  %p853_p12 = pnand %p852_p11, %p979_p5 }
  0x1b   : > { %v297_v13 = vadd.f32 %v265_v10, %v233_v7  ;;  %v298_v14 = vadd.f32 %v266_v11, %v234_v8  ;;  %v313_v18 = vpack.c.bf16 %v282_v9, %v281_v6  ;;  %v284_v20 = vadd.f32 %v252_v17, %v220_v15  ;;  %v235_v21 = vld [vmem:[%s1000_s9 + $0x90] sm:$0xff]  ;;  %v236_v22 = vld [vmem:[%s1000_s9 + $0x98] sm:$0xff]  ;;  %v221_v27 = vld [vmem:[%s1000_s9 + $0x20] sm:$0xff] }
  0x1c   : > { %v267_v23 = vld [vmem:[%s1005_s12 + $0x90] sm:$0xff]  ;;  %v268_v25 = vld [vmem:[%s1005_s12 + $0x98] sm:$0xff]  ;;  %v222_v28 = vld [vmem:[%s1000_s9 + $0x28] sm:$0xff]  ;;  %p854_p13 = pneg %p853_p12 }
  0x1d   : > { %v321_v24 = vpack.c.bf16 %v298_v14, %v297_v13  ;;  %v299_v26 = vadd.f32 %v267_v23, %v235_v21  ;;  %772 = vmatprep.mubr.msk.bf16.mxu0 %vm352_vm0, %v313_v18  ;;  %v314_v29 = vpack.c.bf16 %v284_v20, %v283_v19  ;;  %v300_v30 = vadd.f32 %v268_v25, %v236_v22  ;;  %v253_v31 = vld [vmem:[%s1005_s12 + $0x20] sm:$0xff]  ;;  %v254_v32 = vld [vmem:[%s1005_s12 + $0x28] sm:$0xff]  ;;  %v223_v42 = vld [vmem:[%s1000_s9 + $0x30] sm:$0xff] }
  0x1e   : > { %v237_v33 = vld [vmem:[%s1000_s9 + $0xa0] sm:$0xff]  ;;  %v285_v34 = vadd.f32 %v253_v31, %v221_v27  ;;  %v286_v35 = vadd.f32 %v254_v32, %v222_v28  ;;  %v238_v36 = vld [vmem:[%s1000_s9 + $0xa8] sm:$0xff]  ;;  %v224_v43 = vld [vmem:[%s1000_s9 + $0x38] sm:$0xff] }
  0x1f   : > { %788 = vmatprep.mubr.msk.bf16.mxu1 %vm352_vm0, %v321_v24  ;;  %v269_v37 = vld [vmem:[%s1005_s12 + $0xa0] sm:$0xff]  ;;  %v270_v38 = vld [vmem:[%s1005_s12 + $0xa8] sm:$0xff]  ;;  %773 = vmatmul.mubr.msk.bf16.vlgmr.msra.gmra.mxu0 %vm352_vm0, %v314_v29  ;;  %v322_v39 = vpack.c.bf16 %v300_v30, %v299_v26  ;;  %v255_v44 = vld [vmem:[%s1005_s12 + $0x30] sm:$0xff] }
  0x20   : > { %v301_v40 = vadd.f32 %v269_v37, %v237_v33  ;;  %v302_v41 = vadd.f32 %v270_v38, %v238_v36  ;;  %v315_v45 = vpack.c.bf16 %v286_v35, %v285_v34  ;;  %v256_v46 = vld [vmem:[%s1005_s12 + $0x38] sm:$0xff]  ;;  %v287_v47 = vadd.f32 %v255_v44, %v223_v42  ;;  %v239_v48 = vld [vmem:[%s1000_s9 + $0xb0] sm:$0xff]  ;;  %v225_v54 = vld [vmem:[%s1000_s9 + $0x40] sm:$0xff] }
  0x21   : > { %v240_v49 = vld [vmem:[%s1000_s9 + $0xb8] sm:$0xff]  ;;  %789 = vmatmul.mubr.msk.bf16.vlgmr.msra.gmra.mxu1 %vm352_vm0, %v322_v39  ;;  %v288_v51 = vadd.f32 %v256_v46, %v224_v43  ;;  %v271_v52 = vld [vmem:[%s1005_s12 + $0xb0] sm:$0xff]  ;;  %v226_v57 = vld [vmem:[%s1000_s9 + $0x48] sm:$0xff] }
  0x22   : > { %v323_v50 = vpack.c.bf16 %v302_v41, %v301_v40  ;;  %v272_v53 = vld [vmem:[%s1005_s12 + $0xb8] sm:$0xff]  ;;  %776 = vmatprep.mubr.msk.bf16.mxu0 %vm352_vm0, %v315_v45  ;;  %v303_v55 = vadd.f32 %v271_v52, %v239_v48  ;;  %v257_v58 = vld [vmem:[%s1005_s12 + $0x40] sm:$0xff]  ;;  %v258_v59 = vld [vmem:[%s1005_s12 + $0x48] sm:$0xff] }
  0x23   : > { %v304_v56 = vadd.f32 %v272_v53, %v240_v49  ;;  %v316_v60 = vpack.c.bf16 %v288_v51, %v287_v47  ;;  %v289_v61 = vadd.f32 %v257_v58, %v225_v54  ;;  %v290_v62 = vadd.f32 %v258_v59, %v226_v57  ;;  %v241_v63 = vld [vmem:[%s1000_s9 + $0xc0] sm:$0xff]  ;;  %v242_v0 = vld [vmem:[%s1000_s9 + $0xc8] sm:$0xff]  ;;  %v227_v4 = vld [vmem:[%s1000_s9 + $0x50] sm:$0xff] }
  0x24   : > { %792 = vmatprep.mubr.msk.bf16.mxu1 %vm352_vm0, %v323_v50  ;;  %v273_v1 = vld [vmem:[%s1005_s12 + $0xc0] sm:$0xff]  ;;  %v274_v2 = vld [vmem:[%s1005_s12 + $0xc8] sm:$0xff]  ;;  %v228_v5 = vld [vmem:[%s1000_s9 + $0x58] sm:$0xff] }
  0x25   : > { %v305_v3 = vadd.f32 %v273_v1, %v241_v63  ;;  %v324_v6 = vpack.c.bf16 %v304_v56, %v303_v55  ;;  %v317_v7 = vpack.c.bf16 %v290_v62, %v289_v61  ;;  %v306_v8 = vadd.f32 %v274_v2, %v242_v0  ;;  %v259_v9 = vld [vmem:[%s1005_s12 + $0x50] sm:$0xff]  ;;  %v260_v10 = vld [vmem:[%s1005_s12 + $0x58] sm:$0xff]  ;;  %v229_v18 = vld [vmem:[%s1000_s9 + $0x60] sm:$0xff] }
  0x26   : > { %v243_v11 = vld [vmem:[%s1000_s9 + $0xd0] sm:$0xff]  ;;  %v244_v12 = vld [vmem:[%s1000_s9 + $0xd8] sm:$0xff]  ;;  %v291_v16 = vadd.f32 %v259_v9, %v227_v4  ;;  %v292_v17 = vadd.f32 %v260_v10, %v228_v5  ;;  %v230_v19 = vld [vmem:[%s1000_s9 + $0x68] sm:$0xff] }
  0x27   : > { %v275_v13 = vld [vmem:[%s1005_s12 + $0xd0] sm:$0xff]  ;;  %v276_v14 = vld [vmem:[%s1005_s12 + $0xd8] sm:$0xff]  ;;  %777 = vmatmul.mubr.msk.bf16.gmra.mxu0 %vm352_vm0, %v316_v60  ;;  %v325_v15 = vpack.c.bf16 %v306_v8, %v305_v3  ;;  %v261_v20 = vld [vmem:[%s1005_s12 + $0x60] sm:$0xff] }
  0x28   : > { %780 = vmatprep.mubr.msk.bf16.mxu0 %vm352_vm0, %v317_v7  ;;  %v262_v21 = vld [vmem:[%s1005_s12 + $0x68] sm:$0xff]  ;;  %v293_v22 = vadd.f32 %v261_v20, %v229_v18  ;;  %v245_v23 = vld [vmem:[%s1000_s9 + $0xe0] sm:$0xff]  ;;  %v307_v25 = vadd.f32 %v275_v13, %v243_v11  ;;  %v308_v26 = vadd.f32 %v276_v14, %v244_v12  ;;  %v318_v32 = vpack.c.bf16 %v292_v17, %v291_v16  ;;  %v231_v33 = vld [vmem:[%s1000_s9 + $0x70] sm:$0xff] }
  0x29   : > { %v246_v24 = vld [vmem:[%s1000_s9 + $0xe8] sm:$0xff]  ;;  %793 = vmatmul.mubr.msk.bf16.gmra.mxu1 %vm352_vm0, %v324_v6  ;;  %v294_v27 = vadd.f32 %v262_v21, %v230_v19  ;;  %v277_v28 = vld [vmem:[%s1005_s12 + $0xe0] sm:$0xff]  ;;  %v232_v35 = vld [vmem:[%s1000_s9 + $0x78] sm:$0xff] }
  0x2a   : > { %v278_v29 = vld [vmem:[%s1005_s12 + $0xe8] sm:$0xff]  ;;  %796 = vmatprep.mubr.msk.bf16.mxu1 %vm352_vm0, %v325_v15  ;;  %v309_v30 = vadd.f32 %v277_v28, %v245_v23  ;;  %v263_v36 = vld [vmem:[%s1005_s12 + $0x70] sm:$0xff]  ;;  %v264_v37 = vld [vmem:[%s1005_s12 + $0x78] sm:$0xff]  ;;  %v326_v38 = vpack.c.bf16 %v308_v26, %v307_v25 }
  0x2b   : > { %v310_v31 = vadd.f32 %v278_v29, %v246_v24  ;;  %v319_v34 = vpack.c.bf16 %v294_v27, %v293_v22  ;;  %v247_v39 = vld [vmem:[%s1000_s9 + $0xf0] sm:$0xff]  ;;  %v248_v41 = vld [vmem:[%s1000_s9 + $0xf8] sm:$0xff]  ;;  %v295_v44 = vadd.f32 %v263_v36, %v231_v33  ;;  %v296_v45 = vadd.f32 %v264_v37, %v232_v35  ;;  %v1091_v50 = vld [vmem:[%s1247_s3] ss:$0 sm:$0xff]  ;;  %s857_s9 = scalar_lea.vmem %s856_s8, 8192 }
  0x2c   : > { %v279_v42 = vld [vmem:[%s1005_s12 + $0xf0] sm:$0xff]  ;;  %v280_v43 = vld [vmem:[%s1005_s12 + $0xf8] sm:$0xff]  ;;  %p859_p1 = scmp.lt.s32.totalorder %s857_s9, %s851_s6 }
  0x2d   : > { %v327_v40 = vpack.c.bf16 %v310_v31, %v309_v30  ;;  %v311_v46 = vadd.f32 %v279_v42, %v247_v39  ;;  %v312_v47 = vadd.f32 %v280_v43, %v248_v41  ;;  %v320_v48 = vpack.c.bf16 %v296_v45, %v295_v44 }
  0x2e   : > { %p860_p2 = por %p859_p1, %p858_p0 }
  0x2f   : > { %781 = vmatmul.mubr.msk.bf16.gmra.mxu0 %vm352_vm0, %v318_v32  ;;  %v328_v49 = vpack.c.bf16 %v312_v47, %v311_v46 }
  0x30   : > { %784 = vmatprep.mubr.msk.bf16.mxu0 %vm352_vm0, %v319_v34  ;;  %p861_p3 = pnand %p860_p2, %p854_p13 }
  0x31   : > { %797 = vmatmul.mubr.msk.bf16.gmra.mxu1 %vm352_vm0, %v326_v38 }
  0x32   : > { %800 = vmatprep.mubr.msk.bf16.mxu1 %vm352_vm0, %v327_v40 }
  0x37   : > { %785 = vmatmul.mubr.msk.bf16.gmra.mxu0 %vm352_vm0, %v320_v48 }
  0x39   : > { %801 = vmatmul.mubr.msk.bf16.gmra.mxu1 %vm352_vm0, %v328_v49 }
  0xdf   : > { %v774_v51 = vpop.f32.mrf.mxu0 }
  0xe0   : > { %v444_v52 = vadd.f32 %v774_v51, %v1091_v50 }
  0xe1   : > { %v790_v53 = vpop.f32.mrf.mxu1  ;;  %v435_v54 = vpop.f32.mrf.mxu0 }
  0xe2   : > { %v564_v55 = vmax.f32 %v444_v52, 0.0  ;;  %v508_v56 = vadd.f32 %v790_v53, %v1091_v50  ;;  %v436_v57 = vadd.f32 %v1091_v50, %v435_v54 }
  0xe3   : > { %v499_v58 = vpop.f32.mrf.mxu1  ;;  %v775_v59 = vpop.f32.mrf.mxu0 }
  0xe4   : > { %596 = vst.msk [vmem:[%s1098_s23 + $0x10] sm:$0xff] %vm352_vm0, %v564_v55  ;;  %v580_v60 = vmax.f32 %v508_v56, 0.0  ;;  %v562_v61 = vmax.f32 %v436_v57, 0.0  ;;  %v500_v62 = vadd.f32 %v1091_v50, %v499_v58  ;;  %v447_v63 = vadd.f32 %v775_v59, %v1091_v50 }
  0xe5   : > { %v791_v0 = vpop.f32.mrf.mxu1  ;;  %v438_v1 = vpop.f32.mrf.mxu0 }
  0xe6   : > { %612 = vst.msk [vmem:[%s1098_s23 + $0x90] sm:$0xff] %vm352_vm0, %v580_v60  ;;  %594 = vst.msk [vmem:[%s1098_s23] sm:$0xff] %vm352_vm0, %v562_v61  ;;  %v578_v2 = vmax.f32 %v500_v62, 0.0  ;;  %v565_v3 = vmax.f32 %v447_v63, 0.0  ;;  %v511_v4 = vadd.f32 %v791_v0, %v1091_v50  ;;  %v439_v5 = vadd.f32 %v1091_v50, %v438_v1 }
  0xe7   : > { %v502_v6 = vpop.f32.mrf.mxu1  ;;  %v778_v7 = vpop.f32.mrf.mxu0 }
  0xe8   : > { %610 = vst.msk [vmem:[%s1098_s23 + $0x80] sm:$0xff] %vm352_vm0, %v578_v2  ;;  %597 = vst.msk [vmem:[%s1098_s23 + $0x18] sm:$0xff] %vm352_vm0, %v565_v3  ;;  %v581_v8 = vmax.f32 %v511_v4, 0.0  ;;  %v563_v9 = vmax.f32 %v439_v5, 0.0  ;;  %v503_v10 = vadd.f32 %v1091_v50, %v502_v6  ;;  %v460_v11 = vadd.f32 %v778_v7, %v1091_v50 }
  0xe9   : > { %v794_v12 = vpop.f32.mrf.mxu1  ;;  %v451_v13 = vpop.f32.mrf.mxu0 }
  0xea   : > { %613 = vst.msk [vmem:[%s1098_s23 + $0x98] sm:$0xff] %vm352_vm0, %v581_v8  ;;  %595 = vst.msk [vmem:[%s1098_s23 + $0x8] sm:$0xff] %vm352_vm0, %v563_v9  ;;  %v579_v14 = vmax.f32 %v503_v10, 0.0  ;;  %v568_v15 = vmax.f32 %v460_v11, 0.0  ;;  %v524_v16 = vadd.f32 %v794_v12, %v1091_v50  ;;  %v452_v17 = vadd.f32 %v1091_v50, %v451_v13 }
  0xeb   : > { %v515_v18 = vpop.f32.mrf.mxu1  ;;  %v779_v19 = vpop.f32.mrf.mxu0 }
  0xec   : > { %611 = vst.msk [vmem:[%s1098_s23 + $0x88] sm:$0xff] %vm352_vm0, %v579_v14  ;;  %600 = vst.msk [vmem:[%s1098_s23 + $0x30] sm:$0xff] %vm352_vm0, %v568_v15  ;;  %v584_v20 = vmax.f32 %v524_v16, 0.0  ;;  %v566_v21 = vmax.f32 %v452_v17, 0.0  ;;  %v516_v22 = vadd.f32 %v1091_v50, %v515_v18  ;;  %v463_v23 = vadd.f32 %v779_v19, %v1091_v50 }
  0xed   : > { %v795_v24 = vpop.f32.mrf.mxu1  ;;  %v454_v25 = vpop.f32.mrf.mxu0 }
  0xee   : > { %616 = vst.msk [vmem:[%s1098_s23 + $0xb0] sm:$0xff] %vm352_vm0, %v584_v20  ;;  %598 = vst.msk [vmem:[%s1098_s23 + $0x20] sm:$0xff] %vm352_vm0, %v566_v21  ;;  %v582_v26 = vmax.f32 %v516_v22, 0.0  ;;  %v569_v27 = vmax.f32 %v463_v23, 0.0  ;;  %v527_v28 = vadd.f32 %v795_v24, %v1091_v50  ;;  %v455_v29 = vadd.f32 %v1091_v50, %v454_v25 }
  0xef   : > { %v518_v30 = vpop.f32.mrf.mxu1  ;;  %v782_v31 = vpop.f32.mrf.mxu0 }
  0xf0   : > { %614 = vst.msk [vmem:[%s1098_s23 + $0xa0] sm:$0xff] %vm352_vm0, %v582_v26  ;;  %601 = vst.msk [vmem:[%s1098_s23 + $0x38] sm:$0xff] %vm352_vm0, %v569_v27  ;;  %v585_v32 = vmax.f32 %v527_v28, 0.0  ;;  %v567_v33 = vmax.f32 %v455_v29, 0.0  ;;  %v519_v34 = vadd.f32 %v1091_v50, %v518_v30  ;;  %v476_v35 = vadd.f32 %v782_v31, %v1091_v50 }
  0xf1   : > { %v798_v36 = vpop.f32.mrf.mxu1  ;;  %v467_v37 = vpop.f32.mrf.mxu0 }
  0xf2   : > { %617 = vst.msk [vmem:[%s1098_s23 + $0xb8] sm:$0xff] %vm352_vm0, %v585_v32  ;;  %599 = vst.msk [vmem:[%s1098_s23 + $0x28] sm:$0xff] %vm352_vm0, %v567_v33  ;;  %v583_v38 = vmax.f32 %v519_v34, 0.0  ;;  %v572_v39 = vmax.f32 %v476_v35, 0.0  ;;  %v540_v40 = vadd.f32 %v798_v36, %v1091_v50  ;;  %v468_v41 = vadd.f32 %v1091_v50, %v467_v37 }
  0xf3   : > { %v531_v42 = vpop.f32.mrf.mxu1  ;;  %v783_v43 = vpop.f32.mrf.mxu0 }
  0xf4   : > { %615 = vst.msk [vmem:[%s1098_s23 + $0xa8] sm:$0xff] %vm352_vm0, %v583_v38  ;;  %604 = vst.msk [vmem:[%s1098_s23 + $0x50] sm:$0xff] %vm352_vm0, %v572_v39  ;;  %v588_v44 = vmax.f32 %v540_v40, 0.0  ;;  %v570_v45 = vmax.f32 %v468_v41, 0.0  ;;  %v532_v46 = vadd.f32 %v1091_v50, %v531_v42  ;;  %v479_v47 = vadd.f32 %v783_v43, %v1091_v50 }
  0xf5   : > { %v799_v48 = vpop.f32.mrf.mxu1  ;;  %v470_v49 = vpop.f32.mrf.mxu0 }
  0xf6   : > { %620 = vst.msk [vmem:[%s1098_s23 + $0xd0] sm:$0xff] %vm352_vm0, %v588_v44  ;;  %602 = vst.msk [vmem:[%s1098_s23 + $0x40] sm:$0xff] %vm352_vm0, %v570_v45  ;;  %v586_v51 = vmax.f32 %v532_v46, 0.0  ;;  %v573_v52 = vmax.f32 %v479_v47, 0.0  ;;  %v543_v53 = vadd.f32 %v799_v48, %v1091_v50  ;;  %v471_v54 = vadd.f32 %v1091_v50, %v470_v49 }
  0xf7   : > { %v534_v55 = vpop.f32.mrf.mxu1  ;;  %v786_v56 = vpop.f32.mrf.mxu0 }
  0xf8   : > { %618 = vst.msk [vmem:[%s1098_s23 + $0xc0] sm:$0xff] %vm352_vm0, %v586_v51  ;;  %605 = vst.msk [vmem:[%s1098_s23 + $0x58] sm:$0xff] %vm352_vm0, %v573_v52  ;;  %v589_v57 = vmax.f32 %v543_v53, 0.0  ;;  %v571_v58 = vmax.f32 %v471_v54, 0.0  ;;  %v535_v59 = vadd.f32 %v1091_v50, %v534_v55  ;;  %v492_v60 = vadd.f32 %v786_v56, %v1091_v50 }
  0xf9   : > { %v802_v61 = vpop.f32.mrf.mxu1  ;;  %v483_v62 = vpop.f32.mrf.mxu0 }
  0xfa   : > { %621 = vst.msk [vmem:[%s1098_s23 + $0xd8] sm:$0xff] %vm352_vm0, %v589_v57  ;;  %603 = vst.msk [vmem:[%s1098_s23 + $0x48] sm:$0xff] %vm352_vm0, %v571_v58  ;;  %v587_v63 = vmax.f32 %v535_v59, 0.0  ;;  %v576_v0 = vmax.f32 %v492_v60, 0.0  ;;  %v556_v1 = vadd.f32 %v802_v61, %v1091_v50  ;;  %v484_v2 = vadd.f32 %v1091_v50, %v483_v62 }
  0xfb   : > { %v547_v3 = vpop.f32.mrf.mxu1  ;;  %v787_v4 = vpop.f32.mrf.mxu0 }
  0xfc   : > { %619 = vst.msk [vmem:[%s1098_s23 + $0xc8] sm:$0xff] %vm352_vm0, %v587_v63  ;;  %608 = vst.msk [vmem:[%s1098_s23 + $0x70] sm:$0xff] %vm352_vm0, %v576_v0  ;;  %v592_v5 = vmax.f32 %v556_v1, 0.0  ;;  %v574_v6 = vmax.f32 %v484_v2, 0.0  ;;  %v548_v7 = vadd.f32 %v1091_v50, %v547_v3  ;;  %v495_v8 = vadd.f32 %v787_v4, %v1091_v50 }
  0xfd   : > { %v803_v9 = vpop.f32.mrf.mxu1  ;;  %v486_v10 = vpop.f32.mrf.mxu0 }
  0xfe   : > { %624 = vst.msk [vmem:[%s1098_s23 + $0xf0] sm:$0xff] %vm352_vm0, %v592_v5  ;;  %606 = vst.msk [vmem:[%s1098_s23 + $0x60] sm:$0xff] %vm352_vm0, %v574_v6  ;;  %v590_v11 = vmax.f32 %v548_v7, 0.0  ;;  %v577_v12 = vmax.f32 %v495_v8, 0.0  ;;  %v559_v13 = vadd.f32 %v803_v9, %v1091_v50  ;;  %v487_v14 = vadd.f32 %v1091_v50, %v486_v10 }
  0xff   : > { %v550_v15 = vpop.f32.mrf.mxu1 }
 0x100   : > { %622 = vst.msk [vmem:[%s1098_s23 + $0xe0] sm:$0xff] %vm352_vm0, %v590_v11  ;;  %609 = vst.msk [vmem:[%s1098_s23 + $0x78] sm:$0xff] %vm352_vm0, %v577_v12  ;;  %v593_v16 = vmax.f32 %v559_v13, 0.0  ;;  %v575_v17 = vmax.f32 %v487_v14, 0.0  ;;  %v551_v18 = vadd.f32 %v1091_v50, %v550_v15 }
 0x102   : > { %625 = vst.msk [vmem:[%s1098_s23 + $0xf8] sm:$0xff] %vm352_vm0, %v593_v16  ;;  %607 = vst.msk [vmem:[%s1098_s23 + $0x68] sm:$0xff] %vm352_vm0, %v575_v17  ;;  %v591_v19 = vmax.f32 %v551_v18, 0.0 }
 0x104   : > { %623 = vst.msk [vmem:[%s1098_s23 + $0xe8] sm:$0xff] %vm352_vm0, %v591_v19 }
 0x105   : > { %864 = shalt.err (!%p861_p3)
}
 0x106   : > { %s865_s10 = scalar_lea.hbm %s1192_s5, 4096  ;;  %s869_s13 = scalar_lea.hbm %s1248_s4, 8192 }
 0x107   : > { %p866_p4 = scmp.ne.s32.totalorder %s1192_s5, %s865_s10  ;;  %p870_p9 = scmp.lt.s32.totalorder %s1192_s5, %s1248_s4 }
 0x108   : > { %p871_p10 = scmp.lt.s32.totalorder %s869_s13, %s865_s10 }
 0x109   : > { %p867_p7 = pnand %p866_p4, %p979_p5 }
 0x10a   : > { %p872_p11 = por %p871_p10, %p870_p9 }
 0x10b   : > { %p868_p8 = pneg %p867_p7 }
 0x10d   : > { %p873_p12 = pnand %p872_p11, %p868_p8 }
 0x10f   : > { %876 = shalt.err (!%p873_p12)
}
 0x110   : > { %s914_s22 = smov 128   ;;  %s915_s23 = smov 8  }
 0x111   : > { %808 = dma.vmem_to_hbm [thread:$0]  (%p979_p5), %s1194_s28, 4096, %s1192_s5, %s1204_s19, %s914_s22, %s914_s22, %s915_s23  }
 0x112 PF: > { %p814_p13 = scmp.ge.s32.totalorder %s911_s18, 2  ;;  %s655_s27 = sand.u32 1, %s899_s15  }
 0x113   : > { %s656_s29 = scalar_lea.sflag [#allocation3], %s655_s27 }
 0x114   : > { %p811_p0 = pnand %p814_p13, %p983_p6 }
 0x116   : > { %p812_p1 = pneg %p811_p0 }
 0x118   : > { %894 = dma.done.wait (%p812_p1), %s656_s29, 4096  }
 0x119   : > { %896 = vsyncadd (%p812_p1), %s656_s29, 4294963200  ;;  %p14_p2 = scmp.ge.s32.totalorder %s966_s21, 4   ;;  %s1251_s15 = smov %s903_s16 }
 0x11a   : > { %s1252_s16 = smov %s907_s17  ;;  %s1253_s17 = smov %s977_s24 }
 0x11b   : > { %s1254_s18 = smov %s966_s21  ;;  %16 = sbr.rel (!%p14_p2) target bundleno = 3 (0x3), region = 74 }
 0x120   :  { %661 = vsyncpa [#allocation3], 1 }
 0x121   :  { %663 = vsyncpa [#allocation3 + $0x1], 1 }

</bundles_post_ra>
